<compile_context>
chip_gen: v6e
topology: v6e:2x2x1
jax: 0.10.0
libtpu: 0.0.40
codegen_flags: <defaults>
</compile_context>

<pallas_src>
import functools
import math

import jax
import jax.numpy as jnp
from jax.experimental import pallas as pl
from jax.experimental.pallas import tpu as pltpu


# -----------------------------------------------------------------------------
# Fused encoder-layer Pallas kernel
# -----------------------------------------------------------------------------
def _encoder_layer_kernel(
    x_ref,          # (T, H)   bf16 residual stream
    bias_ref,       # (1, T)   f32 additive key-padding bias (0 or -1e9)
    ln1_g_ref, ln1_b_ref,            # (1, H) f32
    wqkv_ref,       # (H, 3*inner)   bf16 (q-part pre-scaled by 1/sqrt(DH))
    bqkv_ref,       # (1, 3*inner)   f32  (q-part pre-scaled)
    wo_ref,         # (inner, H)     bf16
    bo_ref,         # (1, H)         f32
    ln2_g_ref, ln2_b_ref,            # (1, H) f32
    wc1_ref,        # (ks, H, latent)   bf16
    bc1_ref,        # (1, latent)       f32
    wc2_ref,        # (ks, latent, H)   bf16
    bc2_ref,        # (1, H)            f32
    lnf_g_ref, lnf_b_ref,            # (1, H) f32 final LayerNorm (last layer)
    o_ref,          # (T, H)   bf16
    *, num_heads, dim_head, ks, eps, apply_last_norm, approx_recip,
):
    T, H = x_ref.shape
    inner = num_heads * dim_head
    pad = ks // 2

    def layernorm(v, g_ref, b_ref):
        mu = jnp.mean(v, axis=-1, keepdims=True)
        var = jnp.mean(jnp.square(v - mu), axis=-1, keepdims=True)
        return (v - mu) * jax.lax.rsqrt(var + eps) * g_ref[...] + b_ref[...]

    def softmax_rows(s):
        m = jnp.max(s, axis=-1, keepdims=True)
        p = jnp.exp(s - m)
        denom = jnp.sum(p, axis=-1, keepdims=True)
        if approx_recip:
            return p * pl.reciprocal(denom, approx=True)   # EUP slot
        return p / denom                                   # exact (validation)

    x = x_ref[...].astype(jnp.float32)            # residual stream in f32 VMEM
    bias = bias_ref[...].astype(jnp.float32)      # (1, T)

    # ---- pre-norm multi-head self-attention (fused QKV, bf16 MXU operands) ----
    h_bf = layernorm(x, ln1_g_ref, ln1_b_ref).astype(jnp.bfloat16)
    qkv = (
        jnp.dot(h_bf, wqkv_ref[...], preferred_element_type=jnp.float32)
        + bqkv_ref[...]
    )
    qkv_bf = qkv.astype(jnp.bfloat16)             # (T, 3*inner)

    y = x + bo_ref[...]
    for hh in range(num_heads):                   # static unroll over heads
        lo = hh * dim_head
        qh = qkv_bf[:, lo:lo + dim_head]
        kh = qkv_bf[:, inner + lo:inner + lo + dim_head]
        vh = qkv_bf[:, 2 * inner + lo:2 * inner + lo + dim_head]
        # q @ k^T (scale already baked into q weights) + key-padding bias.
        s = jax.lax.dot_general(
            qh, kh, (((1,), (1,)), ((), ())),
            preferred_element_type=jnp.float32,
        ) + bias                                   # (T, T) f32
        p = softmax_rows(s).astype(jnp.bfloat16)
        ho = jnp.dot(p, vh, preferred_element_type=jnp.float32).astype(jnp.bfloat16)
        # Output projection folded into the head loop: no concat, no (T,inner)
        # intermediate, accumulates straight into the residual.
        y = y + jnp.dot(ho, wo_ref[lo:lo + dim_head, :],
                        preferred_element_type=jnp.float32)
    x = y

    # ---- pre-norm conv1d -> ReLU -> conv1d FFN as ks accumulated matmuls ----
    # 'same' zero padding realized with pltpu.roll (XLU) + static halo mask,
    # instead of im2col concats / giant (T, ks*C) temporaries.
    ri = jax.lax.broadcasted_iota(jnp.int32, (T, 1), 0)

    def conv1d_same(v_f32, w_ref, b_ref):
        cout = w_ref.shape[2]
        acc = jnp.zeros((T, cout), jnp.float32) + b_ref[...]
        for kk in range(ks):
            sh = pad - kk                          # out[t] uses v[t - sh]
            rolled = v_f32 if (sh % T) == 0 else pltpu.roll(v_f32, sh % T, 0)
            valid = (ri >= sh) & (ri < T + sh)     # zero the wrapped halo rows
            tap = jnp.where(valid, rolled, 0.0).astype(jnp.bfloat16)
            acc = acc + jnp.dot(tap, w_ref[kk], preferred_element_type=jnp.float32)
        return acc

    h2 = layernorm(x, ln2_g_ref, ln2_b_ref)
    c1 = jnp.maximum(conv1d_same(h2, wc1_ref, bc1_ref), 0.0)   # (T, latent)
    c2 = conv1d_same(c1, wc2_ref, bc2_ref)                     # (T, H)
    x = x + c2

    if apply_last_norm:
        x = layernorm(x, lnf_g_ref, lnf_b_ref)

    o_ref[...] = x.astype(o_ref.dtype)


def encoder_layer(x, mask_bias, lp, lnf_g, lnf_b, cfg, *, apply_last_norm):
    B, T, H = x.shape
    NH, DH = cfg["fs2_heads"], cfg["fs2_dim_head"]
    latent = cfg["fs2_latent_dim"]
    ks = cfg["fs2_kernel_size"]
    inner = NH * DH

    kern = functools.partial(
        _encoder_layer_kernel,
        num_heads=NH, dim_head=DH, ks=ks, eps=1e-5,
        apply_last_norm=apply_last_norm, approx_recip=True,
    )

    def const_spec(shape):
        nd = len(shape)
        # Grid-invariant weights: single-buffered to halve their VMEM footprint
        # (matters on v7x's 64 MiB VMEM at production sizes).
        return pl.BlockSpec(shape, lambda b, _nd=nd: (0,) * _nd,
                            pipeline_mode=pl.Buffered(1))

    weights = (
        lp["ln1_g"], lp["ln1_b"],
        lp["w_qkv"], lp["b_qkv"],
        lp["wo"], lp["bo"],
        lp["ln2_g"], lp["ln2_b"],
        lp["wc1"], lp["bc1"],
        lp["wc2"], lp["bc2"],
        lnf_g, lnf_b,
    )

    # --- VMEM budget + cost estimate (advisory) ---
    def nbytes(a):
        return int(a.size) * jnp.dtype(a.dtype).itemsize

    weight_bytes = sum(nbytes(w) for w in weights)
    act_bytes = T * H * 4
    scratch_est = (8 * act_bytes + 2 * T * T * 4 + 4 * T * max(latent, H) * 4)
    est = weight_bytes + scratch_est + 4 * (T * H * 2)
    vmem_limit = int(min(56 * 2 ** 20, max(32 * 2 ** 20, 2 * est)))

    flops = B * (
        2 * T * H * 3 * inner          # fused QKV
        + NH * 4 * T * T * DH          # qk^T + p@v
        + 2 * T * inner * H            # output projection
        + 2 * ks * T * H * latent      # conv1
        + 2 * ks * T * latent * H      # conv2
    )
    transcendentals = B * (NH * T * T + 4 * T)
    bytes_accessed = 2 * B * T * H * 2 + B * T * 4 + weight_bytes

    return pl.pallas_call(
        kern,
        out_shape=jax.ShapeDtypeStruct((B, T, H), x.dtype),
        grid=(B,),
        in_specs=[
            pl.BlockSpec((None, T, H), lambda b: (b, 0, 0)),   # x (residual)
            pl.BlockSpec((None, 1, T), lambda b: (b, 0, 0)),   # key-pad bias
            const_spec((1, H)), const_spec((1, H)),            # ln1
            const_spec((H, 3 * inner)), const_spec((1, 3 * inner)),  # fused qkv
            const_spec((inner, H)), const_spec((1, H)),        # out proj
            const_spec((1, H)), const_spec((1, H)),            # ln2
            const_spec((ks, H, latent)), const_spec((1, latent)),    # conv1
            const_spec((ks, latent, H)), const_spec((1, H)),         # conv2
            const_spec((1, H)), const_spec((1, H)),            # final LayerNorm
        ],
        out_specs=pl.BlockSpec((None, T, H), lambda b: (b, 0, 0)),
        compiler_params=pltpu.CompilerParams(
            dimension_semantics=("parallel",),
            vmem_limit_bytes=vmem_limit,
        ),
        cost_estimate=pl.CostEstimate(
            flops=int(flops),
            transcendentals=int(transcendentals),
            bytes_accessed=int(bytes_accessed),
        ),
    )(x, mask_bias, *weights)


# -----------------------------------------------------------------------------
# Model glue (parameter init + forward)
# -----------------------------------------------------------------------------
def sinusoidal_pe(T, H, dtype=jnp.float32):
    pos = jnp.arange(T, dtype=jnp.float32)[:, None]
    i = jnp.arange(H // 2, dtype=jnp.float32)[None, :]
    angle = pos / jnp.power(10000.0, 2.0 * i / H)
    pe = jnp.zeros((T, H), jnp.float32)
    pe = pe.at[:, 0::2].set(jnp.sin(angle))
    pe = pe.at[:, 1::2].set(jnp.cos(angle))
    return pe[None].astype(dtype)  # [1, T, H]


def init_params(key, vocab_size, cfg):
    H = cfg["fs2_hidden_size"]
    NH, DH = cfg["fs2_heads"], cfg["fs2_dim_head"]
    L = cfg["fs2_lays"]
    latent = cfg["fs2_latent_dim"]
    ks = cfg["fs2_kernel_size"]
    inner = NH * DH
    scale = 1.0 / math.sqrt(DH)

    keys = iter(jax.random.split(key, 8 * L + 16))
    nrm = lambda shape, s=0.02: s * jax.random.normal(next(keys), shape, jnp.float32)

    params = {}
    emb = nrm((vocab_size, H))
    params["txt_embed"] = emb.at[0].set(0.0)  # padding_idx=0

    layers = []
    for _ in range(L):
        w_qkv = nrm((H, 3 * inner))
        # Bake 1/sqrt(dim_head) score scaling into the q projection.
        w_qkv = w_qkv.at[:, :inner].multiply(scale)
        b_qkv = jnp.zeros((1, 3 * inner), jnp.float32)
        layers.append({
            "ln1_g": jnp.ones((1, H), jnp.float32), "ln1_b": jnp.zeros((1, H), jnp.float32),
            "w_qkv": w_qkv.astype(jnp.bfloat16), "b_qkv": b_qkv,
            "wo": nrm((inner, H)).astype(jnp.bfloat16), "bo": jnp.zeros((1, H), jnp.float32),
            "ln2_g": jnp.ones((1, H), jnp.float32), "ln2_b": jnp.zeros((1, H), jnp.float32),
            # conv weights stored per-tap: (ks, Cin, Cout), bf16 MXU operands.
            "wc1": nrm((ks, H, latent)).astype(jnp.bfloat16),
            "bc1": jnp.zeros((1, latent), jnp.float32),
            "wc2": nrm((ks, latent, H)).astype(jnp.bfloat16),
            "bc2": jnp.zeros((1, H), jnp.float32),
        })
    params["layers"] = layers

    params["last_norm_g"] = jnp.ones((1, H), jnp.float32)
    params["last_norm_b"] = jnp.zeros((1, H), jnp.float32)

    params["w_energy"] = nrm((1, H))
    params["b_energy"] = jnp.zeros((1, H), jnp.float32)
    params["w_key_shift"] = nrm((1, H))
    params["b_key_shift"] = jnp.zeros((1, H), jnp.float32)
    params["w_speed"] = nrm((1, H))
    params["b_speed"] = jnp.zeros((1, H), jnp.float32)
    return params


def fastspeech2_forward(params, cfg, txt_tokens, mel2ph, key_shift, speed, energy):
    H = cfg["fs2_hidden_size"]
    L = cfg["fs2_lays"]
    xscale = math.sqrt(H)
    B, T = txt_tokens.shape

    # Embedding lookup (data-dependent gather — XLA glue).
    txt_embed = jnp.take(params["txt_embed"], txt_tokens, axis=0)      # [B, T, H]

    # femb: xscale * x + positional encoding (tiny elementwise — XLA fuses it).
    pe = sinusoidal_pe(T, H)
    # Residual stream carried in bf16 through the encoder (halves HBM traffic).
    x = (txt_embed * xscale + pe).astype(jnp.bfloat16)

    # Key-padding additive bias (0 for real tokens, -1e9 for padding).
    mask_bias = jnp.where(txt_tokens != 0, 0.0, -1e9).astype(jnp.float32)[:, None, :]

    # Encoder: one fused Pallas kernel per layer (last layer also applies last_norm).
    for li, lp in enumerate(params["layers"]):
        x = encoder_layer(
            x, mask_bias, lp,
            params["last_norm_g"], params["last_norm_b"], cfg,
            apply_last_norm=(li == L - 1),
        )

    # F.pad(encoder_out, [0,0,1,0]): prepend one zero timestep, then gather with mel2ph.
    x_pad = jnp.pad(x, ((0, 0), (1, 0), (0, 0)))                       # [B, T+1, H]
    condition = jnp.take_along_axis(x_pad, mel2ph[..., None], axis=1)  # [B, Tm, H]
    condition = condition.astype(jnp.float32)

    # Variance / key_shift / speed Linear(1, H) embeddings — pure elementwise,
    # left to XLA fusion (cheaper than a standalone pallas_call).
    condition = condition + energy[..., None] * params["w_energy"] + params["b_energy"]
    condition = condition + key_shift[..., None] * params["w_key_shift"] + params["b_key_shift"]
    condition = condition + speed[..., None] * params["w_speed"] + params["b_speed"]
    return condition


# -----------------------------------------------------------------------------
# Demo
# -----------------------------------------------------------------------------
if __name__ == "__main__":
    # Lane/sublane friendly small config (H, latent multiples of 128; T mult of 8).
    cfg = dict(
        fs2_hidden_size=128,
        fs2_lays=2,
        fs2_heads=4,
        fs2_dim_head=32,
        fs2_latent_dim=256,
        fs2_kernel_size=9,
        use_energy_embed=True,
        use_breathiness_embed=False,
        use_key_shift_embed=True,
        use_speed_embed=True,
    )
    vocab_size = 40
    B, T_txt, T_mel = 2, 16, 32

    root = jax.random.PRNGKey(0)
    kp, kt, km, ke, kk, ks_ = jax.random.split(root, 6)

    params = init_params(kp, vocab_size, cfg)

    txt_tokens = jax.random.randint(kt, (B, T_txt), 1, vocab_size).astype(jnp.int32)
    txt_tokens = txt_tokens.at[:, -3:].set(0)  # some padding
    mel2ph = jax.random.randint(km, (B, T_mel), 0, T_txt + 1).astype(jnp.int32)
    energy = jax.random.normal(ke, (B, T_mel), jnp.float32)
    key_shift = jax.random.normal(kk, (B, T_mel), jnp.float32)
    speed = jax.random.uniform(ks_, (B, T_mel), jnp.float32, 0.5, 1.5)

    fwd = jax.jit(
        lambda p, tt, m2p, kshift, spd, en: fastspeech2_forward(
            p, cfg, tt, m2p, kshift, spd, en
        )
    )
    out = fwd(params, txt_tokens, mel2ph, key_shift, speed, energy)
    out = jax.block_until_ready(out)

    assert out.shape == (B, T_mel, cfg["fs2_hidden_size"])
    assert bool(jnp.all(jnp.isfinite(out)))
    print("KERNEL_OK")
</pallas_src>

<mosaic_0001>
module attributes {stable_mosaic.version = 11 : i64} {
  func.func @_encoder_layer_kernel(%arg0: i32, %arg1: memref<1x16x128xbf16, #tpu.memory_space<vmem>>, %arg2: memref<1x1x16xf32, #tpu.memory_space<vmem>>, %arg3: memref<1x128xf32, #tpu.memory_space<vmem>>, %arg4: memref<1x128xf32, #tpu.memory_space<vmem>>, %arg5: memref<128x384xbf16, #tpu.memory_space<vmem>>, %arg6: memref<1x384xf32, #tpu.memory_space<vmem>>, %arg7: memref<128x128xbf16, #tpu.memory_space<vmem>>, %arg8: memref<1x128xf32, #tpu.memory_space<vmem>>, %arg9: memref<1x128xf32, #tpu.memory_space<vmem>>, %arg10: memref<1x128xf32, #tpu.memory_space<vmem>>, %arg11: memref<9x128x256xbf16, #tpu.memory_space<vmem>>, %arg12: memref<1x256xf32, #tpu.memory_space<vmem>>, %arg13: memref<9x256x128xbf16, #tpu.memory_space<vmem>>, %arg14: memref<1x128xf32, #tpu.memory_space<vmem>>, %arg15: memref<1x128xf32, #tpu.memory_space<vmem>>, %arg16: memref<1x128xf32, #tpu.memory_space<vmem>>, %arg17: memref<1x16x128xbf16, #tpu.memory_space<vmem>>) attributes {dimension_semantics = [#tpu.dimension_semantics<parallel>], iteration_bounds = array<i64: 2>, scalar_prefetch = 0 : i64, scratch_operands = 0 : i64, tpu.core_type = #tpu.core_type<tc>, window_params = [{transform_indices = @transform_0, window_bounds = array<i64: 1, 16, 128>}, {transform_indices = @transform_1, window_bounds = array<i64: 1, 1, 16>}, {pipeline_mode = #tpu.pipeline_mode<synchronous>, transform_indices = @transform_2, window_bounds = array<i64: 1, 128>}, {pipeline_mode = #tpu.pipeline_mode<synchronous>, transform_indices = @transform_3, window_bounds = array<i64: 1, 128>}, {pipeline_mode = #tpu.pipeline_mode<synchronous>, transform_indices = @transform_4, window_bounds = array<i64: 128, 384>}, {pipeline_mode = #tpu.pipeline_mode<synchronous>, transform_indices = @transform_5, window_bounds = array<i64: 1, 384>}, {pipeline_mode = #tpu.pipeline_mode<synchronous>, transform_indices = @transform_6, window_bounds = array<i64: 128, 128>}, {pipeline_mode = #tpu.pipeline_mode<synchronous>, transform_indices = @transform_7, window_bounds = array<i64: 1, 128>}, {pipeline_mode = #tpu.pipeline_mode<synchronous>, transform_indices = @transform_8, window_bounds = array<i64: 1, 128>}, {pipeline_mode = #tpu.pipeline_mode<synchronous>, transform_indices = @transform_9, window_bounds = array<i64: 1, 128>}, {pipeline_mode = #tpu.pipeline_mode<synchronous>, transform_indices = @transform_10, window_bounds = array<i64: 9, 128, 256>}, {pipeline_mode = #tpu.pipeline_mode<synchronous>, transform_indices = @transform_11, window_bounds = array<i64: 1, 256>}, {pipeline_mode = #tpu.pipeline_mode<synchronous>, transform_indices = @transform_12, window_bounds = array<i64: 9, 256, 128>}, {pipeline_mode = #tpu.pipeline_mode<synchronous>, transform_indices = @transform_13, window_bounds = array<i64: 1, 128>}, {pipeline_mode = #tpu.pipeline_mode<synchronous>, transform_indices = @transform_14, window_bounds = array<i64: 1, 128>}, {pipeline_mode = #tpu.pipeline_mode<synchronous>, transform_indices = @transform_15, window_bounds = array<i64: 1, 128>}, {transform_indices = @transform_16, window_bounds = array<i64: 1, 16, 128>}]} {
    %c0 = arith.constant 0 : index
    %c0_0 = arith.constant 0 : index
    %c0_1 = arith.constant 0 : index
    %0 = vector.load %arg1[%c0, %c0_0, %c0_1] : memref<1x16x128xbf16, #tpu.memory_space<vmem>>, vector<1x16x128xbf16>
    %1 = vector.shape_cast %0 : vector<1x16x128xbf16> to vector<16x128xbf16>
    %2 = arith.extf %1 : vector<16x128xbf16> to vector<16x128xf32>
    %c0_2 = arith.constant 0 : index
    %c0_3 = arith.constant 0 : index
    %c0_4 = arith.constant 0 : index
    %3 = vector.load %arg2[%c0_2, %c0_3, %c0_4] : memref<1x1x16xf32, #tpu.memory_space<vmem>>, vector<1x1x16xf32>
    %4 = vector.shape_cast %3 : vector<1x1x16xf32> to vector<1x16xf32>
    %cst = arith.constant dense<0.000000e+00> : vector<16xf32>
    %5 = vector.multi_reduction <add>, %2, %cst [1] : vector<16x128xf32> to vector<16xf32>
    %6 = vector.shape_cast %5 : vector<16xf32> to vector<16x1xf32>
    %cst_5 = arith.constant 1.280000e+02 : f32
    %7 = vector.broadcast %cst_5 : f32 to vector<16x1xf32>
    %8 = arith.divf %6, %7 : vector<16x1xf32>
    %9 = vector.broadcast %8 : vector<16x1xf32> to vector<16x128xf32>
    %10 = arith.subf %2, %9 : vector<16x128xf32>
    %11 = arith.mulf %10, %10 : vector<16x128xf32>
    %cst_6 = arith.constant dense<0.000000e+00> : vector<16xf32>
    %12 = vector.multi_reduction <add>, %11, %cst_6 [1] : vector<16x128xf32> to vector<16xf32>
    %13 = vector.shape_cast %12 : vector<16xf32> to vector<16x1xf32>
    %cst_7 = arith.constant 1.280000e+02 : f32
    %14 = vector.broadcast %cst_7 : f32 to vector<16x1xf32>
    %15 = arith.divf %13, %14 : vector<16x1xf32>
    %16 = vector.broadcast %8 : vector<16x1xf32> to vector<16x128xf32>
    %17 = arith.subf %2, %16 : vector<16x128xf32>
    %cst_8 = arith.constant 9.99999974E-6 : f32
    %18 = vector.broadcast %cst_8 : f32 to vector<16x1xf32>
    %19 = arith.addf %15, %18 : vector<16x1xf32>
    %20 = math.rsqrt %19 : vector<16x1xf32>
    %21 = vector.broadcast %20 : vector<16x1xf32> to vector<16x128xf32>
    %22 = arith.mulf %17, %21 : vector<16x128xf32>
    %c0_9 = arith.constant 0 : index
    %c0_10 = arith.constant 0 : index
    %23 = vector.load %arg3[%c0_9, %c0_10] : memref<1x128xf32, #tpu.memory_space<vmem>>, vector<1x128xf32>
    %24 = vector.broadcast %23 : vector<1x128xf32> to vector<16x128xf32>
    %25 = arith.mulf %22, %24 : vector<16x128xf32>
    %c0_11 = arith.constant 0 : index
    %c0_12 = arith.constant 0 : index
    %26 = vector.load %arg4[%c0_11, %c0_12] : memref<1x128xf32, #tpu.memory_space<vmem>>, vector<1x128xf32>
    %27 = vector.broadcast %26 : vector<1x128xf32> to vector<16x128xf32>
    %28 = arith.addf %25, %27 : vector<16x128xf32>
    %29 = arith.truncf %28 : vector<16x128xf32> to vector<16x128xbf16>
    %c0_13 = arith.constant 0 : index
    %c0_14 = arith.constant 0 : index
    %30 = vector.load %arg5[%c0_13, %c0_14] : memref<128x384xbf16, #tpu.memory_space<vmem>>, vector<128x384xbf16>
    %cst_15 = arith.constant dense<0.000000e+00> : vector<16x384xf32>
    %31 = tpu.matmul %29, %30, %cst_15 {dimension_numbers = #tpu.dot_dimension_numbers<[1], [0], [0], [1], [0, 0, 1, 1], [], []>} : vector<16x128xbf16>, vector<128x384xbf16>, vector<16x384xf32> -> vector<16x384xf32>
    %c0_16 = arith.constant 0 : index
    %c0_17 = arith.constant 0 : index
    %32 = vector.load %arg6[%c0_16, %c0_17] : memref<1x384xf32, #tpu.memory_space<vmem>>, vector<1x384xf32>
    %33 = vector.broadcast %32 : vector<1x384xf32> to vector<16x384xf32>
    %34 = arith.addf %31, %33 : vector<16x384xf32>
    %35 = arith.truncf %34 : vector<16x384xf32> to vector<16x384xbf16>
    %c0_18 = arith.constant 0 : index
    %c0_19 = arith.constant 0 : index
    %36 = vector.load %arg8[%c0_18, %c0_19] : memref<1x128xf32, #tpu.memory_space<vmem>>, vector<1x128xf32>
    %37 = vector.broadcast %36 : vector<1x128xf32> to vector<16x128xf32>
    %38 = arith.addf %2, %37 : vector<16x128xf32>
    %39 = vector.extract_strided_slice %35 {offsets = [0, 0], sizes = [16, 32], strides = [1, 1]} : vector<16x384xbf16> to vector<16x32xbf16>
    %40 = vector.extract_strided_slice %35 {offsets = [0, 128], sizes = [16, 32], strides = [1, 1]} : vector<16x384xbf16> to vector<16x32xbf16>
    %41 = vector.extract_strided_slice %35 {offsets = [0, 256], sizes = [16, 32], strides = [1, 1]} : vector<16x384xbf16> to vector<16x32xbf16>
    %cst_20 = arith.constant dense<0.000000e+00> : vector<16x16xf32>
    %42 = tpu.matmul %39, %40, %cst_20 {dimension_numbers = #tpu.dot_dimension_numbers<[1], [1], [0], [0], [0, 0, 1, 0], [], []>} : vector<16x32xbf16>, vector<16x32xbf16>, vector<16x16xf32> -> vector<16x16xf32>
    %43 = vector.broadcast %4 : vector<1x16xf32> to vector<16x16xf32>
    %44 = arith.addf %42, %43 : vector<16x16xf32>
    %cst_21 = arith.constant dense<0xFF800000> : vector<16xf32>
    %45 = vector.multi_reduction <maximumf>, %44, %cst_21 [1] : vector<16x16xf32> to vector<16xf32>
    %46 = vector.shape_cast %45 : vector<16xf32> to vector<16x1xf32>
    %47 = vector.broadcast %46 : vector<16x1xf32> to vector<16x16xf32>
    %48 = arith.subf %44, %47 : vector<16x16xf32>
    %49 = math.exp %48 : vector<16x16xf32>
    %cst_22 = arith.constant dense<0.000000e+00> : vector<16xf32>
    %50 = vector.multi_reduction <add>, %49, %cst_22 [1] : vector<16x16xf32> to vector<16xf32>
    %51 = vector.shape_cast %50 : vector<16xf32> to vector<16x1xf32>
    %52 = tpu.reciprocal %51 {approx = true} : vector<16x1xf32> -> vector<16x1xf32>
    %53 = vector.broadcast %52 : vector<16x1xf32> to vector<16x16xf32>
    %54 = arith.mulf %49, %53 : vector<16x16xf32>
    %55 = arith.truncf %54 : vector<16x16xf32> to vector<16x16xbf16>
    %cst_23 = arith.constant dense<0.000000e+00> : vector<16x32xf32>
    %56 = tpu.matmul %55, %41, %cst_23 {dimension_numbers = #tpu.dot_dimension_numbers<[1], [0], [0], [1], [0, 0, 1, 1], [], []>} : vector<16x16xbf16>, vector<16x32xbf16>, vector<16x32xf32> -> vector<16x32xf32>
    %57 = arith.truncf %56 : vector<16x32xf32> to vector<16x32xbf16>
    %c0_24 = arith.constant 0 : index
    %c0_25 = arith.constant 0 : index
    %58 = vector.load %arg7[%c0_24, %c0_25] : memref<128x128xbf16, #tpu.memory_space<vmem>>, vector<32x128xbf16>
    %cst_26 = arith.constant dense<0.000000e+00> : vector<16x128xf32>
    %59 = tpu.matmul %57, %58, %cst_26 {dimension_numbers = #tpu.dot_dimension_numbers<[1], [0], [0], [1], [0, 0, 1, 1], [], []>} : vector<16x32xbf16>, vector<32x128xbf16>, vector<16x128xf32> -> vector<16x128xf32>
    %60 = arith.addf %38, %59 : vector<16x128xf32>
    %61 = vector.extract_strided_slice %35 {offsets = [0, 32], sizes = [16, 32], strides = [1, 1]} : vector<16x384xbf16> to vector<16x32xbf16>
    %62 = vector.extract_strided_slice %35 {offsets = [0, 160], sizes = [16, 32], strides = [1, 1]} : vector<16x384xbf16> to vector<16x32xbf16>
    %63 = vector.extract_strided_slice %35 {offsets = [0, 288], sizes = [16, 32], strides = [1, 1]} : vector<16x384xbf16> to vector<16x32xbf16>
    %cst_27 = arith.constant dense<0.000000e+00> : vector<16x16xf32>
    %64 = tpu.matmul %61, %62, %cst_27 {dimension_numbers = #tpu.dot_dimension_numbers<[1], [1], [0], [0], [0, 0, 1, 0], [], []>} : vector<16x32xbf16>, vector<16x32xbf16>, vector<16x16xf32> -> vector<16x16xf32>
    %65 = vector.broadcast %4 : vector<1x16xf32> to vector<16x16xf32>
    %66 = arith.addf %64, %65 : vector<16x16xf32>
    %cst_28 = arith.constant dense<0xFF800000> : vector<16xf32>
    %67 = vector.multi_reduction <maximumf>, %66, %cst_28 [1] : vector<16x16xf32> to vector<16xf32>
    %68 = vector.shape_cast %67 : vector<16xf32> to vector<16x1xf32>
    %69 = vector.broadcast %68 : vector<16x1xf32> to vector<16x16xf32>
    %70 = arith.subf %66, %69 : vector<16x16xf32>
    %71 = math.exp %70 : vector<16x16xf32>
    %cst_29 = arith.constant dense<0.000000e+00> : vector<16xf32>
    %72 = vector.multi_reduction <add>, %71, %cst_29 [1] : vector<16x16xf32> to vector<16xf32>
    %73 = vector.shape_cast %72 : vector<16xf32> to vector<16x1xf32>
    %74 = tpu.reciprocal %73 {approx = true} : vector<16x1xf32> -> vector<16x1xf32>
    %75 = vector.broadcast %74 : vector<16x1xf32> to vector<16x16xf32>
    %76 = arith.mulf %71, %75 : vector<16x16xf32>
    %77 = arith.truncf %76 : vector<16x16xf32> to vector<16x16xbf16>
    %cst_30 = arith.constant dense<0.000000e+00> : vector<16x32xf32>
    %78 = tpu.matmul %77, %63, %cst_30 {dimension_numbers = #tpu.dot_dimension_numbers<[1], [0], [0], [1], [0, 0, 1, 1], [], []>} : vector<16x16xbf16>, vector<16x32xbf16>, vector<16x32xf32> -> vector<16x32xf32>
    %79 = arith.truncf %78 : vector<16x32xf32> to vector<16x32xbf16>
    %c32 = arith.constant 32 : index
    %c0_31 = arith.constant 0 : index
    %80 = vector.load %arg7[%c32, %c0_31] : memref<128x128xbf16, #tpu.memory_space<vmem>>, vector<32x128xbf16>
    %cst_32 = arith.constant dense<0.000000e+00> : vector<16x128xf32>
    %81 = tpu.matmul %79, %80, %cst_32 {dimension_numbers = #tpu.dot_dimension_numbers<[1], [0], [0], [1], [0, 0, 1, 1], [], []>} : vector<16x32xbf16>, vector<32x128xbf16>, vector<16x128xf32> -> vector<16x128xf32>
    %82 = arith.addf %60, %81 : vector<16x128xf32>
    %83 = vector.extract_strided_slice %35 {offsets = [0, 64], sizes = [16, 32], strides = [1, 1]} : vector<16x384xbf16> to vector<16x32xbf16>
    %84 = vector.extract_strided_slice %35 {offsets = [0, 192], sizes = [16, 32], strides = [1, 1]} : vector<16x384xbf16> to vector<16x32xbf16>
    %85 = vector.extract_strided_slice %35 {offsets = [0, 320], sizes = [16, 32], strides = [1, 1]} : vector<16x384xbf16> to vector<16x32xbf16>
    %cst_33 = arith.constant dense<0.000000e+00> : vector<16x16xf32>
    %86 = tpu.matmul %83, %84, %cst_33 {dimension_numbers = #tpu.dot_dimension_numbers<[1], [1], [0], [0], [0, 0, 1, 0], [], []>} : vector<16x32xbf16>, vector<16x32xbf16>, vector<16x16xf32> -> vector<16x16xf32>
    %87 = vector.broadcast %4 : vector<1x16xf32> to vector<16x16xf32>
    %88 = arith.addf %86, %87 : vector<16x16xf32>
    %cst_34 = arith.constant dense<0xFF800000> : vector<16xf32>
    %89 = vector.multi_reduction <maximumf>, %88, %cst_34 [1] : vector<16x16xf32> to vector<16xf32>
    %90 = vector.shape_cast %89 : vector<16xf32> to vector<16x1xf32>
    %91 = vector.broadcast %90 : vector<16x1xf32> to vector<16x16xf32>
    %92 = arith.subf %88, %91 : vector<16x16xf32>
    %93 = math.exp %92 : vector<16x16xf32>
    %cst_35 = arith.constant dense<0.000000e+00> : vector<16xf32>
    %94 = vector.multi_reduction <add>, %93, %cst_35 [1] : vector<16x16xf32> to vector<16xf32>
    %95 = vector.shape_cast %94 : vector<16xf32> to vector<16x1xf32>
    %96 = tpu.reciprocal %95 {approx = true} : vector<16x1xf32> -> vector<16x1xf32>
    %97 = vector.broadcast %96 : vector<16x1xf32> to vector<16x16xf32>
    %98 = arith.mulf %93, %97 : vector<16x16xf32>
    %99 = arith.truncf %98 : vector<16x16xf32> to vector<16x16xbf16>
    %cst_36 = arith.constant dense<0.000000e+00> : vector<16x32xf32>
    %100 = tpu.matmul %99, %85, %cst_36 {dimension_numbers = #tpu.dot_dimension_numbers<[1], [0], [0], [1], [0, 0, 1, 1], [], []>} : vector<16x16xbf16>, vector<16x32xbf16>, vector<16x32xf32> -> vector<16x32xf32>
    %101 = arith.truncf %100 : vector<16x32xf32> to vector<16x32xbf16>
    %c64 = arith.constant 64 : index
    %c0_37 = arith.constant 0 : index
    %102 = vector.load %arg7[%c64, %c0_37] : memref<128x128xbf16, #tpu.memory_space<vmem>>, vector<32x128xbf16>
    %cst_38 = arith.constant dense<0.000000e+00> : vector<16x128xf32>
    %103 = tpu.matmul %101, %102, %cst_38 {dimension_numbers = #tpu.dot_dimension_numbers<[1], [0], [0], [1], [0, 0, 1, 1], [], []>} : vector<16x32xbf16>, vector<32x128xbf16>, vector<16x128xf32> -> vector<16x128xf32>
    %104 = arith.addf %82, %103 : vector<16x128xf32>
    %105 = vector.extract_strided_slice %35 {offsets = [0, 96], sizes = [16, 32], strides = [1, 1]} : vector<16x384xbf16> to vector<16x32xbf16>
    %106 = vector.extract_strided_slice %35 {offsets = [0, 224], sizes = [16, 32], strides = [1, 1]} : vector<16x384xbf16> to vector<16x32xbf16>
    %107 = vector.extract_strided_slice %35 {offsets = [0, 352], sizes = [16, 32], strides = [1, 1]} : vector<16x384xbf16> to vector<16x32xbf16>
    %cst_39 = arith.constant dense<0.000000e+00> : vector<16x16xf32>
    %108 = tpu.matmul %105, %106, %cst_39 {dimension_numbers = #tpu.dot_dimension_numbers<[1], [1], [0], [0], [0, 0, 1, 0], [], []>} : vector<16x32xbf16>, vector<16x32xbf16>, vector<16x16xf32> -> vector<16x16xf32>
    %109 = vector.broadcast %4 : vector<1x16xf32> to vector<16x16xf32>
    %110 = arith.addf %108, %109 : vector<16x16xf32>
    %cst_40 = arith.constant dense<0xFF800000> : vector<16xf32>
    %111 = vector.multi_reduction <maximumf>, %110, %cst_40 [1] : vector<16x16xf32> to vector<16xf32>
    %112 = vector.shape_cast %111 : vector<16xf32> to vector<16x1xf32>
    %113 = vector.broadcast %112 : vector<16x1xf32> to vector<16x16xf32>
    %114 = arith.subf %110, %113 : vector<16x16xf32>
    %115 = math.exp %114 : vector<16x16xf32>
    %cst_41 = arith.constant dense<0.000000e+00> : vector<16xf32>
    %116 = vector.multi_reduction <add>, %115, %cst_41 [1] : vector<16x16xf32> to vector<16xf32>
    %117 = vector.shape_cast %116 : vector<16xf32> to vector<16x1xf32>
    %118 = tpu.reciprocal %117 {approx = true} : vector<16x1xf32> -> vector<16x1xf32>
    %119 = vector.broadcast %118 : vector<16x1xf32> to vector<16x16xf32>
    %120 = arith.mulf %115, %119 : vector<16x16xf32>
    %121 = arith.truncf %120 : vector<16x16xf32> to vector<16x16xbf16>
    %cst_42 = arith.constant dense<0.000000e+00> : vector<16x32xf32>
    %122 = tpu.matmul %121, %107, %cst_42 {dimension_numbers = #tpu.dot_dimension_numbers<[1], [0], [0], [1], [0, 0, 1, 1], [], []>} : vector<16x16xbf16>, vector<16x32xbf16>, vector<16x32xf32> -> vector<16x32xf32>
    %123 = arith.truncf %122 : vector<16x32xf32> to vector<16x32xbf16>
    %c96 = arith.constant 96 : index
    %c0_43 = arith.constant 0 : index
    %124 = vector.load %arg7[%c96, %c0_43] : memref<128x128xbf16, #tpu.memory_space<vmem>>, vector<32x128xbf16>
    %cst_44 = arith.constant dense<0.000000e+00> : vector<16x128xf32>
    %125 = tpu.matmul %123, %124, %cst_44 {dimension_numbers = #tpu.dot_dimension_numbers<[1], [0], [0], [1], [0, 0, 1, 1], [], []>} : vector<16x32xbf16>, vector<32x128xbf16>, vector<16x128xf32> -> vector<16x128xf32>
    %126 = arith.addf %104, %125 : vector<16x128xf32>
    %127 = tpu.iota {dimensions = array<i32: 0>} : vector<16x1xi32>
    %cst_45 = arith.constant dense<0.000000e+00> : vector<16xf32>
    %128 = vector.multi_reduction <add>, %126, %cst_45 [1] : vector<16x128xf32> to vector<16xf32>
    %129 = vector.shape_cast %128 : vector<16xf32> to vector<16x1xf32>
    %cst_46 = arith.constant 1.280000e+02 : f32
    %130 = vector.broadcast %cst_46 : f32 to vector<16x1xf32>
    %131 = arith.divf %129, %130 : vector<16x1xf32>
    %132 = vector.broadcast %131 : vector<16x1xf32> to vector<16x128xf32>
    %133 = arith.subf %126, %132 : vector<16x128xf32>
    %134 = arith.mulf %133, %133 : vector<16x128xf32>
    %cst_47 = arith.constant dense<0.000000e+00> : vector<16xf32>
    %135 = vector.multi_reduction <add>, %134, %cst_47 [1] : vector<16x128xf32> to vector<16xf32>
    %136 = vector.shape_cast %135 : vector<16xf32> to vector<16x1xf32>
    %cst_48 = arith.constant 1.280000e+02 : f32
    %137 = vector.broadcast %cst_48 : f32 to vector<16x1xf32>
    %138 = arith.divf %136, %137 : vector<16x1xf32>
    %139 = vector.broadcast %131 : vector<16x1xf32> to vector<16x128xf32>
    %140 = arith.subf %126, %139 : vector<16x128xf32>
    %cst_49 = arith.constant 9.99999974E-6 : f32
    %141 = vector.broadcast %cst_49 : f32 to vector<16x1xf32>
    %142 = arith.addf %138, %141 : vector<16x1xf32>
    %143 = math.rsqrt %142 : vector<16x1xf32>
    %144 = vector.broadcast %143 : vector<16x1xf32> to vector<16x128xf32>
    %145 = arith.mulf %140, %144 : vector<16x128xf32>
    %c0_50 = arith.constant 0 : index
    %c0_51 = arith.constant 0 : index
    %146 = vector.load %arg9[%c0_50, %c0_51] : memref<1x128xf32, #tpu.memory_space<vmem>>, vector<1x128xf32>
    %147 = vector.broadcast %146 : vector<1x128xf32> to vector<16x128xf32>
    %148 = arith.mulf %145, %147 : vector<16x128xf32>
    %c0_52 = arith.constant 0 : index
    %c0_53 = arith.constant 0 : index
    %149 = vector.load %arg10[%c0_52, %c0_53] : memref<1x128xf32, #tpu.memory_space<vmem>>, vector<1x128xf32>
    %150 = vector.broadcast %149 : vector<1x128xf32> to vector<16x128xf32>
    %151 = arith.addf %148, %150 : vector<16x128xf32>
    %cst_54 = arith.constant 0.000000e+00 : f32
    %152 = vector.broadcast %cst_54 : f32 to vector<16x256xf32>
    %c0_55 = arith.constant 0 : index
    %c0_56 = arith.constant 0 : index
    %153 = vector.load %arg12[%c0_55, %c0_56] : memref<1x256xf32, #tpu.memory_space<vmem>>, vector<1x256xf32>
    %154 = vector.broadcast %153 : vector<1x256xf32> to vector<16x256xf32>
    %155 = arith.addf %152, %154 : vector<16x256xf32>
    %c4_i32 = arith.constant 4 : i32
    %156 = tpu.dynamic_rotate %151 by %c4_i32 dim 0 : vector<16x128xf32>, i32 -> vector<16x128xf32>
    %c4_i32_57 = arith.constant 4 : i32
    %157 = vector.broadcast %c4_i32_57 : i32 to vector<16x1xi32>
    %158 = arith.cmpi sge, %127, %157 : vector<16x1xi32>
    %c20_i32 = arith.constant 20 : i32
    %159 = vector.broadcast %c20_i32 : i32 to vector<16x1xi32>
    %160 = arith.cmpi slt, %127, %159 : vector<16x1xi32>
    %161 = arith.andi %158, %160 : vector<16x1xi1>
    %cst_58 = arith.constant 0.000000e+00 : f32
    %162 = vector.shape_cast %161 : vector<16x1xi1> to vector<16x1xi1>
    %163 = vector.broadcast %162 : vector<16x1xi1> to vector<16x128xi1>
    %164 = vector.broadcast %cst_58 : f32 to vector<16x128xf32>
    %165 = arith.select %163, %156, %164 : vector<16x128xi1>, vector<16x128xf32>
    %166 = arith.truncf %165 : vector<16x128xf32> to vector<16x128xbf16>
    %c0_59 = arith.constant 0 : index
    %c0_60 = arith.constant 0 : index
    %c0_61 = arith.constant 0 : index
    %167 = vector.load %arg11[%c0_59, %c0_60, %c0_61] : memref<9x128x256xbf16, #tpu.memory_space<vmem>>, vector<1x128x256xbf16>
    %168 = vector.shape_cast %167 : vector<1x128x256xbf16> to vector<128x256xbf16>
    %cst_62 = arith.constant dense<0.000000e+00> : vector<16x256xf32>
    %169 = tpu.matmul %166, %168, %cst_62 {dimension_numbers = #tpu.dot_dimension_numbers<[1], [0], [0], [1], [0, 0, 1, 1], [], []>} : vector<16x128xbf16>, vector<128x256xbf16>, vector<16x256xf32> -> vector<16x256xf32>
    %170 = arith.addf %155, %169 : vector<16x256xf32>
    %c3_i32 = arith.constant 3 : i32
    %171 = tpu.dynamic_rotate %151 by %c3_i32 dim 0 : vector<16x128xf32>, i32 -> vector<16x128xf32>
    %c3_i32_63 = arith.constant 3 : i32
    %172 = vector.broadcast %c3_i32_63 : i32 to vector<16x1xi32>
    %173 = arith.cmpi sge, %127, %172 : vector<16x1xi32>
    %c19_i32 = arith.constant 19 : i32
    %174 = vector.broadcast %c19_i32 : i32 to vector<16x1xi32>
    %175 = arith.cmpi slt, %127, %174 : vector<16x1xi32>
    %176 = arith.andi %173, %175 : vector<16x1xi1>
    %cst_64 = arith.constant 0.000000e+00 : f32
    %177 = vector.shape_cast %176 : vector<16x1xi1> to vector<16x1xi1>
    %178 = vector.broadcast %177 : vector<16x1xi1> to vector<16x128xi1>
    %179 = vector.broadcast %cst_64 : f32 to vector<16x128xf32>
    %180 = arith.select %178, %171, %179 : vector<16x128xi1>, vector<16x128xf32>
    %181 = arith.truncf %180 : vector<16x128xf32> to vector<16x128xbf16>
    %c1 = arith.constant 1 : index
    %c0_65 = arith.constant 0 : index
    %c0_66 = arith.constant 0 : index
    %182 = vector.load %arg11[%c1, %c0_65, %c0_66] : memref<9x128x256xbf16, #tpu.memory_space<vmem>>, vector<1x128x256xbf16>
    %183 = vector.shape_cast %182 : vector<1x128x256xbf16> to vector<128x256xbf16>
    %cst_67 = arith.constant dense<0.000000e+00> : vector<16x256xf32>
    %184 = tpu.matmul %181, %183, %cst_67 {dimension_numbers = #tpu.dot_dimension_numbers<[1], [0], [0], [1], [0, 0, 1, 1], [], []>} : vector<16x128xbf16>, vector<128x256xbf16>, vector<16x256xf32> -> vector<16x256xf32>
    %185 = arith.addf %170, %184 : vector<16x256xf32>
    %c2_i32 = arith.constant 2 : i32
    %186 = tpu.dynamic_rotate %151 by %c2_i32 dim 0 : vector<16x128xf32>, i32 -> vector<16x128xf32>
    %c2_i32_68 = arith.constant 2 : i32
    %187 = vector.broadcast %c2_i32_68 : i32 to vector<16x1xi32>
    %188 = arith.cmpi sge, %127, %187 : vector<16x1xi32>
    %c18_i32 = arith.constant 18 : i32
    %189 = vector.broadcast %c18_i32 : i32 to vector<16x1xi32>
    %190 = arith.cmpi slt, %127, %189 : vector<16x1xi32>
    %191 = arith.andi %188, %190 : vector<16x1xi1>
    %cst_69 = arith.constant 0.000000e+00 : f32
    %192 = vector.shape_cast %191 : vector<16x1xi1> to vector<16x1xi1>
    %193 = vector.broadcast %192 : vector<16x1xi1> to vector<16x128xi1>
    %194 = vector.broadcast %cst_69 : f32 to vector<16x128xf32>
    %195 = arith.select %193, %186, %194 : vector<16x128xi1>, vector<16x128xf32>
    %196 = arith.truncf %195 : vector<16x128xf32> to vector<16x128xbf16>
    %c2 = arith.constant 2 : index
    %c0_70 = arith.constant 0 : index
    %c0_71 = arith.constant 0 : index
    %197 = vector.load %arg11[%c2, %c0_70, %c0_71] : memref<9x128x256xbf16, #tpu.memory_space<vmem>>, vector<1x128x256xbf16>
    %198 = vector.shape_cast %197 : vector<1x128x256xbf16> to vector<128x256xbf16>
    %cst_72 = arith.constant dense<0.000000e+00> : vector<16x256xf32>
    %199 = tpu.matmul %196, %198, %cst_72 {dimension_numbers = #tpu.dot_dimension_numbers<[1], [0], [0], [1], [0, 0, 1, 1], [], []>} : vector<16x128xbf16>, vector<128x256xbf16>, vector<16x256xf32> -> vector<16x256xf32>
    %200 = arith.addf %185, %199 : vector<16x256xf32>
    %c1_i32 = arith.constant 1 : i32
    %201 = tpu.dynamic_rotate %151 by %c1_i32 dim 0 : vector<16x128xf32>, i32 -> vector<16x128xf32>
    %c1_i32_73 = arith.constant 1 : i32
    %202 = vector.broadcast %c1_i32_73 : i32 to vector<16x1xi32>
    %203 = arith.cmpi sge, %127, %202 : vector<16x1xi32>
    %c17_i32 = arith.constant 17 : i32
    %204 = vector.broadcast %c17_i32 : i32 to vector<16x1xi32>
    %205 = arith.cmpi slt, %127, %204 : vector<16x1xi32>
    %206 = arith.andi %203, %205 : vector<16x1xi1>
    %cst_74 = arith.constant 0.000000e+00 : f32
    %207 = vector.shape_cast %206 : vector<16x1xi1> to vector<16x1xi1>
    %208 = vector.broadcast %207 : vector<16x1xi1> to vector<16x128xi1>
    %209 = vector.broadcast %cst_74 : f32 to vector<16x128xf32>
    %210 = arith.select %208, %201, %209 : vector<16x128xi1>, vector<16x128xf32>
    %211 = arith.truncf %210 : vector<16x128xf32> to vector<16x128xbf16>
    %c3 = arith.constant 3 : index
    %c0_75 = arith.constant 0 : index
    %c0_76 = arith.constant 0 : index
    %212 = vector.load %arg11[%c3, %c0_75, %c0_76] : memref<9x128x256xbf16, #tpu.memory_space<vmem>>, vector<1x128x256xbf16>
    %213 = vector.shape_cast %212 : vector<1x128x256xbf16> to vector<128x256xbf16>
    %cst_77 = arith.constant dense<0.000000e+00> : vector<16x256xf32>
    %214 = tpu.matmul %211, %213, %cst_77 {dimension_numbers = #tpu.dot_dimension_numbers<[1], [0], [0], [1], [0, 0, 1, 1], [], []>} : vector<16x128xbf16>, vector<128x256xbf16>, vector<16x256xf32> -> vector<16x256xf32>
    %215 = arith.addf %200, %214 : vector<16x256xf32>
    %c0_i32 = arith.constant 0 : i32
    %216 = vector.broadcast %c0_i32 : i32 to vector<16x1xi32>
    %217 = arith.cmpi sge, %127, %216 : vector<16x1xi32>
    %c16_i32 = arith.constant 16 : i32
    %218 = vector.broadcast %c16_i32 : i32 to vector<16x1xi32>
    %219 = arith.cmpi slt, %127, %218 : vector<16x1xi32>
    %220 = arith.andi %217, %219 : vector<16x1xi1>
    %cst_78 = arith.constant 0.000000e+00 : f32
    %221 = vector.shape_cast %220 : vector<16x1xi1> to vector<16x1xi1>
    %222 = vector.broadcast %221 : vector<16x1xi1> to vector<16x128xi1>
    %223 = vector.broadcast %cst_78 : f32 to vector<16x128xf32>
    %224 = arith.select %222, %151, %223 : vector<16x128xi1>, vector<16x128xf32>
    %225 = arith.truncf %224 : vector<16x128xf32> to vector<16x128xbf16>
    %c4 = arith.constant 4 : index
    %c0_79 = arith.constant 0 : index
    %c0_80 = arith.constant 0 : index
    %226 = vector.load %arg11[%c4, %c0_79, %c0_80] : memref<9x128x256xbf16, #tpu.memory_space<vmem>>, vector<1x128x256xbf16>
    %227 = vector.shape_cast %226 : vector<1x128x256xbf16> to vector<128x256xbf16>
    %cst_81 = arith.constant dense<0.000000e+00> : vector<16x256xf32>
    %228 = tpu.matmul %225, %227, %cst_81 {dimension_numbers = #tpu.dot_dimension_numbers<[1], [0], [0], [1], [0, 0, 1, 1], [], []>} : vector<16x128xbf16>, vector<128x256xbf16>, vector<16x256xf32> -> vector<16x256xf32>
    %229 = arith.addf %215, %228 : vector<16x256xf32>
    %c15_i32 = arith.constant 15 : i32
    %230 = tpu.dynamic_rotate %151 by %c15_i32 dim 0 : vector<16x128xf32>, i32 -> vector<16x128xf32>
    %c-1_i32 = arith.constant -1 : i32
    %231 = vector.broadcast %c-1_i32 : i32 to vector<16x1xi32>
    %232 = arith.cmpi sge, %127, %231 : vector<16x1xi32>
    %c15_i32_82 = arith.constant 15 : i32
    %233 = vector.broadcast %c15_i32_82 : i32 to vector<16x1xi32>
    %234 = arith.cmpi slt, %127, %233 : vector<16x1xi32>
    %235 = arith.andi %232, %234 : vector<16x1xi1>
    %cst_83 = arith.constant 0.000000e+00 : f32
    %236 = vector.shape_cast %235 : vector<16x1xi1> to vector<16x1xi1>
    %237 = vector.broadcast %236 : vector<16x1xi1> to vector<16x128xi1>
    %238 = vector.broadcast %cst_83 : f32 to vector<16x128xf32>
    %239 = arith.select %237, %230, %238 : vector<16x128xi1>, vector<16x128xf32>
    %240 = arith.truncf %239 : vector<16x128xf32> to vector<16x128xbf16>
    %c5 = arith.constant 5 : index
    %c0_84 = arith.constant 0 : index
    %c0_85 = arith.constant 0 : index
    %241 = vector.load %arg11[%c5, %c0_84, %c0_85] : memref<9x128x256xbf16, #tpu.memory_space<vmem>>, vector<1x128x256xbf16>
    %242 = vector.shape_cast %241 : vector<1x128x256xbf16> to vector<128x256xbf16>
    %cst_86 = arith.constant dense<0.000000e+00> : vector<16x256xf32>
    %243 = tpu.matmul %240, %242, %cst_86 {dimension_numbers = #tpu.dot_dimension_numbers<[1], [0], [0], [1], [0, 0, 1, 1], [], []>} : vector<16x128xbf16>, vector<128x256xbf16>, vector<16x256xf32> -> vector<16x256xf32>
    %244 = arith.addf %229, %243 : vector<16x256xf32>
    %c14_i32 = arith.constant 14 : i32
    %245 = tpu.dynamic_rotate %151 by %c14_i32 dim 0 : vector<16x128xf32>, i32 -> vector<16x128xf32>
    %c-2_i32 = arith.constant -2 : i32
    %246 = vector.broadcast %c-2_i32 : i32 to vector<16x1xi32>
    %247 = arith.cmpi sge, %127, %246 : vector<16x1xi32>
    %c14_i32_87 = arith.constant 14 : i32
    %248 = vector.broadcast %c14_i32_87 : i32 to vector<16x1xi32>
    %249 = arith.cmpi slt, %127, %248 : vector<16x1xi32>
    %250 = arith.andi %247, %249 : vector<16x1xi1>
    %cst_88 = arith.constant 0.000000e+00 : f32
    %251 = vector.shape_cast %250 : vector<16x1xi1> to vector<16x1xi1>
    %252 = vector.broadcast %251 : vector<16x1xi1> to vector<16x128xi1>
    %253 = vector.broadcast %cst_88 : f32 to vector<16x128xf32>
    %254 = arith.select %252, %245, %253 : vector<16x128xi1>, vector<16x128xf32>
    %255 = arith.truncf %254 : vector<16x128xf32> to vector<16x128xbf16>
    %c6 = arith.constant 6 : index
    %c0_89 = arith.constant 0 : index
    %c0_90 = arith.constant 0 : index
    %256 = vector.load %arg11[%c6, %c0_89, %c0_90] : memref<9x128x256xbf16, #tpu.memory_space<vmem>>, vector<1x128x256xbf16>
    %257 = vector.shape_cast %256 : vector<1x128x256xbf16> to vector<128x256xbf16>
    %cst_91 = arith.constant dense<0.000000e+00> : vector<16x256xf32>
    %258 = tpu.matmul %255, %257, %cst_91 {dimension_numbers = #tpu.dot_dimension_numbers<[1], [0], [0], [1], [0, 0, 1, 1], [], []>} : vector<16x128xbf16>, vector<128x256xbf16>, vector<16x256xf32> -> vector<16x256xf32>
    %259 = arith.addf %244, %258 : vector<16x256xf32>
    %c13_i32 = arith.constant 13 : i32
    %260 = tpu.dynamic_rotate %151 by %c13_i32 dim 0 : vector<16x128xf32>, i32 -> vector<16x128xf32>
    %c-3_i32 = arith.constant -3 : i32
    %261 = vector.broadcast %c-3_i32 : i32 to vector<16x1xi32>
    %262 = arith.cmpi sge, %127, %261 : vector<16x1xi32>
    %c13_i32_92 = arith.constant 13 : i32
    %263 = vector.broadcast %c13_i32_92 : i32 to vector<16x1xi32>
    %264 = arith.cmpi slt, %127, %263 : vector<16x1xi32>
    %265 = arith.andi %262, %264 : vector<16x1xi1>
    %cst_93 = arith.constant 0.000000e+00 : f32
    %266 = vector.shape_cast %265 : vector<16x1xi1> to vector<16x1xi1>
    %267 = vector.broadcast %266 : vector<16x1xi1> to vector<16x128xi1>
    %268 = vector.broadcast %cst_93 : f32 to vector<16x128xf32>
    %269 = arith.select %267, %260, %268 : vector<16x128xi1>, vector<16x128xf32>
    %270 = arith.truncf %269 : vector<16x128xf32> to vector<16x128xbf16>
    %c7 = arith.constant 7 : index
    %c0_94 = arith.constant 0 : index
    %c0_95 = arith.constant 0 : index
    %271 = vector.load %arg11[%c7, %c0_94, %c0_95] : memref<9x128x256xbf16, #tpu.memory_space<vmem>>, vector<1x128x256xbf16>
    %272 = vector.shape_cast %271 : vector<1x128x256xbf16> to vector<128x256xbf16>
    %cst_96 = arith.constant dense<0.000000e+00> : vector<16x256xf32>
    %273 = tpu.matmul %270, %272, %cst_96 {dimension_numbers = #tpu.dot_dimension_numbers<[1], [0], [0], [1], [0, 0, 1, 1], [], []>} : vector<16x128xbf16>, vector<128x256xbf16>, vector<16x256xf32> -> vector<16x256xf32>
    %274 = arith.addf %259, %273 : vector<16x256xf32>
    %c12_i32 = arith.constant 12 : i32
    %275 = tpu.dynamic_rotate %151 by %c12_i32 dim 0 : vector<16x128xf32>, i32 -> vector<16x128xf32>
    %c-4_i32 = arith.constant -4 : i32
    %276 = vector.broadcast %c-4_i32 : i32 to vector<16x1xi32>
    %277 = arith.cmpi sge, %127, %276 : vector<16x1xi32>
    %c12_i32_97 = arith.constant 12 : i32
    %278 = vector.broadcast %c12_i32_97 : i32 to vector<16x1xi32>
    %279 = arith.cmpi slt, %127, %278 : vector<16x1xi32>
    %280 = arith.andi %277, %279 : vector<16x1xi1>
    %cst_98 = arith.constant 0.000000e+00 : f32
    %281 = vector.shape_cast %280 : vector<16x1xi1> to vector<16x1xi1>
    %282 = vector.broadcast %281 : vector<16x1xi1> to vector<16x128xi1>
    %283 = vector.broadcast %cst_98 : f32 to vector<16x128xf32>
    %284 = arith.select %282, %275, %283 : vector<16x128xi1>, vector<16x128xf32>
    %285 = arith.truncf %284 : vector<16x128xf32> to vector<16x128xbf16>
    %c8 = arith.constant 8 : index
    %c0_99 = arith.constant 0 : index
    %c0_100 = arith.constant 0 : index
    %286 = vector.load %arg11[%c8, %c0_99, %c0_100] : memref<9x128x256xbf16, #tpu.memory_space<vmem>>, vector<1x128x256xbf16>
    %287 = vector.shape_cast %286 : vector<1x128x256xbf16> to vector<128x256xbf16>
    %cst_101 = arith.constant dense<0.000000e+00> : vector<16x256xf32>
    %288 = tpu.matmul %285, %287, %cst_101 {dimension_numbers = #tpu.dot_dimension_numbers<[1], [0], [0], [1], [0, 0, 1, 1], [], []>} : vector<16x128xbf16>, vector<128x256xbf16>, vector<16x256xf32> -> vector<16x256xf32>
    %289 = arith.addf %274, %288 : vector<16x256xf32>
    %cst_102 = arith.constant 0.000000e+00 : f32
    %290 = vector.broadcast %cst_102 : f32 to vector<16x256xf32>
    %291 = arith.maximumf %289, %290 : vector<16x256xf32>
    %cst_103 = arith.constant 0.000000e+00 : f32
    %292 = vector.broadcast %cst_103 : f32 to vector<16x128xf32>
    %c0_104 = arith.constant 0 : index
    %c0_105 = arith.constant 0 : index
    %293 = vector.load %arg14[%c0_104, %c0_105] : memref<1x128xf32, #tpu.memory_space<vmem>>, vector<1x128xf32>
    %294 = vector.broadcast %293 : vector<1x128xf32> to vector<16x128xf32>
    %295 = arith.addf %292, %294 : vector<16x128xf32>
    %c4_i32_106 = arith.constant 4 : i32
    %296 = tpu.dynamic_rotate %291 by %c4_i32_106 dim 0 : vector<16x256xf32>, i32 -> vector<16x256xf32>
    %c4_i32_107 = arith.constant 4 : i32
    %297 = vector.broadcast %c4_i32_107 : i32 to vector<16x1xi32>
    %298 = arith.cmpi sge, %127, %297 : vector<16x1xi32>
    %c20_i32_108 = arith.constant 20 : i32
    %299 = vector.broadcast %c20_i32_108 : i32 to vector<16x1xi32>
    %300 = arith.cmpi slt, %127, %299 : vector<16x1xi32>
    %301 = arith.andi %298, %300 : vector<16x1xi1>
    %cst_109 = arith.constant 0.000000e+00 : f32
    %302 = vector.shape_cast %301 : vector<16x1xi1> to vector<16x1xi1>
    %303 = vector.broadcast %302 : vector<16x1xi1> to vector<16x256xi1>
    %304 = vector.broadcast %cst_109 : f32 to vector<16x256xf32>
    %305 = arith.select %303, %296, %304 : vector<16x256xi1>, vector<16x256xf32>
    %306 = arith.truncf %305 : vector<16x256xf32> to vector<16x256xbf16>
    %c0_110 = arith.constant 0 : index
    %c0_111 = arith.constant 0 : index
    %c0_112 = arith.constant 0 : index
    %307 = vector.load %arg13[%c0_110, %c0_111, %c0_112] : memref<9x256x128xbf16, #tpu.memory_space<vmem>>, vector<1x256x128xbf16>
    %308 = vector.shape_cast %307 : vector<1x256x128xbf16> to vector<256x128xbf16>
    %cst_113 = arith.constant dense<0.000000e+00> : vector<16x128xf32>
    %309 = tpu.matmul %306, %308, %cst_113 {dimension_numbers = #tpu.dot_dimension_numbers<[1], [0], [0], [1], [0, 0, 1, 1], [], []>} : vector<16x256xbf16>, vector<256x128xbf16>, vector<16x128xf32> -> vector<16x128xf32>
    %310 = arith.addf %295, %309 : vector<16x128xf32>
    %c3_i32_114 = arith.constant 3 : i32
    %311 = tpu.dynamic_rotate %291 by %c3_i32_114 dim 0 : vector<16x256xf32>, i32 -> vector<16x256xf32>
    %c3_i32_115 = arith.constant 3 : i32
    %312 = vector.broadcast %c3_i32_115 : i32 to vector<16x1xi32>
    %313 = arith.cmpi sge, %127, %312 : vector<16x1xi32>
    %c19_i32_116 = arith.constant 19 : i32
    %314 = vector.broadcast %c19_i32_116 : i32 to vector<16x1xi32>
    %315 = arith.cmpi slt, %127, %314 : vector<16x1xi32>
    %316 = arith.andi %313, %315 : vector<16x1xi1>
    %cst_117 = arith.constant 0.000000e+00 : f32
    %317 = vector.shape_cast %316 : vector<16x1xi1> to vector<16x1xi1>
    %318 = vector.broadcast %317 : vector<16x1xi1> to vector<16x256xi1>
    %319 = vector.broadcast %cst_117 : f32 to vector<16x256xf32>
    %320 = arith.select %318, %311, %319 : vector<16x256xi1>, vector<16x256xf32>
    %321 = arith.truncf %320 : vector<16x256xf32> to vector<16x256xbf16>
    %c1_118 = arith.constant 1 : index
    %c0_119 = arith.constant 0 : index
    %c0_120 = arith.constant 0 : index
    %322 = vector.load %arg13[%c1_118, %c0_119, %c0_120] : memref<9x256x128xbf16, #tpu.memory_space<vmem>>, vector<1x256x128xbf16>
    %323 = vector.shape_cast %322 : vector<1x256x128xbf16> to vector<256x128xbf16>
    %cst_121 = arith.constant dense<0.000000e+00> : vector<16x128xf32>
    %324 = tpu.matmul %321, %323, %cst_121 {dimension_numbers = #tpu.dot_dimension_numbers<[1], [0], [0], [1], [0, 0, 1, 1], [], []>} : vector<16x256xbf16>, vector<256x128xbf16>, vector<16x128xf32> -> vector<16x128xf32>
    %325 = arith.addf %310, %324 : vector<16x128xf32>
    %c2_i32_122 = arith.constant 2 : i32
    %326 = tpu.dynamic_rotate %291 by %c2_i32_122 dim 0 : vector<16x256xf32>, i32 -> vector<16x256xf32>
    %c2_i32_123 = arith.constant 2 : i32
    %327 = vector.broadcast %c2_i32_123 : i32 to vector<16x1xi32>
    %328 = arith.cmpi sge, %127, %327 : vector<16x1xi32>
    %c18_i32_124 = arith.constant 18 : i32
    %329 = vector.broadcast %c18_i32_124 : i32 to vector<16x1xi32>
    %330 = arith.cmpi slt, %127, %329 : vector<16x1xi32>
    %331 = arith.andi %328, %330 : vector<16x1xi1>
    %cst_125 = arith.constant 0.000000e+00 : f32
    %332 = vector.shape_cast %331 : vector<16x1xi1> to vector<16x1xi1>
    %333 = vector.broadcast %332 : vector<16x1xi1> to vector<16x256xi1>
    %334 = vector.broadcast %cst_125 : f32 to vector<16x256xf32>
    %335 = arith.select %333, %326, %334 : vector<16x256xi1>, vector<16x256xf32>
    %336 = arith.truncf %335 : vector<16x256xf32> to vector<16x256xbf16>
    %c2_126 = arith.constant 2 : index
    %c0_127 = arith.constant 0 : index
    %c0_128 = arith.constant 0 : index
    %337 = vector.load %arg13[%c2_126, %c0_127, %c0_128] : memref<9x256x128xbf16, #tpu.memory_space<vmem>>, vector<1x256x128xbf16>
    %338 = vector.shape_cast %337 : vector<1x256x128xbf16> to vector<256x128xbf16>
    %cst_129 = arith.constant dense<0.000000e+00> : vector<16x128xf32>
    %339 = tpu.matmul %336, %338, %cst_129 {dimension_numbers = #tpu.dot_dimension_numbers<[1], [0], [0], [1], [0, 0, 1, 1], [], []>} : vector<16x256xbf16>, vector<256x128xbf16>, vector<16x128xf32> -> vector<16x128xf32>
    %340 = arith.addf %325, %339 : vector<16x128xf32>
    %c1_i32_130 = arith.constant 1 : i32
    %341 = tpu.dynamic_rotate %291 by %c1_i32_130 dim 0 : vector<16x256xf32>, i32 -> vector<16x256xf32>
    %c1_i32_131 = arith.constant 1 : i32
    %342 = vector.broadcast %c1_i32_131 : i32 to vector<16x1xi32>
    %343 = arith.cmpi sge, %127, %342 : vector<16x1xi32>
    %c17_i32_132 = arith.constant 17 : i32
    %344 = vector.broadcast %c17_i32_132 : i32 to vector<16x1xi32>
    %345 = arith.cmpi slt, %127, %344 : vector<16x1xi32>
    %346 = arith.andi %343, %345 : vector<16x1xi1>
    %cst_133 = arith.constant 0.000000e+00 : f32
    %347 = vector.shape_cast %346 : vector<16x1xi1> to vector<16x1xi1>
    %348 = vector.broadcast %347 : vector<16x1xi1> to vector<16x256xi1>
    %349 = vector.broadcast %cst_133 : f32 to vector<16x256xf32>
    %350 = arith.select %348, %341, %349 : vector<16x256xi1>, vector<16x256xf32>
    %351 = arith.truncf %350 : vector<16x256xf32> to vector<16x256xbf16>
    %c3_134 = arith.constant 3 : index
    %c0_135 = arith.constant 0 : index
    %c0_136 = arith.constant 0 : index
    %352 = vector.load %arg13[%c3_134, %c0_135, %c0_136] : memref<9x256x128xbf16, #tpu.memory_space<vmem>>, vector<1x256x128xbf16>
    %353 = vector.shape_cast %352 : vector<1x256x128xbf16> to vector<256x128xbf16>
    %cst_137 = arith.constant dense<0.000000e+00> : vector<16x128xf32>
    %354 = tpu.matmul %351, %353, %cst_137 {dimension_numbers = #tpu.dot_dimension_numbers<[1], [0], [0], [1], [0, 0, 1, 1], [], []>} : vector<16x256xbf16>, vector<256x128xbf16>, vector<16x128xf32> -> vector<16x128xf32>
    %355 = arith.addf %340, %354 : vector<16x128xf32>
    %c0_i32_138 = arith.constant 0 : i32
    %356 = vector.broadcast %c0_i32_138 : i32 to vector<16x1xi32>
    %357 = arith.cmpi sge, %127, %356 : vector<16x1xi32>
    %c16_i32_139 = arith.constant 16 : i32
    %358 = vector.broadcast %c16_i32_139 : i32 to vector<16x1xi32>
    %359 = arith.cmpi slt, %127, %358 : vector<16x1xi32>
    %360 = arith.andi %357, %359 : vector<16x1xi1>
    %cst_140 = arith.constant 0.000000e+00 : f32
    %361 = vector.shape_cast %360 : vector<16x1xi1> to vector<16x1xi1>
    %362 = vector.broadcast %361 : vector<16x1xi1> to vector<16x256xi1>
    %363 = vector.broadcast %cst_140 : f32 to vector<16x256xf32>
    %364 = arith.select %362, %291, %363 : vector<16x256xi1>, vector<16x256xf32>
    %365 = arith.truncf %364 : vector<16x256xf32> to vector<16x256xbf16>
    %c4_141 = arith.constant 4 : index
    %c0_142 = arith.constant 0 : index
    %c0_143 = arith.constant 0 : index
    %366 = vector.load %arg13[%c4_141, %c0_142, %c0_143] : memref<9x256x128xbf16, #tpu.memory_space<vmem>>, vector<1x256x128xbf16>
    %367 = vector.shape_cast %366 : vector<1x256x128xbf16> to vector<256x128xbf16>
    %cst_144 = arith.constant dense<0.000000e+00> : vector<16x128xf32>
    %368 = tpu.matmul %365, %367, %cst_144 {dimension_numbers = #tpu.dot_dimension_numbers<[1], [0], [0], [1], [0, 0, 1, 1], [], []>} : vector<16x256xbf16>, vector<256x128xbf16>, vector<16x128xf32> -> vector<16x128xf32>
    %369 = arith.addf %355, %368 : vector<16x128xf32>
    %c15_i32_145 = arith.constant 15 : i32
    %370 = tpu.dynamic_rotate %291 by %c15_i32_145 dim 0 : vector<16x256xf32>, i32 -> vector<16x256xf32>
    %c-1_i32_146 = arith.constant -1 : i32
    %371 = vector.broadcast %c-1_i32_146 : i32 to vector<16x1xi32>
    %372 = arith.cmpi sge, %127, %371 : vector<16x1xi32>
    %c15_i32_147 = arith.constant 15 : i32
    %373 = vector.broadcast %c15_i32_147 : i32 to vector<16x1xi32>
    %374 = arith.cmpi slt, %127, %373 : vector<16x1xi32>
    %375 = arith.andi %372, %374 : vector<16x1xi1>
    %cst_148 = arith.constant 0.000000e+00 : f32
    %376 = vector.shape_cast %375 : vector<16x1xi1> to vector<16x1xi1>
    %377 = vector.broadcast %376 : vector<16x1xi1> to vector<16x256xi1>
    %378 = vector.broadcast %cst_148 : f32 to vector<16x256xf32>
    %379 = arith.select %377, %370, %378 : vector<16x256xi1>, vector<16x256xf32>
    %380 = arith.truncf %379 : vector<16x256xf32> to vector<16x256xbf16>
    %c5_149 = arith.constant 5 : index
    %c0_150 = arith.constant 0 : index
    %c0_151 = arith.constant 0 : index
    %381 = vector.load %arg13[%c5_149, %c0_150, %c0_151] : memref<9x256x128xbf16, #tpu.memory_space<vmem>>, vector<1x256x128xbf16>
    %382 = vector.shape_cast %381 : vector<1x256x128xbf16> to vector<256x128xbf16>
    %cst_152 = arith.constant dense<0.000000e+00> : vector<16x128xf32>
    %383 = tpu.matmul %380, %382, %cst_152 {dimension_numbers = #tpu.dot_dimension_numbers<[1], [0], [0], [1], [0, 0, 1, 1], [], []>} : vector<16x256xbf16>, vector<256x128xbf16>, vector<16x128xf32> -> vector<16x128xf32>
    %384 = arith.addf %369, %383 : vector<16x128xf32>
    %c14_i32_153 = arith.constant 14 : i32
    %385 = tpu.dynamic_rotate %291 by %c14_i32_153 dim 0 : vector<16x256xf32>, i32 -> vector<16x256xf32>
    %c-2_i32_154 = arith.constant -2 : i32
    %386 = vector.broadcast %c-2_i32_154 : i32 to vector<16x1xi32>
    %387 = arith.cmpi sge, %127, %386 : vector<16x1xi32>
    %c14_i32_155 = arith.constant 14 : i32
    %388 = vector.broadcast %c14_i32_155 : i32 to vector<16x1xi32>
    %389 = arith.cmpi slt, %127, %388 : vector<16x1xi32>
    %390 = arith.andi %387, %389 : vector<16x1xi1>
    %cst_156 = arith.constant 0.000000e+00 : f32
    %391 = vector.shape_cast %390 : vector<16x1xi1> to vector<16x1xi1>
    %392 = vector.broadcast %391 : vector<16x1xi1> to vector<16x256xi1>
    %393 = vector.broadcast %cst_156 : f32 to vector<16x256xf32>
    %394 = arith.select %392, %385, %393 : vector<16x256xi1>, vector<16x256xf32>
    %395 = arith.truncf %394 : vector<16x256xf32> to vector<16x256xbf16>
    %c6_157 = arith.constant 6 : index
    %c0_158 = arith.constant 0 : index
    %c0_159 = arith.constant 0 : index
    %396 = vector.load %arg13[%c6_157, %c0_158, %c0_159] : memref<9x256x128xbf16, #tpu.memory_space<vmem>>, vector<1x256x128xbf16>
    %397 = vector.shape_cast %396 : vector<1x256x128xbf16> to vector<256x128xbf16>
    %cst_160 = arith.constant dense<0.000000e+00> : vector<16x128xf32>
    %398 = tpu.matmul %395, %397, %cst_160 {dimension_numbers = #tpu.dot_dimension_numbers<[1], [0], [0], [1], [0, 0, 1, 1], [], []>} : vector<16x256xbf16>, vector<256x128xbf16>, vector<16x128xf32> -> vector<16x128xf32>
    %399 = arith.addf %384, %398 : vector<16x128xf32>
    %c13_i32_161 = arith.constant 13 : i32
    %400 = tpu.dynamic_rotate %291 by %c13_i32_161 dim 0 : vector<16x256xf32>, i32 -> vector<16x256xf32>
    %c-3_i32_162 = arith.constant -3 : i32
    %401 = vector.broadcast %c-3_i32_162 : i32 to vector<16x1xi32>
    %402 = arith.cmpi sge, %127, %401 : vector<16x1xi32>
    %c13_i32_163 = arith.constant 13 : i32
    %403 = vector.broadcast %c13_i32_163 : i32 to vector<16x1xi32>
    %404 = arith.cmpi slt, %127, %403 : vector<16x1xi32>
    %405 = arith.andi %402, %404 : vector<16x1xi1>
    %cst_164 = arith.constant 0.000000e+00 : f32
    %406 = vector.shape_cast %405 : vector<16x1xi1> to vector<16x1xi1>
    %407 = vector.broadcast %406 : vector<16x1xi1> to vector<16x256xi1>
    %408 = vector.broadcast %cst_164 : f32 to vector<16x256xf32>
    %409 = arith.select %407, %400, %408 : vector<16x256xi1>, vector<16x256xf32>
    %410 = arith.truncf %409 : vector<16x256xf32> to vector<16x256xbf16>
    %c7_165 = arith.constant 7 : index
    %c0_166 = arith.constant 0 : index
    %c0_167 = arith.constant 0 : index
    %411 = vector.load %arg13[%c7_165, %c0_166, %c0_167] : memref<9x256x128xbf16, #tpu.memory_space<vmem>>, vector<1x256x128xbf16>
    %412 = vector.shape_cast %411 : vector<1x256x128xbf16> to vector<256x128xbf16>
    %cst_168 = arith.constant dense<0.000000e+00> : vector<16x128xf32>
    %413 = tpu.matmul %410, %412, %cst_168 {dimension_numbers = #tpu.dot_dimension_numbers<[1], [0], [0], [1], [0, 0, 1, 1], [], []>} : vector<16x256xbf16>, vector<256x128xbf16>, vector<16x128xf32> -> vector<16x128xf32>
    %414 = arith.addf %399, %413 : vector<16x128xf32>
    %c12_i32_169 = arith.constant 12 : i32
    %415 = tpu.dynamic_rotate %291 by %c12_i32_169 dim 0 : vector<16x256xf32>, i32 -> vector<16x256xf32>
    %c-4_i32_170 = arith.constant -4 : i32
    %416 = vector.broadcast %c-4_i32_170 : i32 to vector<16x1xi32>
    %417 = arith.cmpi sge, %127, %416 : vector<16x1xi32>
    %c12_i32_171 = arith.constant 12 : i32
    %418 = vector.broadcast %c12_i32_171 : i32 to vector<16x1xi32>
    %419 = arith.cmpi slt, %127, %418 : vector<16x1xi32>
    %420 = arith.andi %417, %419 : vector<16x1xi1>
    %cst_172 = arith.constant 0.000000e+00 : f32
    %421 = vector.shape_cast %420 : vector<16x1xi1> to vector<16x1xi1>
    %422 = vector.broadcast %421 : vector<16x1xi1> to vector<16x256xi1>
    %423 = vector.broadcast %cst_172 : f32 to vector<16x256xf32>
    %424 = arith.select %422, %415, %423 : vector<16x256xi1>, vector<16x256xf32>
    %425 = arith.truncf %424 : vector<16x256xf32> to vector<16x256xbf16>
    %c8_173 = arith.constant 8 : index
    %c0_174 = arith.constant 0 : index
    %c0_175 = arith.constant 0 : index
    %426 = vector.load %arg13[%c8_173, %c0_174, %c0_175] : memref<9x256x128xbf16, #tpu.memory_space<vmem>>, vector<1x256x128xbf16>
    %427 = vector.shape_cast %426 : vector<1x256x128xbf16> to vector<256x128xbf16>
    %cst_176 = arith.constant dense<0.000000e+00> : vector<16x128xf32>
    %428 = tpu.matmul %425, %427, %cst_176 {dimension_numbers = #tpu.dot_dimension_numbers<[1], [0], [0], [1], [0, 0, 1, 1], [], []>} : vector<16x256xbf16>, vector<256x128xbf16>, vector<16x128xf32> -> vector<16x128xf32>
    %429 = arith.addf %414, %428 : vector<16x128xf32>
    %430 = arith.addf %126, %429 : vector<16x128xf32>
    %cst_177 = arith.constant dense<0.000000e+00> : vector<16xf32>
    %431 = vector.multi_reduction <add>, %430, %cst_177 [1] : vector<16x128xf32> to vector<16xf32>
    %432 = vector.shape_cast %431 : vector<16xf32> to vector<16x1xf32>
    %cst_178 = arith.constant 1.280000e+02 : f32
    %433 = vector.broadcast %cst_178 : f32 to vector<16x1xf32>
    %434 = arith.divf %432, %433 : vector<16x1xf32>
    %435 = vector.broadcast %434 : vector<16x1xf32> to vector<16x128xf32>
    %436 = arith.subf %430, %435 : vector<16x128xf32>
    %437 = arith.mulf %436, %436 : vector<16x128xf32>
    %cst_179 = arith.constant dense<0.000000e+00> : vector<16xf32>
    %438 = vector.multi_reduction <add>, %437, %cst_179 [1] : vector<16x128xf32> to vector<16xf32>
    %439 = vector.shape_cast %438 : vector<16xf32> to vector<16x1xf32>
    %cst_180 = arith.constant 1.280000e+02 : f32
    %440 = vector.broadcast %cst_180 : f32 to vector<16x1xf32>
    %441 = arith.divf %439, %440 : vector<16x1xf32>
    %442 = vector.broadcast %434 : vector<16x1xf32> to vector<16x128xf32>
    %443 = arith.subf %430, %442 : vector<16x128xf32>
    %cst_181 = arith.constant 9.99999974E-6 : f32
    %444 = vector.broadcast %cst_181 : f32 to vector<16x1xf32>
    %445 = arith.addf %441, %444 : vector<16x1xf32>
    %446 = math.rsqrt %445 : vector<16x1xf32>
    %447 = vector.broadcast %446 : vector<16x1xf32> to vector<16x128xf32>
    %448 = arith.mulf %443, %447 : vector<16x128xf32>
    %c0_182 = arith.constant 0 : index
    %c0_183 = arith.constant 0 : index
    %449 = vector.load %arg15[%c0_182, %c0_183] : memref<1x128xf32, #tpu.memory_space<vmem>>, vector<1x128xf32>
    %450 = vector.broadcast %449 : vector<1x128xf32> to vector<16x128xf32>
    %451 = arith.mulf %448, %450 : vector<16x128xf32>
    %c0_184 = arith.constant 0 : index
    %c0_185 = arith.constant 0 : index
    %452 = vector.load %arg16[%c0_184, %c0_185] : memref<1x128xf32, #tpu.memory_space<vmem>>, vector<1x128xf32>
    %453 = vector.broadcast %452 : vector<1x128xf32> to vector<16x128xf32>
    %454 = arith.addf %451, %453 : vector<16x128xf32>
    %455 = arith.truncf %454 : vector<16x128xf32> to vector<16x128xbf16>
    %c0_186 = arith.constant 0 : index
    %c0_187 = arith.constant 0 : index
    %c0_188 = arith.constant 0 : index
    %456 = vector.load %arg17[%c0_186, %c0_187, %c0_188] : memref<1x16x128xbf16, #tpu.memory_space<vmem>>, vector<1x16x128xbf16>
    %457 = vector.shape_cast %456 : vector<1x16x128xbf16> to vector<16x128xbf16>
    %458 = vector.shape_cast %455 : vector<16x128xbf16> to vector<1x16x128xbf16>
    tpu.vector_store %arg17[%c0_186, %c0_187, %c0_188], %458 {strides = array<i32>} : memref<1x16x128xbf16, #tpu.memory_space<vmem>>, vector<1x16x128xbf16>,
    return
  }
  func.func @transform_0(%arg0: i32) -> (i32, i32, i32) {
    %c0_i32 = arith.constant 0 : i32
    %c0_i32_0 = arith.constant 0 : i32
    %c0_i32_1 = arith.constant 0 : i32
    return %arg0, %c0_i32, %c0_i32_0 : i32, i32, i32
  }
  func.func @transform_1(%arg0: i32) -> (i32, i32, i32) {
    %c0_i32 = arith.constant 0 : i32
    %c0_i32_0 = arith.constant 0 : i32
    %c0_i32_1 = arith.constant 0 : i32
    return %arg0, %c0_i32, %c0_i32_0 : i32, i32, i32
  }
  func.func @transform_2(%arg0: i32) -> (i32, i32) {
    %c0_i32 = arith.constant 0 : i32
    %c0_i32_0 = arith.constant 0 : i32
    %c0_i32_1 = arith.constant 0 : i32
    return %c0_i32, %c0_i32_0 : i32, i32
  }
  func.func @transform_3(%arg0: i32) -> (i32, i32) {
    %c0_i32 = arith.constant 0 : i32
    %c0_i32_0 = arith.constant 0 : i32
    %c0_i32_1 = arith.constant 0 : i32
    return %c0_i32, %c0_i32_0 : i32, i32
  }
  func.func @transform_4(%arg0: i32) -> (i32, i32) {
    %c0_i32 = arith.constant 0 : i32
    %c0_i32_0 = arith.constant 0 : i32
    %c0_i32_1 = arith.constant 0 : i32
    return %c0_i32, %c0_i32_0 : i32, i32
  }
  func.func @transform_5(%arg0: i32) -> (i32, i32) {
    %c0_i32 = arith.constant 0 : i32
    %c0_i32_0 = arith.constant 0 : i32
    %c0_i32_1 = arith.constant 0 : i32
    return %c0_i32, %c0_i32_0 : i32, i32
  }
  func.func @transform_6(%arg0: i32) -> (i32, i32) {
    %c0_i32 = arith.constant 0 : i32
    %c0_i32_0 = arith.constant 0 : i32
    %c0_i32_1 = arith.constant 0 : i32
    return %c0_i32, %c0_i32_0 : i32, i32
  }
  func.func @transform_7(%arg0: i32) -> (i32, i32) {
    %c0_i32 = arith.constant 0 : i32
    %c0_i32_0 = arith.constant 0 : i32
    %c0_i32_1 = arith.constant 0 : i32
    return %c0_i32, %c0_i32_0 : i32, i32
  }
  func.func @transform_8(%arg0: i32) -> (i32, i32) {
    %c0_i32 = arith.constant 0 : i32
    %c0_i32_0 = arith.constant 0 : i32
    %c0_i32_1 = arith.constant 0 : i32
    return %c0_i32, %c0_i32_0 : i32, i32
  }
  func.func @transform_9(%arg0: i32) -> (i32, i32) {
    %c0_i32 = arith.constant 0 : i32
    %c0_i32_0 = arith.constant 0 : i32
    %c0_i32_1 = arith.constant 0 : i32
    return %c0_i32, %c0_i32_0 : i32, i32
  }
  func.func @transform_10(%arg0: i32) -> (i32, i32, i32) {
    %c0_i32 = arith.constant 0 : i32
    %c0_i32_0 = arith.constant 0 : i32
    %c0_i32_1 = arith.constant 0 : i32
    %c0_i32_2 = arith.constant 0 : i32
    return %c0_i32, %c0_i32_0, %c0_i32_1 : i32, i32, i32
  }
  func.func @transform_11(%arg0: i32) -> (i32, i32) {
    %c0_i32 = arith.constant 0 : i32
    %c0_i32_0 = arith.constant 0 : i32
    %c0_i32_1 = arith.constant 0 : i32
    return %c0_i32, %c0_i32_0 : i32, i32
  }
  func.func @transform_12(%arg0: i32) -> (i32, i32, i32) {
    %c0_i32 = arith.constant 0 : i32
    %c0_i32_0 = arith.constant 0 : i32
    %c0_i32_1 = arith.constant 0 : i32
    %c0_i32_2 = arith.constant 0 : i32
    return %c0_i32, %c0_i32_0, %c0_i32_1 : i32, i32, i32
  }
  func.func @transform_13(%arg0: i32) -> (i32, i32) {
    %c0_i32 = arith.constant 0 : i32
    %c0_i32_0 = arith.constant 0 : i32
    %c0_i32_1 = arith.constant 0 : i32
    return %c0_i32, %c0_i32_0 : i32, i32
  }
  func.func @transform_14(%arg0: i32) -> (i32, i32) {
    %c0_i32 = arith.constant 0 : i32
    %c0_i32_0 = arith.constant 0 : i32
    %c0_i32_1 = arith.constant 0 : i32
    return %c0_i32, %c0_i32_0 : i32, i32
  }
  func.func @transform_15(%arg0: i32) -> (i32, i32) {
    %c0_i32 = arith.constant 0 : i32
    %c0_i32_0 = arith.constant 0 : i32
    %c0_i32_1 = arith.constant 0 : i32
    return %c0_i32, %c0_i32_0 : i32, i32
  }
  func.func @transform_16(%arg0: i32) -> (i32, i32, i32) {
    %c0_i32 = arith.constant 0 : i32
    %c0_i32_0 = arith.constant 0 : i32
    %c0_i32_1 = arith.constant 0 : i32
    return %arg0, %c0_i32, %c0_i32_0 : i32, i32, i32
  }
}

module attributes {stable_mosaic.version = 11 : i64} {
  func.func @_encoder_layer_kernel(%arg0: i32, %arg1: memref<1x16x128xbf16, #tpu.memory_space<vmem>>, %arg2: memref<1x1x16xf32, #tpu.memory_space<vmem>>, %arg3: memref<1x128xf32, #tpu.memory_space<vmem>>, %arg4: memref<1x128xf32, #tpu.memory_space<vmem>>, %arg5: memref<128x384xbf16, #tpu.memory_space<vmem>>, %arg6: memref<1x384xf32, #tpu.memory_space<vmem>>, %arg7: memref<128x128xbf16, #tpu.memory_space<vmem>>, %arg8: memref<1x128xf32, #tpu.memory_space<vmem>>, %arg9: memref<1x128xf32, #tpu.memory_space<vmem>>, %arg10: memref<1x128xf32, #tpu.memory_space<vmem>>, %arg11: memref<9x128x256xbf16, #tpu.memory_space<vmem>>, %arg12: memref<1x256xf32, #tpu.memory_space<vmem>>, %arg13: memref<9x256x128xbf16, #tpu.memory_space<vmem>>, %arg14: memref<1x128xf32, #tpu.memory_space<vmem>>, %arg15: memref<1x128xf32, #tpu.memory_space<vmem>>, %arg16: memref<1x128xf32, #tpu.memory_space<vmem>>, %arg17: memref<1x16x128xbf16, #tpu.memory_space<vmem>>) attributes {dimension_semantics = [#tpu.dimension_semantics<parallel>], iteration_bounds = array<i64: 2>, scalar_prefetch = 0 : i64, scratch_operands = 0 : i64, tpu.core_type = #tpu.core_type<tc>, window_params = [{transform_indices = @transform_0, window_bounds = array<i64: 1, 16, 128>}, {transform_indices = @transform_1, window_bounds = array<i64: 1, 1, 16>}, {pipeline_mode = #tpu.pipeline_mode<synchronous>, transform_indices = @transform_2, window_bounds = array<i64: 1, 128>}, {pipeline_mode = #tpu.pipeline_mode<synchronous>, transform_indices = @transform_3, window_bounds = array<i64: 1, 128>}, {pipeline_mode = #tpu.pipeline_mode<synchronous>, transform_indices = @transform_4, window_bounds = array<i64: 128, 384>}, {pipeline_mode = #tpu.pipeline_mode<synchronous>, transform_indices = @transform_5, window_bounds = array<i64: 1, 384>}, {pipeline_mode = #tpu.pipeline_mode<synchronous>, transform_indices = @transform_6, window_bounds = array<i64: 128, 128>}, {pipeline_mode = #tpu.pipeline_mode<synchronous>, transform_indices = @transform_7, window_bounds = array<i64: 1, 128>}, {pipeline_mode = #tpu.pipeline_mode<synchronous>, transform_indices = @transform_8, window_bounds = array<i64: 1, 128>}, {pipeline_mode = #tpu.pipeline_mode<synchronous>, transform_indices = @transform_9, window_bounds = array<i64: 1, 128>}, {pipeline_mode = #tpu.pipeline_mode<synchronous>, transform_indices = @transform_10, window_bounds = array<i64: 9, 128, 256>}, {pipeline_mode = #tpu.pipeline_mode<synchronous>, transform_indices = @transform_11, window_bounds = array<i64: 1, 256>}, {pipeline_mode = #tpu.pipeline_mode<synchronous>, transform_indices = @transform_12, window_bounds = array<i64: 9, 256, 128>}, {pipeline_mode = #tpu.pipeline_mode<synchronous>, transform_indices = @transform_13, window_bounds = array<i64: 1, 128>}, {pipeline_mode = #tpu.pipeline_mode<synchronous>, transform_indices = @transform_14, window_bounds = array<i64: 1, 128>}, {pipeline_mode = #tpu.pipeline_mode<synchronous>, transform_indices = @transform_15, window_bounds = array<i64: 1, 128>}, {transform_indices = @transform_16, window_bounds = array<i64: 1, 16, 128>}]} {
    %c0 = arith.constant 0 : index
    %c0_0 = arith.constant 0 : index
    %c0_1 = arith.constant 0 : index
    %0 = vector.load %arg1[%c0, %c0_0, %c0_1] : memref<1x16x128xbf16, #tpu.memory_space<vmem>>, vector<1x16x128xbf16>
    %1 = vector.shape_cast %0 : vector<1x16x128xbf16> to vector<16x128xbf16>
    %2 = arith.extf %1 : vector<16x128xbf16> to vector<16x128xf32>
    %c0_2 = arith.constant 0 : index
    %c0_3 = arith.constant 0 : index
    %c0_4 = arith.constant 0 : index
    %3 = vector.load %arg2[%c0_2, %c0_3, %c0_4] : memref<1x1x16xf32, #tpu.memory_space<vmem>>, vector<1x1x16xf32>
    %4 = vector.shape_cast %3 : vector<1x1x16xf32> to vector<1x16xf32>
    %cst = arith.constant dense<0.000000e+00> : vector<16xf32>
    %5 = vector.multi_reduction <add>, %2, %cst [1] : vector<16x128xf32> to vector<16xf32>
    %6 = vector.shape_cast %5 : vector<16xf32> to vector<16x1xf32>
    %cst_5 = arith.constant 1.280000e+02 : f32
    %7 = vector.broadcast %cst_5 : f32 to vector<16x1xf32>
    %8 = arith.divf %6, %7 : vector<16x1xf32>
    %9 = vector.broadcast %8 : vector<16x1xf32> to vector<16x128xf32>
    %10 = arith.subf %2, %9 : vector<16x128xf32>
    %11 = arith.mulf %10, %10 : vector<16x128xf32>
    %cst_6 = arith.constant dense<0.000000e+00> : vector<16xf32>
    %12 = vector.multi_reduction <add>, %11, %cst_6 [1] : vector<16x128xf32> to vector<16xf32>
    %13 = vector.shape_cast %12 : vector<16xf32> to vector<16x1xf32>
    %cst_7 = arith.constant 1.280000e+02 : f32
    %14 = vector.broadcast %cst_7 : f32 to vector<16x1xf32>
    %15 = arith.divf %13, %14 : vector<16x1xf32>
    %16 = vector.broadcast %8 : vector<16x1xf32> to vector<16x128xf32>
    %17 = arith.subf %2, %16 : vector<16x128xf32>
    %cst_8 = arith.constant 9.99999974E-6 : f32
    %18 = vector.broadcast %cst_8 : f32 to vector<16x1xf32>
    %19 = arith.addf %15, %18 : vector<16x1xf32>
    %20 = math.rsqrt %19 : vector<16x1xf32>
    %21 = vector.broadcast %20 : vector<16x1xf32> to vector<16x128xf32>
    %22 = arith.mulf %17, %21 : vector<16x128xf32>
    %c0_9 = arith.constant 0 : index
    %c0_10 = arith.constant 0 : index
    %23 = vector.load %arg3[%c0_9, %c0_10] : memref<1x128xf32, #tpu.memory_space<vmem>>, vector<1x128xf32>
    %24 = vector.broadcast %23 : vector<1x128xf32> to vector<16x128xf32>
    %25 = arith.mulf %22, %24 : vector<16x128xf32>
    %c0_11 = arith.constant 0 : index
    %c0_12 = arith.constant 0 : index
    %26 = vector.load %arg4[%c0_11, %c0_12] : memref<1x128xf32, #tpu.memory_space<vmem>>, vector<1x128xf32>
    %27 = vector.broadcast %26 : vector<1x128xf32> to vector<16x128xf32>
    %28 = arith.addf %25, %27 : vector<16x128xf32>
    %29 = arith.truncf %28 : vector<16x128xf32> to vector<16x128xbf16>
    %c0_13 = arith.constant 0 : index
    %c0_14 = arith.constant 0 : index
    %30 = vector.load %arg5[%c0_13, %c0_14] : memref<128x384xbf16, #tpu.memory_space<vmem>>, vector<128x384xbf16>
    %cst_15 = arith.constant dense<0.000000e+00> : vector<16x384xf32>
    %31 = tpu.matmul %29, %30, %cst_15 {dimension_numbers = #tpu.dot_dimension_numbers<[1], [0], [0], [1], [0, 0, 1, 1], [], []>} : vector<16x128xbf16>, vector<128x384xbf16>, vector<16x384xf32> -> vector<16x384xf32>
    %c0_16 = arith.constant 0 : index
    %c0_17 = arith.constant 0 : index
    %32 = vector.load %arg6[%c0_16, %c0_17] : memref<1x384xf32, #tpu.memory_space<vmem>>, vector<1x384xf32>
    %33 = vector.broadcast %32 : vector<1x384xf32> to vector<16x384xf32>
    %34 = arith.addf %31, %33 : vector<16x384xf32>
    %35 = arith.truncf %34 : vector<16x384xf32> to vector<16x384xbf16>
    %c0_18 = arith.constant 0 : index
    %c0_19 = arith.constant 0 : index
    %36 = vector.load %arg8[%c0_18, %c0_19] : memref<1x128xf32, #tpu.memory_space<vmem>>, vector<1x128xf32>
    %37 = vector.broadcast %36 : vector<1x128xf32> to vector<16x128xf32>
    %38 = arith.addf %2, %37 : vector<16x128xf32>
    %39 = vector.extract_strided_slice %35 {offsets = [0, 0], sizes = [16, 32], strides = [1, 1]} : vector<16x384xbf16> to vector<16x32xbf16>
    %40 = vector.extract_strided_slice %35 {offsets = [0, 128], sizes = [16, 32], strides = [1, 1]} : vector<16x384xbf16> to vector<16x32xbf16>
    %41 = vector.extract_strided_slice %35 {offsets = [0, 256], sizes = [16, 32], strides = [1, 1]} : vector<16x384xbf16> to vector<16x32xbf16>
    %cst_20 = arith.constant dense<0.000000e+00> : vector<16x16xf32>
    %42 = tpu.matmul %39, %40, %cst_20 {dimension_numbers = #tpu.dot_dimension_numbers<[1], [1], [0], [0], [0, 0, 1, 0], [], []>} : vector<16x32xbf16>, vector<16x32xbf16>, vector<16x16xf32> -> vector<16x16xf32>
    %43 = vector.broadcast %4 : vector<1x16xf32> to vector<16x16xf32>
    %44 = arith.addf %42, %43 : vector<16x16xf32>
    %cst_21 = arith.constant dense<0xFF800000> : vector<16xf32>
    %45 = vector.multi_reduction <maximumf>, %44, %cst_21 [1] : vector<16x16xf32> to vector<16xf32>
    %46 = vector.shape_cast %45 : vector<16xf32> to vector<16x1xf32>
    %47 = vector.broadcast %46 : vector<16x1xf32> to vector<16x16xf32>
    %48 = arith.subf %44, %47 : vector<16x16xf32>
    %49 = math.exp %48 : vector<16x16xf32>
    %cst_22 = arith.constant dense<0.000000e+00> : vector<16xf32>
    %50 = vector.multi_reduction <add>, %49, %cst_22 [1] : vector<16x16xf32> to vector<16xf32>
    %51 = vector.shape_cast %50 : vector<16xf32> to vector<16x1xf32>
    %52 = tpu.reciprocal %51 {approx = true} : vector<16x1xf32> -> vector<16x1xf32>
    %53 = vector.broadcast %52 : vector<16x1xf32> to vector<16x16xf32>
    %54 = arith.mulf %49, %53 : vector<16x16xf32>
    %55 = arith.truncf %54 : vector<16x16xf32> to vector<16x16xbf16>
    %cst_23 = arith.constant dense<0.000000e+00> : vector<16x32xf32>
    %56 = tpu.matmul %55, %41, %cst_23 {dimension_numbers = #tpu.dot_dimension_numbers<[1], [0], [0], [1], [0, 0, 1, 1], [], []>} : vector<16x16xbf16>, vector<16x32xbf16>, vector<16x32xf32> -> vector<16x32xf32>
    %57 = arith.truncf %56 : vector<16x32xf32> to vector<16x32xbf16>
    %c0_24 = arith.constant 0 : index
    %c0_25 = arith.constant 0 : index
    %58 = vector.load %arg7[%c0_24, %c0_25] : memref<128x128xbf16, #tpu.memory_space<vmem>>, vector<32x128xbf16>
    %cst_26 = arith.constant dense<0.000000e+00> : vector<16x128xf32>
    %59 = tpu.matmul %57, %58, %cst_26 {dimension_numbers = #tpu.dot_dimension_numbers<[1], [0], [0], [1], [0, 0, 1, 1], [], []>} : vector<16x32xbf16>, vector<32x128xbf16>, vector<16x128xf32> -> vector<16x128xf32>
    %60 = arith.addf %38, %59 : vector<16x128xf32>
    %61 = vector.extract_strided_slice %35 {offsets = [0, 32], sizes = [16, 32], strides = [1, 1]} : vector<16x384xbf16> to vector<16x32xbf16>
    %62 = vector.extract_strided_slice %35 {offsets = [0, 160], sizes = [16, 32], strides = [1, 1]} : vector<16x384xbf16> to vector<16x32xbf16>
    %63 = vector.extract_strided_slice %35 {offsets = [0, 288], sizes = [16, 32], strides = [1, 1]} : vector<16x384xbf16> to vector<16x32xbf16>
    %cst_27 = arith.constant dense<0.000000e+00> : vector<16x16xf32>
    %64 = tpu.matmul %61, %62, %cst_27 {dimension_numbers = #tpu.dot_dimension_numbers<[1], [1], [0], [0], [0, 0, 1, 0], [], []>} : vector<16x32xbf16>, vector<16x32xbf16>, vector<16x16xf32> -> vector<16x16xf32>
    %65 = vector.broadcast %4 : vector<1x16xf32> to vector<16x16xf32>
    %66 = arith.addf %64, %65 : vector<16x16xf32>
    %cst_28 = arith.constant dense<0xFF800000> : vector<16xf32>
    %67 = vector.multi_reduction <maximumf>, %66, %cst_28 [1] : vector<16x16xf32> to vector<16xf32>
    %68 = vector.shape_cast %67 : vector<16xf32> to vector<16x1xf32>
    %69 = vector.broadcast %68 : vector<16x1xf32> to vector<16x16xf32>
    %70 = arith.subf %66, %69 : vector<16x16xf32>
    %71 = math.exp %70 : vector<16x16xf32>
    %cst_29 = arith.constant dense<0.000000e+00> : vector<16xf32>
    %72 = vector.multi_reduction <add>, %71, %cst_29 [1] : vector<16x16xf32> to vector<16xf32>
    %73 = vector.shape_cast %72 : vector<16xf32> to vector<16x1xf32>
    %74 = tpu.reciprocal %73 {approx = true} : vector<16x1xf32> -> vector<16x1xf32>
    %75 = vector.broadcast %74 : vector<16x1xf32> to vector<16x16xf32>
    %76 = arith.mulf %71, %75 : vector<16x16xf32>
    %77 = arith.truncf %76 : vector<16x16xf32> to vector<16x16xbf16>
    %cst_30 = arith.constant dense<0.000000e+00> : vector<16x32xf32>
    %78 = tpu.matmul %77, %63, %cst_30 {dimension_numbers = #tpu.dot_dimension_numbers<[1], [0], [0], [1], [0, 0, 1, 1], [], []>} : vector<16x16xbf16>, vector<16x32xbf16>, vector<16x32xf32> -> vector<16x32xf32>
    %79 = arith.truncf %78 : vector<16x32xf32> to vector<16x32xbf16>
    %c32 = arith.constant 32 : index
    %c0_31 = arith.constant 0 : index
    %80 = vector.load %arg7[%c32, %c0_31] : memref<128x128xbf16, #tpu.memory_space<vmem>>, vector<32x128xbf16>
    %cst_32 = arith.constant dense<0.000000e+00> : vector<16x128xf32>
    %81 = tpu.matmul %79, %80, %cst_32 {dimension_numbers = #tpu.dot_dimension_numbers<[1], [0], [0], [1], [0, 0, 1, 1], [], []>} : vector<16x32xbf16>, vector<32x128xbf16>, vector<16x128xf32> -> vector<16x128xf32>
    %82 = arith.addf %60, %81 : vector<16x128xf32>
    %83 = vector.extract_strided_slice %35 {offsets = [0, 64], sizes = [16, 32], strides = [1, 1]} : vector<16x384xbf16> to vector<16x32xbf16>
    %84 = vector.extract_strided_slice %35 {offsets = [0, 192], sizes = [16, 32], strides = [1, 1]} : vector<16x384xbf16> to vector<16x32xbf16>
    %85 = vector.extract_strided_slice %35 {offsets = [0, 320], sizes = [16, 32], strides = [1, 1]} : vector<16x384xbf16> to vector<16x32xbf16>
    %cst_33 = arith.constant dense<0.000000e+00> : vector<16x16xf32>
    %86 = tpu.matmul %83, %84, %cst_33 {dimension_numbers = #tpu.dot_dimension_numbers<[1], [1], [0], [0], [0, 0, 1, 0], [], []>} : vector<16x32xbf16>, vector<16x32xbf16>, vector<16x16xf32> -> vector<16x16xf32>
    %87 = vector.broadcast %4 : vector<1x16xf32> to vector<16x16xf32>
    %88 = arith.addf %86, %87 : vector<16x16xf32>
    %cst_34 = arith.constant dense<0xFF800000> : vector<16xf32>
    %89 = vector.multi_reduction <maximumf>, %88, %cst_34 [1] : vector<16x16xf32> to vector<16xf32>
    %90 = vector.shape_cast %89 : vector<16xf32> to vector<16x1xf32>
    %91 = vector.broadcast %90 : vector<16x1xf32> to vector<16x16xf32>
    %92 = arith.subf %88, %91 : vector<16x16xf32>
    %93 = math.exp %92 : vector<16x16xf32>
    %cst_35 = arith.constant dense<0.000000e+00> : vector<16xf32>
    %94 = vector.multi_reduction <add>, %93, %cst_35 [1] : vector<16x16xf32> to vector<16xf32>
    %95 = vector.shape_cast %94 : vector<16xf32> to vector<16x1xf32>
    %96 = tpu.reciprocal %95 {approx = true} : vector<16x1xf32> -> vector<16x1xf32>
    %97 = vector.broadcast %96 : vector<16x1xf32> to vector<16x16xf32>
    %98 = arith.mulf %93, %97 : vector<16x16xf32>
    %99 = arith.truncf %98 : vector<16x16xf32> to vector<16x16xbf16>
    %cst_36 = arith.constant dense<0.000000e+00> : vector<16x32xf32>
    %100 = tpu.matmul %99, %85, %cst_36 {dimension_numbers = #tpu.dot_dimension_numbers<[1], [0], [0], [1], [0, 0, 1, 1], [], []>} : vector<16x16xbf16>, vector<16x32xbf16>, vector<16x32xf32> -> vector<16x32xf32>
    %101 = arith.truncf %100 : vector<16x32xf32> to vector<16x32xbf16>
    %c64 = arith.constant 64 : index
    %c0_37 = arith.constant 0 : index
    %102 = vector.load %arg7[%c64, %c0_37] : memref<128x128xbf16, #tpu.memory_space<vmem>>, vector<32x128xbf16>
    %cst_38 = arith.constant dense<0.000000e+00> : vector<16x128xf32>
    %103 = tpu.matmul %101, %102, %cst_38 {dimension_numbers = #tpu.dot_dimension_numbers<[1], [0], [0], [1], [0, 0, 1, 1], [], []>} : vector<16x32xbf16>, vector<32x128xbf16>, vector<16x128xf32> -> vector<16x128xf32>
    %104 = arith.addf %82, %103 : vector<16x128xf32>
    %105 = vector.extract_strided_slice %35 {offsets = [0, 96], sizes = [16, 32], strides = [1, 1]} : vector<16x384xbf16> to vector<16x32xbf16>
    %106 = vector.extract_strided_slice %35 {offsets = [0, 224], sizes = [16, 32], strides = [1, 1]} : vector<16x384xbf16> to vector<16x32xbf16>
    %107 = vector.extract_strided_slice %35 {offsets = [0, 352], sizes = [16, 32], strides = [1, 1]} : vector<16x384xbf16> to vector<16x32xbf16>
    %cst_39 = arith.constant dense<0.000000e+00> : vector<16x16xf32>
    %108 = tpu.matmul %105, %106, %cst_39 {dimension_numbers = #tpu.dot_dimension_numbers<[1], [1], [0], [0], [0, 0, 1, 0], [], []>} : vector<16x32xbf16>, vector<16x32xbf16>, vector<16x16xf32> -> vector<16x16xf32>
    %109 = vector.broadcast %4 : vector<1x16xf32> to vector<16x16xf32>
    %110 = arith.addf %108, %109 : vector<16x16xf32>
    %cst_40 = arith.constant dense<0xFF800000> : vector<16xf32>
    %111 = vector.multi_reduction <maximumf>, %110, %cst_40 [1] : vector<16x16xf32> to vector<16xf32>
    %112 = vector.shape_cast %111 : vector<16xf32> to vector<16x1xf32>
    %113 = vector.broadcast %112 : vector<16x1xf32> to vector<16x16xf32>
    %114 = arith.subf %110, %113 : vector<16x16xf32>
    %115 = math.exp %114 : vector<16x16xf32>
    %cst_41 = arith.constant dense<0.000000e+00> : vector<16xf32>
    %116 = vector.multi_reduction <add>, %115, %cst_41 [1] : vector<16x16xf32> to vector<16xf32>
    %117 = vector.shape_cast %116 : vector<16xf32> to vector<16x1xf32>
    %118 = tpu.reciprocal %117 {approx = true} : vector<16x1xf32> -> vector<16x1xf32>
    %119 = vector.broadcast %118 : vector<16x1xf32> to vector<16x16xf32>
    %120 = arith.mulf %115, %119 : vector<16x16xf32>
    %121 = arith.truncf %120 : vector<16x16xf32> to vector<16x16xbf16>
    %cst_42 = arith.constant dense<0.000000e+00> : vector<16x32xf32>
    %122 = tpu.matmul %121, %107, %cst_42 {dimension_numbers = #tpu.dot_dimension_numbers<[1], [0], [0], [1], [0, 0, 1, 1], [], []>} : vector<16x16xbf16>, vector<16x32xbf16>, vector<16x32xf32> -> vector<16x32xf32>
    %123 = arith.truncf %122 : vector<16x32xf32> to vector<16x32xbf16>
    %c96 = arith.constant 96 : index
    %c0_43 = arith.constant 0 : index
    %124 = vector.load %arg7[%c96, %c0_43] : memref<128x128xbf16, #tpu.memory_space<vmem>>, vector<32x128xbf16>
    %cst_44 = arith.constant dense<0.000000e+00> : vector<16x128xf32>
    %125 = tpu.matmul %123, %124, %cst_44 {dimension_numbers = #tpu.dot_dimension_numbers<[1], [0], [0], [1], [0, 0, 1, 1], [], []>} : vector<16x32xbf16>, vector<32x128xbf16>, vector<16x128xf32> -> vector<16x128xf32>
    %126 = arith.addf %104, %125 : vector<16x128xf32>
    %127 = tpu.iota {dimensions = array<i32: 0>} : vector<16x1xi32>
    %cst_45 = arith.constant dense<0.000000e+00> : vector<16xf32>
    %128 = vector.multi_reduction <add>, %126, %cst_45 [1] : vector<16x128xf32> to vector<16xf32>
    %129 = vector.shape_cast %128 : vector<16xf32> to vector<16x1xf32>
    %cst_46 = arith.constant 1.280000e+02 : f32
    %130 = vector.broadcast %cst_46 : f32 to vector<16x1xf32>
    %131 = arith.divf %129, %130 : vector<16x1xf32>
    %132 = vector.broadcast %131 : vector<16x1xf32> to vector<16x128xf32>
    %133 = arith.subf %126, %132 : vector<16x128xf32>
    %134 = arith.mulf %133, %133 : vector<16x128xf32>
    %cst_47 = arith.constant dense<0.000000e+00> : vector<16xf32>
    %135 = vector.multi_reduction <add>, %134, %cst_47 [1] : vector<16x128xf32> to vector<16xf32>
    %136 = vector.shape_cast %135 : vector<16xf32> to vector<16x1xf32>
    %cst_48 = arith.constant 1.280000e+02 : f32
    %137 = vector.broadcast %cst_48 : f32 to vector<16x1xf32>
    %138 = arith.divf %136, %137 : vector<16x1xf32>
    %139 = vector.broadcast %131 : vector<16x1xf32> to vector<16x128xf32>
    %140 = arith.subf %126, %139 : vector<16x128xf32>
    %cst_49 = arith.constant 9.99999974E-6 : f32
    %141 = vector.broadcast %cst_49 : f32 to vector<16x1xf32>
    %142 = arith.addf %138, %141 : vector<16x1xf32>
    %143 = math.rsqrt %142 : vector<16x1xf32>
    %144 = vector.broadcast %143 : vector<16x1xf32> to vector<16x128xf32>
    %145 = arith.mulf %140, %144 : vector<16x128xf32>
    %c0_50 = arith.constant 0 : index
    %c0_51 = arith.constant 0 : index
    %146 = vector.load %arg9[%c0_50, %c0_51] : memref<1x128xf32, #tpu.memory_space<vmem>>, vector<1x128xf32>
    %147 = vector.broadcast %146 : vector<1x128xf32> to vector<16x128xf32>
    %148 = arith.mulf %145, %147 : vector<16x128xf32>
    %c0_52 = arith.constant 0 : index
    %c0_53 = arith.constant 0 : index
    %149 = vector.load %arg10[%c0_52, %c0_53] : memref<1x128xf32, #tpu.memory_space<vmem>>, vector<1x128xf32>
    %150 = vector.broadcast %149 : vector<1x128xf32> to vector<16x128xf32>
    %151 = arith.addf %148, %150 : vector<16x128xf32>
    %cst_54 = arith.constant 0.000000e+00 : f32
    %152 = vector.broadcast %cst_54 : f32 to vector<16x256xf32>
    %c0_55 = arith.constant 0 : index
    %c0_56 = arith.constant 0 : index
    %153 = vector.load %arg12[%c0_55, %c0_56] : memref<1x256xf32, #tpu.memory_space<vmem>>, vector<1x256xf32>
    %154 = vector.broadcast %153 : vector<1x256xf32> to vector<16x256xf32>
    %155 = arith.addf %152, %154 : vector<16x256xf32>
    %c4_i32 = arith.constant 4 : i32
    %156 = tpu.dynamic_rotate %151 by %c4_i32 dim 0 : vector<16x128xf32>, i32 -> vector<16x128xf32>
    %c4_i32_57 = arith.constant 4 : i32
    %157 = vector.broadcast %c4_i32_57 : i32 to vector<16x1xi32>
    %158 = arith.cmpi sge, %127, %157 : vector<16x1xi32>
    %c20_i32 = arith.constant 20 : i32
    %159 = vector.broadcast %c20_i32 : i32 to vector<16x1xi32>
    %160 = arith.cmpi slt, %127, %159 : vector<16x1xi32>
    %161 = arith.andi %158, %160 : vector<16x1xi1>
    %cst_58 = arith.constant 0.000000e+00 : f32
    %162 = vector.shape_cast %161 : vector<16x1xi1> to vector<16x1xi1>
    %163 = vector.broadcast %162 : vector<16x1xi1> to vector<16x128xi1>
    %164 = vector.broadcast %cst_58 : f32 to vector<16x128xf32>
    %165 = arith.select %163, %156, %164 : vector<16x128xi1>, vector<16x128xf32>
    %166 = arith.truncf %165 : vector<16x128xf32> to vector<16x128xbf16>
    %c0_59 = arith.constant 0 : index
    %c0_60 = arith.constant 0 : index
    %c0_61 = arith.constant 0 : index
    %167 = vector.load %arg11[%c0_59, %c0_60, %c0_61] : memref<9x128x256xbf16, #tpu.memory_space<vmem>>, vector<1x128x256xbf16>
    %168 = vector.shape_cast %167 : vector<1x128x256xbf16> to vector<128x256xbf16>
    %cst_62 = arith.constant dense<0.000000e+00> : vector<16x256xf32>
    %169 = tpu.matmul %166, %168, %cst_62 {dimension_numbers = #tpu.dot_dimension_numbers<[1], [0], [0], [1], [0, 0, 1, 1], [], []>} : vector<16x128xbf16>, vector<128x256xbf16>, vector<16x256xf32> -> vector<16x256xf32>
    %170 = arith.addf %155, %169 : vector<16x256xf32>
    %c3_i32 = arith.constant 3 : i32
    %171 = tpu.dynamic_rotate %151 by %c3_i32 dim 0 : vector<16x128xf32>, i32 -> vector<16x128xf32>
    %c3_i32_63 = arith.constant 3 : i32
    %172 = vector.broadcast %c3_i32_63 : i32 to vector<16x1xi32>
    %173 = arith.cmpi sge, %127, %172 : vector<16x1xi32>
    %c19_i32 = arith.constant 19 : i32
    %174 = vector.broadcast %c19_i32 : i32 to vector<16x1xi32>
    %175 = arith.cmpi slt, %127, %174 : vector<16x1xi32>
    %176 = arith.andi %173, %175 : vector<16x1xi1>
    %cst_64 = arith.constant 0.000000e+00 : f32
    %177 = vector.shape_cast %176 : vector<16x1xi1> to vector<16x1xi1>
    %178 = vector.broadcast %177 : vector<16x1xi1> to vector<16x128xi1>
    %179 = vector.broadcast %cst_64 : f32 to vector<16x128xf32>
    %180 = arith.select %178, %171, %179 : vector<16x128xi1>, vector<16x128xf32>
    %181 = arith.truncf %180 : vector<16x128xf32> to vector<16x128xbf16>
    %c1 = arith.constant 1 : index
    %c0_65 = arith.constant 0 : index
    %c0_66 = arith.constant 0 : index
    %182 = vector.load %arg11[%c1, %c0_65, %c0_66] : memref<9x128x256xbf16, #tpu.memory_space<vmem>>, vector<1x128x256xbf16>
    %183 = vector.shape_cast %182 : vector<1x128x256xbf16> to vector<128x256xbf16>
    %cst_67 = arith.constant dense<0.000000e+00> : vector<16x256xf32>
    %184 = tpu.matmul %181, %183, %cst_67 {dimension_numbers = #tpu.dot_dimension_numbers<[1], [0], [0], [1], [0, 0, 1, 1], [], []>} : vector<16x128xbf16>, vector<128x256xbf16>, vector<16x256xf32> -> vector<16x256xf32>
    %185 = arith.addf %170, %184 : vector<16x256xf32>
    %c2_i32 = arith.constant 2 : i32
    %186 = tpu.dynamic_rotate %151 by %c2_i32 dim 0 : vector<16x128xf32>, i32 -> vector<16x128xf32>
    %c2_i32_68 = arith.constant 2 : i32
    %187 = vector.broadcast %c2_i32_68 : i32 to vector<16x1xi32>
    %188 = arith.cmpi sge, %127, %187 : vector<16x1xi32>
    %c18_i32 = arith.constant 18 : i32
    %189 = vector.broadcast %c18_i32 : i32 to vector<16x1xi32>
    %190 = arith.cmpi slt, %127, %189 : vector<16x1xi32>
    %191 = arith.andi %188, %190 : vector<16x1xi1>
    %cst_69 = arith.constant 0.000000e+00 : f32
    %192 = vector.shape_cast %191 : vector<16x1xi1> to vector<16x1xi1>
    %193 = vector.broadcast %192 : vector<16x1xi1> to vector<16x128xi1>
    %194 = vector.broadcast %cst_69 : f32 to vector<16x128xf32>
    %195 = arith.select %193, %186, %194 : vector<16x128xi1>, vector<16x128xf32>
    %196 = arith.truncf %195 : vector<16x128xf32> to vector<16x128xbf16>
    %c2 = arith.constant 2 : index
    %c0_70 = arith.constant 0 : index
    %c0_71 = arith.constant 0 : index
    %197 = vector.load %arg11[%c2, %c0_70, %c0_71] : memref<9x128x256xbf16, #tpu.memory_space<vmem>>, vector<1x128x256xbf16>
    %198 = vector.shape_cast %197 : vector<1x128x256xbf16> to vector<128x256xbf16>
    %cst_72 = arith.constant dense<0.000000e+00> : vector<16x256xf32>
    %199 = tpu.matmul %196, %198, %cst_72 {dimension_numbers = #tpu.dot_dimension_numbers<[1], [0], [0], [1], [0, 0, 1, 1], [], []>} : vector<16x128xbf16>, vector<128x256xbf16>, vector<16x256xf32> -> vector<16x256xf32>
    %200 = arith.addf %185, %199 : vector<16x256xf32>
    %c1_i32 = arith.constant 1 : i32
    %201 = tpu.dynamic_rotate %151 by %c1_i32 dim 0 : vector<16x128xf32>, i32 -> vector<16x128xf32>
    %c1_i32_73 = arith.constant 1 : i32
    %202 = vector.broadcast %c1_i32_73 : i32 to vector<16x1xi32>
    %203 = arith.cmpi sge, %127, %202 : vector<16x1xi32>
    %c17_i32 = arith.constant 17 : i32
    %204 = vector.broadcast %c17_i32 : i32 to vector<16x1xi32>
    %205 = arith.cmpi slt, %127, %204 : vector<16x1xi32>
    %206 = arith.andi %203, %205 : vector<16x1xi1>
    %cst_74 = arith.constant 0.000000e+00 : f32
    %207 = vector.shape_cast %206 : vector<16x1xi1> to vector<16x1xi1>
    %208 = vector.broadcast %207 : vector<16x1xi1> to vector<16x128xi1>
    %209 = vector.broadcast %cst_74 : f32 to vector<16x128xf32>
    %210 = arith.select %208, %201, %209 : vector<16x128xi1>, vector<16x128xf32>
    %211 = arith.truncf %210 : vector<16x128xf32> to vector<16x128xbf16>
    %c3 = arith.constant 3 : index
    %c0_75 = arith.constant 0 : index
    %c0_76 = arith.constant 0 : index
    %212 = vector.load %arg11[%c3, %c0_75, %c0_76] : memref<9x128x256xbf16, #tpu.memory_space<vmem>>, vector<1x128x256xbf16>
    %213 = vector.shape_cast %212 : vector<1x128x256xbf16> to vector<128x256xbf16>
    %cst_77 = arith.constant dense<0.000000e+00> : vector<16x256xf32>
    %214 = tpu.matmul %211, %213, %cst_77 {dimension_numbers = #tpu.dot_dimension_numbers<[1], [0], [0], [1], [0, 0, 1, 1], [], []>} : vector<16x128xbf16>, vector<128x256xbf16>, vector<16x256xf32> -> vector<16x256xf32>
    %215 = arith.addf %200, %214 : vector<16x256xf32>
    %c0_i32 = arith.constant 0 : i32
    %216 = vector.broadcast %c0_i32 : i32 to vector<16x1xi32>
    %217 = arith.cmpi sge, %127, %216 : vector<16x1xi32>
    %c16_i32 = arith.constant 16 : i32
    %218 = vector.broadcast %c16_i32 : i32 to vector<16x1xi32>
    %219 = arith.cmpi slt, %127, %218 : vector<16x1xi32>
    %220 = arith.andi %217, %219 : vector<16x1xi1>
    %cst_78 = arith.constant 0.000000e+00 : f32
    %221 = vector.shape_cast %220 : vector<16x1xi1> to vector<16x1xi1>
    %222 = vector.broadcast %221 : vector<16x1xi1> to vector<16x128xi1>
    %223 = vector.broadcast %cst_78 : f32 to vector<16x128xf32>
    %224 = arith.select %222, %151, %223 : vector<16x128xi1>, vector<16x128xf32>
    %225 = arith.truncf %224 : vector<16x128xf32> to vector<16x128xbf16>
    %c4 = arith.constant 4 : index
    %c0_79 = arith.constant 0 : index
    %c0_80 = arith.constant 0 : index
    %226 = vector.load %arg11[%c4, %c0_79, %c0_80] : memref<9x128x256xbf16, #tpu.memory_space<vmem>>, vector<1x128x256xbf16>
    %227 = vector.shape_cast %226 : vector<1x128x256xbf16> to vector<128x256xbf16>
    %cst_81 = arith.constant dense<0.000000e+00> : vector<16x256xf32>
    %228 = tpu.matmul %225, %227, %cst_81 {dimension_numbers = #tpu.dot_dimension_numbers<[1], [0], [0], [1], [0, 0, 1, 1], [], []>} : vector<16x128xbf16>, vector<128x256xbf16>, vector<16x256xf32> -> vector<16x256xf32>
    %229 = arith.addf %215, %228 : vector<16x256xf32>
    %c15_i32 = arith.constant 15 : i32
    %230 = tpu.dynamic_rotate %151 by %c15_i32 dim 0 : vector<16x128xf32>, i32 -> vector<16x128xf32>
    %c-1_i32 = arith.constant -1 : i32
    %231 = vector.broadcast %c-1_i32 : i32 to vector<16x1xi32>
    %232 = arith.cmpi sge, %127, %231 : vector<16x1xi32>
    %c15_i32_82 = arith.constant 15 : i32
    %233 = vector.broadcast %c15_i32_82 : i32 to vector<16x1xi32>
    %234 = arith.cmpi slt, %127, %233 : vector<16x1xi32>
    %235 = arith.andi %232, %234 : vector<16x1xi1>
    %cst_83 = arith.constant 0.000000e+00 : f32
    %236 = vector.shape_cast %235 : vector<16x1xi1> to vector<16x1xi1>
    %237 = vector.broadcast %236 : vector<16x1xi1> to vector<16x128xi1>
    %238 = vector.broadcast %cst_83 : f32 to vector<16x128xf32>
    %239 = arith.select %237, %230, %238 : vector<16x128xi1>, vector<16x128xf32>
    %240 = arith.truncf %239 : vector<16x128xf32> to vector<16x128xbf16>
    %c5 = arith.constant 5 : index
    %c0_84 = arith.constant 0 : index
    %c0_85 = arith.constant 0 : index
    %241 = vector.load %arg11[%c5, %c0_84, %c0_85] : memref<9x128x256xbf16, #tpu.memory_space<vmem>>, vector<1x128x256xbf16>
    %242 = vector.shape_cast %241 : vector<1x128x256xbf16> to vector<128x256xbf16>
    %cst_86 = arith.constant dense<0.000000e+00> : vector<16x256xf32>
    %243 = tpu.matmul %240, %242, %cst_86 {dimension_numbers = #tpu.dot_dimension_numbers<[1], [0], [0], [1], [0, 0, 1, 1], [], []>} : vector<16x128xbf16>, vector<128x256xbf16>, vector<16x256xf32> -> vector<16x256xf32>
    %244 = arith.addf %229, %243 : vector<16x256xf32>
    %c14_i32 = arith.constant 14 : i32
    %245 = tpu.dynamic_rotate %151 by %c14_i32 dim 0 : vector<16x128xf32>, i32 -> vector<16x128xf32>
    %c-2_i32 = arith.constant -2 : i32
    %246 = vector.broadcast %c-2_i32 : i32 to vector<16x1xi32>
    %247 = arith.cmpi sge, %127, %246 : vector<16x1xi32>
    %c14_i32_87 = arith.constant 14 : i32
    %248 = vector.broadcast %c14_i32_87 : i32 to vector<16x1xi32>
    %249 = arith.cmpi slt, %127, %248 : vector<16x1xi32>
    %250 = arith.andi %247, %249 : vector<16x1xi1>
    %cst_88 = arith.constant 0.000000e+00 : f32
    %251 = vector.shape_cast %250 : vector<16x1xi1> to vector<16x1xi1>
    %252 = vector.broadcast %251 : vector<16x1xi1> to vector<16x128xi1>
    %253 = vector.broadcast %cst_88 : f32 to vector<16x128xf32>
    %254 = arith.select %252, %245, %253 : vector<16x128xi1>, vector<16x128xf32>
    %255 = arith.truncf %254 : vector<16x128xf32> to vector<16x128xbf16>
    %c6 = arith.constant 6 : index
    %c0_89 = arith.constant 0 : index
    %c0_90 = arith.constant 0 : index
    %256 = vector.load %arg11[%c6, %c0_89, %c0_90] : memref<9x128x256xbf16, #tpu.memory_space<vmem>>, vector<1x128x256xbf16>
    %257 = vector.shape_cast %256 : vector<1x128x256xbf16> to vector<128x256xbf16>
    %cst_91 = arith.constant dense<0.000000e+00> : vector<16x256xf32>
    %258 = tpu.matmul %255, %257, %cst_91 {dimension_numbers = #tpu.dot_dimension_numbers<[1], [0], [0], [1], [0, 0, 1, 1], [], []>} : vector<16x128xbf16>, vector<128x256xbf16>, vector<16x256xf32> -> vector<16x256xf32>
    %259 = arith.addf %244, %258 : vector<16x256xf32>
    %c13_i32 = arith.constant 13 : i32
    %260 = tpu.dynamic_rotate %151 by %c13_i32 dim 0 : vector<16x128xf32>, i32 -> vector<16x128xf32>
    %c-3_i32 = arith.constant -3 : i32
    %261 = vector.broadcast %c-3_i32 : i32 to vector<16x1xi32>
    %262 = arith.cmpi sge, %127, %261 : vector<16x1xi32>
    %c13_i32_92 = arith.constant 13 : i32
    %263 = vector.broadcast %c13_i32_92 : i32 to vector<16x1xi32>
    %264 = arith.cmpi slt, %127, %263 : vector<16x1xi32>
    %265 = arith.andi %262, %264 : vector<16x1xi1>
    %cst_93 = arith.constant 0.000000e+00 : f32
    %266 = vector.shape_cast %265 : vector<16x1xi1> to vector<16x1xi1>
    %267 = vector.broadcast %266 : vector<16x1xi1> to vector<16x128xi1>
    %268 = vector.broadcast %cst_93 : f32 to vector<16x128xf32>
    %269 = arith.select %267, %260, %268 : vector<16x128xi1>, vector<16x128xf32>
    %270 = arith.truncf %269 : vector<16x128xf32> to vector<16x128xbf16>
    %c7 = arith.constant 7 : index
    %c0_94 = arith.constant 0 : index
    %c0_95 = arith.constant 0 : index
    %271 = vector.load %arg11[%c7, %c0_94, %c0_95] : memref<9x128x256xbf16, #tpu.memory_space<vmem>>, vector<1x128x256xbf16>
    %272 = vector.shape_cast %271 : vector<1x128x256xbf16> to vector<128x256xbf16>
    %cst_96 = arith.constant dense<0.000000e+00> : vector<16x256xf32>
    %273 = tpu.matmul %270, %272, %cst_96 {dimension_numbers = #tpu.dot_dimension_numbers<[1], [0], [0], [1], [0, 0, 1, 1], [], []>} : vector<16x128xbf16>, vector<128x256xbf16>, vector<16x256xf32> -> vector<16x256xf32>
    %274 = arith.addf %259, %273 : vector<16x256xf32>
    %c12_i32 = arith.constant 12 : i32
    %275 = tpu.dynamic_rotate %151 by %c12_i32 dim 0 : vector<16x128xf32>, i32 -> vector<16x128xf32>
    %c-4_i32 = arith.constant -4 : i32
    %276 = vector.broadcast %c-4_i32 : i32 to vector<16x1xi32>
    %277 = arith.cmpi sge, %127, %276 : vector<16x1xi32>
    %c12_i32_97 = arith.constant 12 : i32
    %278 = vector.broadcast %c12_i32_97 : i32 to vector<16x1xi32>
    %279 = arith.cmpi slt, %127, %278 : vector<16x1xi32>
    %280 = arith.andi %277, %279 : vector<16x1xi1>
    %cst_98 = arith.constant 0.000000e+00 : f32
    %281 = vector.shape_cast %280 : vector<16x1xi1> to vector<16x1xi1>
    %282 = vector.broadcast %281 : vector<16x1xi1> to vector<16x128xi1>
    %283 = vector.broadcast %cst_98 : f32 to vector<16x128xf32>
    %284 = arith.select %282, %275, %283 : vector<16x128xi1>, vector<16x128xf32>
    %285 = arith.truncf %284 : vector<16x128xf32> to vector<16x128xbf16>
    %c8 = arith.constant 8 : index
    %c0_99 = arith.constant 0 : index
    %c0_100 = arith.constant 0 : index
    %286 = vector.load %arg11[%c8, %c0_99, %c0_100] : memref<9x128x256xbf16, #tpu.memory_space<vmem>>, vector<1x128x256xbf16>
    %287 = vector.shape_cast %286 : vector<1x128x256xbf16> to vector<128x256xbf16>
    %cst_101 = arith.constant dense<0.000000e+00> : vector<16x256xf32>
    %288 = tpu.matmul %285, %287, %cst_101 {dimension_numbers = #tpu.dot_dimension_numbers<[1], [0], [0], [1], [0, 0, 1, 1], [], []>} : vector<16x128xbf16>, vector<128x256xbf16>, vector<16x256xf32> -> vector<16x256xf32>
    %289 = arith.addf %274, %288 : vector<16x256xf32>
    %cst_102 = arith.constant 0.000000e+00 : f32
    %290 = vector.broadcast %cst_102 : f32 to vector<16x256xf32>
    %291 = arith.maximumf %289, %290 : vector<16x256xf32>
    %cst_103 = arith.constant 0.000000e+00 : f32
    %292 = vector.broadcast %cst_103 : f32 to vector<16x128xf32>
    %c0_104 = arith.constant 0 : index
    %c0_105 = arith.constant 0 : index
    %293 = vector.load %arg14[%c0_104, %c0_105] : memref<1x128xf32, #tpu.memory_space<vmem>>, vector<1x128xf32>
    %294 = vector.broadcast %293 : vector<1x128xf32> to vector<16x128xf32>
    %295 = arith.addf %292, %294 : vector<16x128xf32>
    %c4_i32_106 = arith.constant 4 : i32
    %296 = tpu.dynamic_rotate %291 by %c4_i32_106 dim 0 : vector<16x256xf32>, i32 -> vector<16x256xf32>
    %c4_i32_107 = arith.constant 4 : i32
    %297 = vector.broadcast %c4_i32_107 : i32 to vector<16x1xi32>
    %298 = arith.cmpi sge, %127, %297 : vector<16x1xi32>
    %c20_i32_108 = arith.constant 20 : i32
    %299 = vector.broadcast %c20_i32_108 : i32 to vector<16x1xi32>
    %300 = arith.cmpi slt, %127, %299 : vector<16x1xi32>
    %301 = arith.andi %298, %300 : vector<16x1xi1>
    %cst_109 = arith.constant 0.000000e+00 : f32
    %302 = vector.shape_cast %301 : vector<16x1xi1> to vector<16x1xi1>
    %303 = vector.broadcast %302 : vector<16x1xi1> to vector<16x256xi1>
    %304 = vector.broadcast %cst_109 : f32 to vector<16x256xf32>
    %305 = arith.select %303, %296, %304 : vector<16x256xi1>, vector<16x256xf32>
    %306 = arith.truncf %305 : vector<16x256xf32> to vector<16x256xbf16>
    %c0_110 = arith.constant 0 : index
    %c0_111 = arith.constant 0 : index
    %c0_112 = arith.constant 0 : index
    %307 = vector.load %arg13[%c0_110, %c0_111, %c0_112] : memref<9x256x128xbf16, #tpu.memory_space<vmem>>, vector<1x256x128xbf16>
    %308 = vector.shape_cast %307 : vector<1x256x128xbf16> to vector<256x128xbf16>
    %cst_113 = arith.constant dense<0.000000e+00> : vector<16x128xf32>
    %309 = tpu.matmul %306, %308, %cst_113 {dimension_numbers = #tpu.dot_dimension_numbers<[1], [0], [0], [1], [0, 0, 1, 1], [], []>} : vector<16x256xbf16>, vector<256x128xbf16>, vector<16x128xf32> -> vector<16x128xf32>
    %310 = arith.addf %295, %309 : vector<16x128xf32>
    %c3_i32_114 = arith.constant 3 : i32
    %311 = tpu.dynamic_rotate %291 by %c3_i32_114 dim 0 : vector<16x256xf32>, i32 -> vector<16x256xf32>
    %c3_i32_115 = arith.constant 3 : i32
    %312 = vector.broadcast %c3_i32_115 : i32 to vector<16x1xi32>
    %313 = arith.cmpi sge, %127, %312 : vector<16x1xi32>
    %c19_i32_116 = arith.constant 19 : i32
    %314 = vector.broadcast %c19_i32_116 : i32 to vector<16x1xi32>
    %315 = arith.cmpi slt, %127, %314 : vector<16x1xi32>
    %316 = arith.andi %313, %315 : vector<16x1xi1>
    %cst_117 = arith.constant 0.000000e+00 : f32
    %317 = vector.shape_cast %316 : vector<16x1xi1> to vector<16x1xi1>
    %318 = vector.broadcast %317 : vector<16x1xi1> to vector<16x256xi1>
    %319 = vector.broadcast %cst_117 : f32 to vector<16x256xf32>
    %320 = arith.select %318, %311, %319 : vector<16x256xi1>, vector<16x256xf32>
    %321 = arith.truncf %320 : vector<16x256xf32> to vector<16x256xbf16>
    %c1_118 = arith.constant 1 : index
    %c0_119 = arith.constant 0 : index
    %c0_120 = arith.constant 0 : index
    %322 = vector.load %arg13[%c1_118, %c0_119, %c0_120] : memref<9x256x128xbf16, #tpu.memory_space<vmem>>, vector<1x256x128xbf16>
    %323 = vector.shape_cast %322 : vector<1x256x128xbf16> to vector<256x128xbf16>
    %cst_121 = arith.constant dense<0.000000e+00> : vector<16x128xf32>
    %324 = tpu.matmul %321, %323, %cst_121 {dimension_numbers = #tpu.dot_dimension_numbers<[1], [0], [0], [1], [0, 0, 1, 1], [], []>} : vector<16x256xbf16>, vector<256x128xbf16>, vector<16x128xf32> -> vector<16x128xf32>
    %325 = arith.addf %310, %324 : vector<16x128xf32>
    %c2_i32_122 = arith.constant 2 : i32
    %326 = tpu.dynamic_rotate %291 by %c2_i32_122 dim 0 : vector<16x256xf32>, i32 -> vector<16x256xf32>
    %c2_i32_123 = arith.constant 2 : i32
    %327 = vector.broadcast %c2_i32_123 : i32 to vector<16x1xi32>
    %328 = arith.cmpi sge, %127, %327 : vector<16x1xi32>
    %c18_i32_124 = arith.constant 18 : i32
    %329 = vector.broadcast %c18_i32_124 : i32 to vector<16x1xi32>
    %330 = arith.cmpi slt, %127, %329 : vector<16x1xi32>
    %331 = arith.andi %328, %330 : vector<16x1xi1>
    %cst_125 = arith.constant 0.000000e+00 : f32
    %332 = vector.shape_cast %331 : vector<16x1xi1> to vector<16x1xi1>
    %333 = vector.broadcast %332 : vector<16x1xi1> to vector<16x256xi1>
    %334 = vector.broadcast %cst_125 : f32 to vector<16x256xf32>
    %335 = arith.select %333, %326, %334 : vector<16x256xi1>, vector<16x256xf32>
    %336 = arith.truncf %335 : vector<16x256xf32> to vector<16x256xbf16>
    %c2_126 = arith.constant 2 : index
    %c0_127 = arith.constant 0 : index
    %c0_128 = arith.constant 0 : index
    %337 = vector.load %arg13[%c2_126, %c0_127, %c0_128] : memref<9x256x128xbf16, #tpu.memory_space<vmem>>, vector<1x256x128xbf16>
    %338 = vector.shape_cast %337 : vector<1x256x128xbf16> to vector<256x128xbf16>
    %cst_129 = arith.constant dense<0.000000e+00> : vector<16x128xf32>
    %339 = tpu.matmul %336, %338, %cst_129 {dimension_numbers = #tpu.dot_dimension_numbers<[1], [0], [0], [1], [0, 0, 1, 1], [], []>} : vector<16x256xbf16>, vector<256x128xbf16>, vector<16x128xf32> -> vector<16x128xf32>
    %340 = arith.addf %325, %339 : vector<16x128xf32>
    %c1_i32_130 = arith.constant 1 : i32
    %341 = tpu.dynamic_rotate %291 by %c1_i32_130 dim 0 : vector<16x256xf32>, i32 -> vector<16x256xf32>
    %c1_i32_131 = arith.constant 1 : i32
    %342 = vector.broadcast %c1_i32_131 : i32 to vector<16x1xi32>
    %343 = arith.cmpi sge, %127, %342 : vector<16x1xi32>
    %c17_i32_132 = arith.constant 17 : i32
    %344 = vector.broadcast %c17_i32_132 : i32 to vector<16x1xi32>
    %345 = arith.cmpi slt, %127, %344 : vector<16x1xi32>
    %346 = arith.andi %343, %345 : vector<16x1xi1>
    %cst_133 = arith.constant 0.000000e+00 : f32
    %347 = vector.shape_cast %346 : vector<16x1xi1> to vector<16x1xi1>
    %348 = vector.broadcast %347 : vector<16x1xi1> to vector<16x256xi1>
    %349 = vector.broadcast %cst_133 : f32 to vector<16x256xf32>
    %350 = arith.select %348, %341, %349 : vector<16x256xi1>, vector<16x256xf32>
    %351 = arith.truncf %350 : vector<16x256xf32> to vector<16x256xbf16>
    %c3_134 = arith.constant 3 : index
    %c0_135 = arith.constant 0 : index
    %c0_136 = arith.constant 0 : index
    %352 = vector.load %arg13[%c3_134, %c0_135, %c0_136] : memref<9x256x128xbf16, #tpu.memory_space<vmem>>, vector<1x256x128xbf16>
    %353 = vector.shape_cast %352 : vector<1x256x128xbf16> to vector<256x128xbf16>
    %cst_137 = arith.constant dense<0.000000e+00> : vector<16x128xf32>
    %354 = tpu.matmul %351, %353, %cst_137 {dimension_numbers = #tpu.dot_dimension_numbers<[1], [0], [0], [1], [0, 0, 1, 1], [], []>} : vector<16x256xbf16>, vector<256x128xbf16>, vector<16x128xf32> -> vector<16x128xf32>
    %355 = arith.addf %340, %354 : vector<16x128xf32>
    %c0_i32_138 = arith.constant 0 : i32
    %356 = vector.broadcast %c0_i32_138 : i32 to vector<16x1xi32>
    %357 = arith.cmpi sge, %127, %356 : vector<16x1xi32>
    %c16_i32_139 = arith.constant 16 : i32
    %358 = vector.broadcast %c16_i32_139 : i32 to vector<16x1xi32>
    %359 = arith.cmpi slt, %127, %358 : vector<16x1xi32>
    %360 = arith.andi %357, %359 : vector<16x1xi1>
    %cst_140 = arith.constant 0.000000e+00 : f32
    %361 = vector.shape_cast %360 : vector<16x1xi1> to vector<16x1xi1>
    %362 = vector.broadcast %361 : vector<16x1xi1> to vector<16x256xi1>
    %363 = vector.broadcast %cst_140 : f32 to vector<16x256xf32>
    %364 = arith.select %362, %291, %363 : vector<16x256xi1>, vector<16x256xf32>
    %365 = arith.truncf %364 : vector<16x256xf32> to vector<16x256xbf16>
    %c4_141 = arith.constant 4 : index
    %c0_142 = arith.constant 0 : index
    %c0_143 = arith.constant 0 : index
    %366 = vector.load %arg13[%c4_141, %c0_142, %c0_143] : memref<9x256x128xbf16, #tpu.memory_space<vmem>>, vector<1x256x128xbf16>
    %367 = vector.shape_cast %366 : vector<1x256x128xbf16> to vector<256x128xbf16>
    %cst_144 = arith.constant dense<0.000000e+00> : vector<16x128xf32>
    %368 = tpu.matmul %365, %367, %cst_144 {dimension_numbers = #tpu.dot_dimension_numbers<[1], [0], [0], [1], [0, 0, 1, 1], [], []>} : vector<16x256xbf16>, vector<256x128xbf16>, vector<16x128xf32> -> vector<16x128xf32>
    %369 = arith.addf %355, %368 : vector<16x128xf32>
    %c15_i32_145 = arith.constant 15 : i32
    %370 = tpu.dynamic_rotate %291 by %c15_i32_145 dim 0 : vector<16x256xf32>, i32 -> vector<16x256xf32>
    %c-1_i32_146 = arith.constant -1 : i32
    %371 = vector.broadcast %c-1_i32_146 : i32 to vector<16x1xi32>
    %372 = arith.cmpi sge, %127, %371 : vector<16x1xi32>
    %c15_i32_147 = arith.constant 15 : i32
    %373 = vector.broadcast %c15_i32_147 : i32 to vector<16x1xi32>
    %374 = arith.cmpi slt, %127, %373 : vector<16x1xi32>
    %375 = arith.andi %372, %374 : vector<16x1xi1>
    %cst_148 = arith.constant 0.000000e+00 : f32
    %376 = vector.shape_cast %375 : vector<16x1xi1> to vector<16x1xi1>
    %377 = vector.broadcast %376 : vector<16x1xi1> to vector<16x256xi1>
    %378 = vector.broadcast %cst_148 : f32 to vector<16x256xf32>
    %379 = arith.select %377, %370, %378 : vector<16x256xi1>, vector<16x256xf32>
    %380 = arith.truncf %379 : vector<16x256xf32> to vector<16x256xbf16>
    %c5_149 = arith.constant 5 : index
    %c0_150 = arith.constant 0 : index
    %c0_151 = arith.constant 0 : index
    %381 = vector.load %arg13[%c5_149, %c0_150, %c0_151] : memref<9x256x128xbf16, #tpu.memory_space<vmem>>, vector<1x256x128xbf16>
    %382 = vector.shape_cast %381 : vector<1x256x128xbf16> to vector<256x128xbf16>
    %cst_152 = arith.constant dense<0.000000e+00> : vector<16x128xf32>
    %383 = tpu.matmul %380, %382, %cst_152 {dimension_numbers = #tpu.dot_dimension_numbers<[1], [0], [0], [1], [0, 0, 1, 1], [], []>} : vector<16x256xbf16>, vector<256x128xbf16>, vector<16x128xf32> -> vector<16x128xf32>
    %384 = arith.addf %369, %383 : vector<16x128xf32>
    %c14_i32_153 = arith.constant 14 : i32
    %385 = tpu.dynamic_rotate %291 by %c14_i32_153 dim 0 : vector<16x256xf32>, i32 -> vector<16x256xf32>
    %c-2_i32_154 = arith.constant -2 : i32
    %386 = vector.broadcast %c-2_i32_154 : i32 to vector<16x1xi32>
    %387 = arith.cmpi sge, %127, %386 : vector<16x1xi32>
    %c14_i32_155 = arith.constant 14 : i32
    %388 = vector.broadcast %c14_i32_155 : i32 to vector<16x1xi32>
    %389 = arith.cmpi slt, %127, %388 : vector<16x1xi32>
    %390 = arith.andi %387, %389 : vector<16x1xi1>
    %cst_156 = arith.constant 0.000000e+00 : f32
    %391 = vector.shape_cast %390 : vector<16x1xi1> to vector<16x1xi1>
    %392 = vector.broadcast %391 : vector<16x1xi1> to vector<16x256xi1>
    %393 = vector.broadcast %cst_156 : f32 to vector<16x256xf32>
    %394 = arith.select %392, %385, %393 : vector<16x256xi1>, vector<16x256xf32>
    %395 = arith.truncf %394 : vector<16x256xf32> to vector<16x256xbf16>
    %c6_157 = arith.constant 6 : index
    %c0_158 = arith.constant 0 : index
    %c0_159 = arith.constant 0 : index
    %396 = vector.load %arg13[%c6_157, %c0_158, %c0_159] : memref<9x256x128xbf16, #tpu.memory_space<vmem>>, vector<1x256x128xbf16>
    %397 = vector.shape_cast %396 : vector<1x256x128xbf16> to vector<256x128xbf16>
    %cst_160 = arith.constant dense<0.000000e+00> : vector<16x128xf32>
    %398 = tpu.matmul %395, %397, %cst_160 {dimension_numbers = #tpu.dot_dimension_numbers<[1], [0], [0], [1], [0, 0, 1, 1], [], []>} : vector<16x256xbf16>, vector<256x128xbf16>, vector<16x128xf32> -> vector<16x128xf32>
    %399 = arith.addf %384, %398 : vector<16x128xf32>
    %c13_i32_161 = arith.constant 13 : i32
    %400 = tpu.dynamic_rotate %291 by %c13_i32_161 dim 0 : vector<16x256xf32>, i32 -> vector<16x256xf32>
    %c-3_i32_162 = arith.constant -3 : i32
    %401 = vector.broadcast %c-3_i32_162 : i32 to vector<16x1xi32>
    %402 = arith.cmpi sge, %127, %401 : vector<16x1xi32>
    %c13_i32_163 = arith.constant 13 : i32
    %403 = vector.broadcast %c13_i32_163 : i32 to vector<16x1xi32>
    %404 = arith.cmpi slt, %127, %403 : vector<16x1xi32>
    %405 = arith.andi %402, %404 : vector<16x1xi1>
    %cst_164 = arith.constant 0.000000e+00 : f32
    %406 = vector.shape_cast %405 : vector<16x1xi1> to vector<16x1xi1>
    %407 = vector.broadcast %406 : vector<16x1xi1> to vector<16x256xi1>
    %408 = vector.broadcast %cst_164 : f32 to vector<16x256xf32>
    %409 = arith.select %407, %400, %408 : vector<16x256xi1>, vector<16x256xf32>
    %410 = arith.truncf %409 : vector<16x256xf32> to vector<16x256xbf16>
    %c7_165 = arith.constant 7 : index
    %c0_166 = arith.constant 0 : index
    %c0_167 = arith.constant 0 : index
    %411 = vector.load %arg13[%c7_165, %c0_166, %c0_167] : memref<9x256x128xbf16, #tpu.memory_space<vmem>>, vector<1x256x128xbf16>
    %412 = vector.shape_cast %411 : vector<1x256x128xbf16> to vector<256x128xbf16>
    %cst_168 = arith.constant dense<0.000000e+00> : vector<16x128xf32>
    %413 = tpu.matmul %410, %412, %cst_168 {dimension_numbers = #tpu.dot_dimension_numbers<[1], [0], [0], [1], [0, 0, 1, 1], [], []>} : vector<16x256xbf16>, vector<256x128xbf16>, vector<16x128xf32> -> vector<16x128xf32>
    %414 = arith.addf %399, %413 : vector<16x128xf32>
    %c12_i32_169 = arith.constant 12 : i32
    %415 = tpu.dynamic_rotate %291 by %c12_i32_169 dim 0 : vector<16x256xf32>, i32 -> vector<16x256xf32>
    %c-4_i32_170 = arith.constant -4 : i32
    %416 = vector.broadcast %c-4_i32_170 : i32 to vector<16x1xi32>
    %417 = arith.cmpi sge, %127, %416 : vector<16x1xi32>
    %c12_i32_171 = arith.constant 12 : i32
    %418 = vector.broadcast %c12_i32_171 : i32 to vector<16x1xi32>
    %419 = arith.cmpi slt, %127, %418 : vector<16x1xi32>
    %420 = arith.andi %417, %419 : vector<16x1xi1>
    %cst_172 = arith.constant 0.000000e+00 : f32
    %421 = vector.shape_cast %420 : vector<16x1xi1> to vector<16x1xi1>
    %422 = vector.broadcast %421 : vector<16x1xi1> to vector<16x256xi1>
    %423 = vector.broadcast %cst_172 : f32 to vector<16x256xf32>
    %424 = arith.select %422, %415, %423 : vector<16x256xi1>, vector<16x256xf32>
    %425 = arith.truncf %424 : vector<16x256xf32> to vector<16x256xbf16>
    %c8_173 = arith.constant 8 : index
    %c0_174 = arith.constant 0 : index
    %c0_175 = arith.constant 0 : index
    %426 = vector.load %arg13[%c8_173, %c0_174, %c0_175] : memref<9x256x128xbf16, #tpu.memory_space<vmem>>, vector<1x256x128xbf16>
    %427 = vector.shape_cast %426 : vector<1x256x128xbf16> to vector<256x128xbf16>
    %cst_176 = arith.constant dense<0.000000e+00> : vector<16x128xf32>
    %428 = tpu.matmul %425, %427, %cst_176 {dimension_numbers = #tpu.dot_dimension_numbers<[1], [0], [0], [1], [0, 0, 1, 1], [], []>} : vector<16x256xbf16>, vector<256x128xbf16>, vector<16x128xf32> -> vector<16x128xf32>
    %429 = arith.addf %414, %428 : vector<16x128xf32>
    %430 = arith.addf %126, %429 : vector<16x128xf32>
    %431 = arith.truncf %430 : vector<16x128xf32> to vector<16x128xbf16>
    %c0_177 = arith.constant 0 : index
    %c0_178 = arith.constant 0 : index
    %c0_179 = arith.constant 0 : index
    %432 = vector.load %arg17[%c0_177, %c0_178, %c0_179] : memref<1x16x128xbf16, #tpu.memory_space<vmem>>, vector<1x16x128xbf16>
    %433 = vector.shape_cast %432 : vector<1x16x128xbf16> to vector<16x128xbf16>
    %434 = vector.shape_cast %431 : vector<16x128xbf16> to vector<1x16x128xbf16>
    tpu.vector_store %arg17[%c0_177, %c0_178, %c0_179], %434 {strides = array<i32>} : memref<1x16x128xbf16, #tpu.memory_space<vmem>>, vector<1x16x128xbf16>,
    return
  }
  func.func @transform_0(%arg0: i32) -> (i32, i32, i32) {
    %c0_i32 = arith.constant 0 : i32
    %c0_i32_0 = arith.constant 0 : i32
    %c0_i32_1 = arith.constant 0 : i32
    return %arg0, %c0_i32, %c0_i32_0 : i32, i32, i32
  }
  func.func @transform_1(%arg0: i32) -> (i32, i32, i32) {
    %c0_i32 = arith.constant 0 : i32
    %c0_i32_0 = arith.constant 0 : i32
    %c0_i32_1 = arith.constant 0 : i32
    return %arg0, %c0_i32, %c0_i32_0 : i32, i32, i32
  }
  func.func @transform_2(%arg0: i32) -> (i32, i32) {
    %c0_i32 = arith.constant 0 : i32
    %c0_i32_0 = arith.constant 0 : i32
    %c0_i32_1 = arith.constant 0 : i32
    return %c0_i32, %c0_i32_0 : i32, i32
  }
  func.func @transform_3(%arg0: i32) -> (i32, i32) {
    %c0_i32 = arith.constant 0 : i32
    %c0_i32_0 = arith.constant 0 : i32
    %c0_i32_1 = arith.constant 0 : i32
    return %c0_i32, %c0_i32_0 : i32, i32
  }
  func.func @transform_4(%arg0: i32) -> (i32, i32) {
    %c0_i32 = arith.constant 0 : i32
    %c0_i32_0 = arith.constant 0 : i32
    %c0_i32_1 = arith.constant 0 : i32
    return %c0_i32, %c0_i32_0 : i32, i32
  }
  func.func @transform_5(%arg0: i32) -> (i32, i32) {
    %c0_i32 = arith.constant 0 : i32
    %c0_i32_0 = arith.constant 0 : i32
    %c0_i32_1 = arith.constant 0 : i32
    return %c0_i32, %c0_i32_0 : i32, i32
  }
  func.func @transform_6(%arg0: i32) -> (i32, i32) {
    %c0_i32 = arith.constant 0 : i32
    %c0_i32_0 = arith.constant 0 : i32
    %c0_i32_1 = arith.constant 0 : i32
    return %c0_i32, %c0_i32_0 : i32, i32
  }
  func.func @transform_7(%arg0: i32) -> (i32, i32) {
    %c0_i32 = arith.constant 0 : i32
    %c0_i32_0 = arith.constant 0 : i32
    %c0_i32_1 = arith.constant 0 : i32
    return %c0_i32, %c0_i32_0 : i32, i32
  }
  func.func @transform_8(%arg0: i32) -> (i32, i32) {
    %c0_i32 = arith.constant 0 : i32
    %c0_i32_0 = arith.constant 0 : i32
    %c0_i32_1 = arith.constant 0 : i32
    return %c0_i32, %c0_i32_0 : i32, i32
  }
  func.func @transform_9(%arg0: i32) -> (i32, i32) {
    %c0_i32 = arith.constant 0 : i32
    %c0_i32_0 = arith.constant 0 : i32
    %c0_i32_1 = arith.constant 0 : i32
    return %c0_i32, %c0_i32_0 : i32, i32
  }
  func.func @transform_10(%arg0: i32) -> (i32, i32, i32) {
    %c0_i32 = arith.constant 0 : i32
    %c0_i32_0 = arith.constant 0 : i32
    %c0_i32_1 = arith.constant 0 : i32
    %c0_i32_2 = arith.constant 0 : i32
    return %c0_i32, %c0_i32_0, %c0_i32_1 : i32, i32, i32
  }
  func.func @transform_11(%arg0: i32) -> (i32, i32) {
    %c0_i32 = arith.constant 0 : i32
    %c0_i32_0 = arith.constant 0 : i32
    %c0_i32_1 = arith.constant 0 : i32
    return %c0_i32, %c0_i32_0 : i32, i32
  }
  func.func @transform_12(%arg0: i32) -> (i32, i32, i32) {
    %c0_i32 = arith.constant 0 : i32
    %c0_i32_0 = arith.constant 0 : i32
    %c0_i32_1 = arith.constant 0 : i32
    %c0_i32_2 = arith.constant 0 : i32
    return %c0_i32, %c0_i32_0, %c0_i32_1 : i32, i32, i32
  }
  func.func @transform_13(%arg0: i32) -> (i32, i32) {
    %c0_i32 = arith.constant 0 : i32
    %c0_i32_0 = arith.constant 0 : i32
    %c0_i32_1 = arith.constant 0 : i32
    return %c0_i32, %c0_i32_0 : i32, i32
  }
  func.func @transform_14(%arg0: i32) -> (i32, i32) {
    %c0_i32 = arith.constant 0 : i32
    %c0_i32_0 = arith.constant 0 : i32
    %c0_i32_1 = arith.constant 0 : i32
    return %c0_i32, %c0_i32_0 : i32, i32
  }
  func.func @transform_15(%arg0: i32) -> (i32, i32) {
    %c0_i32 = arith.constant 0 : i32
    %c0_i32_0 = arith.constant 0 : i32
    %c0_i32_1 = arith.constant 0 : i32
    return %c0_i32, %c0_i32_0 : i32, i32
  }
  func.func @transform_16(%arg0: i32) -> (i32, i32, i32) {
    %c0_i32 = arith.constant 0 : i32
    %c0_i32_0 = arith.constant 0 : i32
    %c0_i32_1 = arith.constant 0 : i32
    return %arg0, %c0_i32, %c0_i32_0 : i32, i32, i32
  }
}

</mosaic_0001>

<bundles_post_ra>
// kernel: _lambda_.2
= control target key start
LH: loop header
LB: loop body
LE: loop exit
PB: predicated region body
PF: predicated region fallthrough
CT: control target
= control target key end

     0   :  { %s7067_s0 = inlined_call_operand.vmem [shape: bf16[2,16,128], index: 0, kind: input, shape index: {}]   ;;  %s7068_s1 = inlined_call_operand.vmem [shape: f32[2,1,16], index: 1, kind: input, shape index: {}]   ;;  %s7069_s2 = inlined_call_operand.vmem [shape: f32[1,128], index: 2, kind: input, shape index: {}]   ;;  %s7070_s3 = inlined_call_operand.vmem [shape: f32[1,128], index: 3, kind: input, shape index: {}]   ;;  %s7071_s4 = inlined_call_operand.vmem [shape: bf16[128,384], index: 4, kind: input, shape index: {}]   ;;  %s7072_s5 = inlined_call_operand.vmem [shape: f32[1,384], index: 5, kind: input, shape index: {}]   ;;  %s7073_s6 = inlined_call_operand.vmem [shape: bf16[128,128], index: 6, kind: input, shape index: {}]   ;;  %s7074_s7 = inlined_call_operand.vmem [shape: f32[1,128], index: 7, kind: input, shape index: {}]   ;;  %s7075_s8 = inlined_call_operand.vmem [shape: f32[1,128], index: 8, kind: input, shape index: {}]   ;;  %s7076_s9 = inlined_call_operand.vmem [shape: f32[1,128], index: 9, kind: input, shape index: {}]   ;;  %s7077_s10 = inlined_call_operand.hbm [shape: bf16[9,128,256], index: 10, kind: input, shape index: {}]   ;;  %s7078_s11 = inlined_call_operand.vmem [shape: f32[1,256], index: 11, kind: input, shape index: {}]   ;;  %s7079_s12 = inlined_call_operand.hbm [shape: bf16[9,256,128], index: 12, kind: input, shape index: {}]   ;;  %s7080_s13 = inlined_call_operand.vmem [shape: f32[1,128], index: 13, kind: input, shape index: {}]   ;;  %s7081_s14 = inlined_call_operand.vmem [shape: f32[1,128], index: 14, kind: input, shape index: {}]   ;;  %s7082_s15 = inlined_call_operand.vmem [shape: f32[1,128], index: 15, kind: input, shape index: {}]   ;;  %s7083_s16 = inlined_call_operand.vmem [shape: bf16[2,16,128], index: 16, kind: output, shape index: {}]  }
   0x1   :  { %7085 = sst [smem:[#allocation8_spill]] %s7067_s0 }
   0x2   :  { %21 = vsyncpa [#allocation3], 0 }
   0x3   :  { %22 = vsyncpa [#allocation5], 0  ;;  %s6320_s21 = smov 0  }
   0x4 LB: > { %s6222_s22 = smov [#allocation2]   ;;  %s6326_s23 = sadd.s32 4294967295, %s6220_s21   ;;  %s6220_s21 = sphi %s6320_s21, %s28_s21  }
   0x5   : > { %s441_s14 = sshll.u32 %s6222_s22, 4  ;;  %p4900_p0 = scmp.ge.s32.totalorder %s6220_s21, 1  ;;  %s442_s14 = int_to_ptr.vmem [resolvable:$true] %s441_s14 }
   0x6   : > { %p405_p1 = scmp.lt.s32.totalorder %s6220_s21, 3  ;;  %p5689_p3 = scmp.eq.s32.totalorder %s6326_s23, 0 }
   0x7   : > { %s6223_s24 = smov [#allocation4]   ;;  %s6165_s27 = scalar_lea.vmem %s442_s14, 18432 }
   0x8   : > { %p6330_p2 = pnand %p4900_p0, %p405_p1  ;;  %s457_s25 = sshll.u32 %s6223_s24, 4  ;;  %s458_s25 = int_to_ptr.vmem [resolvable:$true] %s457_s25 }
   0x9   : > { %p6166_p7 = scmp.ne.s32.totalorder %s442_s14, %s6165_s27  ;;  %p6173_p10 = scmp.lt.s32.totalorder %s442_s14, %s442_s14 }
   0xa   : > { %p5682_p4 = pneg %p6330_p2  ;;  %p6174_p11 = scmp.lt.s32.totalorder %s6165_s27, %s6165_s27 }
   0xc   : > { %p6339_p5 = pnand %p5689_p3, %p5682_p4  ;;  %p6175_p12 = por %p6174_p11, %p6173_p10 }
   0xe   : > { %p6156_p6 = pneg %p6339_p5 }
  0x10   : > { %p6168_p8 = pnand %p6166_p7, %p6156_p6 }
  0x12   : > { %p6169_p9 = pneg %p6168_p8 }
  0x14   : > { %p6176_p13 = pnand %p6175_p12, %p6169_p9 }
  0x16   : > { %6179 = shalt.err (!%p6176_p13)
}
  0x17   : > { %s6224_s28 = smov 128   ;;  %s6225_s29 = smov 8  }
  0x18   : > { %5685 = dma.hbm_to_vmem [thread:$0]  (!%p6339_p5), %s7077_s10, 18432, %s442_s14, [#allocation3], %s6224_s28, %s6224_s28, %s6225_s29  }
  0x19   : > { %s6191_s17 = scalar_lea.vmem %s458_s25, 18432  ;;  %p6199_p7 = scmp.lt.s32.totalorder %s458_s25, %s458_s25 }
  0x1a   : > { %p6192_p0 = scmp.ne.s32.totalorder %s458_s25, %s6191_s17  ;;  %p6200_p8 = scmp.lt.s32.totalorder %s6191_s17, %s6191_s17 }
  0x1c   : > { %p6194_p1 = pnand %p6192_p0, %p6156_p6  ;;  %p6201_p10 = por %p6200_p8, %p6199_p7 }
  0x1e   : > { %p6195_p4 = pneg %p6194_p1 }
  0x20   : > { %p6202_p9 = pnand %p6201_p10, %p6195_p4 }
  0x22   : > { %6205 = shalt.err (!%p6202_p9)
}
  0x23   : > { %s6226_s18 = smov 64   ;;  %s6227_s19 = smov 4  }
  0x24   : > { %5688 = dma.hbm_to_vmem [thread:$0]  (!%p6339_p5), %s7079_s12, 18432, %s458_s25, [#allocation5], %s6226_s18, %s6226_s18, %s6227_s19  }
  0x25   : > { %496 = sbr.rel (%p6330_p2) target bundleno = 4036 (0xfc4), region = 84 }
  0x2a   : > { %6211 = dma.done.wait (%p5689_p3), [#allocation3], 18432  }
  0x2b   : > { %6213 = vsyncadd (%p5689_p3), [#allocation3], 4294948864 }
  0x2c   : > { %6215 = dma.done.wait (%p5689_p3), [#allocation5], 18432  }
  0x2d   : > { %6217 = vsyncadd (%p5689_p3), [#allocation5], 4294948864  ;;  %p553_p6 = scmp.lt.s32.totalorder %s6326_s23, 1  ;;  %s7088_s25 = sld [smem:[#allocation8_spill]]  ;;  %v5714_v3 = vld [vmem:[%s7071_s4 + $0xac] ss:$12 sps:$4 sm:$0xff]   ;;  %v648_v54 = vlaneseq }
  0x2e   : > { %v5716_v4 = vld [vmem:[%s7071_s4 + $0xa8] ss:$12 sps:$4 sm:$0xff]   ;;  %v6228_v5 = vmov 0.0   ;;  %v5717_v6 = vld [vmem:[%s7071_s4 + $0xb0] ss:$12 sps:$4 sm:$0xff]   ;;  %791 = vmatprep.subr.bf16.mxu0 %v5714_v3  ;;  %v6229_v28 = vmov 0  }
  0x2f   : > { %s7110_s23 = smov (!%p553_p6, %s6326_s23), 1  ;;  %5574 = vmatprep.subr.bf16.mxu1 %v6228_v5  ;;  %792 = vmatpush1.bf16.msra.mxu0 %v5716_v4  ;;  %v5718_v15 = vld [vmem:[%s7071_s4 + $0x94] ss:$12 sps:$4 sm:$0xff]   ;;  %v5720_v16 = vld [vmem:[%s7071_s4 + $0x90] ss:$12 sps:$4 sm:$0xff]   ;;  %vm6230_vm0 = vmmov 0  }
  0x30   : > { %s5326_s14 = sshll.u32 %s7110_s23, 3  ;;  %5575 = vmatpush3.bf16.msra.mxu1 %v5717_v6  ;;  %v5721_v17 = vld [vmem:[%s7071_s4 + $0x98] ss:$12 sps:$4 sm:$0xff]   ;;  %793 = vmatprep.subr.bf16.mxu0 %v5718_v15  ;;  %v5722_v18 = vld [vmem:[%s7071_s4 + $0x7c] ss:$12 sps:$4 sm:$0xff]   ;;  %v6494_v55 = vshrl.u32 %v648_v54, 7  ;;  %s560_s27 = scalar_lea.vmem %s7068_s1, %s7110_s23 }
  0x31   : > { %5576 = vmatprep.subr.bf16.mxu1 %v6228_v5  ;;  %v5724_v19 = vld [vmem:[%s7071_s4 + $0x78] ss:$12 sps:$4 sm:$0xff]   ;;  %v5725_v20 = vld [vmem:[%s7071_s4 + $0x80] ss:$12 sps:$4 sm:$0xff]   ;;  %v5729_v23 = vld [vmem:[%s7071_s4 + $0x68] ss:$12 sps:$4 sm:$0xff]   ;;  %823 = vmatprep.mubr.bf16.mxu0 %v6229_v28  ;;  %s565_s0 = scalar_lea.vmem %s7083_s16, %s5326_s14 }
  0x32   : > { %v5726_v21 = vld [vmem:[%s7071_s4 + $0x64] ss:$12 sps:$4 sm:$0xff]   ;;  %v5728_v22 = vld [vmem:[%s7071_s4 + $0x60] ss:$12 sps:$4 sm:$0xff]   ;;  %v5732_v25 = vld [vmem:[%s7071_s4 + $0x48] ss:$12 sps:$4 sm:$0xff]   ;;  %5590 = vmatprep.mubr.msk.bf16.mxu1 %vm6230_vm0, %v6228_v5 }
  0x33   : > { %s557_s26 = scalar_lea.vmem %s7088_s25, %s5326_s14  ;;  %794 = vmatpush1.bf16.msra.mxu0 %v5720_v16  ;;  %v5730_v24 = vld [vmem:[%s7071_s4 + $0x4c] ss:$12 sps:$4 sm:$0xff]   ;;  %v5733_v26 = vld [vmem:[%s7071_s4 + $0x50] ss:$12 sps:$4 sm:$0xff]   ;;  %v5734_v27 = vld [vmem:[%s7071_s4 + $0x34] ss:$12 sps:$4 sm:$0xff]  }
  0x34   : > { %v5331_v0 = vld [vmem:[%s557_s26] sm:$0xff]   ;;  %5577 = vmatpush3.bf16.msra.mxu1 %v5721_v17  ;;  %795 = vmatprep.subr.bf16.mxu0 %v5722_v18  ;;  %v5736_v29 = vld [vmem:[%s7071_s4 + $0x30] ss:$12 sps:$4 sm:$0xff]   ;;  %v5745_v36 = vld [vmem:[%s7071_s4 + $0x8] ss:$12 sps:$4 sm:$0xff]   ;;  %v658_v56 = vsub.s32 2, %v6494_v55 }
  0x35   : > { %v6381_v1 = vunpack.c.l.bf16 %v5331_v0  ;;  %v6384_v2 = vunpack.c.h.bf16 %v5331_v0  ;;  %5578 = vmatprep.subr.bf16.mxu1 %v6228_v5  ;;  %v5737_v30 = vld [vmem:[%s7071_s4 + $0x38] ss:$12 sps:$4 sm:$0xff]   ;;  %v5738_v31 = vld [vmem:[%s7071_s4 + $0x1c] ss:$12 sps:$4 sm:$0xff]   ;;  %v5741_v33 = vld [vmem:[%s7071_s4 + $0x20] ss:$12 sps:$4 sm:$0xff]  }
  0x36   : > { %v5740_v32 = vld [vmem:[%s7071_s4 + $0x18] ss:$12 sps:$4 sm:$0xff]   ;;  %v5744_v35 = vld [vmem:[%s7071_s4] ss:$12 sps:$4 sm:$0xff]   ;;  %v654_v58 = vsub.s32 1, %v6494_v55  ;;  %vm893_vm1 = vcmask 261120  }
  0x37   : > { %572 = vadd.xlane.f32.xlu0 %v6381_v1  ;;  %796 = vmatpush1.bf16.msra.mxu0 %v5724_v19  ;;  %v5742_v34 = vld [vmem:[%s7071_s4 + $0x4] ss:$12 sps:$4 sm:$0xff]   ;;  %v4911_v45 = vld [vmem:[%s7069_s2] ss:$0 sm:$0xff]  ;;  %vm941_vm2 = vcmask 130048   ;;  %s6231_s28 = smov 96  }
  0x38   : > { %5579 = vmatpush3.bf16.msra.mxu1 %v5725_v20  ;;  %797 = vmatprep.subr.bf16.mxu0 %v5726_v21  ;;  %v4912_v49 = vld [vmem:[%s7070_s3] ss:$0 sm:$0xff]  ;;  %s6232_s18 = smov 64   ;;  %s6233_s24 = smov 32   ;;  %vm1686_vm3 = vcmp.lt.s32.totalorder %v6494_v55, 4  ;;  %vm1689_vm4 = vcmp.ge.s32.totalorder %v6494_v55, 4 }
  0x39   : > { %5580 = vmatprep.subr.bf16.mxu1 %v6228_v5  ;;  %v646_v57 = vld [vmem:[%s7072_s5] sm:$0x7]  ;;  %vm1847_vm5 = vcmp.lt.s32.totalorder %v6494_v55, 3  ;;  %vm1850_vm6 = vcmp.ge.s32.totalorder %v6494_v55, 3  ;;  %vm2490_vm7 = vcmp.lt.s32.totalorder %v6494_v55, 7  ;;  %vm2652_vm8 = vcmp.lt.s32.totalorder %v6494_v55, 6 }
  0x3a   : > { %v659_v61 = vrot.slane %v646_v57, %v658_v56  ;;  %v655_v0 = vrot.slane %v646_v57, %v654_v58  ;;  %v6525_v20 = vld [vmem:[%s560_s27] ss:$0 sm:$0xff]  ;;  %vm6234_vm9 = vmmov 1   ;;  %vm7084_vm12 = vcmp.lt.s32.totalorder %v6494_v55, 5 }
  0x3b   : > { %574 = vadd.xlane.f32.xlu0 %v6384_v2  ;;  %798 = vmatpush1.bf16.msra.mxu0 %v5728_v22  ;;  %vm6693_vm10 = vmpackc.low %vm6234_vm9, %vm1689_vm4  ;;  %vm2009_vm13 = vcmp.lt.s32.totalorder %v6494_v55, 2  ;;  %vm2171_vm14 = vcmp.lt.s32.totalorder %v6494_v55, 1  ;;  %vm2012_vm15 = vcmp.ge.s32.totalorder %v6494_v55, 2 }
  0x3c   : > { %5581 = vmatpush3.bf16.msra.mxu1 %v5729_v23  ;;  %799 = vmatprep.subr.bf16.mxu0 %v5730_v24  ;;  %vm6717_vm11 = vmpackc.low %vm6234_vm9, %vm1850_vm6 }
  0x3d   : > { %5582 = vmatprep.subr.bf16.mxu1 %v6228_v5 }
  0x3f   : > { %800 = vmatpush1.bf16.msra.mxu0 %v5732_v25 }
  0x40   : > { %5583 = vmatpush3.bf16.msra.mxu1 %v5733_v26  ;;  %801 = vmatprep.subr.bf16.mxu0 %v5734_v27 }
  0x41   : > { %5584 = vmatprep.subr.bf16.mxu1 %v6228_v5 }
  0x43   : > { %802 = vmatpush1.bf16.msra.mxu0 %v5736_v29 }
  0x44   : > { %5585 = vmatpush3.bf16.msra.mxu1 %v5737_v30  ;;  %803 = vmatprep.subr.bf16.mxu0 %v5738_v31 }
  0x45   : > { %5586 = vmatprep.subr.bf16.mxu1 %v6228_v5 }
  0x47   : > { %804 = vmatpush1.bf16.msra.mxu0 %v5740_v32 }
  0x48   : > { %5587 = vmatpush3.bf16.msra.mxu1 %v5741_v33  ;;  %805 = vmatprep.subr.bf16.mxu0 %v5742_v34 }
  0x49   : > { %5588 = vmatprep.subr.bf16.mxu1 %v6228_v5 }
  0x4b   : > { %806 = vmatpush1.bf16.msra.mxu0 %v5744_v35 }
  0x4c   : > { %5589 = vmatpush3.bf16.msra.mxu1 %v5745_v36  ;;  %5594 = vmatprep.subr.bf16.mxu0 %v6228_v5 }
  0x4d   : > { %5600 = vmatprep.subr.bf16.mxu1 %v6228_v5 }
  0xc0   : > { %v573_v7 = vpop.xlane.xlu0 %572 }
  0xc1   : > { %v577_v8 = vmul.f32 0.0078125, %v573_v7 }
  0xc3   : > { %v6399_v9 = vsub.f32 %v6381_v1, %v577_v8 }
  0xc4   : > { %v575_v10 = vpop.xlane.xlu0 %574 }
  0xc5   : > { %v578_v11 = vmul.f32 0.0078125, %v575_v10  ;;  %v581_v12 = vmul.f32 %v6399_v9, %v6399_v9  ;;  %v650_v10 = vsub.s32 0, %v6494_v55 }
  0xc7   : > { %v6404_v13 = vsub.f32 %v6384_v2, %v578_v11  ;;  %583 = vadd.xlane.f32.xlu1 %v581_v12  ;;  %v651_v15 = vrot.slane %v646_v57, %v650_v10 }
  0xc9   : > { %v582_v14 = vmul.f32 %v6404_v13, %v6404_v13 }
  0xcb   : > { %585 = vadd.xlane.f32.xlu1 %v582_v14 }
 0x150   : > { %v584_v37 = vpop.xlane.xlu1 %583 }
 0x151   : > { %v587_v38 = vmul.f32 0.0078125, %v584_v37 }
 0x153   : > { %v589_v39 = vadd.f32 1e-05, %v587_v38 }
 0x154   : > { %v586_v40 = vpop.xlane.xlu1 %585 }
 0x155   : > { %6114 = vrsqrt.f32 %v589_v39  ;;  %v588_v41 = vmul.f32 0.0078125, %v586_v40 }
 0x157   : > { %v590_v42 = vadd.f32 1e-05, %v588_v41 }
 0x159   : > { %6116 = vrsqrt.f32 %v590_v42 }
 0x162   : > { %v6115_v43 = vpop.eup %6114 }
 0x163   : > { %v593_v44 = vmul.f32 %v6115_v43, %v6399_v9 }
 0x165   : > { %v602_v48 = vmul.f32 %v4911_v45, %v593_v44 }
 0x166   : > { %v6117_v46 = vpop.eup %6116 }
 0x167   : > { %v594_v47 = vmul.f32 %v6117_v46, %v6404_v13  ;;  %v611_v51 = vadd.f32 %v4912_v49, %v602_v48 }
 0x169   : > { %v603_v50 = vmul.f32 %v4911_v45, %v594_v47 }
 0x16b   : > { %v612_v52 = vadd.f32 %v4912_v49, %v603_v50  ;;  %v5746_v50 = vld [vmem:[%s7073_s6 + $0x8] sm:$0xff]  }
 0x16d   : > { %v613_v53 = vpack.c.bf16 %v612_v52, %v611_v51  ;;  %v5747_v51 = vld [vmem:[%s7073_s6] sm:$0xff]  }
 0x16f   : > { %824 = vmatmul.mubr.bf16.vlgmr.msra.gmra.mxu0 %v613_v53  ;;  %5591 = vmatmul.mubr.bf16.vlgmr.msra.gmra.mxu1 %v613_v53 }
 0x170   : > { %5596 = vmatprep.mubr.msk.bf16.mxu0 %vm6230_vm0, %v6228_v5  ;;  %5602 = vmatprep.mubr.msk.bf16.mxu1 %vm6230_vm0, %v6228_v5 }
 0x22f   : > { %v825_v59 = vpop.f32.mrf.mxu0  ;;  %v868_v60 = vpop.f32.mrf.mxu1 }
 0x230   : > { %v869_v6 = vadd.f32 %v868_v60, %v659_v61  ;;  %v826_v18 = vadd.f32 %v825_v59, %v651_v15 }
 0x231   : > { %v827_v62 = vpop.f32.mrf.mxu0  ;;  %v5592_v63 = vpop.f32.mrf.mxu1 }
 0x232   : > { %v828_v11 = vadd.f32 %v827_v62, %v655_v0 }
 0x233   : > { %v829_v3 = vpop.f32.mrf.mxu0  ;;  %v871_v4 = vpop.f32.mrf.mxu1 }
 0x234   : > { %v872_v7 = vadd.f32 %v871_v4, %v659_v61  ;;  %v830_v17 = vadd.f32 %v829_v3, %v651_v15 }
 0x235   : > { %v831_v8 = vpop.f32.mrf.mxu0  ;;  %v5593_v9 = vpop.f32.mrf.mxu1 }
 0x236   : > { %v6504_v12 = vpack.c.bf16 %v872_v7, %v869_v6  ;;  %v832_v13 = vadd.f32 %v831_v8, %v655_v0  ;;  %v6515_v19 = vpack.c.bf16 %v830_v17, %v826_v18 }
 0x238   : > { %v6506_v14 = vpack.c.bf16 %v832_v13, %v828_v11  ;;  %5601 = vmatpush3.bf16.msra.mxu1 %v6504_v12 }
 0x239   : > { %5614 = vmatprep.subr.bf16.mxu1 %v6228_v5 }
 0x23a   : > { %v898_v16 = vsel %vm893_vm1, %v6506_v14, 0 }
 0x23b   : > { %5595 = vmatpush3.bf16.xpose.msra.mxu0 %v898_v16 }
 0x23c   : > { %5606 = vmatprep.subr.bf16.mxu0 %v6228_v5 }
 0x242   : > { %5597 = vmatmul.mubr.msk.bf16.vlgmr.msra.gmra.mxu0 %vm893_vm1, %v6515_v19 }
 0x243   : > { %5610 = vmatprep.mubr.msk.bf16.mxu0 %vm6230_vm0, %v6228_v5  ;;  %5607 = vmatpush3.bf16.msra.mxu0 %v5746_v50 }
 0x244   : > { %5608 = vmatprep.subr.bf16.mxu0 %v6228_v5 }
 0x247   : > { %5609 = vmatpush3.bf16.msra.mxu0 %v5747_v51 }
 0x248   : > { %5620 = vmatprep.subr.bf16.mxu0 %v6228_v5 }
 0x302   : > { %v934_v21 = vpop.f32.mrf.mxu0 }
 0x303   : > { %v935_v22 = vadd.f32 %v6525_v20, %v934_v21 }
 0x304   : > { %v5598_v23 = vpop.f32.mrf.mxu0 }
 0x305   : > { %v942_v24 = vsel %vm941_vm2, %v935_v22, -inf }
 0x306   : > { %943 = vmax.xlane.f32.xlu0 %v942_v24  ;;  %v937_v25 = vpop.f32.mrf.mxu0 }
 0x307   : > { %v938_v26 = vadd.f32 %v6525_v20, %v937_v25 }
 0x308   : > { %v5599_v27 = vpop.f32.mrf.mxu0 }
 0x309   : > { %v945_v29 = vsel %vm941_vm2, %v938_v26, -inf }
 0x30a   : > { %946 = vmax.xlane.f32.xlu1 %v945_v29 }
 0x38f   : > { %v944_v30 = vpop.xlane.xlu0 %943 }
 0x390   : > { %v948_v31 = vsub.f32 %v935_v22, %v944_v30 }
 0x392   : > { %v950_v32 = vmul.f32 1.442695, %v948_v31 }
 0x393   : > { %v947_v33 = vpop.xlane.xlu1 %946 }
 0x394   : > { %6118 = vpow2.f32 %v950_v32  ;;  %v949_v34 = vsub.f32 %v938_v26, %v947_v33 }
 0x396   : > { %v952_v35 = vmul.f32 1.442695, %v949_v34 }
 0x398   : > { %6120 = vpow2.f32 %v952_v35 }
 0x3a1   : > { %v6119_v36 = vpop.eup %6118 }
 0x3a2   : > { %v954_v37 = vsel %vm941_vm2, %v6119_v36, 0.0 }
 0x3a3   : > { %955 = vadd.xlane.f32.xlu0 %v954_v37  ;;  %v5748_v37 = vld [vmem:[%s7073_s6 + $0x18] sm:$0xff]  }
 0x3a5   : > { %v6121_v38 = vpop.eup %6120 }
 0x3a6   : > { %v957_v39 = vsel %vm941_vm2, %v6121_v38, 0.0 }
 0x3a7   : > { %958 = vadd.xlane.f32.xlu1 %v957_v39 }
 0x3b8   : > { %1073 = vrot.lane.b32.xlu1 %v6515_v19, %s6231_s28 }
 0x3b9   : > { %1076 = vrot.lane.b32.xlu0 %v6506_v14, %s6231_s28 }
 0x42c   : > { %v956_v40 = vpop.xlane.xlu0 %955 }
 0x42d   : > { %6122 = vrcp.f32 %v956_v40 }
 0x430   : > { %v959_v41 = vpop.xlane.xlu1 %958  ;;  %v1077_v46 = vpop.permute.xlu0 %1076 }
 0x431   : > { %6124 = vrcp.f32 %v959_v41  ;;  %v1082_v48 = vsel %vm893_vm1, %v1077_v46, 0 }
 0x434   : > { %v1074_v49 = vpop.permute.xlu1 %1073 }
 0x43a   : > { %v6123_v42 = vpop.eup %6122 }
 0x43b   : > { %v962_v44 = vmul.f32 %v6123_v42, %v6119_v36 }
 0x43e   : > { %v6125_v43 = vpop.eup %6124 }
 0x43f   : > { %v963_v45 = vmul.f32 %v6125_v43, %v6121_v38  ;;  %v5749_v38 = vld [vmem:[%s7073_s6 + $0x10] sm:$0xff]  }
 0x441   : > { %v964_v47 = vpack.c.bf16 %v963_v45, %v962_v44 }
 0x443   : > { %5603 = vmatmul.mubr.msk.bf16.vlgmr.msra.gmra.mxu1 %vm941_vm2, %v964_v47 }
 0x444   : > { %5615 = vmatpush3.bf16.xpose.msra.mxu1 %v1082_v48  ;;  %5616 = vmatprep.mubr.msk.bf16.mxu1 %vm6230_vm0, %v6228_v5 }
 0x445   : > { %5626 = vmatprep.subr.bf16.mxu1 %v6228_v5 }
 0x44b   : > { %5617 = vmatmul.mubr.msk.bf16.vlgmr.msra.gmra.mxu1 %vm893_vm1, %v1074_v49 }
 0x44c   : > { %5630 = vmatprep.mubr.msk.bf16.mxu1 %vm6230_vm0, %v6228_v5  ;;  %5627 = vmatpush3.bf16.msra.mxu1 %v5748_v37 }
 0x44d   : > { %5628 = vmatprep.subr.bf16.mxu1 %v6228_v5 }
 0x450   : > { %5629 = vmatpush3.bf16.msra.mxu1 %v5749_v38 }
 0x451   : > { %5640 = vmatprep.subr.bf16.mxu1 %v6228_v5 }
 0x503   : > { %v1002_v52 = vpop.f32.mrf.mxu1 }
 0x505   : > { %v5604_v53 = vpop.f32.mrf.mxu1 }
 0x507   : > { %v1005_v54 = vpop.f32.mrf.mxu1 }
 0x508   : > { %v1009_v56 = vpack.c.bf16 %v1005_v54, %v1002_v52 }
 0x509   : > { %v5605_v57 = vpop.f32.mrf.mxu1 }
 0x50a   : > { %5611 = vmatmul.mubr.msk.bf16.vlgmr.msra.gmra.mxu0 %vm893_vm1, %v1009_v56 }
 0x50b   : > { %v1118_v59 = vpop.f32.mrf.mxu1  ;;  %5622 = vmatprep.mubr.msk.bf16.mxu0 %vm6230_vm0, %v6228_v5 }
 0x50c   : > { %v1119_v60 = vadd.f32 %v6525_v20, %v1118_v59 }
 0x50d   : > { %v5618_v61 = vpop.f32.mrf.mxu1 }
 0x50e   : > { %v1125_v62 = vsel %vm941_vm2, %v1119_v60, -inf }
 0x50f   : > { %1126 = vmax.xlane.f32.xlu1 %v1125_v62  ;;  %v1121_v63 = vpop.f32.mrf.mxu1 }
 0x510   : > { %v1122_v0 = vadd.f32 %v6525_v20, %v1121_v63 }
 0x511   : > { %v5619_v3 = vpop.f32.mrf.mxu1 }
 0x512   : > { %v1128_v4 = vsel %vm941_vm2, %v1122_v0, -inf }
 0x513   : > { %1129 = vmax.xlane.f32.xlu0 %v1128_v4 }
 0x598   : > { %v1127_v6 = vpop.xlane.xlu1 %1126 }
 0x599   : > { %v1131_v7 = vsub.f32 %v1119_v60, %v1127_v6 }
 0x59b   : > { %v1133_v8 = vmul.f32 1.442695, %v1131_v7 }
 0x59c   : > { %v1130_v9 = vpop.xlane.xlu0 %1129 }
 0x59d   : > { %6126 = vpow2.f32 %v1133_v8  ;;  %v1132_v11 = vsub.f32 %v1122_v0, %v1130_v9 }
 0x59f   : > { %v1135_v13 = vmul.f32 1.442695, %v1132_v11 }
 0x5a1   : > { %6128 = vpow2.f32 %v1135_v13 }
 0x5aa   : > { %v6127_v15 = vpop.eup %6126 }
 0x5ab   : > { %v1137_v16 = vsel %vm941_vm2, %v6127_v15, 0.0 }
 0x5ac   : > { %1138 = vadd.xlane.f32.xlu0 %v1137_v16 }
 0x5ae   : > { %v6129_v17 = vpop.eup %6128 }
 0x5af   : > { %v1140_v18 = vsel %vm941_vm2, %v6129_v17, 0.0 }
 0x5b0   : > { %1141 = vadd.xlane.f32.xlu1 %v1140_v18 }
 0x5c1   : > { %1261 = vrot.lane.b32.xlu1 %v6506_v14, %s6232_s18 }
 0x5c2   : > { %1149 = vrot.lane.b32.xlu0 %v6504_v12, %s6231_s28 }
 0x5c5   : > { %1259 = vrot.lane.b32.xlu1 %v6515_v19, %s6232_s18 }
 0x5ca   : > { %v6568_v21 = vpop.f32.mrf.mxu0 }
 0x5cc   : > { %v5612_v22 = vpop.f32.mrf.mxu0 }
 0x5ce   : > { %v6570_v23 = vpop.f32.mrf.mxu0 }
 0x5d0   : > { %v5613_v24 = vpop.f32.mrf.mxu0 }
 0x635   : > { %v1139_v25 = vpop.xlane.xlu0 %1138 }
 0x636   : > { %6130 = vrcp.f32 %v1139_v25 }
 0x639   : > { %v1142_v26 = vpop.xlane.xlu1 %1141  ;;  %v1150_v27 = vpop.permute.xlu0 %1149 }
 0x63a   : > { %6132 = vrcp.f32 %v1142_v26  ;;  %5621 = vmatpush3.bf16.msra.mxu0 %v1150_v27  ;;  %v5750_v26 = vld [vmem:[%s7073_s6 + $0x28] sm:$0xff]   ;;  %v5751_v27 = vld [vmem:[%s7073_s6 + $0x20] sm:$0xff]  }
 0x63b   : > { %5634 = vmatprep.subr.bf16.mxu0 %v6228_v5 }
 0x63d   : > { %v1262_v33 = vpop.permute.xlu1 %1261 }
 0x63e   : > { %v1267_v35 = vsel %vm893_vm1, %v1262_v33, 0 }
 0x641   : > { %v1260_v36 = vpop.permute.xlu1 %1259 }
 0x643   : > { %v6131_v29 = vpop.eup %6130 }
 0x644   : > { %v1145_v31 = vmul.f32 %v6131_v29, %v6127_v15 }
 0x647   : > { %v6133_v30 = vpop.eup %6132 }
 0x648   : > { %v1146_v32 = vmul.f32 %v6133_v30, %v6129_v17 }
 0x64a   : > { %v1147_v34 = vpack.c.bf16 %v1146_v32, %v1145_v31 }
 0x64c   : > { %5623 = vmatmul.mubr.msk.bf16.vlgmr.msra.gmra.mxu0 %vm941_vm2, %v1147_v34 }
 0x64d   : > { %5635 = vmatpush3.bf16.xpose.msra.mxu0 %v1267_v35  ;;  %5636 = vmatprep.mubr.msk.bf16.mxu0 %vm6230_vm0, %v6228_v5 }
 0x64e   : > { %5646 = vmatprep.subr.bf16.mxu0 %v6228_v5 }
 0x654   : > { %5637 = vmatmul.mubr.msk.bf16.vlgmr.msra.gmra.mxu0 %vm893_vm1, %v1260_v36 }
 0x655   : > { %5650 = vmatprep.mubr.msk.bf16.mxu0 %vm6230_vm0, %v6228_v5  ;;  %5647 = vmatpush3.bf16.msra.mxu0 %v5750_v26  ;;  %v5756_v26 = vld [vmem:[#allocation2 + $0x74] ss:$8 sps:$4 sm:$0xff]  }
 0x656   : > { %5648 = vmatprep.subr.bf16.mxu0 %v6228_v5 }
 0x659   : > { %5649 = vmatpush3.bf16.msra.mxu0 %v5751_v27  ;;  %v5759_v27 = vld [vmem:[#allocation2 + $0xf4] ss:$8 sps:$4 sm:$0xff]  }
 0x65a   : > { %5660 = vmatprep.subr.bf16.mxu0 %v6228_v5 }
 0x70c   : > { %v1189_v39 = vpop.f32.mrf.mxu0 }
 0x70e   : > { %v5624_v40 = vpop.f32.mrf.mxu0 }
 0x710   : > { %v1192_v41 = vpop.f32.mrf.mxu0 }
 0x711   : > { %v1196_v42 = vpack.c.bf16 %v1192_v41, %v1189_v39 }
 0x712   : > { %v5625_v43 = vpop.f32.mrf.mxu0 }
 0x713   : > { %5631 = vmatmul.mubr.msk.bf16.vlgmr.msra.gmra.mxu1 %vm893_vm1, %v1196_v42 }
 0x714   : > { %v1303_v44 = vpop.f32.mrf.mxu0  ;;  %5642 = vmatprep.mubr.msk.bf16.mxu1 %vm6230_vm0, %v6228_v5 }
 0x715   : > { %v1304_v45 = vadd.f32 %v6525_v20, %v1303_v44 }
 0x716   : > { %v5638_v46 = vpop.f32.mrf.mxu0 }
 0x717   : > { %v1310_v47 = vsel %vm941_vm2, %v1304_v45, -inf }
 0x718   : > { %1311 = vmax.xlane.f32.xlu1 %v1310_v47  ;;  %v1306_v48 = vpop.f32.mrf.mxu0 }
 0x719   : > { %v1307_v49 = vadd.f32 %v6525_v20, %v1306_v48 }
 0x71a   : > { %v5639_v50 = vpop.f32.mrf.mxu0 }
 0x71b   : > { %v1313_v51 = vsel %vm941_vm2, %v1307_v49, -inf }
 0x71c   : > { %1314 = vmax.xlane.f32.xlu0 %v1313_v51 }
 0x729   : > { %1333 = vrot.lane.b32.xlu1 %v6504_v12, %s6232_s18 }
 0x72d   : > { %1443 = vrot.lane.b32.xlu1 %v6515_v19, %s6233_s24  ;;  %v4937_v19 = vld [vmem:[%s7074_s7] ss:$0 sm:$0xff] }
 0x72e   : > { %v885_v3 = vadd.f32 %v6381_v1, %v4937_v19  ;;  %v886_v6 = vadd.f32 %v6384_v2, %v4937_v19 }
 0x730   : > { %v1070_v4 = vadd.f32 %v6568_v21, %v885_v3  ;;  %v1071_v11 = vadd.f32 %v6570_v23, %v886_v6 }
 0x7a1   : > { %v1312_v52 = vpop.xlane.xlu1 %1311 }
 0x7a2   : > { %v1316_v53 = vsub.f32 %v1304_v45, %v1312_v52 }
 0x7a4   : > { %v1318_v54 = vmul.f32 1.442695, %v1316_v53 }
 0x7a5   : > { %v1334_v56 = vpop.permute.xlu1 %1333  ;;  %v1315_v57 = vpop.xlane.xlu0 %1314 }
 0x7a6   : > { %6134 = vpow2.f32 %v1318_v54  ;;  %v1317_v59 = vsub.f32 %v1307_v49, %v1315_v57  ;;  %5641 = vmatpush3.bf16.msra.mxu1 %v1334_v56 }
 0x7a7   : > { %5654 = vmatprep.subr.bf16.mxu1 %v6228_v5 }
 0x7a8   : > { %v1320_v60 = vmul.f32 1.442695, %v1317_v59 }
 0x7a9   : > { %v1444_v23 = vpop.permute.xlu1 %1443 }
 0x7aa   : > { %6136 = vpow2.f32 %v1320_v60 }
 0x7b3   : > { %v6135_v61 = vpop.eup %6134 }
 0x7b4   : > { %v1322_v62 = vsel %vm941_vm2, %v6135_v61, 0.0 }
 0x7b5   : > { %1323 = vadd.xlane.f32.xlu0 %v1322_v62 }
 0x7b7   : > { %v6137_v63 = vpop.eup %6136 }
 0x7b8   : > { %v1325_v0 = vsel %vm941_vm2, %v6137_v63, 0.0 }
 0x7b9   : > { %1326 = vadd.xlane.f32.xlu0 %v1325_v0 }
 0x7cf   : > { %1445 = vrot.lane.b32.xlu0 %v6506_v14, %s6233_s24 }
 0x7d3   : > { %v1250_v7 = vpop.f32.mrf.mxu1 }
 0x7d4   : > { %v6611_v8 = vadd.f32 %v1250_v7, %v1070_v4  ;;  %v5753_v4 = vld [vmem:[%s7073_s6 + $0x30] sm:$0xff]  }
 0x7d5   : > { %v5632_v9 = vpop.f32.mrf.mxu1 }
 0x7d7   : > { %v1253_v13 = vpop.f32.mrf.mxu1 }
 0x7d8   : > { %v1258_v15 = vadd.f32 %v1253_v13, %v1071_v11 }
 0x7d9   : > { %v5633_v16 = vpop.f32.mrf.mxu1 }
 0x83e   : > { %v1324_v17 = vpop.xlane.xlu0 %1323 }
 0x83f   : > { %6138 = vrcp.f32 %v1324_v17 }
 0x842   : > { %v1327_v18 = vpop.xlane.xlu0 %1326 }
 0x843   : > { %6140 = vrcp.f32 %v1327_v18 }
 0x846   : > { %v1446_v21 = vpop.permute.xlu0 %1445 }
 0x847   : > { %v1451_v2 = vsel %vm893_vm1, %v1446_v21, 0 }
 0x84c   : > { %v6139_v1 = vpop.eup %6138 }
 0x84d   : > { %v1330_v14 = vmul.f32 %v6139_v1, %v6135_v61 }
 0x850   : > { %v6141_v22 = vpop.eup %6140 }
 0x851   : > { %v1331_v24 = vmul.f32 %v6141_v22, %v6137_v63 }
 0x853   : > { %v1332_v25 = vpack.c.bf16 %v1331_v24, %v1330_v14 }
 0x855   : > { %5643 = vmatmul.mubr.msk.bf16.vlgmr.msra.gmra.mxu1 %vm941_vm2, %v1332_v25 }
 0x856   : > { %5655 = vmatpush3.bf16.xpose.msra.mxu1 %v1451_v2  ;;  %5656 = vmatprep.mubr.msk.bf16.mxu1 %vm6230_vm0, %v6228_v5 }
 0x857   : > { %5666 = vmatprep.subr.bf16.mxu1 %v6228_v5 }
 0x85d   : > { %5657 = vmatmul.mubr.msk.bf16.vlgmr.msra.gmra.mxu1 %vm893_vm1, %v1444_v23 }
 0x85e   : > { %5670 = vmatprep.mubr.msk.bf16.mxu1 %vm6230_vm0, %v6228_v5 }
 0x915   : > { %v1373_v29 = vpop.f32.mrf.mxu1 }
 0x917   : > { %v5644_v30 = vpop.f32.mrf.mxu1 }
 0x918   : > { %v5757_v30 = vld [vmem:[#allocation2 + $0xf0] ss:$8 sps:$4 sm:$0xff]  }
 0x919   : > { %v1376_v31 = vpop.f32.mrf.mxu1 }
 0x91a   : > { %v1380_v32 = vpack.c.bf16 %v1376_v31, %v1373_v29  ;;  %v5754_v29 = vld [vmem:[#allocation2 + $0x70] ss:$8 sps:$4 sm:$0xff]   ;;  %v5762_v31 = vld [vmem:[#allocation2 + $0x64] ss:$8 sps:$4 sm:$0xff]  }
 0x91b   : > { %v5645_v33 = vpop.f32.mrf.mxu1 }
 0x91c   : > { %5651 = vmatmul.mubr.msk.bf16.vlgmr.msra.gmra.mxu0 %vm893_vm1, %v1380_v32  ;;  %v5765_v32 = vld [vmem:[#allocation2 + $0xe4] ss:$8 sps:$4 sm:$0xff]   ;;  %v5760_v33 = vld [vmem:[#allocation2 + $0x60] ss:$8 sps:$4 sm:$0xff]  }
 0x91d   : > { %v1487_v34 = vpop.f32.mrf.mxu1  ;;  %5662 = vmatprep.mubr.msk.bf16.mxu0 %vm6230_vm0, %v6228_v5  ;;  %vm2174_vm0 = vcmp.ge.s32.totalorder %v6494_v55, 1 }
 0x91e   : > { %v1488_v35 = vadd.f32 %v6525_v20, %v1487_v34  ;;  %v5763_v34 = vld [vmem:[#allocation2 + $0xe0] ss:$8 sps:$4 sm:$0xff]  }
 0x91f   : > { %v5658_v36 = vpop.f32.mrf.mxu1 }
 0x920   : > { %v1494_v37 = vsel %vm941_vm2, %v1488_v35, -inf  ;;  %v5771_v36 = vld [vmem:[#allocation2 + $0xd4] ss:$8 sps:$4 sm:$0xff]  }
 0x921   : > { %1495 = vmax.xlane.f32.xlu1 %v1494_v37  ;;  %v1490_v38 = vpop.f32.mrf.mxu1  ;;  %v5766_v37 = vld [vmem:[#allocation2 + $0x50] ss:$8 sps:$4 sm:$0xff]  }
 0x922   : > { %v1491_v39 = vadd.f32 %v6525_v20, %v1490_v38  ;;  %v5769_v38 = vld [vmem:[#allocation2 + $0xd0] ss:$8 sps:$4 sm:$0xff]  }
 0x923   : > { %v5659_v40 = vpop.f32.mrf.mxu1 }
 0x924   : > { %v1497_v41 = vsel %vm941_vm2, %v1491_v39, -inf  ;;  %v5777_v40 = vld [vmem:[#allocation2 + $0xc4] ss:$8 sps:$4 sm:$0xff]  }
 0x925   : > { %1498 = vmax.xlane.f32.xlu0 %v1497_v41  ;;  %v5772_v41 = vld [vmem:[#allocation2 + $0x40] ss:$8 sps:$4 sm:$0xff]  }
 0x9aa   : > { %v1496_v42 = vpop.xlane.xlu1 %1495 }
 0x9ab   : > { %v1500_v43 = vsub.f32 %v1488_v35, %v1496_v42  ;;  %v5768_v35 = vld [vmem:[#allocation2 + $0x54] ss:$8 sps:$4 sm:$0xff]   ;;  %v5775_v42 = vld [vmem:[#allocation2 + $0xc0] ss:$8 sps:$4 sm:$0xff]  }
 0x9ad   : > { %v1502_v44 = vmul.f32 1.442695, %v1500_v43  ;;  %v5780_v43 = vld [vmem:[#allocation2 + $0x34] ss:$8 sps:$4 sm:$0xff]  }
 0x9ae   : > { %v1499_v45 = vpop.xlane.xlu0 %1498 }
 0x9af   : > { %6142 = vpow2.f32 %v1502_v44  ;;  %v1501_v46 = vsub.f32 %v1491_v39, %v1499_v45  ;;  %v5774_v39 = vld [vmem:[#allocation2 + $0x44] ss:$8 sps:$4 sm:$0xff]   ;;  %v5783_v44 = vld [vmem:[#allocation2 + $0xb4] ss:$8 sps:$4 sm:$0xff]   ;;  %v5778_v45 = vld [vmem:[#allocation2 + $0x30] ss:$8 sps:$4 sm:$0xff]  }
 0x9b1   : > { %v1504_v47 = vmul.f32 1.442695, %v1501_v46  ;;  %v5781_v46 = vld [vmem:[#allocation2 + $0xb0] ss:$8 sps:$4 sm:$0xff]  }
 0x9b3   : > { %6144 = vpow2.f32 %v1504_v47  ;;  %v5786_v47 = vld [vmem:[#allocation2 + $0x24] ss:$8 sps:$4 sm:$0xff]  }
 0x9bc   : > { %v6143_v48 = vpop.eup %6142 }
 0x9bd   : > { %v1506_v49 = vsel %vm941_vm2, %v6143_v48, 0.0 }
 0x9be   : > { %1507 = vadd.xlane.f32.xlu0 %v1506_v49  ;;  %v5784_v49 = vld [vmem:[#allocation2 + $0x20] ss:$8 sps:$4 sm:$0xff]  }
 0x9c0   : > { %v6145_v50 = vpop.eup %6144 }
 0x9c1   : > { %v1509_v51 = vsel %vm941_vm2, %v6145_v50, 0.0 }
 0x9c2   : > { %1510 = vadd.xlane.f32.xlu1 %v1509_v51  ;;  %v5792_v51 = vld [vmem:[#allocation2 + $0x14] ss:$8 sps:$4 sm:$0xff]  }
 0x9d4   : > { %1517 = vrot.lane.b32.xlu0 %v6504_v12, %s6233_s24  ;;  %v5752_v12 = vld [vmem:[%s7073_s6 + $0x38] sm:$0xff]  }
 0x9d5   : > { %5667 = vmatpush3.bf16.msra.mxu1 %v5752_v12 }
 0x9d6   : > { %5668 = vmatprep.subr.bf16.mxu1 %v6228_v5 }
 0x9d9   : > { %5669 = vmatpush3.bf16.msra.mxu1 %v5753_v4 }
 0x9da   : > { %1960 = vmatprep.subr.bf16.mxu1 %v5759_v27 }
 0x9dc   : > { %v1434_v20 = vpop.f32.mrf.mxu0 }
 0x9dd   : > { %v1441_v52 = vadd.f32 %v1434_v20, %v6611_v8  ;;  %v5795_v20 = vld [vmem:[#allocation2 + $0x94] ss:$8 sps:$4 sm:$0xff]  }
 0x9de   : > { %v5652_v53 = vpop.f32.mrf.mxu0 }
 0x9df   : > { %v5793_v53 = vld [vmem:[#allocation2 + $0x90] ss:$8 sps:$4 sm:$0xff]  }
 0x9e0   : > { %v1437_v54 = vpop.f32.mrf.mxu0 }
 0x9e1   : > { %v1442_v56 = vadd.f32 %v1437_v54, %v1258_v15  ;;  %v5796_v54 = vld [vmem:[#allocation2] ss:$8 sps:$4 sm:$0xff]  }
 0x9e2   : > { %v5653_v57 = vpop.f32.mrf.mxu0 }
 0x9e3   : > { %v5799_v57 = vld [vmem:[#allocation2 + $0x80] ss:$8 sps:$4 sm:$0xff]  }
 0xa47   : > { %v1508_v59 = vpop.xlane.xlu0 %1507 }
 0xa48   : > { %6146 = vrcp.f32 %v1508_v59  ;;  %v5801_v59 = vld [vmem:[#allocation2 + $0x84] ss:$8 sps:$4 sm:$0xff]  }
 0xa4b   : > { %v1511_v60 = vpop.xlane.xlu1 %1510  ;;  %v1518_v61 = vpop.permute.xlu0 %1517 }
 0xa4c   : > { %6148 = vrcp.f32 %v1511_v60  ;;  %5661 = vmatpush3.bf16.msra.mxu0 %v1518_v61  ;;  %v5804_v60 = vld [vmem:[#allocation2 + $0x174] ss:$8 sps:$4 sm:$0xff]  }
 0xa4d   : > { %1798 = vmatprep.subr.bf16.mxu0 %v5756_v26  ;;  %v5807_v61 = vld [vmem:[#allocation2 + $0x1f4] ss:$8 sps:$4 sm:$0xff]  }
 0xa55   : > { %v6147_v62 = vpop.eup %6146 }
 0xa56   : > { %v1514_v0 = vmul.f32 %v6147_v62, %v6143_v48  ;;  %v5789_v48 = vld [vmem:[#allocation2 + $0xa4] ss:$8 sps:$4 sm:$0xff]  }
 0xa59   : > { %v6149_v63 = vpop.eup %6148 }
 0xa5a   : > { %v1515_v19 = vmul.f32 %v6149_v63, %v6145_v50  ;;  %v5787_v50 = vld [vmem:[#allocation2 + $0xa0] ss:$8 sps:$4 sm:$0xff]  }
 0xa5c   : > { %v1516_v3 = vpack.c.bf16 %v1515_v19, %v1514_v0 }
 0xa5e   : > { %5663 = vmatmul.mubr.msk.bf16.vlgmr.msra.gmra.mxu0 %vm941_vm2, %v1516_v3  ;;  %vm6786_vm2 = vmpackc.low %vm6234_vm9, %vm2174_vm0 }
 0xa5f   : > { %1830 = vmatprep.mubr.bf16.mxu0 %v6229_v28  ;;  %1799 = vmatpush1.bf16.msra.mxu0 %v5754_v29  ;;  %v5802_v29 = vld [vmem:[#allocation2 + $0x170] ss:$8 sps:$4 sm:$0xff]  }
 0xa60   : > { %1800 = vmatprep.subr.bf16.mxu0 %v5762_v31 }
 0xa63   : > { %1801 = vmatpush1.bf16.msra.mxu0 %v5760_v33 }
 0xa64   : > { %1802 = vmatprep.subr.bf16.mxu0 %v5768_v35  ;;  %v6010_v35 = vld [vmem:[#allocation4 + $0x168] sm:$0xff]  }
 0xa67   : > { %1803 = vmatpush1.bf16.msra.mxu0 %v5766_v37 }
 0xa68   : > { %1804 = vmatprep.subr.bf16.mxu0 %v5774_v39  ;;  %v5813_v39 = vld [vmem:[#allocation2 + $0x1e4] ss:$8 sps:$4 sm:$0xff]  }
 0xa6b   : > { %1805 = vmatpush1.bf16.msra.mxu0 %v5772_v41 }
 0xa6c   : > { %1806 = vmatprep.subr.bf16.mxu0 %v5780_v43 }
 0xa6f   : > { %1807 = vmatpush1.bf16.msra.mxu0 %v5778_v45  ;;  %v5808_v45 = vld [vmem:[#allocation2 + $0x160] ss:$8 sps:$4 sm:$0xff]  }
 0xa70   : > { %1808 = vmatprep.subr.bf16.mxu0 %v5786_v47 }
 0xa73   : > { %1809 = vmatpush1.bf16.msra.mxu0 %v5784_v49 }
 0xa74   : > { %1810 = vmatprep.subr.bf16.mxu0 %v5792_v51  ;;  %v5819_v51 = vld [vmem:[#allocation2 + $0x1d4] ss:$8 sps:$4 sm:$0xff]  }
 0xb1e   : > { %v1557_v6 = vpop.f32.mrf.mxu0 }
 0xb20   : > { %v5664_v7 = vpop.f32.mrf.mxu0 }
 0xb22   : > { %v1560_v8 = vpop.f32.mrf.mxu0 }
 0xb23   : > { %v1564_v9 = vpack.c.bf16 %v1560_v8, %v1557_v6  ;;  %v4959_v6 = vld [vmem:[%s7075_s8] ss:$0 sm:$0xff] }
 0xb24   : > { %v5665_v11 = vpop.f32.mrf.mxu0  ;;  %v4960_v8 = vld [vmem:[%s7076_s9] ss:$0 sm:$0xff] }
 0xb25   : > { %5671 = vmatmul.mubr.msk.bf16.vlgmr.msra.gmra.mxu1 %vm893_vm1, %v1564_v9  ;;  %vm6781_vm1 = vmpackc.low %vm6234_vm9, %vm2012_vm15 }
 0xb26   : > { %1992 = vmatprep.mubr.bf16.mxu1 %v6229_v28  ;;  %1961 = vmatpush1.bf16.msra.mxu1 %v5757_v30  ;;  %v5805_v30 = vld [vmem:[#allocation2 + $0x1f0] ss:$8 sps:$4 sm:$0xff]  }
 0xb27   : > { %1962 = vmatprep.subr.bf16.mxu1 %v5765_v32 }
 0xb2a   : > { %1963 = vmatpush1.bf16.msra.mxu1 %v5763_v34 }
 0xb2b   : > { %1964 = vmatprep.subr.bf16.mxu1 %v5771_v36 }
 0xb2e   : > { %1965 = vmatpush1.bf16.msra.mxu1 %v5769_v38  ;;  %v5810_v38 = vld [vmem:[#allocation2 + $0x164] ss:$8 sps:$4 sm:$0xff]  }
 0xb2f   : > { %1966 = vmatprep.subr.bf16.mxu1 %v5777_v40 }
 0xb32   : > { %1967 = vmatpush1.bf16.msra.mxu1 %v5775_v42 }
 0xb33   : > { %1968 = vmatprep.subr.bf16.mxu1 %v5783_v44 }
 0xb36   : > { %1969 = vmatpush1.bf16.msra.mxu1 %v5781_v46  ;;  %v5811_v46 = vld [vmem:[#allocation2 + $0x1e0] ss:$8 sps:$4 sm:$0xff]  }
 0xb37   : > { %1970 = vmatprep.subr.bf16.mxu1 %v5789_v48 }
 0xb3a   : > { %1971 = vmatpush1.bf16.msra.mxu1 %v5787_v50  ;;  %v5816_v50 = vld [vmem:[#allocation2 + $0x154] ss:$8 sps:$4 sm:$0xff]  }
 0xb3b   : > { %1972 = vmatprep.subr.bf16.mxu1 %v5795_v20 }
 0xb3e   : > { %1973 = vmatpush1.bf16.msra.mxu1 %v5793_v53 }
 0xb3f   : > { %1974 = vmatprep.subr.bf16.mxu1 %v5801_v59  ;;  %v5822_v59 = vld [vmem:[#allocation2 + $0x144] ss:$8 sps:$4 sm:$0xff]  }
 0xb42   : > { %1975 = vmatpush1.bf16.msra.mxu1 %v5799_v57  ;;  %v5817_v57 = vld [vmem:[#allocation2 + $0x1d0] ss:$8 sps:$4 sm:$0xff]  }
 0xb43   : > { %2284 = vmatprep.subr.bf16.mxu1 %v5807_v61  ;;  %v5820_v61 = vld [vmem:[#allocation2 + $0x140] ss:$8 sps:$4 sm:$0xff]  }
 0xbe5   : > { %v1618_v13 = vpop.f32.mrf.mxu1 }
 0xbe6   : > { %v6653_v15 = vadd.f32 %v1618_v13, %v1441_v52  ;;  %v5790_v52 = vld [vmem:[#allocation2 + $0x10] ss:$8 sps:$4 sm:$0xff]  }
 0xbe7   : > { %v5672_v16 = vpop.f32.mrf.mxu1  ;;  %1811 = vmatpush1.bf16.msra.mxu0 %v5790_v52 }
 0xbe8   : > { %1630 = vadd.xlane.f32.xlu1 %v6653_v15 }
 0xbe9   : > { %v1621_v5 = vpop.f32.mrf.mxu1 }
 0xbea   : > { %v6656_v17 = vadd.f32 %v1621_v5, %v1442_v56  ;;  %v5798_v56 = vld [vmem:[#allocation2 + $0x4] ss:$8 sps:$4 sm:$0xff]  }
 0xbeb   : > { %v5673_v18 = vpop.f32.mrf.mxu1  ;;  %1812 = vmatprep.subr.bf16.mxu0 %v5798_v56  ;;  %v5814_v56 = vld [vmem:[#allocation2 + $0x150] ss:$8 sps:$4 sm:$0xff]  }
 0xbec   : > { %1632 = vadd.xlane.f32.xlu1 %v6656_v17  ;;  %1813 = vmatpush1.bf16.msra.mxu0 %v5796_v54 }
 0xbed   : > { %2122 = vmatprep.subr.bf16.mxu0 %v5804_v60  ;;  %v5825_v60 = vld [vmem:[#allocation2 + $0x1c4] ss:$8 sps:$4 sm:$0xff]  }
 0xc71   : > { %v1631_v1 = vpop.xlane.xlu1 %1630 }
 0xc72   : > { %v1634_v22 = vmul.f32 0.0078125, %v1631_v1 }
 0xc74   : > { %v6660_v14 = vsub.f32 %v6653_v15, %v1634_v22 }
 0xc75   : > { %v1633_v24 = vpop.xlane.xlu1 %1632 }
 0xc76   : > { %v1635_v21 = vmul.f32 0.0078125, %v1633_v24  ;;  %v1638_v25 = vmul.f32 %v6660_v14, %v6660_v14 }
 0xc78   : > { %v6665_v2 = vsub.f32 %v6656_v17, %v1635_v21  ;;  %1640 = vadd.xlane.f32.xlu1 %v1638_v25 }
 0xc7a   : > { %v1639_v23 = vmul.f32 %v6665_v2, %v6665_v2 }
 0xc7c   : > { %1642 = vadd.xlane.f32.xlu1 %v1639_v23 }
 0xd01   : > { %v1641_v62 = vpop.xlane.xlu1 %1640 }
 0xd02   : > { %v1644_v63 = vmul.f32 0.0078125, %v1641_v62  ;;  %v5823_v62 = vld [vmem:[#allocation2 + $0x1c0] ss:$8 sps:$4 sm:$0xff]  }
 0xd04   : > { %v1646_v0 = vadd.f32 1e-05, %v1644_v63  ;;  %v5828_v63 = vld [vmem:[#allocation2 + $0x134] ss:$8 sps:$4 sm:$0xff]  }
 0xd05   : > { %v1643_v19 = vpop.xlane.xlu1 %1642 }
 0xd06   : > { %6150 = vrsqrt.f32 %v1646_v0  ;;  %v1645_v3 = vmul.f32 0.0078125, %v1643_v19  ;;  %v5831_v0 = vld [vmem:[#allocation2 + $0x1b4] ss:$8 sps:$4 sm:$0xff]   ;;  %v5826_v19 = vld [vmem:[#allocation2 + $0x130] ss:$8 sps:$4 sm:$0xff]  }
 0xd08   : > { %v1647_v12 = vadd.f32 1e-05, %v1645_v3  ;;  %v5829_v3 = vld [vmem:[#allocation2 + $0x1b0] ss:$8 sps:$4 sm:$0xff]  }
 0xd0a   : > { %6152 = vrsqrt.f32 %v1647_v12  ;;  %v5834_v12 = vld [vmem:[#allocation2 + $0x124] ss:$8 sps:$4 sm:$0xff]  }
 0xd13   : > { %v6151_v4 = vpop.eup %6150 }
 0xd14   : > { %v1650_v7 = vmul.f32 %v6151_v4, %v6660_v14  ;;  %v5837_v4 = vld [vmem:[#allocation2 + $0x1a4] ss:$8 sps:$4 sm:$0xff]  }
 0xd16   : > { %v1659_v9 = vmul.f32 %v4959_v6, %v1650_v7  ;;  %v5835_v7 = vld [vmem:[#allocation2 + $0x1a0] ss:$8 sps:$4 sm:$0xff]  }
 0xd17   : > { %v6153_v11 = vpop.eup %6152 }
 0xd18   : > { %v1651_v13 = vmul.f32 %v6153_v11, %v6665_v2  ;;  %v6677_v16 = vadd.f32 %v4960_v8, %v1659_v9  ;;  %v5843_v9 = vld [vmem:[#allocation2 + $0x194] ss:$8 sps:$4 sm:$0xff]   ;;  %v5838_v11 = vld [vmem:[#allocation2 + $0x110] ss:$8 sps:$4 sm:$0xff]  }
 0xd1a   : > { %v1660_v5 = vmul.f32 %v4959_v6, %v1651_v13  ;;  %v1684_v1 = vrot.slane %v6677_v16, 4  ;;  %v1845_v14 = vrot.slane %v6677_v16, 5  ;;  %v2488_v21 = vrot.slane %v6677_v16, 1  ;;  %v5832_v6 = vld [vmem:[#allocation2 + $0x120] ss:$8 sps:$4 sm:$0xff]  }
 0xd1b   : > { %v2650_v40 = vrot.slane %v6677_v16, 2  ;;  %v2812_v42 = vrot.slane %v6677_v16, 3  ;;  %v5841_v13 = vld [vmem:[#allocation2 + $0x190] ss:$8 sps:$4 sm:$0xff]  }
 0xd1c   : > { %v6680_v18 = vadd.f32 %v4960_v8, %v1660_v5  ;;  %v5840_v8 = vld [vmem:[#allocation2 + $0x114] ss:$8 sps:$4 sm:$0xff]   ;;  %v5846_v5 = vld [vmem:[#allocation2 + $0x104] ss:$8 sps:$4 sm:$0xff]  }
 0xd1e   : > { %v1685_v22 = vrot.slane %v6680_v18, 4  ;;  %v1846_v24 = vrot.slane %v6680_v18, 5  ;;  %v2343_v2 = vpack.c.bf16 %v6680_v18, %v6677_v16  ;;  %v2489_v23 = vrot.slane %v6680_v18, 1 }
 0xd1f   : > { %v2651_v26 = vrot.slane %v6680_v18, 2  ;;  %v2813_v27 = vrot.slane %v6680_v18, 3 }
 0xd20   : > { %v6704_v31 = vsel %vm1686_vm3, %v1684_v1, %v1685_v22  ;;  %v6708_v32 = vsel %vm1686_vm3, %v1685_v22, %v1684_v1  ;;  %v1848_v33 = vsel %vm1847_vm5, %v1845_v14, %v1846_v24  ;;  %v1849_v34 = vsel %vm1847_vm5, %v1846_v24, %v1845_v14  ;;  %v5849_v1 = vld [vmem:[#allocation2 + $0x184] ss:$8 sps:$4 sm:$0xff]   ;;  %v5844_v24 = vld [vmem:[#allocation2 + $0x100] ss:$8 sps:$4 sm:$0xff]  }
 0xd21   : > { %v4978_v36 = vpack.c.bf16 %v6704_v31, %v6708_v32  ;;  %v4997_v37 = vpack.c.bf16 %v1848_v33, %v1849_v34  ;;  %v6727_v41 = vsel %vm2490_vm7, %v2488_v21, %v2489_v23  ;;  %v6736_v43 = vsel %vm2490_vm7, %v2489_v23, %v2488_v21  ;;  %v5847_v21 = vld [vmem:[#allocation2 + $0x180] ss:$8 sps:$4 sm:$0xff]  }
 0xd22   : > { %v6740_v44 = vsel %vm2652_vm8, %v2650_v40, %v2651_v26  ;;  %v5070_v47 = vpack.c.bf16 %v6736_v43, %v6727_v41  ;;  %v6746_v48 = vsel %vm2652_vm8, %v2651_v26, %v2650_v40  ;;  %v6750_v49 = vsel %vm7084_vm12, %v2812_v42, %v2813_v27  ;;  %v5853_v40 = vld [vmem:[#allocation2 + $0x2f0] ss:$8 sps:$4 sm:$0xff]   ;;  %v5921_v41 = vld [vmem:[#allocation2 + $0x3c4] ss:$8 sps:$4 sm:$0xff]   ;;  %v5916_v43 = vld [vmem:[#allocation2 + $0x340] ss:$8 sps:$4 sm:$0xff]  }
 0xd23   : > { %4979 = vmatmul.mubr.msk.bf16.vlgmr.msra.gmra.mxu0 %vm6693_vm10, %v4978_v36  ;;  %4998 = vmatmul.mubr.msk.bf16.vlgmr.msra.gmra.mxu1 %vm6717_vm11, %v4997_v37  ;;  %v5089_v20 = vpack.c.bf16 %v6746_v48, %v6740_v44  ;;  %v6756_v52 = vsel %vm7084_vm12, %v2813_v27, %v2812_v42  ;;  %v5127_v53 = vpack.c.bf16 %v6708_v32, %v6704_v31  ;;  %v2008_v22 = vrot.slane %v6680_v18, 6  ;;  %v5852_v27 = vld [vmem:[#allocation2 + $0x274] ss:$8 sps:$4 sm:$0xff]   ;;  %v5955_v44 = vld [vmem:[#allocation2 + $0x440] ss:$8 sps:$4 sm:$0xff]  }
 0xd24   : > { %2123 = vmatpush1.bf16.msra.mxu0 %v5802_v29  ;;  %2285 = vmatpush1.bf16.msra.mxu1 %v5805_v30  ;;  %v5108_v54 = vpack.c.bf16 %v6756_v52, %v6750_v49  ;;  %v2170_v14 = vrot.slane %v6680_v18, 7  ;;  %v2007_v23 = vrot.slane %v6677_v16, 6  ;;  %v2169_v26 = vrot.slane %v6677_v16, 7  ;;  %v5855_v29 = vld [vmem:[#allocation2 + $0x2f4] ss:$8 sps:$4 sm:$0xff]   ;;  %v5980_v31 = vld [vmem:[#allocation4 + $0x28] sm:$0xff]  }
 0xd25   : > { %2124 = vmatprep.subr.bf16.mxu0 %v5810_v38  ;;  %2286 = vmatprep.subr.bf16.mxu1 %v5813_v39  ;;  %v5850_v39 = vld [vmem:[#allocation2 + $0x270] ss:$8 sps:$4 sm:$0xff]   ;;  %v5960_v48 = vld [vmem:[#allocation2 + $0x434] ss:$8 sps:$4 sm:$0xff]   ;;  %v5963_v49 = vld [vmem:[#allocation2 + $0x424] ss:$8 sps:$4 sm:$0xff]  }
 0xd26   : > { %2154 = vmatprep.mubr.bf16.mxu0 %v6229_v28  ;;  %2316 = vmatprep.mubr.bf16.mxu1 %v6229_v28  ;;  %v2010_v30 = vsel %vm2009_vm13, %v2007_v23, %v2008_v22  ;;  %v2011_v33 = vsel %vm2009_vm13, %v2008_v22, %v2007_v23  ;;  %v2172_v34 = vsel %vm2171_vm14, %v2169_v26, %v2170_v14  ;;  %v5889_v22 = vld [vmem:[#allocation2 + $0x290] ss:$8 sps:$4 sm:$0xff]   ;;  %v5892_v23 = vld [vmem:[#allocation2 + $0x200] ss:$8 sps:$4 sm:$0xff]  }
 0xd27   : > { %v2173_v36 = vsel %vm2171_vm14, %v2170_v14, %v2169_v26  ;;  %v5016_v42 = vpack.c.bf16 %v2010_v30, %v2011_v33  ;;  %v5894_v14 = vld [vmem:[#allocation2 + $0x204] ss:$8 sps:$4 sm:$0xff]   ;;  %v5895_v26 = vld [vmem:[#allocation2 + $0x280] ss:$8 sps:$4 sm:$0xff]   ;;  %v5898_v33 = vld [vmem:[#allocation2 + $0x370] ss:$8 sps:$4 sm:$0xff]  }
 0xd28   : > { %2125 = vmatpush1.bf16.msra.mxu0 %v5808_v45  ;;  %2287 = vmatpush1.bf16.msra.mxu1 %v5811_v46  ;;  %v5035_v45 = vpack.c.bf16 %v2172_v34, %v2173_v36  ;;  %v5858_v46 = vld [vmem:[#allocation2 + $0x264] ss:$8 sps:$4 sm:$0xff]   ;;  %v5901_v34 = vld [vmem:[#allocation2 + $0x3f0] ss:$8 sps:$4 sm:$0xff]   ;;  %v5961_v52 = vld [vmem:[#allocation2 + $0x420] ss:$8 sps:$4 sm:$0xff]  }
 0xd29   : > { %2126 = vmatprep.subr.bf16.mxu0 %v5816_v50  ;;  %2288 = vmatprep.subr.bf16.mxu1 %v5819_v51  ;;  %v5861_v50 = vld [vmem:[#allocation2 + $0x2e4] ss:$8 sps:$4 sm:$0xff]   ;;  %v5856_v51 = vld [vmem:[#allocation2 + $0x260] ss:$8 sps:$4 sm:$0xff]   ;;  %v5910_v16 = vld [vmem:[#allocation2 + $0x350] ss:$8 sps:$4 sm:$0xff]  }
 0xd2a   : > { %v5906_v36 = vld [vmem:[#allocation2 + $0x364] ss:$8 sps:$4 sm:$0xff]   ;;  %v5913_v18 = vld [vmem:[#allocation2 + $0x3d0] ss:$8 sps:$4 sm:$0xff]  }
 0xd2b   : > { %v5981_v32 = vld [vmem:[#allocation4 + $0xa8] sm:$0xff]   ;;  %v6046_v38 = vld [vmem:[#allocation4 + $0x260] sm:$0xff]  }
 0xd2c   : > { %2127 = vmatpush1.bf16.msra.mxu0 %v5814_v56  ;;  %2289 = vmatpush1.bf16.msra.mxu1 %v5817_v57  ;;  %v5859_v56 = vld [vmem:[#allocation2 + $0x2e0] ss:$8 sps:$4 sm:$0xff]   ;;  %v5864_v57 = vld [vmem:[#allocation2 + $0x254] ss:$8 sps:$4 sm:$0xff]  }
 0xd2d   : > { %2128 = vmatprep.subr.bf16.mxu0 %v5822_v59  ;;  %2290 = vmatprep.subr.bf16.mxu1 %v5825_v60  ;;  %v5867_v59 = vld [vmem:[#allocation2 + $0x2d4] ss:$8 sps:$4 sm:$0xff]   ;;  %v5862_v60 = vld [vmem:[#allocation2 + $0x250] ss:$8 sps:$4 sm:$0xff]   ;;  %v6045_v37 = vld [vmem:[#allocation4 + $0x2a8] sm:$0xff]  }
 0xd2e   : > { %v6075_v30 = vld [vmem:[#allocation4 + $0x3e8] sm:$0xff]  }
 0xd30   : > { %2129 = vmatpush1.bf16.msra.mxu0 %v5820_v61  ;;  %2291 = vmatpush1.bf16.msra.mxu1 %v5823_v62  ;;  %v5865_v61 = vld [vmem:[#allocation2 + $0x2d0] ss:$8 sps:$4 sm:$0xff]   ;;  %v5870_v62 = vld [vmem:[#allocation2 + $0x244] ss:$8 sps:$4 sm:$0xff]  }
 0xd31   : > { %2130 = vmatprep.subr.bf16.mxu0 %v5828_v63  ;;  %2292 = vmatprep.subr.bf16.mxu1 %v5831_v0  ;;  %v5873_v63 = vld [vmem:[#allocation2 + $0x2c4] ss:$8 sps:$4 sm:$0xff]   ;;  %v5868_v0 = vld [vmem:[#allocation2 + $0x240] ss:$8 sps:$4 sm:$0xff]  }
 0xd34   : > { %2131 = vmatpush1.bf16.msra.mxu0 %v5826_v19  ;;  %2293 = vmatpush1.bf16.msra.mxu1 %v5829_v3  ;;  %v5871_v19 = vld [vmem:[#allocation2 + $0x2c0] ss:$8 sps:$4 sm:$0xff]   ;;  %v5876_v3 = vld [vmem:[#allocation2 + $0x234] ss:$8 sps:$4 sm:$0xff]  }
 0xd35   : > { %2132 = vmatprep.subr.bf16.mxu0 %v5834_v12  ;;  %2294 = vmatprep.subr.bf16.mxu1 %v5837_v4  ;;  %v5879_v12 = vld [vmem:[#allocation2 + $0x2b4] ss:$8 sps:$4 sm:$0xff]   ;;  %v5874_v4 = vld [vmem:[#allocation2 + $0x230] ss:$8 sps:$4 sm:$0xff]  }
 0xd38   : > { %2133 = vmatpush1.bf16.msra.mxu0 %v5832_v6  ;;  %2295 = vmatpush1.bf16.msra.mxu1 %v5835_v7  ;;  %v5877_v6 = vld [vmem:[#allocation2 + $0x2b0] ss:$8 sps:$4 sm:$0xff]   ;;  %v5882_v7 = vld [vmem:[#allocation2 + $0x224] ss:$8 sps:$4 sm:$0xff]  }
 0xd39   : > { %2134 = vmatprep.subr.bf16.mxu0 %v5840_v8  ;;  %2296 = vmatprep.subr.bf16.mxu1 %v5843_v9  ;;  %v5885_v8 = vld [vmem:[#allocation2 + $0x2a4] ss:$8 sps:$4 sm:$0xff]   ;;  %v5880_v9 = vld [vmem:[#allocation2 + $0x220] ss:$8 sps:$4 sm:$0xff]  }
 0xd3c   : > { %2135 = vmatpush1.bf16.msra.mxu0 %v5838_v11  ;;  %2297 = vmatpush1.bf16.msra.mxu1 %v5841_v13  ;;  %v5883_v11 = vld [vmem:[#allocation2 + $0x2a0] ss:$8 sps:$4 sm:$0xff]   ;;  %v5888_v13 = vld [vmem:[#allocation2 + $0x214] ss:$8 sps:$4 sm:$0xff]  }
 0xd3d   : > { %2136 = vmatprep.subr.bf16.mxu0 %v5846_v5  ;;  %2298 = vmatprep.subr.bf16.mxu1 %v5849_v1  ;;  %v5891_v5 = vld [vmem:[#allocation2 + $0x294] ss:$8 sps:$4 sm:$0xff]   ;;  %v5886_v1 = vld [vmem:[#allocation2 + $0x210] ss:$8 sps:$4 sm:$0xff]  }
 0xd40   : > { %2137 = vmatpush1.bf16.msra.mxu0 %v5844_v24  ;;  %2299 = vmatpush1.bf16.msra.mxu1 %v5847_v21  ;;  %v5897_v24 = vld [vmem:[#allocation2 + $0x284] ss:$8 sps:$4 sm:$0xff]   ;;  %v6797_v21 = vadd.s32 8, %v6494_v55 }
 0xd41   : > { %2441 = vmatprep.subr.bf16.mxu0 %v5852_v27  ;;  %2603 = vmatprep.subr.bf16.mxu1 %v5855_v29  ;;  %v5900_v27 = vld [vmem:[#allocation2 + $0x374] ss:$8 sps:$4 sm:$0xff]  }
 0xd42   : > { %vm2496_vm4 = vcmp.lt.s32.totalorder %v6797_v21, 15  ;;  %v5903_v29 = vld [vmem:[#allocation2 + $0x3f4] ss:$8 sps:$4 sm:$0xff]   ;;  %vm2658_vm15 = vcmp.lt.s32.totalorder %v6797_v21, 14  ;;  %vm2820_vm0 = vcmp.lt.s32.totalorder %v6797_v21, 13 }
 0xd43   : > { %5017 = vmatmul.mubr.msk.bf16.vlgmr.msra.gmra.mxu0 %vm6781_vm1, %v5016_v42  ;;  %5036 = vmatmul.mubr.msk.bf16.vlgmr.msra.gmra.mxu1 %vm6786_vm2, %v5035_v45  ;;  %vm6801_vm6 = vmpackc.low %vm2496_vm4, %vm6234_vm9  ;;  %v5907_v42 = vld [vmem:[#allocation2 + $0x3e0] ss:$8 sps:$4 sm:$0xff]   ;;  %v5912_v45 = vld [vmem:[#allocation2 + $0x354] ss:$8 sps:$4 sm:$0xff]  }
 0xd44   : > { %2442 = vmatpush1.bf16.msra.mxu0 %v5850_v39  ;;  %2604 = vmatpush1.bf16.msra.mxu1 %v5853_v40  ;;  %v5909_v39 = vld [vmem:[#allocation2 + $0x3e4] ss:$8 sps:$4 sm:$0xff]   ;;  %v5904_v40 = vld [vmem:[#allocation2 + $0x360] ss:$8 sps:$4 sm:$0xff]   ;;  %vm6818_vm4 = vmpackc.low %vm2658_vm15, %vm6234_vm9  ;;  %vm2977_vm15 = vcmp.lt.s32.totalorder %v6797_v21, 12 }
 0xd45   : > { %2443 = vmatprep.subr.bf16.mxu0 %v5858_v46  ;;  %2605 = vmatprep.subr.bf16.mxu1 %v5861_v50  ;;  %v5915_v46 = vld [vmem:[#allocation2 + $0x3d4] ss:$8 sps:$4 sm:$0xff]   ;;  %vm6823_vm12 = vmpackc.low %vm2820_vm0, %vm6234_vm9 }
 0xd46   : > { %2473 = vmatprep.mubr.bf16.mxu0 %v6229_v28  ;;  %2635 = vmatprep.mubr.bf16.mxu1 %v6229_v28  ;;  %v5924_v50 = vld [vmem:[#allocation2 + $0x334] ss:$8 sps:$4 sm:$0xff]   ;;  %vm6840_vm0 = vmpackc.low %vm2977_vm15, %vm6234_vm9 }
 0xd47   : > { %v5976_v21 = vld [vmem:[#allocation4 + $0x30] sm:$0xff]  }
 0xd48   : > { %2444 = vmatpush1.bf16.msra.mxu0 %v5856_v51  ;;  %2606 = vmatpush1.bf16.msra.mxu1 %v5859_v56  ;;  %v5927_v51 = vld [vmem:[#allocation2 + $0x3b4] ss:$8 sps:$4 sm:$0xff]   ;;  %v5922_v56 = vld [vmem:[#allocation2 + $0x330] ss:$8 sps:$4 sm:$0xff]  }
 0xd49   : > { %2445 = vmatprep.subr.bf16.mxu0 %v5864_v57  ;;  %2607 = vmatprep.subr.bf16.mxu1 %v5867_v59  ;;  %v5925_v57 = vld [vmem:[#allocation2 + $0x3b0] ss:$8 sps:$4 sm:$0xff]   ;;  %v5930_v59 = vld [vmem:[#allocation2 + $0x324] ss:$8 sps:$4 sm:$0xff]  }
 0xd4c   : > { %2446 = vmatpush1.bf16.msra.mxu0 %v5862_v60  ;;  %2608 = vmatpush1.bf16.msra.mxu1 %v5865_v61  ;;  %v5933_v60 = vld [vmem:[#allocation2 + $0x3a4] ss:$8 sps:$4 sm:$0xff]   ;;  %v5928_v61 = vld [vmem:[#allocation2 + $0x320] ss:$8 sps:$4 sm:$0xff]  }
 0xd4d   : > { %2447 = vmatprep.subr.bf16.mxu0 %v5870_v62  ;;  %2609 = vmatprep.subr.bf16.mxu1 %v5873_v63  ;;  %v5931_v62 = vld [vmem:[#allocation2 + $0x3a0] ss:$8 sps:$4 sm:$0xff]   ;;  %v5936_v63 = vld [vmem:[#allocation2 + $0x314] ss:$8 sps:$4 sm:$0xff]  }
 0xd50   : > { %2448 = vmatpush1.bf16.msra.mxu0 %v5868_v0  ;;  %2610 = vmatpush1.bf16.msra.mxu1 %v5871_v19  ;;  %v5939_v0 = vld [vmem:[#allocation2 + $0x394] ss:$8 sps:$4 sm:$0xff]   ;;  %v5934_v19 = vld [vmem:[#allocation2 + $0x310] ss:$8 sps:$4 sm:$0xff]  }
 0xd51   : > { %2449 = vmatprep.subr.bf16.mxu0 %v5876_v3  ;;  %2611 = vmatprep.subr.bf16.mxu1 %v5879_v12  ;;  %v5937_v3 = vld [vmem:[#allocation2 + $0x390] ss:$8 sps:$4 sm:$0xff]   ;;  %v5942_v12 = vld [vmem:[#allocation2 + $0x304] ss:$8 sps:$4 sm:$0xff]  }
 0xd54   : > { %2450 = vmatpush1.bf16.msra.mxu0 %v5874_v4  ;;  %2612 = vmatpush1.bf16.msra.mxu1 %v5877_v6  ;;  %v5945_v4 = vld [vmem:[#allocation2 + $0x384] ss:$8 sps:$4 sm:$0xff]   ;;  %v5940_v6 = vld [vmem:[#allocation2 + $0x300] ss:$8 sps:$4 sm:$0xff]  }
 0xd55   : > { %2451 = vmatprep.subr.bf16.mxu0 %v5882_v7  ;;  %2613 = vmatprep.subr.bf16.mxu1 %v5885_v8  ;;  %v5943_v7 = vld [vmem:[#allocation2 + $0x380] ss:$8 sps:$4 sm:$0xff]   ;;  %v5948_v8 = vld [vmem:[#allocation2 + $0x474] ss:$8 sps:$4 sm:$0xff]  }
 0xd58   : > { %2452 = vmatpush1.bf16.msra.mxu0 %v5880_v9  ;;  %2614 = vmatpush1.bf16.msra.mxu1 %v5883_v11  ;;  %v6104_v9 = vld [vmem:[#allocation4 + $0x460] sm:$0xff]   ;;  %v6107_v11 = vld [vmem:[#allocation4 + $0x418] sm:$0xff]  }
 0xd59   : > { %2453 = vmatprep.subr.bf16.mxu0 %v5888_v13  ;;  %2615 = vmatprep.subr.bf16.mxu1 %v5891_v5  ;;  %v5946_v13 = vld [vmem:[#allocation2 + $0x470] ss:$8 sps:$4 sm:$0xff]   ;;  %v5951_v5 = vld [vmem:[#allocation2 + $0x464] ss:$8 sps:$4 sm:$0xff]  }
 0xd5c   : > { %2454 = vmatpush1.bf16.msra.mxu0 %v5886_v1  ;;  %2616 = vmatpush1.bf16.msra.mxu1 %v5889_v22  ;;  %v5949_v1 = vld [vmem:[#allocation2 + $0x460] ss:$8 sps:$4 sm:$0xff]   ;;  %v5954_v22 = vld [vmem:[#allocation2 + $0x454] ss:$8 sps:$4 sm:$0xff]  }
 0xd5d   : > { %2455 = vmatprep.subr.bf16.mxu0 %v5894_v14  ;;  %2617 = vmatprep.subr.bf16.mxu1 %v5897_v24  ;;  %v5952_v14 = vld [vmem:[#allocation2 + $0x450] ss:$8 sps:$4 sm:$0xff]   ;;  %v5957_v24 = vld [vmem:[#allocation2 + $0x444] ss:$8 sps:$4 sm:$0xff]  }
 0xd60   : > { %2456 = vmatpush1.bf16.msra.mxu0 %v5892_v23  ;;  %2618 = vmatpush1.bf16.msra.mxu1 %v5895_v26  ;;  %v5969_v23 = vld [vmem:[#allocation2 + $0x404] ss:$8 sps:$4 sm:$0xff]   ;;  %v5967_v26 = vld [vmem:[#allocation2 + $0x400] ss:$8 sps:$4 sm:$0xff]  }
 0xd61   : > { %2765 = vmatprep.subr.bf16.mxu0 %v5900_v27  ;;  %2927 = vmatprep.subr.bf16.mxu1 %v5903_v29  ;;  %v5970_v29 = vld [vmem:[#allocation4 + $0x78] sm:$0xff]  }
 0xd63   : > { %2474 = vmatmul.mubr.bf16.vlgmr.msra.gmra.mxu0 %v2343_v2  ;;  %5071 = vmatmul.mubr.msk.bf16.vlgmr.msra.gmra.mxu1 %vm6801_vm6, %v5070_v47  ;;  %v5918_v2 = vld [vmem:[#allocation2 + $0x344] ss:$8 sps:$4 sm:$0xff]   ;;  %v5919_v47 = vld [vmem:[#allocation2 + $0x3c0] ss:$8 sps:$4 sm:$0xff]  }
 0xd64   : > { %2766 = vmatpush1.bf16.msra.mxu0 %v5898_v33  ;;  %2928 = vmatpush1.bf16.msra.mxu1 %v5901_v34  ;;  %v5971_v33 = vld [vmem:[#allocation4 + $0xf8] sm:$0xff]  }
 0xd65   : > { %2767 = vmatprep.subr.bf16.mxu0 %v5906_v36  ;;  %2929 = vmatprep.subr.bf16.mxu1 %v5909_v39  ;;  %v5972_v34 = vld [vmem:[#allocation4 + $0x38] sm:$0xff]   ;;  %v5974_v39 = vld [vmem:[#allocation4 + $0x70] sm:$0xff]  }
 0xd66   : > { %2797 = vmatprep.mubr.bf16.mxu0 %v6229_v28  ;;  %2959 = vmatprep.mubr.bf16.mxu1 %v6229_v28  ;;  %v5973_v36 = vld [vmem:[#allocation4 + $0xb8] sm:$0xff]  }
 0xd68   : > { %2768 = vmatpush1.bf16.msra.mxu0 %v5904_v40  ;;  %2930 = vmatpush1.bf16.msra.mxu1 %v5907_v42  ;;  %v5975_v40 = vld [vmem:[#allocation4 + $0xf0] sm:$0xff]  }
 0xd69   : > { %2769 = vmatprep.subr.bf16.mxu0 %v5912_v45  ;;  %2931 = vmatprep.subr.bf16.mxu1 %v5915_v46  ;;  %v5977_v42 = vld [vmem:[#allocation4 + $0xb0] sm:$0xff]   ;;  %v5978_v45 = vld [vmem:[#allocation4 + $0x68] sm:$0xff]  }
 0xd6a   : > { %v5979_v46 = vld [vmem:[#allocation4 + $0xe8] sm:$0xff]  }
 0xd6c   : > { %2770 = vmatpush1.bf16.msra.mxu0 %v5910_v16  ;;  %2932 = vmatpush1.bf16.msra.mxu1 %v5913_v18  ;;  %v5983_v16 = vld [vmem:[#allocation4 + $0xe0] sm:$0xff]  }
 0xd6d   : > { %2771 = vmatprep.subr.bf16.mxu0 %v5918_v2  ;;  %2933 = vmatprep.subr.bf16.mxu1 %v5921_v41  ;;  %v5984_v18 = vld [vmem:[#allocation4 + $0x20] sm:$0xff]   ;;  %v5986_v41 = vld [vmem:[#allocation4 + $0x58] sm:$0xff]  }
 0xd6e   : > { %v5985_v2 = vld [vmem:[#allocation4 + $0xa0] sm:$0xff]  }
 0xd70   : > { %2772 = vmatpush1.bf16.msra.mxu0 %v5916_v43  ;;  %2934 = vmatpush1.bf16.msra.mxu1 %v5919_v47  ;;  %v5987_v43 = vld [vmem:[#allocation4 + $0xd8] sm:$0xff]  }
 0xd71   : > { %2773 = vmatprep.subr.bf16.mxu0 %v5924_v50  ;;  %2935 = vmatprep.subr.bf16.mxu1 %v5927_v51  ;;  %v5988_v47 = vld [vmem:[#allocation4 + $0x18] sm:$0xff]   ;;  %v5990_v51 = vld [vmem:[#allocation4 + $0x50] sm:$0xff]  }
 0xd72   : > { %v5989_v50 = vld [vmem:[#allocation4 + $0x98] sm:$0xff]  }
 0xd74   : > { %2774 = vmatpush1.bf16.msra.mxu0 %v5922_v56  ;;  %2936 = vmatpush1.bf16.msra.mxu1 %v5925_v57  ;;  %v5991_v56 = vld [vmem:[#allocation4 + $0xd0] sm:$0xff]  }
 0xd75   : > { %2775 = vmatprep.subr.bf16.mxu0 %v5930_v59  ;;  %2937 = vmatprep.subr.bf16.mxu1 %v5933_v60  ;;  %v5992_v57 = vld [vmem:[#allocation4 + $0x10] sm:$0xff]   ;;  %v5994_v60 = vld [vmem:[#allocation4 + $0x48] sm:$0xff]  }
 0xd76   : > { %v5993_v59 = vld [vmem:[#allocation4 + $0x90] sm:$0xff]  }
 0xd78   : > { %2776 = vmatpush1.bf16.msra.mxu0 %v5928_v61  ;;  %2938 = vmatpush1.bf16.msra.mxu1 %v5931_v62  ;;  %v5995_v61 = vld [vmem:[#allocation4 + $0xc8] sm:$0xff]  }
 0xd79   : > { %2777 = vmatprep.subr.bf16.mxu0 %v5936_v63  ;;  %2939 = vmatprep.subr.bf16.mxu1 %v5939_v0  ;;  %v5996_v62 = vld [vmem:[#allocation4 + $0x8] sm:$0xff]   ;;  %v5998_v0 = vld [vmem:[#allocation4 + $0x40] sm:$0xff]  }
 0xd7a   : > { %v5997_v63 = vld [vmem:[#allocation4 + $0x88] sm:$0xff]  }
 0xd7c   : > { %2778 = vmatpush1.bf16.msra.mxu0 %v5934_v19  ;;  %2940 = vmatpush1.bf16.msra.mxu1 %v5937_v3  ;;  %v5999_v19 = vld [vmem:[#allocation4 + $0xc0] sm:$0xff]  }
 0xd7d   : > { %2779 = vmatprep.subr.bf16.mxu0 %v5942_v12  ;;  %2941 = vmatprep.subr.bf16.mxu1 %v5945_v4  ;;  %v6000_v3 = vld [vmem:[#allocation4] sm:$0xff]   ;;  %v6002_v4 = vld [vmem:[#allocation4 + $0x178] sm:$0xff]  }
 0xd7e   : > { %v6001_v12 = vld [vmem:[#allocation4 + $0x80] sm:$0xff]  }
 0xd80   : > { %2780 = vmatpush1.bf16.msra.mxu0 %v5940_v6  ;;  %2942 = vmatpush1.bf16.msra.mxu1 %v5943_v7  ;;  %v6003_v6 = vld [vmem:[#allocation4 + $0x1f8] sm:$0xff]  }
 0xd81   : > { %3084 = vmatprep.subr.bf16.mxu0 %v5948_v8  ;;  %5376 = vmatprep.subr.bf16.mxu1 %v5970_v29 }
 0xd83   : > { %5090 = vmatmul.mubr.msk.bf16.vlgmr.msra.gmra.mxu0 %vm6818_vm4, %v5089_v20  ;;  %5109 = vmatmul.mubr.msk.bf16.vlgmr.msra.gmra.mxu1 %vm6823_vm12, %v5108_v54  ;;  %v5958_v20 = vld [vmem:[#allocation2 + $0x430] ss:$8 sps:$4 sm:$0xff]   ;;  %v5966_v54 = vld [vmem:[#allocation2 + $0x414] ss:$8 sps:$4 sm:$0xff]  }
 0xd84   : > { %3085 = vmatpush1.bf16.msra.mxu0 %v5946_v13  ;;  %3116 = vmatprep.mubr.bf16.mxu0 %v6229_v28  ;;  %v5964_v28 = vld [vmem:[#allocation2 + $0x410] ss:$8 sps:$4 sm:$0xff]  }
 0xd85   : > { %3086 = vmatprep.subr.bf16.mxu0 %v5951_v5  ;;  %5377 = vmatpush3.bf16.msra.mxu1 %v5972_v34 }
 0xd86   : > { %5378 = vmatprep.subr.bf16.mxu1 %v5974_v39 }
 0xd88   : > { %3087 = vmatpush1.bf16.msra.mxu0 %v5949_v1 }
 0xd89   : > { %3088 = vmatprep.subr.bf16.mxu0 %v5954_v22  ;;  %5379 = vmatpush3.bf16.msra.mxu1 %v5976_v21 }
 0xd8a   : > { %5380 = vmatprep.subr.bf16.mxu1 %v5978_v45 }
 0xd8c   : > { %3089 = vmatpush1.bf16.msra.mxu0 %v5952_v14 }
 0xd8d   : > { %3090 = vmatprep.subr.bf16.mxu0 %v5957_v24  ;;  %5381 = vmatpush3.bf16.msra.mxu1 %v5980_v31 }
 0xd90   : > { %3091 = vmatpush1.bf16.msra.mxu0 %v5955_v44 }
 0xd91   : > { %3092 = vmatprep.subr.bf16.mxu0 %v5960_v48 }
 0xd94   : > { %3093 = vmatpush1.bf16.msra.mxu0 %v5958_v20 }
 0xd95   : > { %3094 = vmatprep.subr.bf16.mxu0 %v5963_v49 }
 0xd98   : > { %3095 = vmatpush1.bf16.msra.mxu0 %v5961_v52 }
 0xd99   : > { %3096 = vmatprep.subr.bf16.mxu0 %v5966_v54  ;;  %v1670_v54 = vld [vmem:[%s7078_s11] sm:$0x3] }
 0xd9a   : > { %v1675_v29 = vrot.slane %v1670_v54, %v650_v10 }
 0xd9c   : > { %3097 = vmatpush1.bf16.msra.mxu0 %v5964_v28 }
 0xd9d   : > { %3098 = vmatprep.subr.bf16.mxu0 %v5969_v23 }
 0xda0   : > { %3099 = vmatpush1.bf16.msra.mxu0 %v5967_v26 }
 0xda1   : > { %5398 = vmatprep.subr.bf16.mxu0 %v5971_v33  ;;  %v1679_v33 = vrot.slane %v1670_v54, %v654_v58 }
 0xda3   : > { %5128 = vmatmul.mubr.msk.bf16.vlgmr.msra.gmra.mxu0 %vm6840_vm0, %v5127_v53  ;;  %v5982_v53 = vld [vmem:[#allocation4 + $0x60] sm:$0xff]  }
 0xda4   : > { %5399 = vmatpush3.bf16.msra.mxu0 %v5973_v36  ;;  %5382 = vmatprep.subr.bf16.mxu1 %v5982_v53 }
 0xda5   : > { %5400 = vmatprep.subr.bf16.mxu0 %v5975_v40  ;;  %5383 = vmatpush3.bf16.msra.mxu1 %v5984_v18 }
 0xda6   : > { %5384 = vmatprep.subr.bf16.mxu1 %v5986_v41 }
 0xda8   : > { %5401 = vmatpush3.bf16.msra.mxu0 %v5977_v42 }
 0xda9   : > { %5402 = vmatprep.subr.bf16.mxu0 %v5979_v46  ;;  %5385 = vmatpush3.bf16.msra.mxu1 %v5988_v47 }
 0xdaa   : > { %5386 = vmatprep.subr.bf16.mxu1 %v5990_v51 }
 0xdac   : > { %5403 = vmatpush3.bf16.msra.mxu0 %v5981_v32 }
 0xdad   : > { %5404 = vmatprep.subr.bf16.mxu0 %v5983_v16  ;;  %5387 = vmatpush3.bf16.msra.mxu1 %v5992_v57 }
 0xdae   : > { %5388 = vmatprep.subr.bf16.mxu1 %v5994_v60 }
 0xdb0   : > { %5405 = vmatpush3.bf16.msra.mxu0 %v5985_v2 }
 0xdb1   : > { %5406 = vmatprep.subr.bf16.mxu0 %v5987_v43  ;;  %5389 = vmatpush3.bf16.msra.mxu1 %v5996_v62 }
 0xdb2   : > { %5390 = vmatprep.subr.bf16.mxu1 %v5998_v0 }
 0xdb4   : > { %5407 = vmatpush3.bf16.msra.mxu0 %v5989_v50 }
 0xdb5   : > { %5408 = vmatprep.subr.bf16.mxu0 %v5991_v56  ;;  %5391 = vmatpush3.bf16.msra.mxu1 %v6000_v3 }
 0xdb6   : > { %5420 = vmatprep.subr.bf16.mxu1 %v6002_v4 }
 0xdb8   : > { %5409 = vmatpush3.bf16.msra.mxu0 %v5993_v59 }
 0xdb9   : > { %5410 = vmatprep.subr.bf16.mxu0 %v5995_v61 }
 0xdbc   : > { %5411 = vmatpush3.bf16.msra.mxu0 %v5997_v63 }
 0xdbd   : > { %5412 = vmatprep.subr.bf16.mxu0 %v5999_v19 }
 0xdc0   : > { %5413 = vmatpush3.bf16.msra.mxu0 %v6001_v12 }
 0xdc1   : > { %5442 = vmatprep.subr.bf16.mxu0 %v6003_v6 }
 0xde3   : > { %v1832_v7 = vpop.f32.mrf.mxu0  ;;  %v1994_v13 = vpop.f32.mrf.mxu1 }
 0xde4   : > { %v1841_v39 = vadd.f32 %v1832_v7, %v1675_v29 }
 0xde5   : > { %v1834_v8 = vpop.f32.mrf.mxu0  ;;  %v1996_v1 = vpop.f32.mrf.mxu1 }
 0xde6   : > { %v1842_v21 = vadd.f32 %v1834_v8, %v1679_v33  ;;  %v2003_v45 = vadd.f32 %v1994_v13, %v1841_v39 }
 0xde7   : > { %v1836_v5 = vpop.f32.mrf.mxu0  ;;  %v1998_v14 = vpop.f32.mrf.mxu1 }
 0xde8   : > { %v1843_v46 = vadd.f32 %v1836_v5, %v1675_v29  ;;  %v2004_v32 = vadd.f32 %v1996_v1, %v1842_v21 }
 0xde9   : > { %v1838_v22 = vpop.f32.mrf.mxu0  ;;  %v2000_v44 = vpop.f32.mrf.mxu1 }
 0xdea   : > { %v1844_v53 = vadd.f32 %v1838_v22, %v1679_v33  ;;  %v2005_v2 = vadd.f32 %v1998_v14, %v1843_v46 }
 0xdec   : > { %v2006_v47 = vadd.f32 %v2000_v44, %v1844_v53 }
 0xe03   : > { %v2156_v24 = vpop.f32.mrf.mxu0  ;;  %v2318_v20 = vpop.f32.mrf.mxu1 }
 0xe04   : > { %v2165_v16 = vadd.f32 %v2156_v24, %v2003_v45 }
 0xe05   : > { %v2158_v48 = vpop.f32.mrf.mxu0  ;;  %v2320_v52 = vpop.f32.mrf.mxu1 }
 0xe06   : > { %v2166_v41 = vadd.f32 %v2158_v48, %v2004_v32  ;;  %v2327_v50 = vadd.f32 %v2318_v20, %v2165_v16 }
 0xe07   : > { %v2160_v49 = vpop.f32.mrf.mxu0  ;;  %v2322_v23 = vpop.f32.mrf.mxu1 }
 0xe08   : > { %v2167_v58 = vadd.f32 %v2160_v49, %v2005_v2  ;;  %v2328_v51 = vadd.f32 %v2320_v52, %v2166_v41 }
 0xe09   : > { %v2162_v28 = vpop.f32.mrf.mxu0  ;;  %v2324_v34 = vpop.f32.mrf.mxu1 }
 0xe0a   : > { %v2168_v56 = vadd.f32 %v2162_v28, %v2006_v47  ;;  %v2329_v61 = vadd.f32 %v2322_v23, %v2167_v58 }
 0xe0c   : > { %v2330_v0 = vadd.f32 %v2324_v34, %v2168_v56 }
 0xe23   : > { %v2475_v26 = vpop.f32.mrf.mxu0  ;;  %v2637_v40 = vpop.f32.mrf.mxu1 }
 0xe24   : > { %v2484_v57 = vadd.f32 %v2475_v26, %v2327_v50 }
 0xe25   : > { %v2477_v36 = vpop.f32.mrf.mxu0  ;;  %v2639_v31 = vpop.f32.mrf.mxu1 }
 0xe26   : > { %v2485_v62 = vadd.f32 %v2477_v36, %v2328_v51  ;;  %v2646_v19 = vadd.f32 %v2637_v40, %v2484_v57 }
 0xe27   : > { %v2479_v42 = vpop.f32.mrf.mxu0  ;;  %v2641_v43 = vpop.f32.mrf.mxu1 }
 0xe28   : > { %v2486_v3 = vadd.f32 %v2479_v42, %v2329_v61  ;;  %v2647_v4 = vadd.f32 %v2639_v31, %v2485_v62 }
 0xe29   : > { %v2481_v18 = vpop.f32.mrf.mxu0  ;;  %v2643_v59 = vpop.f32.mrf.mxu1 }
 0xe2a   : > { %v2487_v6 = vadd.f32 %v2481_v18, %v2330_v0  ;;  %v2648_v13 = vadd.f32 %v2641_v43, %v2486_v3  ;;  %v6005_v3 = vld [vmem:[#allocation4 + $0x1b8] sm:$0xff]  }
 0xe2c   : > { %v2649_v22 = vadd.f32 %v2643_v59, %v2487_v6 }
 0xe43   : > { %v2799_v10 = vpop.f32.mrf.mxu0  ;;  %v2961_v63 = vpop.f32.mrf.mxu1 }
 0xe44   : > { %v2808_v7 = vadd.f32 %v2799_v10, %v2646_v19  ;;  %v6004_v19 = vld [vmem:[#allocation4 + $0x138] sm:$0xff]  }
 0xe45   : > { %v2801_v60 = vpop.f32.mrf.mxu0  ;;  %v2963_v8 = vpop.f32.mrf.mxu1 }
 0xe46   : > { %v2809_v5 = vadd.f32 %v2801_v60, %v2647_v4  ;;  %v2970_v14 = vadd.f32 %v2961_v63, %v2808_v7 }
 0xe47   : > { %v2803_v12 = vpop.f32.mrf.mxu0  ;;  %v2965_v44 = vpop.f32.mrf.mxu1 }
 0xe48   : > { %v2810_v24 = vadd.f32 %v2803_v12, %v2648_v13  ;;  %v2971_v20 = vadd.f32 %v2963_v8, %v2809_v5  ;;  %v6006_v5 = vld [vmem:[#allocation4 + $0x170] sm:$0xff]  }
 0xe49   : > { %v2805_v1 = vpop.f32.mrf.mxu0  ;;  %v2967_v26 = vpop.f32.mrf.mxu1 }
 0xe4a   : > { %v2811_v49 = vadd.f32 %v2805_v1, %v2649_v22  ;;  %v2972_v28 = vadd.f32 %v2965_v44, %v2810_v24  ;;  %v6007_v1 = vld [vmem:[#allocation4 + $0x1f0] sm:$0xff]  }
 0xe4c   : > { %v2973_v34 = vadd.f32 %v2967_v26, %v2811_v49  ;;  %v6008_v49 = vld [vmem:[#allocation4 + $0x130] sm:$0xff]  }
 0xe63   : > { %v3118_v48 = vpop.f32.mrf.mxu0 }
 0xe64   : > { %v3127_v52 = vadd.f32 %v3118_v48, %v2970_v14 }
 0xe65   : > { %v3120_v54 = vpop.f32.mrf.mxu0 }
 0xe66   : > { %v3128_v23 = vadd.f32 %v3120_v54, %v2971_v20  ;;  %v6856_v29 = vmax.f32 %v3127_v52, 0.0  ;;  %v6009_v52 = vld [vmem:[#allocation4 + $0x1b0] sm:$0xff]  }
 0xe67   : > { %v3122_v33 = vpop.f32.mrf.mxu0 }
 0xe68   : > { %v3129_v36 = vadd.f32 %v3122_v33, %v2972_v28  ;;  %v6858_v39 = vmax.f32 %v3128_v23, 0.0  ;;  %v3143_v45 = vrot.slane %v6856_v29, 4  ;;  %v3328_v32 = vrot.slane %v6856_v29, 5  ;;  %v6011_v28 = vld [vmem:[#allocation4 + $0x1e8] sm:$0xff]  }
 0xe69   : > { %v3124_v40 = vpop.f32.mrf.mxu0  ;;  %v4064_v22 = vrot.slane %v6856_v29, 1 }
 0xe6a   : > { %v6860_v21 = vmax.f32 %v3129_v36, 0.0  ;;  %v3130_v42 = vadd.f32 %v3124_v40, %v2973_v34  ;;  %v3144_v16 = vrot.slane %v6858_v39, 4  ;;  %v3329_v18 = vrot.slane %v6858_v39, 5 }
 0xe6b   : > { %v3515_v2 = vrot.slane %v6858_v39, 6  ;;  %v3701_v50 = vrot.slane %v6858_v39, 7  ;;  %v4251_v25 = vrot.slane %v6858_v39, 2  ;;  %v4437_v26 = vrot.slane %v6858_v39, 3 }
 0xe6c   : > { %v6863_v46 = vmax.f32 %v3130_v42, 0.0  ;;  %v3145_v31 = vrot.slane %v6860_v21, 4  ;;  %v3330_v53 = vrot.slane %v6860_v21, 5  ;;  %v3890_v41 = vpack.c.bf16 %v6860_v21, %v6856_v29 }
 0xe6d   : > { %v4066_v4 = vrot.slane %v6860_v21, 1  ;;  %v4252_v33 = vrot.slane %v6860_v21, 2  ;;  %v4250_v40 = vrot.slane %v6856_v29, 2  ;;  %v4436_v42 = vrot.slane %v6856_v29, 3 }
 0xe6e   : > { %v3146_v43 = vrot.slane %v6863_v46, 4  ;;  %v3331_v10 = vrot.slane %v6863_v46, 5  ;;  %v6877_v47 = vsel %vm1686_vm3, %v3143_v45, %v3145_v31  ;;  %v6882_v58 = vsel %vm1686_vm3, %v3145_v31, %v3143_v45 }
 0xe6f   : > { %v3332_v51 = vsel %vm1847_vm5, %v3328_v32, %v3330_v53  ;;  %v3334_v56 = vsel %vm1847_vm5, %v3330_v53, %v3328_v32  ;;  %v3517_v57 = vrot.slane %v6863_v46, 6  ;;  %v5150_v6 = vpack.c.bf16 %v6877_v47, %v6882_v58 }
 0xe70   : > { %v6891_v59 = vsel %vm1686_vm3, %v3144_v16, %v3146_v43  ;;  %v6895_v60 = vsel %vm1686_vm3, %v3146_v43, %v3144_v16  ;;  %v3333_v61 = vsel %vm1847_vm5, %v3329_v18, %v3331_v10  ;;  %v3335_v62 = vsel %vm1847_vm5, %v3331_v10, %v3329_v18  ;;  %v6012_v16 = vld [vmem:[#allocation4 + $0x128] sm:$0xff]  }
 0xe71   : > { %v5147_v63 = vpack.c.bf16 %v6891_v59, %v6895_v60  ;;  %v5169_v0 = vpack.c.bf16 %v3333_v61, %v3335_v62  ;;  %v3519_v12 = vsel %vm2009_vm13, %v3515_v2, %v3517_v57  ;;  %v5172_v7 = vpack.c.bf16 %v3332_v51, %v3334_v56  ;;  %v6013_v18 = vld [vmem:[#allocation4 + $0x1a8] sm:$0xff]   ;;  %v6014_v51 = vld [vmem:[#allocation4 + $0x160] sm:$0xff]  }
 0xe72   : > { %v3521_v8 = vsel %vm2009_vm13, %v3517_v57, %v3515_v2  ;;  %v3703_v13 = vrot.slane %v6863_v46, 7  ;;  %v4253_v48 = vrot.slane %v6863_v46, 2  ;;  %v4439_v54 = vrot.slane %v6863_v46, 3  ;;  %v6015_v56 = vld [vmem:[#allocation4 + $0x1e0] sm:$0xff]  }
 0xe73   : > { %5148 = vmatprep.mubr.msk.bf16.mxu1 %vm6693_vm10, %v5147_v63  ;;  %5170 = vmatprep.mubr.msk.bf16.mxu0 %vm6717_vm11, %v5169_v0  ;;  %v5191_v14 = vpack.c.bf16 %v3519_v12, %v3521_v8  ;;  %v6931_v23 = vsel %vm2490_vm7, %v4064_v22, %v4066_v4  ;;  %v6939_v34 = vsel %vm2490_vm7, %v4066_v4, %v4064_v22  ;;  %vm7105_vm3 = vcmp.lt.s32.totalorder %v6494_v55, 5  ;;  %v6016_v12 = vld [vmem:[#allocation4 + $0x120] sm:$0xff]   ;;  %v6020_v8 = vld [vmem:[#allocation4 + $0x118] sm:$0xff]   ;;  %v6024_v22 = vld [vmem:[#allocation4 + $0x110] sm:$0xff]  }
 0xe74   : > { %5151 = vmatmul.mubr.msk.bf16.vlgmr.msra.gmra.mxu1 %vm6693_vm10, %v5150_v6  ;;  %5173 = vmatmul.mubr.msk.bf16.vlgmr.msra.gmra.mxu0 %vm6717_vm11, %v5172_v7  ;;  %v3705_v24 = vsel %vm2171_vm14, %v3701_v50, %v3703_v13  ;;  %v3707_v44 = vsel %vm2171_vm14, %v3703_v13, %v3701_v50  ;;  %v6943_v36 = vsel %vm2652_vm8, %v4251_v25, %v4253_v48  ;;  %vm7106_vm5 = vmmov %vm7105_vm3  ;;  %v4438_v50 = vrot.slane %v6860_v21, 3  ;;  %v6017_v4 = vld [vmem:[#allocation4 + $0x1a0] sm:$0xff]   ;;  %v6018_v6 = vld [vmem:[#allocation4 + $0x158] sm:$0xff]  }
 0xe75   : > { %5421 = vmatpush3.bf16.msra.mxu1 %v6004_v19  ;;  %5443 = vmatpush3.bf16.msra.mxu0 %v6005_v3  ;;  %v5213_v20 = vpack.c.bf16 %v3705_v24, %v3707_v44  ;;  %v5254_v45 = vpack.c.bf16 %v6939_v34, %v6931_v23  ;;  %v6951_v31 = vsel %vm2652_vm8, %v4253_v48, %v4251_v25  ;;  %vm7107_vm9 = vmmov %vm7105_vm3  ;;  %v6019_v7 = vld [vmem:[#allocation4 + $0x1d8] sm:$0xff]   ;;  %v6026_v24 = vld [vmem:[#allocation4 + $0x148] sm:$0xff]   ;;  %v3516_v25 = vrot.slane %v6860_v21, 6 }
 0xe76   : > { %5192 = vmatprep.mubr.msk.bf16.mxu1 %vm6781_vm1, %v5191_v14  ;;  %5422 = vmatprep.subr.bf16.mxu1 %v6006_v5  ;;  %v6955_v32 = vsel %vm7105_vm3, %v4437_v26, %v4439_v54  ;;  %v6959_v53 = vsel %vm7106_vm5, %v4439_v54, %v4437_v26  ;;  %v5273_v2 = vpack.c.bf16 %v6951_v31, %v6943_v36  ;;  %vm7108_vm10 = vmmov %vm7105_vm3  ;;  %v6021_v13 = vld [vmem:[#allocation4 + $0x198] sm:$0xff]   ;;  %v6022_v5 = vld [vmem:[#allocation4 + $0x150] sm:$0xff]   ;;  %v3702_v54 = vrot.slane %v6860_v21, 7 }
 0xe77   : > { %5214 = vmatprep.mubr.msk.bf16.mxu0 %vm6786_vm2, %v5213_v20  ;;  %5444 = vmatprep.subr.bf16.mxu0 %v6007_v1  ;;  %v5295_v43 = vpack.c.bf16 %v6959_v53, %v6955_v32  ;;  %v6967_v10 = vsel %vm2652_vm8, %v4250_v40, %v4252_v33  ;;  %v6972_v57 = vsel %vm2652_vm8, %v4252_v33, %v4250_v40  ;;  %v6023_v1 = vld [vmem:[#allocation4 + $0x1d0] sm:$0xff]   ;;  %v6027_v44 = vld [vmem:[#allocation4 + $0x1c8] sm:$0xff]   ;;  %v3514_v26 = vrot.slane %v6856_v29, 6  ;;  %v6079_v23 = vld [vmem:[#allocation4 + $0x3e0] sm:$0xff]  }
 0xe78   : > { %v5317_v61 = vpack.c.bf16 %v6895_v60, %v6891_v59  ;;  %v5320_v62 = vpack.c.bf16 %v6882_v58, %v6877_v47  ;;  %v5276_v63 = vpack.c.bf16 %v6972_v57, %v6967_v10  ;;  %v6982_v0 = vsel %vm7107_vm9, %v4436_v42, %v4438_v50  ;;  %v6025_v14 = vld [vmem:[#allocation4 + $0x190] sm:$0xff]   ;;  %v6028_v48 = vld [vmem:[#allocation4 + $0x108] sm:$0xff]   ;;  %v6080_v34 = vld [vmem:[#allocation4 + $0x320] sm:$0xff]  }
 0xe79   : > { %5423 = vmatpush3.bf16.msra.mxu1 %v6008_v49  ;;  %5445 = vmatpush3.bf16.msra.mxu0 %v6009_v52  ;;  %v6986_v19 = vsel %vm7108_vm10, %v4438_v50, %v4436_v42  ;;  %v6029_v20 = vld [vmem:[#allocation4 + $0x188] sm:$0xff]   ;;  %v6030_v49 = vld [vmem:[#allocation4 + $0x140] sm:$0xff]   ;;  %v3700_v33 = vrot.slane %v6856_v29, 7  ;;  %v4067_v40 = vrot.slane %v6863_v46, 1  ;;  %v6034_v42 = vld [vmem:[#allocation4 + $0x278] sm:$0xff]   ;;  %v3518_v50 = vsel %vm2009_vm13, %v3514_v26, %v3516_v25 }
 0xe7a   : > { %5424 = vmatprep.subr.bf16.mxu1 %v6010_v35  ;;  %5446 = vmatprep.subr.bf16.mxu0 %v6011_v28  ;;  %v5298_v3 = vpack.c.bf16 %v6986_v19, %v6982_v0  ;;  %v6031_v52 = vld [vmem:[#allocation4 + $0x1c0] sm:$0xff]   ;;  %v6040_v55 = vld [vmem:[#allocation4 + $0x230] sm:$0xff]   ;;  %v6076_v29 = vld [vmem:[#allocation4 + $0x328] sm:$0xff]  }
 0xe7b   : > { %v6032_v35 = vld [vmem:[#allocation4 + $0x100] sm:$0xff]   ;;  %v6077_v21 = vld [vmem:[#allocation4 + $0x3a8] sm:$0xff]   ;;  %v6083_v31 = vld [vmem:[#allocation4 + $0x3d8] sm:$0xff]  }
 0xe7c   : > { %v6033_v28 = vld [vmem:[#allocation4 + $0x180] sm:$0xff]   ;;  %v6084_v32 = vld [vmem:[#allocation4 + $0x318] sm:$0xff]   ;;  %v6103_v10 = vld [vmem:[#allocation4 + $0x428] sm:$0xff]  }
 0xe7d   : > { %5425 = vmatpush3.bf16.msra.mxu1 %v6012_v16  ;;  %5447 = vmatpush3.bf16.msra.mxu0 %v6013_v18  ;;  %v6035_v16 = vld [vmem:[#allocation4 + $0x2f8] sm:$0xff]   ;;  %v4065_v18 = vrot.slane %v6858_v39, 1  ;;  %v6081_v36 = vld [vmem:[#allocation4 + $0x3a0] sm:$0xff]   ;;  %v6108_v0 = vld [vmem:[#allocation4 + $0x450] sm:$0xff]  }
 0xe7e   : > { %5426 = vmatprep.subr.bf16.mxu1 %v6014_v51  ;;  %5448 = vmatprep.subr.bf16.mxu0 %v6015_v56  ;;  %v3520_v51 = vsel %vm2009_vm13, %v3516_v25, %v3514_v26  ;;  %v3704_v56 = vsel %vm2171_vm14, %v3700_v33, %v3702_v54  ;;  %v6050_v25 = vld [vmem:[#allocation4 + $0x258] sm:$0xff]   ;;  %v6054_v26 = vld [vmem:[#allocation4 + $0x250] sm:$0xff]   ;;  %v6105_v57 = vld [vmem:[#allocation4 + $0x420] sm:$0xff]  }
 0xe7f   : > { %v6085_v53 = vld [vmem:[#allocation4 + $0x398] sm:$0xff]   ;;  %v6109_v19 = vld [vmem:[#allocation4 + $0x410] sm:$0xff]   ;;  %v6110_v59 = vld [vmem:[#allocation4 + $0x448] sm:$0xff]  }
 0xe80   : > { %v6111_v60 = vld [vmem:[#allocation4 + $0x408] sm:$0xff]  }
 0xe81   : > { %5427 = vmatpush3.bf16.msra.mxu1 %v6016_v12  ;;  %5449 = vmatpush3.bf16.msra.mxu0 %v6017_v4  ;;  %v3706_v12 = vsel %vm2171_vm14, %v3702_v54, %v3700_v33  ;;  %v6036_v4 = vld [vmem:[#allocation4 + $0x238] sm:$0xff]   ;;  %v6055_v33 = vld [vmem:[#allocation4 + $0x2d0] sm:$0xff]  }
 0xe82   : > { %5428 = vmatprep.subr.bf16.mxu1 %v6018_v6  ;;  %5450 = vmatprep.subr.bf16.mxu0 %v6019_v7  ;;  %v4069_v6 = vsel %vm2490_vm7, %v4065_v18, %v4067_v40  ;;  %v4071_v7 = vsel %vm2490_vm7, %v4067_v40, %v4065_v18  ;;  %v6051_v54 = vld [vmem:[#allocation4 + $0x2d8] sm:$0xff]   ;;  %v6056_v40 = vld [vmem:[#allocation4 + $0x210] sm:$0xff]   ;;  %v6059_v18 = vld [vmem:[#allocation4 + $0x2c8] sm:$0xff]  }
 0xe85   : > { %5429 = vmatpush3.bf16.msra.mxu1 %v6020_v8  ;;  %5451 = vmatpush3.bf16.msra.mxu0 %v6021_v13  ;;  %v5194_v8 = vpack.c.bf16 %v3518_v50, %v3520_v51  ;;  %v5216_v13 = vpack.c.bf16 %v3704_v56, %v3706_v12  ;;  %v6060_v50 = vld [vmem:[#allocation4 + $0x208] sm:$0xff]   ;;  %v6062_v56 = vld [vmem:[#allocation4 + $0x240] sm:$0xff]  }
 0xe86   : > { %5430 = vmatprep.subr.bf16.mxu1 %v6022_v5  ;;  %5452 = vmatprep.subr.bf16.mxu0 %v6023_v1  ;;  %v6037_v5 = vld [vmem:[#allocation4 + $0x2b8] sm:$0xff]   ;;  %v3891_v1 = vpack.c.bf16 %v6863_v46, %v6858_v39  ;;  %v6043_v39 = vld [vmem:[#allocation4 + $0x2e8] sm:$0xff]   ;;  %v6063_v12 = vld [vmem:[#allocation4 + $0x2c0] sm:$0xff]  }
 0xe87   : > { %v6044_v46 = vld [vmem:[#allocation4 + $0x228] sm:$0xff]  }
 0xe88   : > { %v6061_v51 = vld [vmem:[#allocation4 + $0x288] sm:$0xff]  }
 0xe89   : > { %5431 = vmatpush3.bf16.msra.mxu1 %v6024_v22  ;;  %5453 = vmatpush3.bf16.msra.mxu0 %v6025_v14  ;;  %v6038_v22 = vld [vmem:[#allocation4 + $0x270] sm:$0xff]  }
 0xe8a   : > { %5432 = vmatprep.subr.bf16.mxu1 %v6026_v24  ;;  %5454 = vmatprep.subr.bf16.mxu0 %v6027_v44  ;;  %v6039_v14 = vld [vmem:[#allocation4 + $0x2f0] sm:$0xff]   ;;  %v5251_v24 = vpack.c.bf16 %v4071_v7, %v4069_v6  ;;  %v6065_v6 = vld [vmem:[#allocation4 + $0x280] sm:$0xff]   ;;  %v6066_v7 = vld [vmem:[#allocation4 + $0x378] sm:$0xff]  }
 0xe8b   : > { %v6041_v44 = vld [vmem:[#allocation4 + $0x2b0] sm:$0xff]  }
 0xe8d   : > { %5433 = vmatpush3.bf16.msra.mxu1 %v6028_v48  ;;  %5455 = vmatpush3.bf16.msra.mxu0 %v6029_v20  ;;  %v6042_v48 = vld [vmem:[#allocation4 + $0x268] sm:$0xff]   ;;  %v6047_v20 = vld [vmem:[#allocation4 + $0x2e0] sm:$0xff]  }
 0xe8e   : > { %5434 = vmatprep.subr.bf16.mxu1 %v6030_v49  ;;  %5456 = vmatprep.subr.bf16.mxu0 %v6031_v52  ;;  %v6048_v49 = vld [vmem:[#allocation4 + $0x220] sm:$0xff]  }
 0xe8f   : > { %v6049_v52 = vld [vmem:[#allocation4 + $0x2a0] sm:$0xff]  }
 0xe91   : > { %5435 = vmatpush3.bf16.msra.mxu1 %v6032_v35  ;;  %5457 = vmatpush3.bf16.msra.mxu0 %v6033_v28  ;;  %v6052_v35 = vld [vmem:[#allocation4 + $0x218] sm:$0xff]  }
 0xe92   : > { %5464 = vmatprep.subr.bf16.mxu1 %v6034_v42  ;;  %5486 = vmatprep.subr.bf16.mxu0 %v6035_v16  ;;  %v6053_v28 = vld [vmem:[#allocation4 + $0x298] sm:$0xff]   ;;  %v6057_v42 = vld [vmem:[#allocation4 + $0x290] sm:$0xff]   ;;  %v6058_v16 = vld [vmem:[#allocation4 + $0x248] sm:$0xff]  }
 0xe94   : > { %5195 = vmatmul.mubr.msk.bf16.vlgmr.msra.gmra.mxu1 %vm6781_vm1, %v5194_v8  ;;  %5217 = vmatmul.mubr.msk.bf16.vlgmr.msra.gmra.mxu0 %vm6786_vm2, %v5216_v13  ;;  %v6067_v8 = vld [vmem:[#allocation4 + $0x3f8] sm:$0xff]  }
 0xe95   : > { %5465 = vmatpush3.bf16.msra.mxu1 %v6036_v4  ;;  %4053 = vmatprep.mubr.bf16.mxu1 %v3891_v1  ;;  %v6064_v4 = vld [vmem:[#allocation4 + $0x200] sm:$0xff]   ;;  %v6068_v13 = vld [vmem:[#allocation4 + $0x338] sm:$0xff]   ;;  %v6070_v1 = vld [vmem:[#allocation4 + $0x370] sm:$0xff]  }
 0xe96   : > { %5487 = vmatpush3.bf16.msra.mxu0 %v6037_v5  ;;  %5252 = vmatprep.mubr.msk.bf16.mxu0 %vm6801_vm6, %v5251_v24  ;;  %v6069_v5 = vld [vmem:[#allocation4 + $0x3b8] sm:$0xff]   ;;  %v6073_v24 = vld [vmem:[#allocation4 + $0x3b0] sm:$0xff]  }
 0xe97   : > { %5466 = vmatprep.subr.bf16.mxu1 %v6038_v22  ;;  %5488 = vmatprep.subr.bf16.mxu0 %v6039_v14  ;;  %v6071_v22 = vld [vmem:[#allocation4 + $0x3f0] sm:$0xff]  }
 0xe98   : > { %v6072_v14 = vld [vmem:[#allocation4 + $0x330] sm:$0xff]  }
 0xe99   : > { %5467 = vmatpush3.bf16.msra.mxu1 %v6040_v55  ;;  %v6074_v55 = vld [vmem:[#allocation4 + $0x368] sm:$0xff]  }
 0xe9a   : > { %5489 = vmatpush3.bf16.msra.mxu0 %v6041_v44  ;;  %5468 = vmatprep.subr.bf16.mxu1 %v6042_v48  ;;  %v6088_v44 = vld [vmem:[#allocation4 + $0x310] sm:$0xff]  }
 0xe9b   : > { %5490 = vmatprep.subr.bf16.mxu0 %v6043_v39  ;;  %v6089_v48 = vld [vmem:[#allocation4 + $0x390] sm:$0xff]   ;;  %v6090_v39 = vld [vmem:[#allocation4 + $0x348] sm:$0xff]  }
 0xe9d   : > { %5469 = vmatpush3.bf16.msra.mxu1 %v6044_v46  ;;  %v6091_v46 = vld [vmem:[#allocation4 + $0x3c8] sm:$0xff]  }
 0xe9e   : > { %5491 = vmatpush3.bf16.msra.mxu0 %v6045_v37  ;;  %5470 = vmatprep.subr.bf16.mxu1 %v6046_v38  ;;  %v6092_v37 = vld [vmem:[#allocation4 + $0x308] sm:$0xff]  }
 0xe9f   : > { %5492 = vmatprep.subr.bf16.mxu0 %v6047_v20  ;;  %v6093_v38 = vld [vmem:[#allocation4 + $0x388] sm:$0xff]   ;;  %v6094_v20 = vld [vmem:[#allocation4 + $0x340] sm:$0xff]  }
 0xea1   : > { %5471 = vmatpush3.bf16.msra.mxu1 %v6048_v49  ;;  %v6095_v49 = vld [vmem:[#allocation4 + $0x3c0] sm:$0xff]  }
 0xea2   : > { %5493 = vmatpush3.bf16.msra.mxu0 %v6049_v52  ;;  %5472 = vmatprep.subr.bf16.mxu1 %v6050_v25  ;;  %v6096_v52 = vld [vmem:[#allocation4 + $0x300] sm:$0xff]  }
 0xea3   : > { %5494 = vmatprep.subr.bf16.mxu0 %v6051_v54  ;;  %v6097_v25 = vld [vmem:[#allocation4 + $0x380] sm:$0xff]   ;;  %v6098_v54 = vld [vmem:[#allocation4 + $0x478] sm:$0xff]  }
 0xea5   : > { %5473 = vmatpush3.bf16.msra.mxu1 %v6052_v35  ;;  %v6099_v35 = vld [vmem:[#allocation4 + $0x438] sm:$0xff]  }
 0xea6   : > { %5495 = vmatpush3.bf16.msra.mxu0 %v6053_v28  ;;  %5474 = vmatprep.subr.bf16.mxu1 %v6054_v26  ;;  %v6100_v28 = vld [vmem:[#allocation4 + $0x470] sm:$0xff]  }
 0xea7   : > { %5496 = vmatprep.subr.bf16.mxu0 %v6055_v33  ;;  %v6101_v26 = vld [vmem:[#allocation4 + $0x430] sm:$0xff]   ;;  %v6102_v33 = vld [vmem:[#allocation4 + $0x468] sm:$0xff]  }
 0xea9   : > { %5475 = vmatpush3.bf16.msra.mxu1 %v6056_v40 }
 0xeaa   : > { %5497 = vmatpush3.bf16.msra.mxu0 %v6057_v42  ;;  %5476 = vmatprep.subr.bf16.mxu1 %v6058_v16 }
 0xeab   : > { %5498 = vmatprep.subr.bf16.mxu0 %v6059_v18 }
 0xead   : > { %5477 = vmatpush3.bf16.msra.mxu1 %v6060_v50 }
 0xeae   : > { %5499 = vmatpush3.bf16.msra.mxu0 %v6061_v51  ;;  %5478 = vmatprep.subr.bf16.mxu1 %v6062_v56 }
 0xeaf   : > { %5500 = vmatprep.subr.bf16.mxu0 %v6063_v12 }
 0xeb1   : > { %5479 = vmatpush3.bf16.msra.mxu1 %v6064_v4 }
 0xeb2   : > { %5501 = vmatpush3.bf16.msra.mxu0 %v6065_v6  ;;  %5508 = vmatprep.subr.bf16.mxu1 %v6066_v7 }
 0xeb3   : > { %5530 = vmatprep.subr.bf16.mxu0 %v6067_v8 }
 0xeb4   : > { %4054 = vmatmul.mubr.bf16.vlgmr.msra.gmra.mxu1 %v3890_v41  ;;  %v6078_v41 = vld [vmem:[#allocation4 + $0x360] sm:$0xff]  }
 0xeb5   : > { %5255 = vmatmul.mubr.msk.bf16.vlgmr.msra.gmra.mxu0 %vm6801_vm6, %v5254_v45  ;;  %5509 = vmatpush3.bf16.msra.mxu1 %v6068_v13  ;;  %v6082_v45 = vld [vmem:[#allocation4 + $0x358] sm:$0xff]  }
 0xeb6   : > { %5274 = vmatprep.mubr.msk.bf16.mxu1 %vm6818_vm4, %v5273_v2  ;;  %5531 = vmatpush3.bf16.msra.mxu0 %v6069_v5  ;;  %v6086_v2 = vld [vmem:[#allocation4 + $0x350] sm:$0xff]  }
 0xeb7   : > { %5296 = vmatprep.mubr.msk.bf16.mxu0 %vm6823_vm12, %v5295_v43  ;;  %5510 = vmatprep.subr.bf16.mxu1 %v6070_v1  ;;  %v6087_v43 = vld [vmem:[#allocation4 + $0x3d0] sm:$0xff]  }
 0xeb8   : > { %5532 = vmatprep.subr.bf16.mxu0 %v6071_v22 }
 0xeb9   : > { %5511 = vmatpush3.bf16.msra.mxu1 %v6072_v14 }
 0xeba   : > { %5533 = vmatpush3.bf16.msra.mxu0 %v6073_v24  ;;  %5512 = vmatprep.subr.bf16.mxu1 %v6074_v55  ;;  %v5129_v24 = vld [vmem:[%s7080_s13] ss:$0 sm:$0xff] }
 0xebb   : > { %5534 = vmatprep.subr.bf16.mxu0 %v6075_v30 }
 0xebd   : > { %5513 = vmatpush3.bf16.msra.mxu1 %v6076_v29 }
 0xebe   : > { %5535 = vmatpush3.bf16.msra.mxu0 %v6077_v21  ;;  %5514 = vmatprep.subr.bf16.mxu1 %v6078_v41 }
 0xebf   : > { %5536 = vmatprep.subr.bf16.mxu0 %v6079_v23 }
 0xec1   : > { %5515 = vmatpush3.bf16.msra.mxu1 %v6080_v34 }
 0xec2   : > { %5537 = vmatpush3.bf16.msra.mxu0 %v6081_v36  ;;  %5516 = vmatprep.subr.bf16.mxu1 %v6082_v45 }
 0xec3   : > { %5538 = vmatprep.subr.bf16.mxu0 %v6083_v31 }
 0xec5   : > { %5517 = vmatpush3.bf16.msra.mxu1 %v6084_v32 }
 0xec6   : > { %5539 = vmatpush3.bf16.msra.mxu0 %v6085_v53  ;;  %5518 = vmatprep.subr.bf16.mxu1 %v6086_v2 }
 0xec7   : > { %5540 = vmatprep.subr.bf16.mxu0 %v6087_v43 }
 0xec9   : > { %5519 = vmatpush3.bf16.msra.mxu1 %v6088_v44 }
 0xeca   : > { %5541 = vmatpush3.bf16.msra.mxu0 %v6089_v48  ;;  %5520 = vmatprep.subr.bf16.mxu1 %v6090_v39 }
 0xecb   : > { %5542 = vmatprep.subr.bf16.mxu0 %v6091_v46 }
 0xecd   : > { %5521 = vmatpush3.bf16.msra.mxu1 %v6092_v37 }
 0xece   : > { %5543 = vmatpush3.bf16.msra.mxu0 %v6093_v38  ;;  %5522 = vmatprep.subr.bf16.mxu1 %v6094_v20 }
 0xecf   : > { %5544 = vmatprep.subr.bf16.mxu0 %v6095_v49 }
 0xed1   : > { %5523 = vmatpush3.bf16.msra.mxu1 %v6096_v52 }
 0xed2   : > { %5545 = vmatpush3.bf16.msra.mxu0 %v6097_v25  ;;  %5552 = vmatprep.subr.bf16.mxu1 %v6098_v54 }
 0xed4   : > { %5277 = vmatmul.mubr.msk.bf16.vlgmr.msra.gmra.mxu1 %vm6818_vm4, %v5276_v63  ;;  %v6106_v63 = vld [vmem:[#allocation4 + $0x458] sm:$0xff]  }
 0xed5   : > { %5299 = vmatmul.mubr.msk.bf16.vlgmr.msra.gmra.mxu0 %vm6823_vm12, %v5298_v3  ;;  %5553 = vmatpush3.bf16.msra.mxu1 %v6099_v35  ;;  %v6113_v3 = vld [vmem:[#allocation4 + $0x400] sm:$0xff]  }
 0xed6   : > { %5318 = vmatprep.mubr.msk.bf16.mxu1 %vm6840_vm0, %v5317_v61  ;;  %5554 = vmatprep.subr.bf16.mxu1 %v6100_v28  ;;  %v6112_v61 = vld [vmem:[#allocation4 + $0x440] sm:$0xff]  }
 0xed9   : > { %5555 = vmatpush3.bf16.msra.mxu1 %v6101_v26 }
 0xeda   : > { %5556 = vmatprep.subr.bf16.mxu1 %v6102_v33 }
 0xedd   : > { %5557 = vmatpush3.bf16.msra.mxu1 %v6103_v10 }
 0xede   : > { %5558 = vmatprep.subr.bf16.mxu1 %v6104_v9 }
 0xee1   : > { %5559 = vmatpush3.bf16.msra.mxu1 %v6105_v57 }
 0xee2   : > { %5560 = vmatprep.subr.bf16.mxu1 %v6106_v63 }
 0xee5   : > { %5561 = vmatpush3.bf16.msra.mxu1 %v6107_v11 }
 0xee6   : > { %5562 = vmatprep.subr.bf16.mxu1 %v6108_v0 }
 0xee9   : > { %5563 = vmatpush3.bf16.msra.mxu1 %v6109_v19 }
 0xeea   : > { %5564 = vmatprep.subr.bf16.mxu1 %v6110_v59 }
 0xeed   : > { %5565 = vmatpush3.bf16.msra.mxu1 %v6111_v60 }
 0xeee   : > { %5566 = vmatprep.subr.bf16.mxu1 %v6112_v61 }
 0xef1   : > { %5567 = vmatpush3.bf16.msra.mxu1 %v6113_v3 }
 0xef4   : > { %5321 = vmatmul.mubr.msk.bf16.vlgmr.msra.gmra.mxu1 %vm6840_vm0, %v5320_v62 }
 0xf34   : > { %v5392_v40 = vpop.f32.mrf.mxu1  ;;  %v5414_v16 = vpop.f32.mrf.mxu0 }
 0xf36   : > { %v5393_v42 = vpop.f32.mrf.mxu1  ;;  %v5415_v50 = vpop.f32.mrf.mxu0 }
 0xf37   : > { %v5394_v14 = vadd.f32 %v5393_v42, %v5392_v40  ;;  %v5416_v34 = vadd.f32 %v5415_v50, %v5414_v16 }
 0xf38   : > { %v5395_v18 = vpop.f32.mrf.mxu1  ;;  %v5417_v56 = vpop.f32.mrf.mxu0 }
 0xf39   : > { %v3326_v21 = vadd.f32 %v5394_v14, %v5129_v24 }
 0xf3a   : > { %v5396_v51 = vpop.f32.mrf.mxu1  ;;  %v5418_v4 = vpop.f32.mrf.mxu0 }
 0xf3b   : > { %v5397_v30 = vadd.f32 %v5396_v51, %v5395_v18  ;;  %v3512_v31 = vadd.f32 %v5416_v34, %v3326_v21  ;;  %v5419_v32 = vadd.f32 %v5418_v4, %v5417_v56 }
 0xf3d   : > { %v3327_v36 = vadd.f32 %v5397_v30, %v5129_v24 }
 0xf3f   : > { %v3513_v44 = vadd.f32 %v5419_v32, %v3327_v36 }
 0xf54   : > { %v5436_v12 = vpop.f32.mrf.mxu1  ;;  %v5458_v7 = vpop.f32.mrf.mxu0 }
 0xf56   : > { %v5437_v6 = vpop.f32.mrf.mxu1  ;;  %v5459_v13 = vpop.f32.mrf.mxu0 }
 0xf57   : > { %v5438_v45 = vadd.f32 %v5437_v6, %v5436_v12  ;;  %v5460_v46 = vadd.f32 %v5459_v13, %v5458_v7 }
 0xf58   : > { %v5439_v8 = vpop.f32.mrf.mxu1  ;;  %v5461_v1 = vpop.f32.mrf.mxu0 }
 0xf59   : > { %v3698_v48 = vadd.f32 %v5438_v45, %v3512_v31 }
 0xf5a   : > { %v5440_v5 = vpop.f32.mrf.mxu1  ;;  %v5462_v47 = vpop.f32.mrf.mxu0 }
 0xf5b   : > { %v5441_v53 = vadd.f32 %v5440_v5, %v5439_v8  ;;  %v3884_v49 = vadd.f32 %v5460_v46, %v3698_v48  ;;  %v5463_v52 = vadd.f32 %v5462_v47, %v5461_v1 }
 0xf5d   : > { %v3699_v37 = vadd.f32 %v5441_v53, %v3513_v44 }
 0xf5f   : > { %v3885_v35 = vadd.f32 %v5463_v52, %v3699_v37 }
 0xf74   : > { %v5480_v22 = vpop.f32.mrf.mxu1 }
 0xf75   : > { %v5502_v27 = vpop.f32.mrf.mxu0 }
 0xf76   : > { %v5481_v58 = vpop.f32.mrf.mxu1 }
 0xf77   : > { %v5503_v55 = vpop.f32.mrf.mxu0  ;;  %v5482_v38 = vadd.f32 %v5481_v58, %v5480_v22 }
 0xf78   : > { %v5483_v62 = vpop.f32.mrf.mxu1  ;;  %v5504_v33 = vadd.f32 %v5503_v55, %v5502_v27 }
 0xf79   : > { %v5505_v41 = vpop.f32.mrf.mxu0  ;;  %v4062_v28 = vadd.f32 %v5482_v38, %v3884_v49 }
 0xf7a   : > { %v5484_v29 = vpop.f32.mrf.mxu1 }
 0xf7b   : > { %v5506_v2 = vpop.f32.mrf.mxu0  ;;  %v5485_v25 = vadd.f32 %v5484_v29, %v5483_v62  ;;  %v4248_v63 = vadd.f32 %v5504_v33, %v4062_v28 }
 0xf7c   : > { %v5507_v11 = vadd.f32 %v5506_v2, %v5505_v41 }
 0xf7d   : > { %v4063_v10 = vadd.f32 %v5485_v25, %v3885_v35 }
 0xf7f   : > { %v4249_v59 = vadd.f32 %v5507_v11, %v4063_v10 }
 0xf94   : > { %v5524_v23 = vpop.f32.mrf.mxu1 }
 0xf95   : > { %v5546_v39 = vpop.f32.mrf.mxu0 }
 0xf96   : > { %v5525_v43 = vpop.f32.mrf.mxu1 }
 0xf97   : > { %v5547_v54 = vpop.f32.mrf.mxu0  ;;  %v5526_v9 = vadd.f32 %v5525_v43, %v5524_v23 }
 0xf98   : > { %v5527_v20 = vpop.f32.mrf.mxu1  ;;  %v5548_v40 = vadd.f32 %v5547_v54, %v5546_v39 }
 0xf99   : > { %v5549_v57 = vpop.f32.mrf.mxu0  ;;  %v4434_v60 = vadd.f32 %v5526_v9, %v4248_v63 }
 0xf9a   : > { %v5528_v26 = vpop.f32.mrf.mxu1 }
 0xf9b   : > { %v5529_v0 = vadd.f32 %v5528_v26, %v5527_v20  ;;  %v5550_v61 = vpop.f32.mrf.mxu0  ;;  %v4620_v50 = vadd.f32 %v5548_v40, %v4434_v60 }
 0xf9c   : > { %v5551_v51 = vadd.f32 %v5550_v61, %v5549_v57 }
 0xf9d   : > { %v4435_v42 = vadd.f32 %v5529_v0, %v4249_v59 }
 0xf9f   : > { %v4621_v12 = vadd.f32 %v5551_v51, %v4435_v42 }
 0xfb4   : > { %v5568_v19 = vpop.f32.mrf.mxu1 }
 0xfb6   : > { %v5569_v3 = vpop.f32.mrf.mxu1 }
 0xfb7   : > { %v5570_v16 = vadd.f32 %v5569_v3, %v5568_v19 }
 0xfb8   : > { %v5571_v18 = vpop.f32.mrf.mxu1 }
 0xfb9   : > { %v4798_v4 = vadd.f32 %v5570_v16, %v4620_v50 }
 0xfba   : > { %v5572_v56 = vpop.f32.mrf.mxu1 }
 0xfbb   : > { %v5573_v6 = vadd.f32 %v5572_v56, %v5571_v18  ;;  %v4800_v8 = vadd.f32 %v4798_v4, %v6653_v15 }
 0xfbd   : > { %v4799_v7 = vadd.f32 %v5573_v6, %v4621_v12 }
 0xfbf   : > { %v4801_v13 = vadd.f32 %v4799_v7, %v6656_v17 }
 0xfc1   : > { %v5337_v5 = vpack.c.bf16 %v4801_v13, %v4800_v8 }
 0xfc3   : > { %5338 = vst [vmem:[%s565_s0] sm:$0xff] %v5337_v5  }
 0xfc4 PF: > { %s28_s21 = sadd.s32 1, %s6220_s21  }
 0xfc5   : > { %p25_p2 = scmp.ge.s32.totalorder %s28_s21, 4  }
 0xfc7   :  { %27 = sbr.rel (!%p25_p2) target bundleno = 4 (0x4), region = 142 }
 0xfcc   :  { %4833 = vsyncpa [#allocation3], 1 }
 0xfcd   :  { %4835 = vsyncpa [#allocation3 + $0x1], 1 }
 0xfce   :  { %4836 = vsyncpa [#allocation5], 1 }

// kernel: _lambda_.3
= control target key start
LH: loop header
LB: loop body
LE: loop exit
PB: predicated region body
PF: predicated region fallthrough
CT: control target
= control target key end

     0   :  { %s6603_s21 = smov 0   ;;  %s8175_s0 = inlined_call_operand.vmem [shape: bf16[2,16,128], index: 0, kind: input, shape index: {}]   ;;  %s8176_s1 = inlined_call_operand.vmem [shape: f32[2,1,16], index: 1, kind: input, shape index: {}]   ;;  %s8177_s2 = inlined_call_operand.vmem [shape: f32[1,128], index: 2, kind: input, shape index: {}]   ;;  %s8178_s3 = inlined_call_operand.vmem [shape: f32[1,128], index: 3, kind: input, shape index: {}]   ;;  %s8179_s4 = inlined_call_operand.vmem [shape: bf16[128,384], index: 4, kind: input, shape index: {}]   ;;  %s8180_s5 = inlined_call_operand.vmem [shape: f32[1,384], index: 5, kind: input, shape index: {}]   ;;  %s8181_s6 = inlined_call_operand.vmem [shape: bf16[128,128], index: 6, kind: input, shape index: {}]   ;;  %s8182_s7 = inlined_call_operand.vmem [shape: f32[1,128], index: 7, kind: input, shape index: {}]   ;;  %s8183_s8 = inlined_call_operand.vmem [shape: f32[1,128], index: 8, kind: input, shape index: {}]   ;;  %s8184_s9 = inlined_call_operand.vmem [shape: f32[1,128], index: 9, kind: input, shape index: {}]   ;;  %s8185_s10 = inlined_call_operand.vmem [shape: bf16[9,128,256], index: 10, kind: input, shape index: {}]   ;;  %s8186_s11 = inlined_call_operand.vmem [shape: f32[1,256], index: 11, kind: input, shape index: {}]   ;;  %s8187_s12 = inlined_call_operand.vmem [shape: bf16[9,256,128], index: 12, kind: input, shape index: {}]   ;;  %s8188_s13 = inlined_call_operand.vmem [shape: f32[1,128], index: 13, kind: input, shape index: {}]   ;;  %s8189_s14 = inlined_call_operand.vmem [shape: f32[1,128], index: 14, kind: input, shape index: {}]   ;;  %s8190_s15 = inlined_call_operand.vmem [shape: f32[1,128], index: 15, kind: input, shape index: {}]   ;;  %s8191_s16 = inlined_call_operand.vmem [shape: bf16[2,16,128], index: 16, kind: output, shape index: {}]  }
   0x1   :  { %8193 = sst [smem:[#allocation2_spill]] %s8175_s0 }
   0x2 LB: > { %s4886_s22 = sadd.s32 4294967295, %s6509_s21   ;;  %p4890_p0 = scmp.ge.s32.totalorder %s6509_s21, 1  ;;  %s6509_s21 = sphi %s6603_s21, %s26_s21  }
   0x3   : > { %p470_p1 = scmp.lt.s32.totalorder %s6509_s21, 3 }
   0x5   : > { %p471_p2 = pnand %p4890_p0, %p470_p1 }
   0x6   : > { %p523_p3 = scmp.lt.s32.totalorder (!%p471_p2), %s4886_s22, 1  ;;  %s8194_s26 = sld [smem:[#allocation2_spill]] (!%p471_p2) }
   0x7   : > { %474 = sbr.rel (%p471_p2) target bundleno = 4305 (0x10d1), region = 84  ;;  %s6514_s25 = smov (!%p471_p2), 96  }
   0x8   : > { %s6515_s30 = smov (!%p471_p2), 64   ;;  %s6516_s20 = smov (!%p471_p2), 32  }
   0xc   : > { %s8216_s22 = smov (!%p523_p3, %s4886_s22), 1  ;;  %v6059_v3 = vld [vmem:[%s8179_s4 + $0xac] ss:$12 sps:$4 sm:$0xff]   ;;  %v6061_v4 = vld [vmem:[%s8179_s4 + $0xa8] ss:$12 sps:$4 sm:$0xff]   ;;  %v6511_v5 = vmov 0.0   ;;  %v618_v54 = vlaneseq }
   0xd   : > { %s5696_s23 = sshll.u32 %s8216_s22, 3  ;;  %5944 = vmatprep.subr.bf16.mxu1 %v6511_v5  ;;  %v6062_v6 = vld [vmem:[%s8179_s4 + $0xb0] ss:$12 sps:$4 sm:$0xff]   ;;  %761 = vmatprep.subr.bf16.mxu0 %v6059_v3  ;;  %v6063_v15 = vld [vmem:[%s8179_s4 + $0x94] ss:$12 sps:$4 sm:$0xff]   ;;  %v6512_v28 = vmov 0   ;;  %s530_s24 = scalar_lea.vmem %s8176_s1, %s8216_s22 }
   0xe   : > { %s527_s27 = scalar_lea.vmem %s8194_s26, %s5696_s23  ;;  %762 = vmatpush1.bf16.msra.mxu0 %v6061_v4  ;;  %5945 = vmatpush3.bf16.msra.mxu1 %v6062_v6  ;;  %v6065_v16 = vld [vmem:[%s8179_s4 + $0x90] ss:$12 sps:$4 sm:$0xff]   ;;  %v6066_v17 = vld [vmem:[%s8179_s4 + $0x98] ss:$12 sps:$4 sm:$0xff]   ;;  %v6070_v20 = vld [vmem:[%s8179_s4 + $0x80] ss:$12 sps:$4 sm:$0xff]  }
   0xf   : > { %v5701_v0 = vld [vmem:[%s527_s27] sm:$0xff]   ;;  %5946 = vmatprep.subr.bf16.mxu1 %v6511_v5  ;;  %763 = vmatprep.subr.bf16.mxu0 %v6063_v15  ;;  %v6067_v18 = vld [vmem:[%s8179_s4 + $0x7c] ss:$12 sps:$4 sm:$0xff]   ;;  %v6075_v24 = vld [vmem:[%s8179_s4 + $0x4c] ss:$12 sps:$4 sm:$0xff]   ;;  %vm6513_vm0 = vmmov 0  }
  0x10   : > { %v6619_v1 = vunpack.c.l.bf16 %v5701_v0  ;;  %v6622_v2 = vunpack.c.h.bf16 %v5701_v0  ;;  %v6069_v19 = vld [vmem:[%s8179_s4 + $0x78] ss:$12 sps:$4 sm:$0xff]   ;;  %v6073_v22 = vld [vmem:[%s8179_s4 + $0x60] ss:$12 sps:$4 sm:$0xff]   ;;  %v6074_v23 = vld [vmem:[%s8179_s4 + $0x68] ss:$12 sps:$4 sm:$0xff]   ;;  %793 = vmatprep.mubr.bf16.mxu0 %v6512_v28  ;;  %5960 = vmatprep.mubr.msk.bf16.mxu1 %vm6513_vm0, %v6511_v5 }
  0x11   : > { %v6071_v21 = vld [vmem:[%s8179_s4 + $0x64] ss:$12 sps:$4 sm:$0xff]   ;;  %v6077_v25 = vld [vmem:[%s8179_s4 + $0x48] ss:$12 sps:$4 sm:$0xff]   ;;  %v6086_v33 = vld [vmem:[%s8179_s4 + $0x20] ss:$12 sps:$4 sm:$0xff]  }
  0x12   : > { %542 = vadd.xlane.f32.xlu0 %v6619_v1  ;;  %764 = vmatpush1.bf16.msra.mxu0 %v6065_v16  ;;  %v6078_v26 = vld [vmem:[%s8179_s4 + $0x50] ss:$12 sps:$4 sm:$0xff]   ;;  %v6079_v27 = vld [vmem:[%s8179_s4 + $0x34] ss:$12 sps:$4 sm:$0xff]   ;;  %v6082_v30 = vld [vmem:[%s8179_s4 + $0x38] ss:$12 sps:$4 sm:$0xff]  }
  0x13   : > { %5947 = vmatpush3.bf16.msra.mxu1 %v6066_v17  ;;  %765 = vmatprep.subr.bf16.mxu0 %v6067_v18  ;;  %v6081_v29 = vld [vmem:[%s8179_s4 + $0x30] ss:$12 sps:$4 sm:$0xff]   ;;  %v6085_v32 = vld [vmem:[%s8179_s4 + $0x18] ss:$12 sps:$4 sm:$0xff]   ;;  %v6089_v35 = vld [vmem:[%s8179_s4] ss:$12 sps:$4 sm:$0xff]  }
  0x14   : > { %5948 = vmatprep.subr.bf16.mxu1 %v6511_v5  ;;  %v6083_v31 = vld [vmem:[%s8179_s4 + $0x1c] ss:$12 sps:$4 sm:$0xff]   ;;  %v6087_v34 = vld [vmem:[%s8179_s4 + $0x4] ss:$12 sps:$4 sm:$0xff]   ;;  %v4895_v45 = vld [vmem:[%s8177_s2] ss:$0 sm:$0xff] }
  0x15   : > { %v6090_v36 = vld [vmem:[%s8179_s4 + $0x8] ss:$12 sps:$4 sm:$0xff]   ;;  %v4896_v49 = vld [vmem:[%s8178_s3] ss:$0 sm:$0xff]  ;;  %v6732_v55 = vshrl.u32 %v618_v54, 7  ;;  %vm863_vm1 = vcmask 261120  }
  0x16   : > { %544 = vadd.xlane.f32.xlu0 %v6622_v2  ;;  %766 = vmatpush1.bf16.msra.mxu0 %v6069_v19  ;;  %v616_v57 = vld [vmem:[%s8180_s5] sm:$0x7]  ;;  %vm911_vm2 = vcmask 130048   ;;  %vm6517_vm9 = vmmov 1  }
  0x17   : > { %5949 = vmatpush3.bf16.msra.mxu1 %v6070_v20  ;;  %767 = vmatprep.subr.bf16.mxu0 %v6071_v21  ;;  %v628_v56 = vsub.s32 2, %v6732_v55  ;;  %v624_v58 = vsub.s32 1, %v6732_v55  ;;  %v6763_v20 = vld [vmem:[%s530_s24] ss:$0 sm:$0xff]  ;;  %vm1656_vm3 = vcmp.lt.s32.totalorder %v6732_v55, 4  ;;  %vm1659_vm4 = vcmp.ge.s32.totalorder %v6732_v55, 4  ;;  %s535_s24 = scalar_lea.vmem %s8191_s16, %s5696_s23 }
  0x18   : > { %5950 = vmatprep.subr.bf16.mxu1 %v6511_v5  ;;  %vm1817_vm5 = vcmp.lt.s32.totalorder %v6732_v55, 3  ;;  %vm1820_vm6 = vcmp.ge.s32.totalorder %v6732_v55, 3  ;;  %vm2460_vm7 = vcmp.lt.s32.totalorder %v6732_v55, 7  ;;  %vm2622_vm8 = vcmp.lt.s32.totalorder %v6732_v55, 6  ;;  %vm7033_vm10 = vmpackc.low %vm6517_vm9, %vm1659_vm4 }
  0x19   : > { %v629_v61 = vrot.slane %v616_v57, %v628_v56  ;;  %v625_v0 = vrot.slane %v616_v57, %v624_v58  ;;  %vm7063_vm11 = vmpackc.low %vm6517_vm9, %vm1820_vm6  ;;  %vm8192_vm12 = vcmp.lt.s32.totalorder %v6732_v55, 5  ;;  %vm1979_vm13 = vcmp.lt.s32.totalorder %v6732_v55, 2 }
  0x1a   : > { %768 = vmatpush1.bf16.msra.mxu0 %v6073_v22  ;;  %vm2141_vm14 = vcmp.lt.s32.totalorder %v6732_v55, 1  ;;  %vm1982_vm15 = vcmp.ge.s32.totalorder %v6732_v55, 2 }
  0x1b   : > { %5951 = vmatpush3.bf16.msra.mxu1 %v6074_v23  ;;  %769 = vmatprep.subr.bf16.mxu0 %v6075_v24 }
  0x1c   : > { %5952 = vmatprep.subr.bf16.mxu1 %v6511_v5 }
  0x1e   : > { %770 = vmatpush1.bf16.msra.mxu0 %v6077_v25 }
  0x1f   : > { %5953 = vmatpush3.bf16.msra.mxu1 %v6078_v26  ;;  %771 = vmatprep.subr.bf16.mxu0 %v6079_v27 }
  0x20   : > { %5954 = vmatprep.subr.bf16.mxu1 %v6511_v5 }
  0x22   : > { %772 = vmatpush1.bf16.msra.mxu0 %v6081_v29 }
  0x23   : > { %5955 = vmatpush3.bf16.msra.mxu1 %v6082_v30  ;;  %773 = vmatprep.subr.bf16.mxu0 %v6083_v31 }
  0x24   : > { %5956 = vmatprep.subr.bf16.mxu1 %v6511_v5 }
  0x26   : > { %774 = vmatpush1.bf16.msra.mxu0 %v6085_v32 }
  0x27   : > { %5957 = vmatpush3.bf16.msra.mxu1 %v6086_v33  ;;  %775 = vmatprep.subr.bf16.mxu0 %v6087_v34 }
  0x28   : > { %5958 = vmatprep.subr.bf16.mxu1 %v6511_v5 }
  0x2a   : > { %776 = vmatpush1.bf16.msra.mxu0 %v6089_v35 }
  0x2b   : > { %5959 = vmatpush3.bf16.msra.mxu1 %v6090_v36  ;;  %5964 = vmatprep.subr.bf16.mxu0 %v6511_v5 }
  0x2c   : > { %5970 = vmatprep.subr.bf16.mxu1 %v6511_v5 }
  0x9b   : > { %v543_v7 = vpop.xlane.xlu0 %542 }
  0x9c   : > { %v547_v8 = vmul.f32 0.0078125, %v543_v7 }
  0x9e   : > { %v6637_v9 = vsub.f32 %v6619_v1, %v547_v8 }
  0x9f   : > { %v545_v10 = vpop.xlane.xlu0 %544 }
  0xa0   : > { %v548_v11 = vmul.f32 0.0078125, %v545_v10  ;;  %v551_v12 = vmul.f32 %v6637_v9, %v6637_v9  ;;  %v620_v10 = vsub.s32 0, %v6732_v55 }
  0xa2   : > { %v6642_v13 = vsub.f32 %v6622_v2, %v548_v11  ;;  %553 = vadd.xlane.f32.xlu1 %v551_v12  ;;  %v621_v15 = vrot.slane %v616_v57, %v620_v10 }
  0xa4   : > { %v552_v14 = vmul.f32 %v6642_v13, %v6642_v13 }
  0xa6   : > { %555 = vadd.xlane.f32.xlu1 %v552_v14 }
 0x12b   : > { %v554_v37 = vpop.xlane.xlu1 %553 }
 0x12c   : > { %v557_v38 = vmul.f32 0.0078125, %v554_v37 }
 0x12e   : > { %v559_v39 = vadd.f32 1e-05, %v557_v38 }
 0x12f   : > { %v556_v40 = vpop.xlane.xlu1 %555 }
 0x130   : > { %6459 = vrsqrt.f32 %v559_v39  ;;  %v558_v41 = vmul.f32 0.0078125, %v556_v40 }
 0x132   : > { %v560_v42 = vadd.f32 1e-05, %v558_v41 }
 0x134   : > { %6461 = vrsqrt.f32 %v560_v42 }
 0x13d   : > { %v6460_v43 = vpop.eup %6459 }
 0x13e   : > { %v563_v44 = vmul.f32 %v6460_v43, %v6637_v9 }
 0x140   : > { %v572_v48 = vmul.f32 %v4895_v45, %v563_v44 }
 0x141   : > { %v6462_v46 = vpop.eup %6461 }
 0x142   : > { %v564_v47 = vmul.f32 %v6462_v46, %v6642_v13  ;;  %v581_v51 = vadd.f32 %v4896_v49, %v572_v48 }
 0x144   : > { %v573_v50 = vmul.f32 %v4895_v45, %v564_v47 }
 0x146   : > { %v582_v52 = vadd.f32 %v4896_v49, %v573_v50  ;;  %v6091_v50 = vld [vmem:[%s8181_s6 + $0x8] sm:$0xff]  }
 0x148   : > { %v583_v53 = vpack.c.bf16 %v582_v52, %v581_v51  ;;  %v6092_v51 = vld [vmem:[%s8181_s6] sm:$0xff]  }
 0x14a   : > { %794 = vmatmul.mubr.bf16.vlgmr.msra.gmra.mxu0 %v583_v53  ;;  %5961 = vmatmul.mubr.bf16.vlgmr.msra.gmra.mxu1 %v583_v53 }
 0x14b   : > { %5966 = vmatprep.mubr.msk.bf16.mxu0 %vm6513_vm0, %v6511_v5  ;;  %5972 = vmatprep.mubr.msk.bf16.mxu1 %vm6513_vm0, %v6511_v5 }
 0x20a   : > { %v795_v59 = vpop.f32.mrf.mxu0  ;;  %v838_v60 = vpop.f32.mrf.mxu1 }
 0x20b   : > { %v839_v6 = vadd.f32 %v838_v60, %v629_v61  ;;  %v796_v18 = vadd.f32 %v795_v59, %v621_v15 }
 0x20c   : > { %v797_v62 = vpop.f32.mrf.mxu0  ;;  %v5962_v63 = vpop.f32.mrf.mxu1 }
 0x20d   : > { %v798_v11 = vadd.f32 %v797_v62, %v625_v0 }
 0x20e   : > { %v799_v3 = vpop.f32.mrf.mxu0  ;;  %v841_v4 = vpop.f32.mrf.mxu1 }
 0x20f   : > { %v842_v7 = vadd.f32 %v841_v4, %v629_v61  ;;  %v800_v17 = vadd.f32 %v799_v3, %v621_v15 }
 0x210   : > { %v801_v8 = vpop.f32.mrf.mxu0  ;;  %v5963_v9 = vpop.f32.mrf.mxu1 }
 0x211   : > { %v6742_v12 = vpack.c.bf16 %v842_v7, %v839_v6  ;;  %v802_v13 = vadd.f32 %v801_v8, %v625_v0  ;;  %v6753_v19 = vpack.c.bf16 %v800_v17, %v796_v18 }
 0x213   : > { %v6744_v14 = vpack.c.bf16 %v802_v13, %v798_v11  ;;  %5971 = vmatpush3.bf16.msra.mxu1 %v6742_v12 }
 0x214   : > { %5984 = vmatprep.subr.bf16.mxu1 %v6511_v5 }
 0x215   : > { %v868_v16 = vsel %vm863_vm1, %v6744_v14, 0 }
 0x216   : > { %5965 = vmatpush3.bf16.xpose.msra.mxu0 %v868_v16 }
 0x217   : > { %5976 = vmatprep.subr.bf16.mxu0 %v6511_v5 }
 0x21d   : > { %5967 = vmatmul.mubr.msk.bf16.vlgmr.msra.gmra.mxu0 %vm863_vm1, %v6753_v19 }
 0x21e   : > { %5980 = vmatprep.mubr.msk.bf16.mxu0 %vm6513_vm0, %v6511_v5  ;;  %5977 = vmatpush3.bf16.msra.mxu0 %v6091_v50 }
 0x21f   : > { %5978 = vmatprep.subr.bf16.mxu0 %v6511_v5 }
 0x222   : > { %5979 = vmatpush3.bf16.msra.mxu0 %v6092_v51 }
 0x223   : > { %5990 = vmatprep.subr.bf16.mxu0 %v6511_v5 }
 0x2dd   : > { %v904_v21 = vpop.f32.mrf.mxu0 }
 0x2de   : > { %v905_v22 = vadd.f32 %v6763_v20, %v904_v21 }
 0x2df   : > { %v5968_v23 = vpop.f32.mrf.mxu0 }
 0x2e0   : > { %v912_v24 = vsel %vm911_vm2, %v905_v22, -inf }
 0x2e1   : > { %913 = vmax.xlane.f32.xlu0 %v912_v24  ;;  %v907_v25 = vpop.f32.mrf.mxu0 }
 0x2e2   : > { %v908_v26 = vadd.f32 %v6763_v20, %v907_v25 }
 0x2e3   : > { %v5969_v27 = vpop.f32.mrf.mxu0 }
 0x2e4   : > { %v915_v29 = vsel %vm911_vm2, %v908_v26, -inf }
 0x2e5   : > { %916 = vmax.xlane.f32.xlu1 %v915_v29 }
 0x36a   : > { %v914_v30 = vpop.xlane.xlu0 %913 }
 0x36b   : > { %v918_v31 = vsub.f32 %v905_v22, %v914_v30 }
 0x36d   : > { %v920_v32 = vmul.f32 1.442695, %v918_v31 }
 0x36e   : > { %v917_v33 = vpop.xlane.xlu1 %916 }
 0x36f   : > { %6463 = vpow2.f32 %v920_v32  ;;  %v919_v34 = vsub.f32 %v908_v26, %v917_v33 }
 0x371   : > { %v922_v35 = vmul.f32 1.442695, %v919_v34 }
 0x373   : > { %6465 = vpow2.f32 %v922_v35 }
 0x37c   : > { %v6464_v36 = vpop.eup %6463 }
 0x37d   : > { %v924_v37 = vsel %vm911_vm2, %v6464_v36, 0.0 }
 0x37e   : > { %925 = vadd.xlane.f32.xlu0 %v924_v37  ;;  %v6093_v37 = vld [vmem:[%s8181_s6 + $0x18] sm:$0xff]  }
 0x380   : > { %v6466_v38 = vpop.eup %6465 }
 0x381   : > { %v927_v39 = vsel %vm911_vm2, %v6466_v38, 0.0 }
 0x382   : > { %928 = vadd.xlane.f32.xlu1 %v927_v39 }
 0x393   : > { %1043 = vrot.lane.b32.xlu1 %v6753_v19, %s6514_s25 }
 0x394   : > { %1046 = vrot.lane.b32.xlu0 %v6744_v14, %s6514_s25 }
 0x407   : > { %v926_v40 = vpop.xlane.xlu0 %925 }
 0x408   : > { %6467 = vrcp.f32 %v926_v40 }
 0x40b   : > { %v929_v41 = vpop.xlane.xlu1 %928  ;;  %v1047_v46 = vpop.permute.xlu0 %1046 }
 0x40c   : > { %6469 = vrcp.f32 %v929_v41  ;;  %v1052_v48 = vsel %vm863_vm1, %v1047_v46, 0 }
 0x40f   : > { %v1044_v49 = vpop.permute.xlu1 %1043 }
 0x415   : > { %v6468_v42 = vpop.eup %6467 }
 0x416   : > { %v932_v44 = vmul.f32 %v6468_v42, %v6464_v36 }
 0x419   : > { %v6470_v43 = vpop.eup %6469 }
 0x41a   : > { %v933_v45 = vmul.f32 %v6470_v43, %v6466_v38  ;;  %v6094_v38 = vld [vmem:[%s8181_s6 + $0x10] sm:$0xff]  }
 0x41c   : > { %v934_v47 = vpack.c.bf16 %v933_v45, %v932_v44 }
 0x41e   : > { %5973 = vmatmul.mubr.msk.bf16.vlgmr.msra.gmra.mxu1 %vm911_vm2, %v934_v47 }
 0x41f   : > { %5985 = vmatpush3.bf16.xpose.msra.mxu1 %v1052_v48  ;;  %5986 = vmatprep.mubr.msk.bf16.mxu1 %vm6513_vm0, %v6511_v5 }
 0x420   : > { %5996 = vmatprep.subr.bf16.mxu1 %v6511_v5 }
 0x426   : > { %5987 = vmatmul.mubr.msk.bf16.vlgmr.msra.gmra.mxu1 %vm863_vm1, %v1044_v49 }
 0x427   : > { %6000 = vmatprep.mubr.msk.bf16.mxu1 %vm6513_vm0, %v6511_v5  ;;  %5997 = vmatpush3.bf16.msra.mxu1 %v6093_v37 }
 0x428   : > { %5998 = vmatprep.subr.bf16.mxu1 %v6511_v5 }
 0x42b   : > { %5999 = vmatpush3.bf16.msra.mxu1 %v6094_v38 }
 0x42c   : > { %6010 = vmatprep.subr.bf16.mxu1 %v6511_v5 }
 0x4de   : > { %v972_v52 = vpop.f32.mrf.mxu1 }
 0x4e0   : > { %v5974_v53 = vpop.f32.mrf.mxu1 }
 0x4e2   : > { %v975_v54 = vpop.f32.mrf.mxu1 }
 0x4e3   : > { %v979_v56 = vpack.c.bf16 %v975_v54, %v972_v52 }
 0x4e4   : > { %v5975_v57 = vpop.f32.mrf.mxu1 }
 0x4e5   : > { %5981 = vmatmul.mubr.msk.bf16.vlgmr.msra.gmra.mxu0 %vm863_vm1, %v979_v56 }
 0x4e6   : > { %v1088_v59 = vpop.f32.mrf.mxu1  ;;  %5992 = vmatprep.mubr.msk.bf16.mxu0 %vm6513_vm0, %v6511_v5 }
 0x4e7   : > { %v1089_v60 = vadd.f32 %v6763_v20, %v1088_v59 }
 0x4e8   : > { %v5988_v61 = vpop.f32.mrf.mxu1 }
 0x4e9   : > { %v1095_v62 = vsel %vm911_vm2, %v1089_v60, -inf }
 0x4ea   : > { %1096 = vmax.xlane.f32.xlu1 %v1095_v62  ;;  %v1091_v63 = vpop.f32.mrf.mxu1 }
 0x4eb   : > { %v1092_v0 = vadd.f32 %v6763_v20, %v1091_v63 }
 0x4ec   : > { %v5989_v3 = vpop.f32.mrf.mxu1 }
 0x4ed   : > { %v1098_v4 = vsel %vm911_vm2, %v1092_v0, -inf }
 0x4ee   : > { %1099 = vmax.xlane.f32.xlu0 %v1098_v4 }
 0x573   : > { %v1097_v6 = vpop.xlane.xlu1 %1096 }
 0x574   : > { %v1101_v7 = vsub.f32 %v1089_v60, %v1097_v6 }
 0x576   : > { %v1103_v8 = vmul.f32 1.442695, %v1101_v7 }
 0x577   : > { %v1100_v9 = vpop.xlane.xlu0 %1099 }
 0x578   : > { %6471 = vpow2.f32 %v1103_v8  ;;  %v1102_v11 = vsub.f32 %v1092_v0, %v1100_v9 }
 0x57a   : > { %v1105_v13 = vmul.f32 1.442695, %v1102_v11 }
 0x57c   : > { %6473 = vpow2.f32 %v1105_v13 }
 0x585   : > { %v6472_v15 = vpop.eup %6471 }
 0x586   : > { %v1107_v16 = vsel %vm911_vm2, %v6472_v15, 0.0 }
 0x587   : > { %1108 = vadd.xlane.f32.xlu0 %v1107_v16 }
 0x589   : > { %v6474_v17 = vpop.eup %6473 }
 0x58a   : > { %v1110_v18 = vsel %vm911_vm2, %v6474_v17, 0.0 }
 0x58b   : > { %1111 = vadd.xlane.f32.xlu1 %v1110_v18 }
 0x59c   : > { %1231 = vrot.lane.b32.xlu1 %v6744_v14, %s6515_s30 }
 0x59d   : > { %1119 = vrot.lane.b32.xlu0 %v6742_v12, %s6514_s25 }
 0x5a0   : > { %1229 = vrot.lane.b32.xlu1 %v6753_v19, %s6515_s30 }
 0x5a5   : > { %v6806_v21 = vpop.f32.mrf.mxu0 }
 0x5a7   : > { %v5982_v22 = vpop.f32.mrf.mxu0 }
 0x5a9   : > { %v6808_v23 = vpop.f32.mrf.mxu0 }
 0x5ab   : > { %v5983_v24 = vpop.f32.mrf.mxu0 }
 0x610   : > { %v1109_v25 = vpop.xlane.xlu0 %1108 }
 0x611   : > { %6475 = vrcp.f32 %v1109_v25 }
 0x614   : > { %v1112_v26 = vpop.xlane.xlu1 %1111  ;;  %v1120_v27 = vpop.permute.xlu0 %1119 }
 0x615   : > { %6477 = vrcp.f32 %v1112_v26  ;;  %5991 = vmatpush3.bf16.msra.mxu0 %v1120_v27  ;;  %v6095_v26 = vld [vmem:[%s8181_s6 + $0x28] sm:$0xff]   ;;  %v6096_v27 = vld [vmem:[%s8181_s6 + $0x20] sm:$0xff]  }
 0x616   : > { %6004 = vmatprep.subr.bf16.mxu0 %v6511_v5 }
 0x618   : > { %v1232_v33 = vpop.permute.xlu1 %1231 }
 0x619   : > { %v1237_v35 = vsel %vm863_vm1, %v1232_v33, 0 }
 0x61c   : > { %v1230_v36 = vpop.permute.xlu1 %1229 }
 0x61e   : > { %v6476_v29 = vpop.eup %6475 }
 0x61f   : > { %v1115_v31 = vmul.f32 %v6476_v29, %v6472_v15 }
 0x622   : > { %v6478_v30 = vpop.eup %6477 }
 0x623   : > { %v1116_v32 = vmul.f32 %v6478_v30, %v6474_v17 }
 0x625   : > { %v1117_v34 = vpack.c.bf16 %v1116_v32, %v1115_v31 }
 0x627   : > { %5993 = vmatmul.mubr.msk.bf16.vlgmr.msra.gmra.mxu0 %vm911_vm2, %v1117_v34 }
 0x628   : > { %6005 = vmatpush3.bf16.xpose.msra.mxu0 %v1237_v35  ;;  %6006 = vmatprep.mubr.msk.bf16.mxu0 %vm6513_vm0, %v6511_v5 }
 0x629   : > { %6016 = vmatprep.subr.bf16.mxu0 %v6511_v5 }
 0x62f   : > { %6007 = vmatmul.mubr.msk.bf16.vlgmr.msra.gmra.mxu0 %vm863_vm1, %v1230_v36 }
 0x630   : > { %6020 = vmatprep.mubr.msk.bf16.mxu0 %vm6513_vm0, %v6511_v5  ;;  %6017 = vmatpush3.bf16.msra.mxu0 %v6095_v26  ;;  %v6101_v26 = vld [vmem:[%s8185_s10 + $0x74] ss:$8 sps:$4 sm:$0xff]  }
 0x631   : > { %6018 = vmatprep.subr.bf16.mxu0 %v6511_v5 }
 0x634   : > { %6019 = vmatpush3.bf16.msra.mxu0 %v6096_v27  ;;  %v6104_v27 = vld [vmem:[%s8185_s10 + $0xf4] ss:$8 sps:$4 sm:$0xff]  }
 0x635   : > { %6030 = vmatprep.subr.bf16.mxu0 %v6511_v5 }
 0x6e7   : > { %v1159_v39 = vpop.f32.mrf.mxu0 }
 0x6e9   : > { %v5994_v40 = vpop.f32.mrf.mxu0 }
 0x6eb   : > { %v1162_v41 = vpop.f32.mrf.mxu0 }
 0x6ec   : > { %v1166_v42 = vpack.c.bf16 %v1162_v41, %v1159_v39 }
 0x6ed   : > { %v5995_v43 = vpop.f32.mrf.mxu0 }
 0x6ee   : > { %6001 = vmatmul.mubr.msk.bf16.vlgmr.msra.gmra.mxu1 %vm863_vm1, %v1166_v42 }
 0x6ef   : > { %v1273_v44 = vpop.f32.mrf.mxu0  ;;  %6012 = vmatprep.mubr.msk.bf16.mxu1 %vm6513_vm0, %v6511_v5 }
 0x6f0   : > { %v1274_v45 = vadd.f32 %v6763_v20, %v1273_v44 }
 0x6f1   : > { %v6008_v46 = vpop.f32.mrf.mxu0 }
 0x6f2   : > { %v1280_v47 = vsel %vm911_vm2, %v1274_v45, -inf }
 0x6f3   : > { %1281 = vmax.xlane.f32.xlu1 %v1280_v47  ;;  %v1276_v48 = vpop.f32.mrf.mxu0 }
 0x6f4   : > { %v1277_v49 = vadd.f32 %v6763_v20, %v1276_v48 }
 0x6f5   : > { %v6009_v50 = vpop.f32.mrf.mxu0 }
 0x6f6   : > { %v1283_v51 = vsel %vm911_vm2, %v1277_v49, -inf }
 0x6f7   : > { %1284 = vmax.xlane.f32.xlu0 %v1283_v51 }
 0x704   : > { %1303 = vrot.lane.b32.xlu1 %v6742_v12, %s6515_s30 }
 0x708   : > { %1413 = vrot.lane.b32.xlu1 %v6753_v19, %s6516_s20  ;;  %v4921_v19 = vld [vmem:[%s8182_s7] ss:$0 sm:$0xff] }
 0x709   : > { %v855_v3 = vadd.f32 %v6619_v1, %v4921_v19  ;;  %v856_v6 = vadd.f32 %v6622_v2, %v4921_v19 }
 0x70b   : > { %v1040_v4 = vadd.f32 %v6806_v21, %v855_v3  ;;  %v1041_v11 = vadd.f32 %v6808_v23, %v856_v6 }
 0x77c   : > { %v1282_v52 = vpop.xlane.xlu1 %1281 }
 0x77d   : > { %v1286_v53 = vsub.f32 %v1274_v45, %v1282_v52 }
 0x77f   : > { %v1288_v54 = vmul.f32 1.442695, %v1286_v53 }
 0x780   : > { %v1304_v56 = vpop.permute.xlu1 %1303  ;;  %v1285_v57 = vpop.xlane.xlu0 %1284 }
 0x781   : > { %6479 = vpow2.f32 %v1288_v54  ;;  %v1287_v59 = vsub.f32 %v1277_v49, %v1285_v57  ;;  %6011 = vmatpush3.bf16.msra.mxu1 %v1304_v56 }
 0x782   : > { %6024 = vmatprep.subr.bf16.mxu1 %v6511_v5 }
 0x783   : > { %v1290_v60 = vmul.f32 1.442695, %v1287_v59 }
 0x784   : > { %v1414_v23 = vpop.permute.xlu1 %1413 }
 0x785   : > { %6481 = vpow2.f32 %v1290_v60 }
 0x78e   : > { %v6480_v61 = vpop.eup %6479 }
 0x78f   : > { %v1292_v62 = vsel %vm911_vm2, %v6480_v61, 0.0 }
 0x790   : > { %1293 = vadd.xlane.f32.xlu0 %v1292_v62 }
 0x792   : > { %v6482_v63 = vpop.eup %6481 }
 0x793   : > { %v1295_v0 = vsel %vm911_vm2, %v6482_v63, 0.0 }
 0x794   : > { %1296 = vadd.xlane.f32.xlu0 %v1295_v0 }
 0x7aa   : > { %1415 = vrot.lane.b32.xlu0 %v6744_v14, %s6516_s20 }
 0x7ae   : > { %v1220_v7 = vpop.f32.mrf.mxu1 }
 0x7af   : > { %v6849_v8 = vadd.f32 %v1220_v7, %v1040_v4  ;;  %v6098_v4 = vld [vmem:[%s8181_s6 + $0x30] sm:$0xff]  }
 0x7b0   : > { %v6002_v9 = vpop.f32.mrf.mxu1 }
 0x7b2   : > { %v1223_v13 = vpop.f32.mrf.mxu1 }
 0x7b3   : > { %v1228_v15 = vadd.f32 %v1223_v13, %v1041_v11 }
 0x7b4   : > { %v6003_v16 = vpop.f32.mrf.mxu1 }
 0x819   : > { %v1294_v17 = vpop.xlane.xlu0 %1293 }
 0x81a   : > { %6483 = vrcp.f32 %v1294_v17 }
 0x81d   : > { %v1297_v18 = vpop.xlane.xlu0 %1296 }
 0x81e   : > { %6485 = vrcp.f32 %v1297_v18 }
 0x821   : > { %v1416_v21 = vpop.permute.xlu0 %1415 }
 0x822   : > { %v1421_v2 = vsel %vm863_vm1, %v1416_v21, 0 }
 0x827   : > { %v6484_v1 = vpop.eup %6483 }
 0x828   : > { %v1300_v14 = vmul.f32 %v6484_v1, %v6480_v61 }
 0x82b   : > { %v6486_v22 = vpop.eup %6485 }
 0x82c   : > { %v1301_v24 = vmul.f32 %v6486_v22, %v6482_v63 }
 0x82e   : > { %v1302_v25 = vpack.c.bf16 %v1301_v24, %v1300_v14 }
 0x830   : > { %6013 = vmatmul.mubr.msk.bf16.vlgmr.msra.gmra.mxu1 %vm911_vm2, %v1302_v25 }
 0x831   : > { %6025 = vmatpush3.bf16.xpose.msra.mxu1 %v1421_v2  ;;  %6026 = vmatprep.mubr.msk.bf16.mxu1 %vm6513_vm0, %v6511_v5 }
 0x832   : > { %6036 = vmatprep.subr.bf16.mxu1 %v6511_v5 }
 0x838   : > { %6027 = vmatmul.mubr.msk.bf16.vlgmr.msra.gmra.mxu1 %vm863_vm1, %v1414_v23 }
 0x839   : > { %6040 = vmatprep.mubr.msk.bf16.mxu1 %vm6513_vm0, %v6511_v5 }
 0x8f0   : > { %v1343_v29 = vpop.f32.mrf.mxu1 }
 0x8f2   : > { %v6014_v30 = vpop.f32.mrf.mxu1 }
 0x8f3   : > { %v6102_v30 = vld [vmem:[%s8185_s10 + $0xf0] ss:$8 sps:$4 sm:$0xff]  }
 0x8f4   : > { %v1346_v31 = vpop.f32.mrf.mxu1 }
 0x8f5   : > { %v1350_v32 = vpack.c.bf16 %v1346_v31, %v1343_v29  ;;  %v6099_v29 = vld [vmem:[%s8185_s10 + $0x70] ss:$8 sps:$4 sm:$0xff]   ;;  %v6107_v31 = vld [vmem:[%s8185_s10 + $0x64] ss:$8 sps:$4 sm:$0xff]  }
 0x8f6   : > { %v6015_v33 = vpop.f32.mrf.mxu1 }
 0x8f7   : > { %6021 = vmatmul.mubr.msk.bf16.vlgmr.msra.gmra.mxu0 %vm863_vm1, %v1350_v32  ;;  %v6110_v32 = vld [vmem:[%s8185_s10 + $0xe4] ss:$8 sps:$4 sm:$0xff]   ;;  %v6105_v33 = vld [vmem:[%s8185_s10 + $0x60] ss:$8 sps:$4 sm:$0xff]  }
 0x8f8   : > { %v1457_v34 = vpop.f32.mrf.mxu1  ;;  %6032 = vmatprep.mubr.msk.bf16.mxu0 %vm6513_vm0, %v6511_v5  ;;  %vm2144_vm0 = vcmp.ge.s32.totalorder %v6732_v55, 1 }
 0x8f9   : > { %v1458_v35 = vadd.f32 %v6763_v20, %v1457_v34  ;;  %v6108_v34 = vld [vmem:[%s8185_s10 + $0xe0] ss:$8 sps:$4 sm:$0xff]  }
 0x8fa   : > { %v6028_v36 = vpop.f32.mrf.mxu1 }
 0x8fb   : > { %v1464_v37 = vsel %vm911_vm2, %v1458_v35, -inf  ;;  %v6116_v36 = vld [vmem:[%s8185_s10 + $0xd4] ss:$8 sps:$4 sm:$0xff]  }
 0x8fc   : > { %1465 = vmax.xlane.f32.xlu1 %v1464_v37  ;;  %v1460_v38 = vpop.f32.mrf.mxu1  ;;  %v6111_v37 = vld [vmem:[%s8185_s10 + $0x50] ss:$8 sps:$4 sm:$0xff]  }
 0x8fd   : > { %v1461_v39 = vadd.f32 %v6763_v20, %v1460_v38  ;;  %v6114_v38 = vld [vmem:[%s8185_s10 + $0xd0] ss:$8 sps:$4 sm:$0xff]  }
 0x8fe   : > { %v6029_v40 = vpop.f32.mrf.mxu1 }
 0x8ff   : > { %v1467_v41 = vsel %vm911_vm2, %v1461_v39, -inf  ;;  %v6122_v40 = vld [vmem:[%s8185_s10 + $0xc4] ss:$8 sps:$4 sm:$0xff]  }
 0x900   : > { %1468 = vmax.xlane.f32.xlu0 %v1467_v41  ;;  %v6117_v41 = vld [vmem:[%s8185_s10 + $0x40] ss:$8 sps:$4 sm:$0xff]  }
 0x985   : > { %v1466_v42 = vpop.xlane.xlu1 %1465 }
 0x986   : > { %v1470_v43 = vsub.f32 %v1458_v35, %v1466_v42  ;;  %v6113_v35 = vld [vmem:[%s8185_s10 + $0x54] ss:$8 sps:$4 sm:$0xff]   ;;  %v6120_v42 = vld [vmem:[%s8185_s10 + $0xc0] ss:$8 sps:$4 sm:$0xff]  }
 0x988   : > { %v1472_v44 = vmul.f32 1.442695, %v1470_v43  ;;  %v6125_v43 = vld [vmem:[%s8185_s10 + $0x34] ss:$8 sps:$4 sm:$0xff]  }
 0x989   : > { %v1469_v45 = vpop.xlane.xlu0 %1468 }
 0x98a   : > { %6487 = vpow2.f32 %v1472_v44  ;;  %v1471_v46 = vsub.f32 %v1461_v39, %v1469_v45  ;;  %v6119_v39 = vld [vmem:[%s8185_s10 + $0x44] ss:$8 sps:$4 sm:$0xff]   ;;  %v6128_v44 = vld [vmem:[%s8185_s10 + $0xb4] ss:$8 sps:$4 sm:$0xff]   ;;  %v6123_v45 = vld [vmem:[%s8185_s10 + $0x30] ss:$8 sps:$4 sm:$0xff]  }
 0x98c   : > { %v1474_v47 = vmul.f32 1.442695, %v1471_v46  ;;  %v6126_v46 = vld [vmem:[%s8185_s10 + $0xb0] ss:$8 sps:$4 sm:$0xff]  }
 0x98e   : > { %6489 = vpow2.f32 %v1474_v47  ;;  %v6131_v47 = vld [vmem:[%s8185_s10 + $0x24] ss:$8 sps:$4 sm:$0xff]  }
 0x997   : > { %v6488_v48 = vpop.eup %6487 }
 0x998   : > { %v1476_v49 = vsel %vm911_vm2, %v6488_v48, 0.0 }
 0x999   : > { %1477 = vadd.xlane.f32.xlu0 %v1476_v49  ;;  %v6129_v49 = vld [vmem:[%s8185_s10 + $0x20] ss:$8 sps:$4 sm:$0xff]  }
 0x99b   : > { %v6490_v50 = vpop.eup %6489 }
 0x99c   : > { %v1479_v51 = vsel %vm911_vm2, %v6490_v50, 0.0 }
 0x99d   : > { %1480 = vadd.xlane.f32.xlu1 %v1479_v51  ;;  %v6137_v51 = vld [vmem:[%s8185_s10 + $0x14] ss:$8 sps:$4 sm:$0xff]  }
 0x9af   : > { %1487 = vrot.lane.b32.xlu0 %v6742_v12, %s6516_s20  ;;  %v6097_v12 = vld [vmem:[%s8181_s6 + $0x38] sm:$0xff]  }
 0x9b0   : > { %6037 = vmatpush3.bf16.msra.mxu1 %v6097_v12 }
 0x9b1   : > { %6038 = vmatprep.subr.bf16.mxu1 %v6511_v5 }
 0x9b4   : > { %6039 = vmatpush3.bf16.msra.mxu1 %v6098_v4 }
 0x9b5   : > { %1930 = vmatprep.subr.bf16.mxu1 %v6104_v27 }
 0x9b7   : > { %v1404_v20 = vpop.f32.mrf.mxu0 }
 0x9b8   : > { %v1411_v52 = vadd.f32 %v1404_v20, %v6849_v8  ;;  %v6140_v20 = vld [vmem:[%s8185_s10 + $0x94] ss:$8 sps:$4 sm:$0xff]  }
 0x9b9   : > { %v6022_v53 = vpop.f32.mrf.mxu0 }
 0x9ba   : > { %v6138_v53 = vld [vmem:[%s8185_s10 + $0x90] ss:$8 sps:$4 sm:$0xff]  }
 0x9bb   : > { %v1407_v54 = vpop.f32.mrf.mxu0 }
 0x9bc   : > { %v1412_v56 = vadd.f32 %v1407_v54, %v1228_v15  ;;  %v6141_v54 = vld [vmem:[%s8185_s10] ss:$8 sps:$4 sm:$0xff]  }
 0x9bd   : > { %v6023_v57 = vpop.f32.mrf.mxu0 }
 0x9be   : > { %v6144_v57 = vld [vmem:[%s8185_s10 + $0x80] ss:$8 sps:$4 sm:$0xff]  }
 0xa22   : > { %v1478_v59 = vpop.xlane.xlu0 %1477 }
 0xa23   : > { %6491 = vrcp.f32 %v1478_v59  ;;  %v6146_v59 = vld [vmem:[%s8185_s10 + $0x84] ss:$8 sps:$4 sm:$0xff]  }
 0xa26   : > { %v1481_v60 = vpop.xlane.xlu1 %1480  ;;  %v1488_v61 = vpop.permute.xlu0 %1487 }
 0xa27   : > { %6493 = vrcp.f32 %v1481_v60  ;;  %6031 = vmatpush3.bf16.msra.mxu0 %v1488_v61  ;;  %v6149_v60 = vld [vmem:[%s8185_s10 + $0x174] ss:$8 sps:$4 sm:$0xff]  }
 0xa28   : > { %1768 = vmatprep.subr.bf16.mxu0 %v6101_v26  ;;  %v6152_v61 = vld [vmem:[%s8185_s10 + $0x1f4] ss:$8 sps:$4 sm:$0xff]  }
 0xa30   : > { %v6492_v62 = vpop.eup %6491 }
 0xa31   : > { %v1484_v0 = vmul.f32 %v6492_v62, %v6488_v48  ;;  %v6134_v48 = vld [vmem:[%s8185_s10 + $0xa4] ss:$8 sps:$4 sm:$0xff]  }
 0xa34   : > { %v6494_v63 = vpop.eup %6493 }
 0xa35   : > { %v1485_v19 = vmul.f32 %v6494_v63, %v6490_v50  ;;  %v6132_v50 = vld [vmem:[%s8185_s10 + $0xa0] ss:$8 sps:$4 sm:$0xff]  }
 0xa37   : > { %v1486_v3 = vpack.c.bf16 %v1485_v19, %v1484_v0 }
 0xa39   : > { %6033 = vmatmul.mubr.msk.bf16.vlgmr.msra.gmra.mxu0 %vm911_vm2, %v1486_v3  ;;  %vm7222_vm2 = vmpackc.low %vm6517_vm9, %vm2144_vm0 }
 0xa3a   : > { %1800 = vmatprep.mubr.bf16.mxu0 %v6512_v28  ;;  %1769 = vmatpush1.bf16.msra.mxu0 %v6099_v29  ;;  %v6147_v29 = vld [vmem:[%s8185_s10 + $0x170] ss:$8 sps:$4 sm:$0xff]  }
 0xa3b   : > { %1770 = vmatprep.subr.bf16.mxu0 %v6107_v31 }
 0xa3e   : > { %1771 = vmatpush1.bf16.msra.mxu0 %v6105_v33 }
 0xa3f   : > { %1772 = vmatprep.subr.bf16.mxu0 %v6113_v35  ;;  %v6354_v35 = vld [vmem:[%s8187_s12 + $0x1b0] sm:$0xff]  }
 0xa42   : > { %1773 = vmatpush1.bf16.msra.mxu0 %v6111_v37 }
 0xa43   : > { %1774 = vmatprep.subr.bf16.mxu0 %v6119_v39  ;;  %v6158_v39 = vld [vmem:[%s8185_s10 + $0x1e4] ss:$8 sps:$4 sm:$0xff]  }
 0xa46   : > { %1775 = vmatpush1.bf16.msra.mxu0 %v6117_v41 }
 0xa47   : > { %1776 = vmatprep.subr.bf16.mxu0 %v6125_v43 }
 0xa4a   : > { %1777 = vmatpush1.bf16.msra.mxu0 %v6123_v45  ;;  %v6153_v45 = vld [vmem:[%s8185_s10 + $0x160] ss:$8 sps:$4 sm:$0xff]  }
 0xa4b   : > { %1778 = vmatprep.subr.bf16.mxu0 %v6131_v47 }
 0xa4e   : > { %1779 = vmatpush1.bf16.msra.mxu0 %v6129_v49 }
 0xa4f   : > { %1780 = vmatprep.subr.bf16.mxu0 %v6137_v51  ;;  %v6164_v51 = vld [vmem:[%s8185_s10 + $0x1d4] ss:$8 sps:$4 sm:$0xff]  }
 0xaf9   : > { %v1527_v6 = vpop.f32.mrf.mxu0 }
 0xafb   : > { %v6034_v7 = vpop.f32.mrf.mxu0 }
 0xafd   : > { %v1530_v8 = vpop.f32.mrf.mxu0 }
 0xafe   : > { %v1534_v9 = vpack.c.bf16 %v1530_v8, %v1527_v6  ;;  %v4943_v6 = vld [vmem:[%s8183_s8] ss:$0 sm:$0xff] }
 0xaff   : > { %v6035_v11 = vpop.f32.mrf.mxu0  ;;  %v4944_v8 = vld [vmem:[%s8184_s9] ss:$0 sm:$0xff] }
 0xb00   : > { %6041 = vmatmul.mubr.msk.bf16.vlgmr.msra.gmra.mxu1 %vm863_vm1, %v1534_v9  ;;  %vm7217_vm1 = vmpackc.low %vm6517_vm9, %vm1982_vm15 }
 0xb01   : > { %1962 = vmatprep.mubr.bf16.mxu1 %v6512_v28  ;;  %1931 = vmatpush1.bf16.msra.mxu1 %v6102_v30  ;;  %v6150_v30 = vld [vmem:[%s8185_s10 + $0x1f0] ss:$8 sps:$4 sm:$0xff]  }
 0xb02   : > { %1932 = vmatprep.subr.bf16.mxu1 %v6110_v32 }
 0xb05   : > { %1933 = vmatpush1.bf16.msra.mxu1 %v6108_v34 }
 0xb06   : > { %1934 = vmatprep.subr.bf16.mxu1 %v6116_v36 }
 0xb09   : > { %1935 = vmatpush1.bf16.msra.mxu1 %v6114_v38  ;;  %v6155_v38 = vld [vmem:[%s8185_s10 + $0x164] ss:$8 sps:$4 sm:$0xff]  }
 0xb0a   : > { %1936 = vmatprep.subr.bf16.mxu1 %v6122_v40 }
 0xb0d   : > { %1937 = vmatpush1.bf16.msra.mxu1 %v6120_v42 }
 0xb0e   : > { %1938 = vmatprep.subr.bf16.mxu1 %v6128_v44 }
 0xb11   : > { %1939 = vmatpush1.bf16.msra.mxu1 %v6126_v46  ;;  %v6156_v46 = vld [vmem:[%s8185_s10 + $0x1e0] ss:$8 sps:$4 sm:$0xff]  }
 0xb12   : > { %1940 = vmatprep.subr.bf16.mxu1 %v6134_v48 }
 0xb15   : > { %1941 = vmatpush1.bf16.msra.mxu1 %v6132_v50  ;;  %v6161_v50 = vld [vmem:[%s8185_s10 + $0x154] ss:$8 sps:$4 sm:$0xff]  }
 0xb16   : > { %1942 = vmatprep.subr.bf16.mxu1 %v6140_v20 }
 0xb19   : > { %1943 = vmatpush1.bf16.msra.mxu1 %v6138_v53 }
 0xb1a   : > { %1944 = vmatprep.subr.bf16.mxu1 %v6146_v59  ;;  %v6167_v59 = vld [vmem:[%s8185_s10 + $0x144] ss:$8 sps:$4 sm:$0xff]  }
 0xb1d   : > { %1945 = vmatpush1.bf16.msra.mxu1 %v6144_v57  ;;  %v6162_v57 = vld [vmem:[%s8185_s10 + $0x1d0] ss:$8 sps:$4 sm:$0xff]  }
 0xb1e   : > { %2254 = vmatprep.subr.bf16.mxu1 %v6152_v61  ;;  %v6165_v61 = vld [vmem:[%s8185_s10 + $0x140] ss:$8 sps:$4 sm:$0xff]  }
 0xbc0   : > { %v1588_v13 = vpop.f32.mrf.mxu1 }
 0xbc1   : > { %v6891_v15 = vadd.f32 %v1588_v13, %v1411_v52  ;;  %v6135_v52 = vld [vmem:[%s8185_s10 + $0x10] ss:$8 sps:$4 sm:$0xff]  }
 0xbc2   : > { %v6042_v16 = vpop.f32.mrf.mxu1  ;;  %1781 = vmatpush1.bf16.msra.mxu0 %v6135_v52 }
 0xbc3   : > { %1600 = vadd.xlane.f32.xlu1 %v6891_v15 }
 0xbc4   : > { %v1591_v5 = vpop.f32.mrf.mxu1 }
 0xbc5   : > { %v6894_v17 = vadd.f32 %v1591_v5, %v1412_v56  ;;  %v6143_v56 = vld [vmem:[%s8185_s10 + $0x4] ss:$8 sps:$4 sm:$0xff]  }
 0xbc6   : > { %v6043_v18 = vpop.f32.mrf.mxu1  ;;  %1782 = vmatprep.subr.bf16.mxu0 %v6143_v56  ;;  %v6159_v56 = vld [vmem:[%s8185_s10 + $0x150] ss:$8 sps:$4 sm:$0xff]  }
 0xbc7   : > { %1602 = vadd.xlane.f32.xlu1 %v6894_v17  ;;  %1783 = vmatpush1.bf16.msra.mxu0 %v6141_v54 }
 0xbc8   : > { %2092 = vmatprep.subr.bf16.mxu0 %v6149_v60  ;;  %v6170_v60 = vld [vmem:[%s8185_s10 + $0x1c4] ss:$8 sps:$4 sm:$0xff]  }
 0xc4c   : > { %v1601_v1 = vpop.xlane.xlu1 %1600 }
 0xc4d   : > { %v1604_v22 = vmul.f32 0.0078125, %v1601_v1 }
 0xc4f   : > { %v6898_v14 = vsub.f32 %v6891_v15, %v1604_v22 }
 0xc50   : > { %v1603_v24 = vpop.xlane.xlu1 %1602 }
 0xc51   : > { %v1605_v21 = vmul.f32 0.0078125, %v1603_v24  ;;  %v1608_v25 = vmul.f32 %v6898_v14, %v6898_v14 }
 0xc53   : > { %v6903_v2 = vsub.f32 %v6894_v17, %v1605_v21  ;;  %1610 = vadd.xlane.f32.xlu1 %v1608_v25  ;;  %v6353_v25 = vld [vmem:[%s8187_s12 + $0x130] sm:$0xff]  }
 0xc55   : > { %v1609_v23 = vmul.f32 %v6903_v2, %v6903_v2 }
 0xc57   : > { %1612 = vadd.xlane.f32.xlu1 %v1609_v23 }
 0xcdc   : > { %v1611_v62 = vpop.xlane.xlu1 %1610 }
 0xcdd   : > { %v1614_v63 = vmul.f32 0.0078125, %v1611_v62  ;;  %v6168_v62 = vld [vmem:[%s8185_s10 + $0x1c0] ss:$8 sps:$4 sm:$0xff]  }
 0xcdf   : > { %v1616_v0 = vadd.f32 1e-05, %v1614_v63  ;;  %v6173_v63 = vld [vmem:[%s8185_s10 + $0x134] ss:$8 sps:$4 sm:$0xff]  }
 0xce0   : > { %v1613_v19 = vpop.xlane.xlu1 %1612 }
 0xce1   : > { %6495 = vrsqrt.f32 %v1616_v0  ;;  %v1615_v3 = vmul.f32 0.0078125, %v1613_v19  ;;  %v6176_v0 = vld [vmem:[%s8185_s10 + $0x1b4] ss:$8 sps:$4 sm:$0xff]   ;;  %v6171_v19 = vld [vmem:[%s8185_s10 + $0x130] ss:$8 sps:$4 sm:$0xff]  }
 0xce3   : > { %v1617_v12 = vadd.f32 1e-05, %v1615_v3  ;;  %v6174_v3 = vld [vmem:[%s8185_s10 + $0x1b0] ss:$8 sps:$4 sm:$0xff]  }
 0xce5   : > { %6497 = vrsqrt.f32 %v1617_v12  ;;  %v6179_v12 = vld [vmem:[%s8185_s10 + $0x124] ss:$8 sps:$4 sm:$0xff]  }
 0xcee   : > { %v6496_v4 = vpop.eup %6495 }
 0xcef   : > { %v1620_v7 = vmul.f32 %v6496_v4, %v6898_v14  ;;  %v6182_v4 = vld [vmem:[%s8185_s10 + $0x1a4] ss:$8 sps:$4 sm:$0xff]  }
 0xcf1   : > { %v1629_v9 = vmul.f32 %v4943_v6, %v1620_v7  ;;  %v6180_v7 = vld [vmem:[%s8185_s10 + $0x1a0] ss:$8 sps:$4 sm:$0xff]  }
 0xcf2   : > { %v6498_v11 = vpop.eup %6497 }
 0xcf3   : > { %v1621_v13 = vmul.f32 %v6498_v11, %v6903_v2  ;;  %v7017_v16 = vadd.f32 %v4944_v8, %v1629_v9  ;;  %v6188_v9 = vld [vmem:[%s8185_s10 + $0x194] ss:$8 sps:$4 sm:$0xff]   ;;  %v6183_v11 = vld [vmem:[%s8185_s10 + $0x110] ss:$8 sps:$4 sm:$0xff]  }
 0xcf5   : > { %v1630_v5 = vmul.f32 %v4943_v6, %v1621_v13  ;;  %v1654_v1 = vrot.slane %v7017_v16, 4  ;;  %v1815_v14 = vrot.slane %v7017_v16, 5  ;;  %v2458_v21 = vrot.slane %v7017_v16, 1  ;;  %v6177_v6 = vld [vmem:[%s8185_s10 + $0x120] ss:$8 sps:$4 sm:$0xff]  }
 0xcf6   : > { %v2620_v40 = vrot.slane %v7017_v16, 2  ;;  %v2782_v42 = vrot.slane %v7017_v16, 3  ;;  %v6186_v13 = vld [vmem:[%s8185_s10 + $0x190] ss:$8 sps:$4 sm:$0xff]  }
 0xcf7   : > { %v7020_v18 = vadd.f32 %v4944_v8, %v1630_v5  ;;  %v6185_v8 = vld [vmem:[%s8185_s10 + $0x114] ss:$8 sps:$4 sm:$0xff]   ;;  %v6191_v5 = vld [vmem:[%s8185_s10 + $0x104] ss:$8 sps:$4 sm:$0xff]  }
 0xcf9   : > { %v1655_v22 = vrot.slane %v7020_v18, 4  ;;  %v1816_v24 = vrot.slane %v7020_v18, 5  ;;  %v2313_v2 = vpack.c.bf16 %v7020_v18, %v7017_v16  ;;  %v2459_v23 = vrot.slane %v7020_v18, 1 }
 0xcfa   : > { %v2621_v26 = vrot.slane %v7020_v18, 2  ;;  %v2783_v27 = vrot.slane %v7020_v18, 3 }
 0xcfb   : > { %v7050_v31 = vsel %vm1656_vm3, %v1654_v1, %v1655_v22  ;;  %v7054_v32 = vsel %vm1656_vm3, %v1655_v22, %v1654_v1  ;;  %v1818_v33 = vsel %vm1817_vm5, %v1815_v14, %v1816_v24  ;;  %v1819_v34 = vsel %vm1817_vm5, %v1816_v24, %v1815_v14  ;;  %v6194_v1 = vld [vmem:[%s8185_s10 + $0x184] ss:$8 sps:$4 sm:$0xff]   ;;  %v6189_v24 = vld [vmem:[%s8185_s10 + $0x100] ss:$8 sps:$4 sm:$0xff]  }
 0xcfc   : > { %v4962_v36 = vpack.c.bf16 %v7050_v31, %v7054_v32  ;;  %v4997_v37 = vpack.c.bf16 %v1818_v33, %v1819_v34  ;;  %v7079_v41 = vsel %vm2460_vm7, %v2458_v21, %v2459_v23  ;;  %v7088_v43 = vsel %vm2460_vm7, %v2459_v23, %v2458_v21  ;;  %v6192_v21 = vld [vmem:[%s8185_s10 + $0x180] ss:$8 sps:$4 sm:$0xff]  }
 0xcfd   : > { %v7092_v44 = vsel %vm2622_vm8, %v2620_v40, %v2621_v26  ;;  %v5134_v47 = vpack.c.bf16 %v7088_v43, %v7079_v41  ;;  %v7104_v48 = vsel %vm2622_vm8, %v2621_v26, %v2620_v40  ;;  %v7108_v49 = vsel %vm8192_vm12, %v2782_v42, %v2783_v27  ;;  %v6198_v40 = vld [vmem:[%s8185_s10 + $0x2f0] ss:$8 sps:$4 sm:$0xff]   ;;  %v6263_v43 = vld [vmem:[%s8185_s10 + $0x344] ss:$8 sps:$4 sm:$0xff]  }
 0xcfe   : > { %4963 = vmatmul.mubr.msk.bf16.vlgmr.msra.gmra.mxu0 %vm7033_vm10, %v4962_v36  ;;  %4998 = vmatmul.mubr.msk.bf16.vlgmr.msra.gmra.mxu1 %vm7063_vm11, %v4997_v37  ;;  %v5169_v20 = vpack.c.bf16 %v7104_v48, %v7092_v44  ;;  %v7120_v52 = vsel %vm8192_vm12, %v2783_v27, %v2782_v42  ;;  %v5239_v53 = vpack.c.bf16 %v7054_v32, %v7050_v31  ;;  %v1978_v22 = vrot.slane %v7020_v18, 6  ;;  %v6197_v27 = vld [vmem:[%s8185_s10 + $0x274] ss:$8 sps:$4 sm:$0xff]   ;;  %v6258_v41 = vld [vmem:[%s8185_s10 + $0x3d0] ss:$8 sps:$4 sm:$0xff]   ;;  %v6387_v37 = vld [vmem:[%s8187_s12 + $0x268] sm:$0xff]  }
 0xcff   : > { %2093 = vmatpush1.bf16.msra.mxu0 %v6147_v29  ;;  %2255 = vmatpush1.bf16.msra.mxu1 %v6150_v30  ;;  %v5204_v54 = vpack.c.bf16 %v7120_v52, %v7108_v49  ;;  %v2140_v14 = vrot.slane %v7020_v18, 7  ;;  %v1977_v23 = vrot.slane %v7017_v16, 6  ;;  %v2139_v26 = vrot.slane %v7017_v16, 7  ;;  %v6200_v29 = vld [vmem:[%s8185_s10 + $0x2f4] ss:$8 sps:$4 sm:$0xff]  }
 0xd00   : > { %2094 = vmatprep.subr.bf16.mxu0 %v6155_v38  ;;  %2256 = vmatprep.subr.bf16.mxu1 %v6158_v39  ;;  %v6195_v39 = vld [vmem:[%s8185_s10 + $0x270] ss:$8 sps:$4 sm:$0xff]   ;;  %v6257_v16 = vld [vmem:[%s8185_s10 + $0x354] ss:$8 sps:$4 sm:$0xff]   ;;  %v6302_v49 = vld [vmem:[%s8185_s10 + $0x444] ss:$8 sps:$4 sm:$0xff]  }
 0xd01   : > { %2124 = vmatprep.mubr.bf16.mxu0 %v6512_v28  ;;  %2286 = vmatprep.mubr.bf16.mxu1 %v6512_v28  ;;  %v1980_v30 = vsel %vm1979_vm13, %v1977_v23, %v1978_v22  ;;  %v1981_v33 = vsel %vm1979_vm13, %v1978_v22, %v1977_v23  ;;  %v2142_v34 = vsel %vm2141_vm14, %v2139_v26, %v2140_v14  ;;  %v6234_v22 = vld [vmem:[%s8185_s10 + $0x290] ss:$8 sps:$4 sm:$0xff]   ;;  %v6237_v23 = vld [vmem:[%s8185_s10 + $0x200] ss:$8 sps:$4 sm:$0xff]   ;;  %v6260_v18 = vld [vmem:[%s8185_s10 + $0x3d4] ss:$8 sps:$4 sm:$0xff]  }
 0xd02   : > { %v2143_v36 = vsel %vm2141_vm14, %v2140_v14, %v2139_v26  ;;  %v5032_v42 = vpack.c.bf16 %v1980_v30, %v1981_v33  ;;  %v6239_v14 = vld [vmem:[%s8185_s10 + $0x204] ss:$8 sps:$4 sm:$0xff]   ;;  %v6240_v26 = vld [vmem:[%s8185_s10 + $0x280] ss:$8 sps:$4 sm:$0xff]   ;;  %v6243_v33 = vld [vmem:[%s8185_s10 + $0x370] ss:$8 sps:$4 sm:$0xff]  }
 0xd03   : > { %2095 = vmatpush1.bf16.msra.mxu0 %v6153_v45  ;;  %2257 = vmatpush1.bf16.msra.mxu1 %v6156_v46  ;;  %v5067_v45 = vpack.c.bf16 %v2142_v34, %v2143_v36  ;;  %v6203_v46 = vld [vmem:[%s8185_s10 + $0x264] ss:$8 sps:$4 sm:$0xff]   ;;  %v6246_v34 = vld [vmem:[%s8185_s10 + $0x3f0] ss:$8 sps:$4 sm:$0xff]   ;;  %v6299_v44 = vld [vmem:[%s8185_s10 + $0x454] ss:$8 sps:$4 sm:$0xff]  }
 0xd04   : > { %2096 = vmatprep.subr.bf16.mxu0 %v6161_v50  ;;  %2258 = vmatprep.subr.bf16.mxu1 %v6164_v51  ;;  %v6206_v50 = vld [vmem:[%s8185_s10 + $0x2e4] ss:$8 sps:$4 sm:$0xff]   ;;  %v6201_v51 = vld [vmem:[%s8185_s10 + $0x260] ss:$8 sps:$4 sm:$0xff]   ;;  %v6297_v48 = vld [vmem:[%s8185_s10 + $0x450] ss:$8 sps:$4 sm:$0xff]  }
 0xd05   : > { %v6251_v36 = vld [vmem:[%s8185_s10 + $0x364] ss:$8 sps:$4 sm:$0xff]   ;;  %v6303_v52 = vld [vmem:[%s8185_s10 + $0x430] ss:$8 sps:$4 sm:$0xff]  }
 0xd06   : > { %v6319_v31 = vld [vmem:[%s8187_s12 + $0x70] sm:$0xff]   ;;  %v6388_v38 = vld [vmem:[%s8187_s12 + $0x2e8] sm:$0xff]  }
 0xd07   : > { %2097 = vmatpush1.bf16.msra.mxu0 %v6159_v56  ;;  %2259 = vmatpush1.bf16.msra.mxu1 %v6162_v57  ;;  %v6204_v56 = vld [vmem:[%s8185_s10 + $0x2e0] ss:$8 sps:$4 sm:$0xff]   ;;  %v6209_v57 = vld [vmem:[%s8185_s10 + $0x254] ss:$8 sps:$4 sm:$0xff]  }
 0xd08   : > { %2098 = vmatprep.subr.bf16.mxu0 %v6167_v59  ;;  %2260 = vmatprep.subr.bf16.mxu1 %v6170_v60  ;;  %v6212_v59 = vld [vmem:[%s8185_s10 + $0x2d4] ss:$8 sps:$4 sm:$0xff]   ;;  %v6207_v60 = vld [vmem:[%s8185_s10 + $0x250] ss:$8 sps:$4 sm:$0xff]   ;;  %v6419_v30 = vld [vmem:[%s8187_s12 + $0x368] sm:$0xff]  }
 0xd09   : > { %v6320_v32 = vld [vmem:[%s8187_s12 + $0xf0] sm:$0xff]  }
 0xd0b   : > { %2099 = vmatpush1.bf16.msra.mxu0 %v6165_v61  ;;  %2261 = vmatpush1.bf16.msra.mxu1 %v6168_v62  ;;  %v6210_v61 = vld [vmem:[%s8185_s10 + $0x2d0] ss:$8 sps:$4 sm:$0xff]   ;;  %v6215_v62 = vld [vmem:[%s8185_s10 + $0x244] ss:$8 sps:$4 sm:$0xff]  }
 0xd0c   : > { %2100 = vmatprep.subr.bf16.mxu0 %v6173_v63  ;;  %2262 = vmatprep.subr.bf16.mxu1 %v6176_v0  ;;  %v6218_v63 = vld [vmem:[%s8185_s10 + $0x2c4] ss:$8 sps:$4 sm:$0xff]   ;;  %v6213_v0 = vld [vmem:[%s8185_s10 + $0x240] ss:$8 sps:$4 sm:$0xff]  }
 0xd0f   : > { %2101 = vmatpush1.bf16.msra.mxu0 %v6171_v19  ;;  %2263 = vmatpush1.bf16.msra.mxu1 %v6174_v3  ;;  %v6216_v19 = vld [vmem:[%s8185_s10 + $0x2c0] ss:$8 sps:$4 sm:$0xff]   ;;  %v6221_v3 = vld [vmem:[%s8185_s10 + $0x234] ss:$8 sps:$4 sm:$0xff]  }
 0xd10   : > { %2102 = vmatprep.subr.bf16.mxu0 %v6179_v12  ;;  %2264 = vmatprep.subr.bf16.mxu1 %v6182_v4  ;;  %v6224_v12 = vld [vmem:[%s8185_s10 + $0x2b4] ss:$8 sps:$4 sm:$0xff]   ;;  %v6219_v4 = vld [vmem:[%s8185_s10 + $0x230] ss:$8 sps:$4 sm:$0xff]  }
 0xd13   : > { %2103 = vmatpush1.bf16.msra.mxu0 %v6177_v6  ;;  %2265 = vmatpush1.bf16.msra.mxu1 %v6180_v7  ;;  %v6222_v6 = vld [vmem:[%s8185_s10 + $0x2b0] ss:$8 sps:$4 sm:$0xff]   ;;  %v6227_v7 = vld [vmem:[%s8185_s10 + $0x224] ss:$8 sps:$4 sm:$0xff]  }
 0xd14   : > { %2104 = vmatprep.subr.bf16.mxu0 %v6185_v8  ;;  %2266 = vmatprep.subr.bf16.mxu1 %v6188_v9  ;;  %v6230_v8 = vld [vmem:[%s8185_s10 + $0x2a4] ss:$8 sps:$4 sm:$0xff]   ;;  %v6225_v9 = vld [vmem:[%s8185_s10 + $0x220] ss:$8 sps:$4 sm:$0xff]  }
 0xd17   : > { %2105 = vmatpush1.bf16.msra.mxu0 %v6183_v11  ;;  %2267 = vmatpush1.bf16.msra.mxu1 %v6186_v13  ;;  %v6228_v11 = vld [vmem:[%s8185_s10 + $0x2a0] ss:$8 sps:$4 sm:$0xff]   ;;  %v6233_v13 = vld [vmem:[%s8185_s10 + $0x214] ss:$8 sps:$4 sm:$0xff]  }
 0xd18   : > { %2106 = vmatprep.subr.bf16.mxu0 %v6191_v5  ;;  %2268 = vmatprep.subr.bf16.mxu1 %v6194_v1  ;;  %v6236_v5 = vld [vmem:[%s8185_s10 + $0x294] ss:$8 sps:$4 sm:$0xff]   ;;  %v6231_v1 = vld [vmem:[%s8185_s10 + $0x210] ss:$8 sps:$4 sm:$0xff]  }
 0xd1b   : > { %2107 = vmatpush1.bf16.msra.mxu0 %v6189_v24  ;;  %2269 = vmatpush1.bf16.msra.mxu1 %v6192_v21  ;;  %v6242_v24 = vld [vmem:[%s8185_s10 + $0x284] ss:$8 sps:$4 sm:$0xff]   ;;  %v7317_v21 = vadd.s32 8, %v6732_v55 }
 0xd1c   : > { %2411 = vmatprep.subr.bf16.mxu0 %v6197_v27  ;;  %2573 = vmatprep.subr.bf16.mxu1 %v6200_v29  ;;  %v6245_v27 = vld [vmem:[%s8185_s10 + $0x374] ss:$8 sps:$4 sm:$0xff]  }
 0xd1d   : > { %vm2466_vm4 = vcmp.lt.s32.totalorder %v7317_v21, 15  ;;  %v6248_v29 = vld [vmem:[%s8185_s10 + $0x3f4] ss:$8 sps:$4 sm:$0xff]   ;;  %vm2628_vm15 = vcmp.lt.s32.totalorder %v7317_v21, 14  ;;  %vm2790_vm0 = vcmp.lt.s32.totalorder %v7317_v21, 13 }
 0xd1e   : > { %5033 = vmatmul.mubr.msk.bf16.vlgmr.msra.gmra.mxu0 %vm7217_vm1, %v5032_v42  ;;  %5068 = vmatmul.mubr.msk.bf16.vlgmr.msra.gmra.mxu1 %vm7222_vm2, %v5067_v45  ;;  %vm7333_vm6 = vmpackc.low %vm2466_vm4, %vm6517_vm9  ;;  %v6252_v42 = vld [vmem:[%s8185_s10 + $0x3e0] ss:$8 sps:$4 sm:$0xff]  }
 0xd1f   : > { %2412 = vmatpush1.bf16.msra.mxu0 %v6195_v39  ;;  %2574 = vmatpush1.bf16.msra.mxu1 %v6198_v40  ;;  %v6254_v39 = vld [vmem:[%s8185_s10 + $0x3e4] ss:$8 sps:$4 sm:$0xff]   ;;  %v6249_v40 = vld [vmem:[%s8185_s10 + $0x360] ss:$8 sps:$4 sm:$0xff]   ;;  %vm7443_vm4 = vmpackc.low %vm2628_vm15, %vm6517_vm9  ;;  %vm2947_vm15 = vcmp.lt.s32.totalorder %v7317_v21, 12 }
 0xd20   : > { %2413 = vmatprep.subr.bf16.mxu0 %v6203_v46  ;;  %2575 = vmatprep.subr.bf16.mxu1 %v6206_v50  ;;  %v6261_v45 = vld [vmem:[%s8185_s10 + $0x340] ss:$8 sps:$4 sm:$0xff]   ;;  %v6269_v50 = vld [vmem:[%s8185_s10 + $0x334] ss:$8 sps:$4 sm:$0xff]   ;;  %vm7448_vm12 = vmpackc.low %vm2790_vm0, %vm6517_vm9 }
 0xd21   : > { %2443 = vmatprep.mubr.bf16.mxu0 %v6512_v28  ;;  %2605 = vmatprep.mubr.bf16.mxu1 %v6512_v28  ;;  %v6264_v46 = vld [vmem:[%s8185_s10 + $0x3c0] ss:$8 sps:$4 sm:$0xff]   ;;  %vm7510_vm0 = vmpackc.low %vm2947_vm15, %vm6517_vm9  ;;  %v6316_v21 = vld [vmem:[%s8187_s12 + $0xf8] sm:$0xff]  }
 0xd23   : > { %2414 = vmatpush1.bf16.msra.mxu0 %v6201_v51  ;;  %2576 = vmatpush1.bf16.msra.mxu1 %v6204_v56  ;;  %v6272_v51 = vld [vmem:[%s8185_s10 + $0x3b4] ss:$8 sps:$4 sm:$0xff]   ;;  %v6267_v56 = vld [vmem:[%s8185_s10 + $0x330] ss:$8 sps:$4 sm:$0xff]  }
 0xd24   : > { %2415 = vmatprep.subr.bf16.mxu0 %v6209_v57  ;;  %2577 = vmatprep.subr.bf16.mxu1 %v6212_v59  ;;  %v6270_v57 = vld [vmem:[%s8185_s10 + $0x3b0] ss:$8 sps:$4 sm:$0xff]   ;;  %v6275_v59 = vld [vmem:[%s8185_s10 + $0x324] ss:$8 sps:$4 sm:$0xff]  }
 0xd27   : > { %2416 = vmatpush1.bf16.msra.mxu0 %v6207_v60  ;;  %2578 = vmatpush1.bf16.msra.mxu1 %v6210_v61  ;;  %v6278_v60 = vld [vmem:[%s8185_s10 + $0x3a4] ss:$8 sps:$4 sm:$0xff]   ;;  %v6273_v61 = vld [vmem:[%s8185_s10 + $0x320] ss:$8 sps:$4 sm:$0xff]  }
 0xd28   : > { %2417 = vmatprep.subr.bf16.mxu0 %v6215_v62  ;;  %2579 = vmatprep.subr.bf16.mxu1 %v6218_v63  ;;  %v6276_v62 = vld [vmem:[%s8185_s10 + $0x3a0] ss:$8 sps:$4 sm:$0xff]   ;;  %v6281_v63 = vld [vmem:[%s8185_s10 + $0x314] ss:$8 sps:$4 sm:$0xff]  }
 0xd2b   : > { %2418 = vmatpush1.bf16.msra.mxu0 %v6213_v0  ;;  %2580 = vmatpush1.bf16.msra.mxu1 %v6216_v19  ;;  %v6284_v0 = vld [vmem:[%s8185_s10 + $0x394] ss:$8 sps:$4 sm:$0xff]   ;;  %v6279_v19 = vld [vmem:[%s8185_s10 + $0x310] ss:$8 sps:$4 sm:$0xff]  }
 0xd2c   : > { %2419 = vmatprep.subr.bf16.mxu0 %v6221_v3  ;;  %2581 = vmatprep.subr.bf16.mxu1 %v6224_v12  ;;  %v6282_v3 = vld [vmem:[%s8185_s10 + $0x390] ss:$8 sps:$4 sm:$0xff]   ;;  %v6287_v12 = vld [vmem:[%s8185_s10 + $0x304] ss:$8 sps:$4 sm:$0xff]  }
 0xd2f   : > { %2420 = vmatpush1.bf16.msra.mxu0 %v6219_v4  ;;  %2582 = vmatpush1.bf16.msra.mxu1 %v6222_v6  ;;  %v6290_v4 = vld [vmem:[%s8185_s10 + $0x384] ss:$8 sps:$4 sm:$0xff]   ;;  %v6285_v6 = vld [vmem:[%s8185_s10 + $0x300] ss:$8 sps:$4 sm:$0xff]  }
 0xd30   : > { %2421 = vmatprep.subr.bf16.mxu0 %v6227_v7  ;;  %2583 = vmatprep.subr.bf16.mxu1 %v6230_v8  ;;  %v6288_v7 = vld [vmem:[%s8185_s10 + $0x380] ss:$8 sps:$4 sm:$0xff]   ;;  %v6293_v8 = vld [vmem:[%s8185_s10 + $0x474] ss:$8 sps:$4 sm:$0xff]  }
 0xd33   : > { %2422 = vmatpush1.bf16.msra.mxu0 %v6225_v9  ;;  %2584 = vmatpush1.bf16.msra.mxu1 %v6228_v11  ;;  %v6447_v9 = vld [vmem:[%s8187_s12 + $0x468] sm:$0xff]  }
 0xd34   : > { %2423 = vmatprep.subr.bf16.mxu0 %v6233_v13  ;;  %2585 = vmatprep.subr.bf16.mxu1 %v6236_v5  ;;  %v6291_v13 = vld [vmem:[%s8185_s10 + $0x470] ss:$8 sps:$4 sm:$0xff]   ;;  %v6296_v5 = vld [vmem:[%s8185_s10 + $0x464] ss:$8 sps:$4 sm:$0xff]  }
 0xd35   : > { %v6448_v11 = vld [vmem:[%s8187_s12 + $0x428] sm:$0xff]  }
 0xd37   : > { %2424 = vmatpush1.bf16.msra.mxu0 %v6231_v1  ;;  %2586 = vmatpush1.bf16.msra.mxu1 %v6234_v22  ;;  %v6294_v1 = vld [vmem:[%s8185_s10 + $0x460] ss:$8 sps:$4 sm:$0xff]  }
 0xd38   : > { %2425 = vmatprep.subr.bf16.mxu0 %v6239_v14  ;;  %2587 = vmatprep.subr.bf16.mxu1 %v6242_v24  ;;  %v6306_v22 = vld [vmem:[%s8185_s10 + $0x420] ss:$8 sps:$4 sm:$0xff]   ;;  %v6311_v14 = vld [vmem:[%s8185_s10 + $0x414] ss:$8 sps:$4 sm:$0xff]   ;;  %v6309_v24 = vld [vmem:[%s8185_s10 + $0x410] ss:$8 sps:$4 sm:$0xff]  }
 0xd3b   : > { %2426 = vmatpush1.bf16.msra.mxu0 %v6237_v23  ;;  %2588 = vmatpush1.bf16.msra.mxu1 %v6240_v26  ;;  %v6314_v23 = vld [vmem:[%s8185_s10 + $0x404] ss:$8 sps:$4 sm:$0xff]   ;;  %v6312_v26 = vld [vmem:[%s8185_s10 + $0x400] ss:$8 sps:$4 sm:$0xff]  }
 0xd3c   : > { %2735 = vmatprep.subr.bf16.mxu0 %v6245_v27  ;;  %2897 = vmatprep.subr.bf16.mxu1 %v6248_v29  ;;  %v6315_v29 = vld [vmem:[%s8187_s12 + $0x78] sm:$0xff]  }
 0xd3e   : > { %2444 = vmatmul.mubr.bf16.vlgmr.msra.gmra.mxu0 %v2313_v2  ;;  %5135 = vmatmul.mubr.msk.bf16.vlgmr.msra.gmra.mxu1 %vm7333_vm6, %v5134_v47  ;;  %v6255_v2 = vld [vmem:[%s8185_s10 + $0x350] ss:$8 sps:$4 sm:$0xff]   ;;  %v6266_v47 = vld [vmem:[%s8185_s10 + $0x3c4] ss:$8 sps:$4 sm:$0xff]  }
 0xd3f   : > { %2736 = vmatpush1.bf16.msra.mxu0 %v6243_v33  ;;  %2898 = vmatpush1.bf16.msra.mxu1 %v6246_v34  ;;  %v6317_v33 = vld [vmem:[%s8187_s12 + $0x38] sm:$0xff]  }
 0xd40   : > { %2737 = vmatprep.subr.bf16.mxu0 %v6251_v36  ;;  %2899 = vmatprep.subr.bf16.mxu1 %v6254_v39  ;;  %v6318_v34 = vld [vmem:[%s8187_s12 + $0xb8] sm:$0xff]   ;;  %v6322_v36 = vld [vmem:[%s8187_s12 + $0xb0] sm:$0xff]   ;;  %v6323_v39 = vld [vmem:[%s8187_s12 + $0x68] sm:$0xff]  }
 0xd41   : > { %2767 = vmatprep.mubr.bf16.mxu0 %v6512_v28  ;;  %2929 = vmatprep.mubr.bf16.mxu1 %v6512_v28 }
 0xd43   : > { %2738 = vmatpush1.bf16.msra.mxu0 %v6249_v40  ;;  %2900 = vmatpush1.bf16.msra.mxu1 %v6252_v42  ;;  %v6324_v40 = vld [vmem:[%s8187_s12 + $0xe8] sm:$0xff]  }
 0xd44   : > { %2739 = vmatprep.subr.bf16.mxu0 %v6257_v16  ;;  %2901 = vmatprep.subr.bf16.mxu1 %v6260_v18  ;;  %v6325_v42 = vld [vmem:[%s8187_s12 + $0x28] sm:$0xff]   ;;  %v6327_v18 = vld [vmem:[%s8187_s12 + $0x60] sm:$0xff]  }
 0xd45   : > { %v6326_v16 = vld [vmem:[%s8187_s12 + $0xa8] sm:$0xff]  }
 0xd47   : > { %2740 = vmatpush1.bf16.msra.mxu0 %v6255_v2  ;;  %2902 = vmatpush1.bf16.msra.mxu1 %v6258_v41  ;;  %v6328_v2 = vld [vmem:[%s8187_s12 + $0xe0] sm:$0xff]  }
 0xd48   : > { %2741 = vmatprep.subr.bf16.mxu0 %v6263_v43  ;;  %2903 = vmatprep.subr.bf16.mxu1 %v6266_v47  ;;  %v6329_v41 = vld [vmem:[%s8187_s12 + $0x20] sm:$0xff]   ;;  %v6331_v47 = vld [vmem:[%s8187_s12 + $0x58] sm:$0xff]  }
 0xd49   : > { %v6330_v43 = vld [vmem:[%s8187_s12 + $0xa0] sm:$0xff]  }
 0xd4b   : > { %2742 = vmatpush1.bf16.msra.mxu0 %v6261_v45  ;;  %2904 = vmatpush1.bf16.msra.mxu1 %v6264_v46  ;;  %v6332_v45 = vld [vmem:[%s8187_s12 + $0xd8] sm:$0xff]  }
 0xd4c   : > { %2743 = vmatprep.subr.bf16.mxu0 %v6269_v50  ;;  %2905 = vmatprep.subr.bf16.mxu1 %v6272_v51  ;;  %v6333_v46 = vld [vmem:[%s8187_s12 + $0x18] sm:$0xff]   ;;  %v6335_v51 = vld [vmem:[%s8187_s12 + $0x50] sm:$0xff]  }
 0xd4d   : > { %v6334_v50 = vld [vmem:[%s8187_s12 + $0x98] sm:$0xff]  }
 0xd4f   : > { %2744 = vmatpush1.bf16.msra.mxu0 %v6267_v56  ;;  %2906 = vmatpush1.bf16.msra.mxu1 %v6270_v57  ;;  %v6336_v56 = vld [vmem:[%s8187_s12 + $0xd0] sm:$0xff]  }
 0xd50   : > { %2745 = vmatprep.subr.bf16.mxu0 %v6275_v59  ;;  %2907 = vmatprep.subr.bf16.mxu1 %v6278_v60  ;;  %v6337_v57 = vld [vmem:[%s8187_s12 + $0x10] sm:$0xff]   ;;  %v6339_v60 = vld [vmem:[%s8187_s12 + $0x48] sm:$0xff]  }
 0xd51   : > { %v6338_v59 = vld [vmem:[%s8187_s12 + $0x90] sm:$0xff]  }
 0xd53   : > { %2746 = vmatpush1.bf16.msra.mxu0 %v6273_v61  ;;  %2908 = vmatpush1.bf16.msra.mxu1 %v6276_v62  ;;  %v6340_v61 = vld [vmem:[%s8187_s12 + $0xc8] sm:$0xff]  }
 0xd54   : > { %2747 = vmatprep.subr.bf16.mxu0 %v6281_v63  ;;  %2909 = vmatprep.subr.bf16.mxu1 %v6284_v0  ;;  %v6341_v62 = vld [vmem:[%s8187_s12 + $0x8] sm:$0xff]   ;;  %v6343_v0 = vld [vmem:[%s8187_s12 + $0x40] sm:$0xff]  }
 0xd55   : > { %v6342_v63 = vld [vmem:[%s8187_s12 + $0x88] sm:$0xff]  }
 0xd57   : > { %2748 = vmatpush1.bf16.msra.mxu0 %v6279_v19  ;;  %2910 = vmatpush1.bf16.msra.mxu1 %v6282_v3  ;;  %v6344_v19 = vld [vmem:[%s8187_s12 + $0xc0] sm:$0xff]  }
 0xd58   : > { %2749 = vmatprep.subr.bf16.mxu0 %v6287_v12  ;;  %2911 = vmatprep.subr.bf16.mxu1 %v6290_v4  ;;  %v6345_v3 = vld [vmem:[%s8187_s12] sm:$0xff]   ;;  %v6347_v4 = vld [vmem:[%s8187_s12 + $0x178] sm:$0xff]  }
 0xd59   : > { %v6346_v12 = vld [vmem:[%s8187_s12 + $0x80] sm:$0xff]  }
 0xd5b   : > { %2750 = vmatpush1.bf16.msra.mxu0 %v6285_v6  ;;  %2912 = vmatpush1.bf16.msra.mxu1 %v6288_v7  ;;  %v6348_v6 = vld [vmem:[%s8187_s12 + $0x1f8] sm:$0xff]  }
 0xd5c   : > { %3054 = vmatprep.subr.bf16.mxu0 %v6293_v8  ;;  %5746 = vmatprep.subr.bf16.mxu1 %v6315_v29 }
 0xd5e   : > { %5170 = vmatmul.mubr.msk.bf16.vlgmr.msra.gmra.mxu0 %vm7443_vm4, %v5169_v20  ;;  %5205 = vmatmul.mubr.msk.bf16.vlgmr.msra.gmra.mxu1 %vm7448_vm12, %v5204_v54  ;;  %v6305_v20 = vld [vmem:[%s8185_s10 + $0x434] ss:$8 sps:$4 sm:$0xff]   ;;  %v6308_v54 = vld [vmem:[%s8185_s10 + $0x424] ss:$8 sps:$4 sm:$0xff]  }
 0xd5f   : > { %3055 = vmatpush1.bf16.msra.mxu0 %v6291_v13  ;;  %3086 = vmatprep.mubr.bf16.mxu0 %v6512_v28  ;;  %v6300_v28 = vld [vmem:[%s8185_s10 + $0x440] ss:$8 sps:$4 sm:$0xff]  }
 0xd60   : > { %3056 = vmatprep.subr.bf16.mxu0 %v6296_v5  ;;  %5747 = vmatpush3.bf16.msra.mxu1 %v6317_v33 }
 0xd61   : > { %5748 = vmatprep.subr.bf16.mxu1 %v6319_v31 }
 0xd63   : > { %3057 = vmatpush1.bf16.msra.mxu0 %v6294_v1 }
 0xd64   : > { %3058 = vmatprep.subr.bf16.mxu0 %v6299_v44 }
 0xd67   : > { %3059 = vmatpush1.bf16.msra.mxu0 %v6297_v48 }
 0xd68   : > { %3060 = vmatprep.subr.bf16.mxu0 %v6302_v49 }
 0xd6b   : > { %3061 = vmatpush1.bf16.msra.mxu0 %v6300_v28 }
 0xd6c   : > { %3062 = vmatprep.subr.bf16.mxu0 %v6305_v20 }
 0xd6f   : > { %3063 = vmatpush1.bf16.msra.mxu0 %v6303_v52 }
 0xd70   : > { %3064 = vmatprep.subr.bf16.mxu0 %v6308_v54 }
 0xd73   : > { %3065 = vmatpush1.bf16.msra.mxu0 %v6306_v22 }
 0xd74   : > { %3066 = vmatprep.subr.bf16.mxu0 %v6311_v14  ;;  %v1640_v14 = vld [vmem:[%s8186_s11] sm:$0x3] }
 0xd75   : > { %v1645_v29 = vrot.slane %v1640_v14, %v620_v10 }
 0xd77   : > { %3067 = vmatpush1.bf16.msra.mxu0 %v6309_v24 }
 0xd78   : > { %3068 = vmatprep.subr.bf16.mxu0 %v6314_v23 }
 0xd7b   : > { %3069 = vmatpush1.bf16.msra.mxu0 %v6312_v26 }
 0xd7c   : > { %5768 = vmatprep.subr.bf16.mxu0 %v6316_v21  ;;  %v1649_v21 = vrot.slane %v1640_v14, %v624_v58 }
 0xd7e   : > { %5240 = vmatmul.mubr.msk.bf16.vlgmr.msra.gmra.mxu0 %vm7510_vm0, %v5239_v53  ;;  %v6321_v53 = vld [vmem:[%s8187_s12 + $0x30] sm:$0xff]  }
 0xd7f   : > { %5769 = vmatpush3.bf16.msra.mxu0 %v6318_v34  ;;  %5749 = vmatpush3.bf16.msra.mxu1 %v6321_v53 }
 0xd80   : > { %5770 = vmatprep.subr.bf16.mxu0 %v6320_v32  ;;  %5750 = vmatprep.subr.bf16.mxu1 %v6323_v39 }
 0xd83   : > { %5771 = vmatpush3.bf16.msra.mxu0 %v6322_v36  ;;  %5751 = vmatpush3.bf16.msra.mxu1 %v6325_v42 }
 0xd84   : > { %5772 = vmatprep.subr.bf16.mxu0 %v6324_v40  ;;  %5752 = vmatprep.subr.bf16.mxu1 %v6327_v18 }
 0xd87   : > { %5773 = vmatpush3.bf16.msra.mxu0 %v6326_v16  ;;  %5753 = vmatpush3.bf16.msra.mxu1 %v6329_v41 }
 0xd88   : > { %5774 = vmatprep.subr.bf16.mxu0 %v6328_v2  ;;  %5754 = vmatprep.subr.bf16.mxu1 %v6331_v47 }
 0xd8b   : > { %5775 = vmatpush3.bf16.msra.mxu0 %v6330_v43  ;;  %5755 = vmatpush3.bf16.msra.mxu1 %v6333_v46 }
 0xd8c   : > { %5776 = vmatprep.subr.bf16.mxu0 %v6332_v45  ;;  %5756 = vmatprep.subr.bf16.mxu1 %v6335_v51 }
 0xd8f   : > { %5777 = vmatpush3.bf16.msra.mxu0 %v6334_v50  ;;  %5757 = vmatpush3.bf16.msra.mxu1 %v6337_v57 }
 0xd90   : > { %5778 = vmatprep.subr.bf16.mxu0 %v6336_v56  ;;  %5758 = vmatprep.subr.bf16.mxu1 %v6339_v60 }
 0xd93   : > { %5779 = vmatpush3.bf16.msra.mxu0 %v6338_v59  ;;  %5759 = vmatpush3.bf16.msra.mxu1 %v6341_v62 }
 0xd94   : > { %5780 = vmatprep.subr.bf16.mxu0 %v6340_v61  ;;  %5760 = vmatprep.subr.bf16.mxu1 %v6343_v0 }
 0xd97   : > { %5781 = vmatpush3.bf16.msra.mxu0 %v6342_v63  ;;  %5761 = vmatpush3.bf16.msra.mxu1 %v6345_v3 }
 0xd98   : > { %5782 = vmatprep.subr.bf16.mxu0 %v6344_v19  ;;  %5790 = vmatprep.subr.bf16.mxu1 %v6347_v4 }
 0xd9b   : > { %5783 = vmatpush3.bf16.msra.mxu0 %v6346_v12 }
 0xd9c   : > { %5812 = vmatprep.subr.bf16.mxu0 %v6348_v6 }
 0xdbe   : > { %v1802_v7 = vpop.f32.mrf.mxu0  ;;  %v1964_v13 = vpop.f32.mrf.mxu1 }
 0xdbf   : > { %v1811_v31 = vadd.f32 %v1802_v7, %v1645_v29 }
 0xdc0   : > { %v1804_v8 = vpop.f32.mrf.mxu0  ;;  %v1966_v1 = vpop.f32.mrf.mxu1 }
 0xdc1   : > { %v1812_v53 = vadd.f32 %v1804_v8, %v1649_v21  ;;  %v1973_v39 = vadd.f32 %v1964_v13, %v1811_v31 }
 0xdc2   : > { %v1806_v5 = vpop.f32.mrf.mxu0  ;;  %v1968_v48 = vpop.f32.mrf.mxu1 }
 0xdc3   : > { %v1813_v40 = vadd.f32 %v1806_v5, %v1645_v29  ;;  %v1974_v16 = vadd.f32 %v1966_v1, %v1812_v53 }
 0xdc4   : > { %v1808_v44 = vpop.f32.mrf.mxu0  ;;  %v1970_v28 = vpop.f32.mrf.mxu1 }
 0xdc5   : > { %v1814_v18 = vadd.f32 %v1808_v44, %v1649_v21  ;;  %v1975_v43 = vadd.f32 %v1968_v48, %v1813_v40 }
 0xdc7   : > { %v1976_v46 = vadd.f32 %v1970_v28, %v1814_v18 }
 0xdde   : > { %v2126_v49 = vpop.f32.mrf.mxu0  ;;  %v2288_v52 = vpop.f32.mrf.mxu1 }
 0xddf   : > { %v2135_v2 = vadd.f32 %v2126_v49, %v1973_v39 }
 0xde0   : > { %v2128_v20 = vpop.f32.mrf.mxu0  ;;  %v2290_v22 = vpop.f32.mrf.mxu1 }
 0xde1   : > { %v2136_v47 = vadd.f32 %v2128_v20, %v1974_v16  ;;  %v2297_v50 = vadd.f32 %v2288_v52, %v2135_v2 }
 0xde2   : > { %v2130_v54 = vpop.f32.mrf.mxu0  ;;  %v2292_v23 = vpop.f32.mrf.mxu1 }
 0xde3   : > { %v2137_v58 = vadd.f32 %v2130_v54, %v1975_v43  ;;  %v2298_v51 = vadd.f32 %v2290_v22, %v2136_v47 }
 0xde4   : > { %v2132_v24 = vpop.f32.mrf.mxu0  ;;  %v2294_v33 = vpop.f32.mrf.mxu1 }
 0xde5   : > { %v2138_v56 = vadd.f32 %v2132_v24, %v1976_v46  ;;  %v2299_v61 = vadd.f32 %v2292_v23, %v2137_v58 }
 0xde7   : > { %v2300_v0 = vadd.f32 %v2294_v33, %v2138_v56 }
 0xdfe   : > { %v2445_v26 = vpop.f32.mrf.mxu0  ;;  %v2607_v32 = vpop.f32.mrf.mxu1 }
 0xdff   : > { %v2454_v57 = vadd.f32 %v2445_v26, %v2297_v50 }
 0xe00   : > { %v2447_v34 = vpop.f32.mrf.mxu0  ;;  %v2609_v42 = vpop.f32.mrf.mxu1 }
 0xe01   : > { %v2455_v62 = vadd.f32 %v2447_v34, %v2298_v51  ;;  %v2616_v19 = vadd.f32 %v2607_v32, %v2454_v57 }
 0xe02   : > { %v2449_v36 = vpop.f32.mrf.mxu0  ;;  %v2611_v45 = vpop.f32.mrf.mxu1 }
 0xe03   : > { %v2456_v3 = vadd.f32 %v2449_v36, %v2299_v61  ;;  %v2617_v4 = vadd.f32 %v2609_v42, %v2455_v62 }
 0xe04   : > { %v2451_v41 = vpop.f32.mrf.mxu0  ;;  %v2613_v59 = vpop.f32.mrf.mxu1 }
 0xe05   : > { %v2457_v6 = vadd.f32 %v2451_v41, %v2300_v0  ;;  %v2618_v13 = vadd.f32 %v2611_v45, %v2456_v3  ;;  %v6350_v3 = vld [vmem:[%s8187_s12 + $0x1b8] sm:$0xff]  }
 0xe07   : > { %v2619_v44 = vadd.f32 %v2613_v59, %v2457_v6 }
 0xe1e   : > { %v2769_v10 = vpop.f32.mrf.mxu0  ;;  %v2931_v63 = vpop.f32.mrf.mxu1 }
 0xe1f   : > { %v2778_v7 = vadd.f32 %v2769_v10, %v2616_v19  ;;  %v6349_v19 = vld [vmem:[%s8187_s12 + $0x138] sm:$0xff]  }
 0xe20   : > { %v2771_v60 = vpop.f32.mrf.mxu0  ;;  %v2933_v8 = vpop.f32.mrf.mxu1 }
 0xe21   : > { %v2779_v5 = vadd.f32 %v2771_v60, %v2617_v4  ;;  %v2940_v48 = vadd.f32 %v2931_v63, %v2778_v7 }
 0xe22   : > { %v2773_v12 = vpop.f32.mrf.mxu0  ;;  %v2935_v28 = vpop.f32.mrf.mxu1 }
 0xe23   : > { %v2780_v49 = vadd.f32 %v2773_v12, %v2618_v13  ;;  %v2941_v52 = vadd.f32 %v2933_v8, %v2779_v5  ;;  %v6351_v5 = vld [vmem:[%s8187_s12 + $0x170] sm:$0xff]  }
 0xe24   : > { %v2775_v1 = vpop.f32.mrf.mxu0  ;;  %v2937_v26 = vpop.f32.mrf.mxu1 }
 0xe25   : > { %v2781_v54 = vadd.f32 %v2775_v1, %v2619_v44  ;;  %v2942_v24 = vadd.f32 %v2935_v28, %v2780_v49  ;;  %v6352_v1 = vld [vmem:[%s8187_s12 + $0x1f0] sm:$0xff]  }
 0xe27   : > { %v2943_v33 = vadd.f32 %v2937_v26, %v2781_v54 }
 0xe3e   : > { %v3088_v20 = vpop.f32.mrf.mxu0 }
 0xe3f   : > { %v3097_v22 = vadd.f32 %v3088_v20, %v2940_v48 }
 0xe40   : > { %v3090_v14 = vpop.f32.mrf.mxu0 }
 0xe41   : > { %v3098_v23 = vadd.f32 %v3090_v14, %v2941_v52  ;;  %v7628_v29 = vmax.f32 %v3097_v22, 0.0  ;;  %v6355_v14 = vld [vmem:[%s8187_s12 + $0x168] sm:$0xff]  }
 0xe42   : > { %v3092_v21 = vpop.f32.mrf.mxu0 }
 0xe43   : > { %v3099_v34 = vadd.f32 %v3092_v21, %v2942_v24  ;;  %v7630_v31 = vmax.f32 %v3098_v23, 0.0  ;;  %v3113_v39 = vrot.slane %v7628_v29, 4  ;;  %v3298_v16 = vrot.slane %v7628_v29, 5  ;;  %v6356_v24 = vld [vmem:[%s8187_s12 + $0x1e8] sm:$0xff]  }
 0xe44   : > { %v3094_v32 = vpop.f32.mrf.mxu0  ;;  %v4034_v44 = vrot.slane %v7628_v29, 1 }
 0xe45   : > { %v7632_v53 = vmax.f32 %v3099_v34, 0.0  ;;  %v3100_v36 = vadd.f32 %v3094_v32, %v2943_v33  ;;  %v3114_v2 = vrot.slane %v7630_v31, 4  ;;  %v3299_v41 = vrot.slane %v7630_v31, 5 }
 0xe46   : > { %v3485_v43 = vrot.slane %v7630_v31, 6  ;;  %v3671_v50 = vrot.slane %v7630_v31, 7  ;;  %v4221_v54 = vrot.slane %v7630_v31, 2  ;;  %v4407_v26 = vrot.slane %v7630_v31, 3 }
 0xe47   : > { %v7635_v40 = vmax.f32 %v3100_v36, 0.0  ;;  %v3115_v42 = vrot.slane %v7632_v53, 4  ;;  %v3300_v18 = vrot.slane %v7632_v53, 5  ;;  %v3860_v47 = vpack.c.bf16 %v7632_v53, %v7628_v29 }
 0xe48   : > { %v4036_v4 = vrot.slane %v7632_v53, 1  ;;  %v4222_v21 = vrot.slane %v7632_v53, 2  ;;  %v4220_v32 = vrot.slane %v7628_v29, 2  ;;  %v4406_v36 = vrot.slane %v7628_v29, 3 }
 0xe49   : > { %v3116_v45 = vrot.slane %v7635_v40, 4  ;;  %v3301_v10 = vrot.slane %v7635_v40, 5  ;;  %v7649_v46 = vsel %vm1656_vm3, %v3113_v39, %v3115_v42  ;;  %v7654_v58 = vsel %vm1656_vm3, %v3115_v42, %v3113_v39 }
 0xe4a   : > { %v3302_v51 = vsel %vm1817_vm5, %v3298_v16, %v3300_v18  ;;  %v3304_v56 = vsel %vm1817_vm5, %v3300_v18, %v3298_v16  ;;  %v3487_v57 = vrot.slane %v7635_v40, 6  ;;  %v5262_v6 = vpack.c.bf16 %v7649_v46, %v7654_v58 }
 0xe4b   : > { %v7663_v59 = vsel %vm1656_vm3, %v3114_v2, %v3116_v45  ;;  %v7667_v60 = vsel %vm1656_vm3, %v3116_v45, %v3114_v2  ;;  %v3303_v61 = vsel %vm1817_vm5, %v3299_v41, %v3301_v10  ;;  %v3305_v62 = vsel %vm1817_vm5, %v3301_v10, %v3299_v41  ;;  %v6357_v2 = vld [vmem:[%s8187_s12 + $0x128] sm:$0xff]  }
 0xe4c   : > { %v5259_v63 = vpack.c.bf16 %v7663_v59, %v7667_v60  ;;  %v5313_v0 = vpack.c.bf16 %v3303_v61, %v3305_v62  ;;  %v3489_v12 = vsel %vm1979_vm13, %v3485_v43, %v3487_v57  ;;  %v5316_v7 = vpack.c.bf16 %v3302_v51, %v3304_v56  ;;  %v6358_v41 = vld [vmem:[%s8187_s12 + $0x1a8] sm:$0xff]   ;;  %v6359_v51 = vld [vmem:[%s8187_s12 + $0x160] sm:$0xff]  }
 0xe4d   : > { %v3491_v8 = vsel %vm1979_vm13, %v3487_v57, %v3485_v43  ;;  %v3673_v13 = vrot.slane %v7635_v40, 7  ;;  %v4223_v20 = vrot.slane %v7635_v40, 2  ;;  %v4409_v22 = vrot.slane %v7635_v40, 3  ;;  %v6360_v56 = vld [vmem:[%s8187_s12 + $0x1e0] sm:$0xff]  }
 0xe4e   : > { %5260 = vmatprep.mubr.msk.bf16.mxu1 %vm7033_vm10, %v5259_v63  ;;  %5314 = vmatprep.mubr.msk.bf16.mxu0 %vm7063_vm11, %v5313_v0  ;;  %v5367_v48 = vpack.c.bf16 %v3489_v12, %v3491_v8  ;;  %v7727_v23 = vsel %vm2460_vm7, %v4034_v44, %v4036_v4  ;;  %v7735_v33 = vsel %vm2460_vm7, %v4036_v4, %v4034_v44  ;;  %vm8211_vm3 = vcmp.lt.s32.totalorder %v6732_v55, 5  ;;  %v6361_v12 = vld [vmem:[%s8187_s12 + $0x120] sm:$0xff]   ;;  %v6365_v8 = vld [vmem:[%s8187_s12 + $0x118] sm:$0xff]   ;;  %v6369_v44 = vld [vmem:[%s8187_s12 + $0x110] sm:$0xff]  }
 0xe4f   : > { %5263 = vmatmul.mubr.msk.bf16.vlgmr.msra.gmra.mxu1 %vm7033_vm10, %v5262_v6  ;;  %5317 = vmatmul.mubr.msk.bf16.vlgmr.msra.gmra.mxu0 %vm7063_vm11, %v5316_v7  ;;  %v3675_v49 = vsel %vm2141_vm14, %v3671_v50, %v3673_v13  ;;  %v3677_v28 = vsel %vm2141_vm14, %v3673_v13, %v3671_v50  ;;  %v7739_v34 = vsel %vm2622_vm8, %v4221_v54, %v4223_v20  ;;  %vm8212_vm5 = vmmov %vm8211_vm3  ;;  %v4408_v50 = vrot.slane %v7632_v53, 3  ;;  %v6362_v4 = vld [vmem:[%s8187_s12 + $0x1a0] sm:$0xff]   ;;  %v6363_v6 = vld [vmem:[%s8187_s12 + $0x158] sm:$0xff]  }
 0xe50   : > { %5791 = vmatpush3.bf16.msra.mxu1 %v6349_v19  ;;  %5813 = vmatpush3.bf16.msra.mxu0 %v6350_v3  ;;  %v5421_v52 = vpack.c.bf16 %v3675_v49, %v3677_v28  ;;  %v5526_v39 = vpack.c.bf16 %v7735_v33, %v7727_v23  ;;  %v7747_v42 = vsel %vm2622_vm8, %v4223_v20, %v4221_v54  ;;  %vm8213_vm9 = vmmov %vm8211_vm3  ;;  %v6364_v7 = vld [vmem:[%s8187_s12 + $0x1d8] sm:$0xff]   ;;  %v6371_v49 = vld [vmem:[%s8187_s12 + $0x148] sm:$0xff]   ;;  %v3486_v54 = vrot.slane %v7632_v53, 6 }
 0xe51   : > { %5368 = vmatprep.mubr.msk.bf16.mxu1 %vm7217_vm1, %v5367_v48  ;;  %5792 = vmatprep.subr.bf16.mxu1 %v6351_v5  ;;  %v7751_v16 = vsel %vm8211_vm3, %v4407_v26, %v4409_v22  ;;  %v7755_v18 = vsel %vm8212_vm5, %v4409_v22, %v4407_v26  ;;  %v5577_v43 = vpack.c.bf16 %v7747_v42, %v7739_v34  ;;  %vm8214_vm10 = vmmov %vm8211_vm3  ;;  %v6366_v13 = vld [vmem:[%s8187_s12 + $0x198] sm:$0xff]   ;;  %v6367_v5 = vld [vmem:[%s8187_s12 + $0x150] sm:$0xff]   ;;  %v3672_v22 = vrot.slane %v7632_v53, 7 }
 0xe52   : > { %5422 = vmatprep.mubr.msk.bf16.mxu0 %vm7222_vm2, %v5421_v52  ;;  %5814 = vmatprep.subr.bf16.mxu0 %v6352_v1  ;;  %v5631_v45 = vpack.c.bf16 %v7755_v18, %v7751_v16  ;;  %v7769_v10 = vsel %vm2622_vm8, %v4220_v32, %v4222_v21  ;;  %v7780_v57 = vsel %vm2622_vm8, %v4222_v21, %v4220_v32  ;;  %v6368_v1 = vld [vmem:[%s8187_s12 + $0x1d0] sm:$0xff]   ;;  %v6372_v28 = vld [vmem:[%s8187_s12 + $0x1c8] sm:$0xff]   ;;  %v3484_v26 = vrot.slane %v7628_v29, 6  ;;  %v6423_v33 = vld [vmem:[%s8187_s12 + $0x360] sm:$0xff]  }
 0xe53   : > { %v5685_v61 = vpack.c.bf16 %v7667_v60, %v7663_v59  ;;  %v5688_v62 = vpack.c.bf16 %v7654_v58, %v7649_v46  ;;  %v5580_v63 = vpack.c.bf16 %v7780_v57, %v7769_v10  ;;  %v7790_v0 = vsel %vm8213_vm9, %v4406_v36, %v4408_v50  ;;  %v6370_v48 = vld [vmem:[%s8187_s12 + $0x190] sm:$0xff]   ;;  %v6373_v20 = vld [vmem:[%s8187_s12 + $0x108] sm:$0xff]   ;;  %v6424_v34 = vld [vmem:[%s8187_s12 + $0x3e0] sm:$0xff]  }
 0xe54   : > { %5793 = vmatpush3.bf16.msra.mxu1 %v6353_v25  ;;  %5815 = vmatpush3.bf16.msra.mxu0 %v6354_v35  ;;  %v7794_v19 = vsel %vm8214_vm10, %v4408_v50, %v4406_v36  ;;  %v6374_v52 = vld [vmem:[%s8187_s12 + $0x188] sm:$0xff]   ;;  %v6375_v25 = vld [vmem:[%s8187_s12 + $0x140] sm:$0xff]   ;;  %v3670_v21 = vrot.slane %v7628_v29, 7  ;;  %v4037_v32 = vrot.slane %v7635_v40, 1  ;;  %v6379_v36 = vld [vmem:[%s8187_s12 + $0x278] sm:$0xff]   ;;  %v3488_v50 = vsel %vm1979_vm13, %v3484_v26, %v3486_v54 }
 0xe55   : > { %5794 = vmatprep.subr.bf16.mxu1 %v6355_v14  ;;  %5816 = vmatprep.subr.bf16.mxu0 %v6356_v24  ;;  %v5634_v3 = vpack.c.bf16 %v7794_v19, %v7790_v0  ;;  %v6376_v35 = vld [vmem:[%s8187_s12 + $0x1c0] sm:$0xff]   ;;  %v6384_v55 = vld [vmem:[%s8187_s12 + $0x2f0] sm:$0xff]   ;;  %v6420_v53 = vld [vmem:[%s8187_s12 + $0x3e8] sm:$0xff]  }
 0xe56   : > { %v6377_v14 = vld [vmem:[%s8187_s12 + $0x100] sm:$0xff]   ;;  %v6418_v29 = vld [vmem:[%s8187_s12 + $0x3b0] sm:$0xff]   ;;  %v6422_v23 = vld [vmem:[%s8187_s12 + $0x3a8] sm:$0xff]  }
 0xe57   : > { %v6378_v24 = vld [vmem:[%s8187_s12 + $0x180] sm:$0xff]   ;;  %v6427_v16 = vld [vmem:[%s8187_s12 + $0x358] sm:$0xff]   ;;  %v6455_v0 = vld [vmem:[%s8187_s12 + $0x448] sm:$0xff]  }
 0xe58   : > { %5795 = vmatpush3.bf16.msra.mxu1 %v6357_v2  ;;  %5817 = vmatpush3.bf16.msra.mxu0 %v6358_v41  ;;  %v6380_v2 = vld [vmem:[%s8187_s12 + $0x2f8] sm:$0xff]   ;;  %v4035_v41 = vrot.slane %v7630_v31, 1  ;;  %v6426_v42 = vld [vmem:[%s8187_s12 + $0x3a0] sm:$0xff]   ;;  %v6456_v19 = vld [vmem:[%s8187_s12 + $0x408] sm:$0xff]  }
 0xe59   : > { %5796 = vmatprep.subr.bf16.mxu1 %v6359_v51  ;;  %5818 = vmatprep.subr.bf16.mxu0 %v6360_v56  ;;  %v3490_v51 = vsel %vm1979_vm13, %v3486_v54, %v3484_v26  ;;  %v3674_v56 = vsel %vm2141_vm14, %v3670_v21, %v3672_v22  ;;  %v6395_v54 = vld [vmem:[%s8187_s12 + $0x258] sm:$0xff]   ;;  %v6399_v26 = vld [vmem:[%s8187_s12 + $0x250] sm:$0xff]   ;;  %v6449_v10 = vld [vmem:[%s8187_s12 + $0x460] sm:$0xff]  }
 0xe5a   : > { %v6428_v18 = vld [vmem:[%s8187_s12 + $0x3d8] sm:$0xff]   ;;  %v6450_v59 = vld [vmem:[%s8187_s12 + $0x420] sm:$0xff]  }
 0xe5b   : > { %v6451_v60 = vld [vmem:[%s8187_s12 + $0x458] sm:$0xff]  }
 0xe5c   : > { %5797 = vmatpush3.bf16.msra.mxu1 %v6361_v12  ;;  %5819 = vmatpush3.bf16.msra.mxu0 %v6362_v4  ;;  %v3676_v12 = vsel %vm2141_vm14, %v3672_v22, %v3670_v21  ;;  %v6381_v4 = vld [vmem:[%s8187_s12 + $0x238] sm:$0xff]   ;;  %v6400_v21 = vld [vmem:[%s8187_s12 + $0x2d0] sm:$0xff]  }
 0xe5d   : > { %5798 = vmatprep.subr.bf16.mxu1 %v6363_v6  ;;  %5820 = vmatprep.subr.bf16.mxu0 %v6364_v7  ;;  %v4039_v6 = vsel %vm2460_vm7, %v4035_v41, %v4037_v32  ;;  %v4041_v7 = vsel %vm2460_vm7, %v4037_v32, %v4035_v41  ;;  %v6396_v22 = vld [vmem:[%s8187_s12 + $0x2d8] sm:$0xff]   ;;  %v6401_v32 = vld [vmem:[%s8187_s12 + $0x210] sm:$0xff]   ;;  %v6404_v41 = vld [vmem:[%s8187_s12 + $0x2c8] sm:$0xff]  }
 0xe5e   : > { %v6452_v57 = vld [vmem:[%s8187_s12 + $0x418] sm:$0xff]  }
 0xe60   : > { %5799 = vmatpush3.bf16.msra.mxu1 %v6365_v8  ;;  %5821 = vmatpush3.bf16.msra.mxu0 %v6366_v13  ;;  %v5370_v8 = vpack.c.bf16 %v3488_v50, %v3490_v51  ;;  %v5424_v13 = vpack.c.bf16 %v3674_v56, %v3676_v12  ;;  %v6405_v50 = vld [vmem:[%s8187_s12 + $0x208] sm:$0xff]   ;;  %v6407_v56 = vld [vmem:[%s8187_s12 + $0x240] sm:$0xff]  }
 0xe61   : > { %5800 = vmatprep.subr.bf16.mxu1 %v6367_v5  ;;  %5822 = vmatprep.subr.bf16.mxu0 %v6368_v1  ;;  %v6382_v5 = vld [vmem:[%s8187_s12 + $0x2b8] sm:$0xff]   ;;  %v3861_v1 = vpack.c.bf16 %v7635_v40, %v7630_v31  ;;  %v6385_v31 = vld [vmem:[%s8187_s12 + $0x230] sm:$0xff]   ;;  %v6406_v51 = vld [vmem:[%s8187_s12 + $0x288] sm:$0xff]  }
 0xe62   : > { %v6386_v40 = vld [vmem:[%s8187_s12 + $0x2b0] sm:$0xff]   ;;  %v6408_v12 = vld [vmem:[%s8187_s12 + $0x2c0] sm:$0xff]  }
 0xe64   : > { %5801 = vmatpush3.bf16.msra.mxu1 %v6369_v44  ;;  %5823 = vmatpush3.bf16.msra.mxu0 %v6370_v48  ;;  %v6383_v44 = vld [vmem:[%s8187_s12 + $0x270] sm:$0xff]   ;;  %v5523_v48 = vpack.c.bf16 %v4041_v7, %v4039_v6  ;;  %v6410_v6 = vld [vmem:[%s8187_s12 + $0x280] sm:$0xff]   ;;  %v6411_v7 = vld [vmem:[%s8187_s12 + $0x378] sm:$0xff]  }
 0xe65   : > { %5802 = vmatprep.subr.bf16.mxu1 %v6371_v49  ;;  %5824 = vmatprep.subr.bf16.mxu0 %v6372_v28  ;;  %v6389_v49 = vld [vmem:[%s8187_s12 + $0x228] sm:$0xff]  }
 0xe66   : > { %v6390_v28 = vld [vmem:[%s8187_s12 + $0x2a8] sm:$0xff]  }
 0xe68   : > { %5803 = vmatpush3.bf16.msra.mxu1 %v6373_v20  ;;  %5825 = vmatpush3.bf16.msra.mxu0 %v6374_v52  ;;  %v6391_v20 = vld [vmem:[%s8187_s12 + $0x260] sm:$0xff]  }
 0xe69   : > { %5804 = vmatprep.subr.bf16.mxu1 %v6375_v25  ;;  %5826 = vmatprep.subr.bf16.mxu0 %v6376_v35  ;;  %v6392_v52 = vld [vmem:[%s8187_s12 + $0x2e0] sm:$0xff]  }
 0xe6a   : > { %v6393_v25 = vld [vmem:[%s8187_s12 + $0x220] sm:$0xff]  }
 0xe6b   : > { %v6394_v35 = vld [vmem:[%s8187_s12 + $0x2a0] sm:$0xff]  }
 0xe6c   : > { %5805 = vmatpush3.bf16.msra.mxu1 %v6377_v14  ;;  %5827 = vmatpush3.bf16.msra.mxu0 %v6378_v24  ;;  %v6397_v14 = vld [vmem:[%s8187_s12 + $0x218] sm:$0xff]  }
 0xe6d   : > { %5834 = vmatprep.subr.bf16.mxu1 %v6379_v36  ;;  %5856 = vmatprep.subr.bf16.mxu0 %v6380_v2  ;;  %v6398_v24 = vld [vmem:[%s8187_s12 + $0x298] sm:$0xff]   ;;  %v6402_v36 = vld [vmem:[%s8187_s12 + $0x290] sm:$0xff]   ;;  %v6403_v2 = vld [vmem:[%s8187_s12 + $0x248] sm:$0xff]  }
 0xe6f   : > { %5371 = vmatmul.mubr.msk.bf16.vlgmr.msra.gmra.mxu1 %vm7217_vm1, %v5370_v8  ;;  %5425 = vmatmul.mubr.msk.bf16.vlgmr.msra.gmra.mxu0 %vm7222_vm2, %v5424_v13  ;;  %v6412_v8 = vld [vmem:[%s8187_s12 + $0x3f8] sm:$0xff]  }
 0xe70   : > { %5835 = vmatpush3.bf16.msra.mxu1 %v6381_v4  ;;  %4023 = vmatprep.mubr.bf16.mxu1 %v3861_v1  ;;  %v6409_v4 = vld [vmem:[%s8187_s12 + $0x200] sm:$0xff]   ;;  %v6413_v13 = vld [vmem:[%s8187_s12 + $0x338] sm:$0xff]   ;;  %v6415_v1 = vld [vmem:[%s8187_s12 + $0x370] sm:$0xff]  }
 0xe71   : > { %5857 = vmatpush3.bf16.msra.mxu0 %v6382_v5  ;;  %5524 = vmatprep.mubr.msk.bf16.mxu0 %vm7333_vm6, %v5523_v48  ;;  %v6414_v5 = vld [vmem:[%s8187_s12 + $0x3b8] sm:$0xff]   ;;  %v6431_v48 = vld [vmem:[%s8187_s12 + $0x350] sm:$0xff]  }
 0xe72   : > { %5836 = vmatprep.subr.bf16.mxu1 %v6383_v44  ;;  %5858 = vmatprep.subr.bf16.mxu0 %v6384_v55  ;;  %v6416_v44 = vld [vmem:[%s8187_s12 + $0x3f0] sm:$0xff]  }
 0xe73   : > { %v6417_v55 = vld [vmem:[%s8187_s12 + $0x330] sm:$0xff]  }
 0xe74   : > { %5837 = vmatpush3.bf16.msra.mxu1 %v6385_v31  ;;  %v6432_v31 = vld [vmem:[%s8187_s12 + $0x3d0] sm:$0xff]  }
 0xe75   : > { %5859 = vmatpush3.bf16.msra.mxu0 %v6386_v40  ;;  %5838 = vmatprep.subr.bf16.mxu1 %v6387_v37  ;;  %v6433_v40 = vld [vmem:[%s8187_s12 + $0x310] sm:$0xff]  }
 0xe76   : > { %5860 = vmatprep.subr.bf16.mxu0 %v6388_v38  ;;  %v6434_v37 = vld [vmem:[%s8187_s12 + $0x390] sm:$0xff]   ;;  %v6435_v38 = vld [vmem:[%s8187_s12 + $0x348] sm:$0xff]  }
 0xe78   : > { %5839 = vmatpush3.bf16.msra.mxu1 %v6389_v49  ;;  %v6436_v49 = vld [vmem:[%s8187_s12 + $0x3c8] sm:$0xff]  }
 0xe79   : > { %5861 = vmatpush3.bf16.msra.mxu0 %v6390_v28  ;;  %5840 = vmatprep.subr.bf16.mxu1 %v6391_v20  ;;  %v6437_v28 = vld [vmem:[%s8187_s12 + $0x308] sm:$0xff]  }
 0xe7a   : > { %5862 = vmatprep.subr.bf16.mxu0 %v6392_v52  ;;  %v6438_v20 = vld [vmem:[%s8187_s12 + $0x388] sm:$0xff]   ;;  %v6439_v52 = vld [vmem:[%s8187_s12 + $0x340] sm:$0xff]  }
 0xe7c   : > { %5841 = vmatpush3.bf16.msra.mxu1 %v6393_v25  ;;  %v6440_v25 = vld [vmem:[%s8187_s12 + $0x3c0] sm:$0xff]  }
 0xe7d   : > { %5863 = vmatpush3.bf16.msra.mxu0 %v6394_v35  ;;  %5842 = vmatprep.subr.bf16.mxu1 %v6395_v54  ;;  %v6441_v35 = vld [vmem:[%s8187_s12 + $0x300] sm:$0xff]  }
 0xe7e   : > { %5864 = vmatprep.subr.bf16.mxu0 %v6396_v22  ;;  %v6442_v54 = vld [vmem:[%s8187_s12 + $0x380] sm:$0xff]   ;;  %v6443_v22 = vld [vmem:[%s8187_s12 + $0x478] sm:$0xff]  }
 0xe80   : > { %5843 = vmatpush3.bf16.msra.mxu1 %v6397_v14  ;;  %v6444_v14 = vld [vmem:[%s8187_s12 + $0x438] sm:$0xff]  }
 0xe81   : > { %5865 = vmatpush3.bf16.msra.mxu0 %v6398_v24  ;;  %5844 = vmatprep.subr.bf16.mxu1 %v6399_v26  ;;  %v6445_v24 = vld [vmem:[%s8187_s12 + $0x470] sm:$0xff]  }
 0xe82   : > { %5866 = vmatprep.subr.bf16.mxu0 %v6400_v21  ;;  %v6446_v26 = vld [vmem:[%s8187_s12 + $0x430] sm:$0xff]   ;;  %v6458_v21 = vld [vmem:[%s8187_s12 + $0x400] sm:$0xff]  }
 0xe84   : > { %5845 = vmatpush3.bf16.msra.mxu1 %v6401_v32 }
 0xe85   : > { %5867 = vmatpush3.bf16.msra.mxu0 %v6402_v36  ;;  %5846 = vmatprep.subr.bf16.mxu1 %v6403_v2 }
 0xe86   : > { %5868 = vmatprep.subr.bf16.mxu0 %v6404_v41 }
 0xe88   : > { %5847 = vmatpush3.bf16.msra.mxu1 %v6405_v50 }
 0xe89   : > { %5869 = vmatpush3.bf16.msra.mxu0 %v6406_v51  ;;  %5848 = vmatprep.subr.bf16.mxu1 %v6407_v56 }
 0xe8a   : > { %5870 = vmatprep.subr.bf16.mxu0 %v6408_v12 }
 0xe8c   : > { %5849 = vmatpush3.bf16.msra.mxu1 %v6409_v4 }
 0xe8d   : > { %5871 = vmatpush3.bf16.msra.mxu0 %v6410_v6  ;;  %5878 = vmatprep.subr.bf16.mxu1 %v6411_v7 }
 0xe8e   : > { %5900 = vmatprep.subr.bf16.mxu0 %v6412_v8 }
 0xe8f   : > { %4024 = vmatmul.mubr.bf16.vlgmr.msra.gmra.mxu1 %v3860_v47  ;;  %v6421_v47 = vld [vmem:[%s8187_s12 + $0x328] sm:$0xff]  }
 0xe90   : > { %5527 = vmatmul.mubr.msk.bf16.vlgmr.msra.gmra.mxu0 %vm7333_vm6, %v5526_v39  ;;  %5879 = vmatpush3.bf16.msra.mxu1 %v6413_v13  ;;  %v6425_v39 = vld [vmem:[%s8187_s12 + $0x320] sm:$0xff]  }
 0xe91   : > { %5578 = vmatprep.mubr.msk.bf16.mxu1 %vm7443_vm4, %v5577_v43  ;;  %5901 = vmatpush3.bf16.msra.mxu0 %v6414_v5  ;;  %v6429_v43 = vld [vmem:[%s8187_s12 + $0x318] sm:$0xff]  }
 0xe92   : > { %5632 = vmatprep.mubr.msk.bf16.mxu0 %vm7448_vm12, %v5631_v45  ;;  %5880 = vmatprep.subr.bf16.mxu1 %v6415_v1  ;;  %v6430_v45 = vld [vmem:[%s8187_s12 + $0x398] sm:$0xff]  }
 0xe93   : > { %5902 = vmatprep.subr.bf16.mxu0 %v6416_v44 }
 0xe94   : > { %5881 = vmatpush3.bf16.msra.mxu1 %v6417_v55  ;;  %v5241_v55 = vld [vmem:[%s8188_s13] ss:$0 sm:$0xff] }
 0xe95   : > { %5903 = vmatpush3.bf16.msra.mxu0 %v6418_v29  ;;  %5882 = vmatprep.subr.bf16.mxu1 %v6419_v30 }
 0xe96   : > { %5904 = vmatprep.subr.bf16.mxu0 %v6420_v53 }
 0xe98   : > { %5883 = vmatpush3.bf16.msra.mxu1 %v6421_v47 }
 0xe99   : > { %5905 = vmatpush3.bf16.msra.mxu0 %v6422_v23  ;;  %5884 = vmatprep.subr.bf16.mxu1 %v6423_v33 }
 0xe9a   : > { %5906 = vmatprep.subr.bf16.mxu0 %v6424_v34 }
 0xe9c   : > { %5885 = vmatpush3.bf16.msra.mxu1 %v6425_v39 }
 0xe9d   : > { %5907 = vmatpush3.bf16.msra.mxu0 %v6426_v42  ;;  %5886 = vmatprep.subr.bf16.mxu1 %v6427_v16 }
 0xe9e   : > { %5908 = vmatprep.subr.bf16.mxu0 %v6428_v18 }
 0xea0   : > { %5887 = vmatpush3.bf16.msra.mxu1 %v6429_v43 }
 0xea1   : > { %5909 = vmatpush3.bf16.msra.mxu0 %v6430_v45  ;;  %5888 = vmatprep.subr.bf16.mxu1 %v6431_v48 }
 0xea2   : > { %5910 = vmatprep.subr.bf16.mxu0 %v6432_v31 }
 0xea4   : > { %5889 = vmatpush3.bf16.msra.mxu1 %v6433_v40 }
 0xea5   : > { %5911 = vmatpush3.bf16.msra.mxu0 %v6434_v37  ;;  %5890 = vmatprep.subr.bf16.mxu1 %v6435_v38 }
 0xea6   : > { %5912 = vmatprep.subr.bf16.mxu0 %v6436_v49 }
 0xea8   : > { %5891 = vmatpush3.bf16.msra.mxu1 %v6437_v28 }
 0xea9   : > { %5913 = vmatpush3.bf16.msra.mxu0 %v6438_v20  ;;  %5892 = vmatprep.subr.bf16.mxu1 %v6439_v52 }
 0xeaa   : > { %5914 = vmatprep.subr.bf16.mxu0 %v6440_v25 }
 0xeac   : > { %5893 = vmatpush3.bf16.msra.mxu1 %v6441_v35 }
 0xead   : > { %5915 = vmatpush3.bf16.msra.mxu0 %v6442_v54  ;;  %5922 = vmatprep.subr.bf16.mxu1 %v6443_v22 }
 0xeaf   : > { %5581 = vmatmul.mubr.msk.bf16.vlgmr.msra.gmra.mxu1 %vm7443_vm4, %v5580_v63  ;;  %v6454_v63 = vld [vmem:[%s8187_s12 + $0x410] sm:$0xff]  }
 0xeb0   : > { %5635 = vmatmul.mubr.msk.bf16.vlgmr.msra.gmra.mxu0 %vm7448_vm12, %v5634_v3  ;;  %5923 = vmatpush3.bf16.msra.mxu1 %v6444_v14  ;;  %v6457_v3 = vld [vmem:[%s8187_s12 + $0x440] sm:$0xff]  }
 0xeb1   : > { %5686 = vmatprep.mubr.msk.bf16.mxu1 %vm7510_vm0, %v5685_v61  ;;  %5924 = vmatprep.subr.bf16.mxu1 %v6445_v24  ;;  %v6453_v61 = vld [vmem:[%s8187_s12 + $0x450] sm:$0xff]  }
 0xeb4   : > { %5925 = vmatpush3.bf16.msra.mxu1 %v6446_v26 }
 0xeb5   : > { %5926 = vmatprep.subr.bf16.mxu1 %v6447_v9 }
 0xeb8   : > { %5927 = vmatpush3.bf16.msra.mxu1 %v6448_v11 }
 0xeb9   : > { %5928 = vmatprep.subr.bf16.mxu1 %v6449_v10 }
 0xebc   : > { %5929 = vmatpush3.bf16.msra.mxu1 %v6450_v59 }
 0xebd   : > { %5930 = vmatprep.subr.bf16.mxu1 %v6451_v60 }
 0xec0   : > { %5931 = vmatpush3.bf16.msra.mxu1 %v6452_v57 }
 0xec1   : > { %5932 = vmatprep.subr.bf16.mxu1 %v6453_v61 }
 0xec4   : > { %5933 = vmatpush3.bf16.msra.mxu1 %v6454_v63 }
 0xec5   : > { %5934 = vmatprep.subr.bf16.mxu1 %v6455_v0 }
 0xec8   : > { %5935 = vmatpush3.bf16.msra.mxu1 %v6456_v19 }
 0xec9   : > { %5936 = vmatprep.subr.bf16.mxu1 %v6457_v3 }
 0xecc   : > { %5937 = vmatpush3.bf16.msra.mxu1 %v6458_v21 }
 0xecf   : > { %5689 = vmatmul.mubr.msk.bf16.vlgmr.msra.gmra.mxu1 %vm7510_vm0, %v5688_v62 }
 0xf0f   : > { %v5762_v32 = vpop.f32.mrf.mxu1  ;;  %v5784_v2 = vpop.f32.mrf.mxu0 }
 0xf11   : > { %v5763_v36 = vpop.f32.mrf.mxu1  ;;  %v5785_v50 = vpop.f32.mrf.mxu0 }
 0xf12   : > { %v5764_v62 = vadd.f32 %v5763_v36, %v5762_v32  ;;  %v5786_v33 = vadd.f32 %v5785_v50, %v5784_v2 }
 0xf13   : > { %v5765_v41 = vpop.f32.mrf.mxu1  ;;  %v5787_v56 = vpop.f32.mrf.mxu0 }
 0xf14   : > { %v3296_v53 = vadd.f32 %v5764_v62, %v5241_v55 }
 0xf15   : > { %v5766_v51 = vpop.f32.mrf.mxu1  ;;  %v5788_v4 = vpop.f32.mrf.mxu0 }
 0xf16   : > { %v5767_v47 = vadd.f32 %v5766_v51, %v5765_v41  ;;  %v3482_v16 = vadd.f32 %v5786_v33, %v3296_v53  ;;  %v5789_v43 = vadd.f32 %v5788_v4, %v5787_v56 }
 0xf18   : > { %v3297_v18 = vadd.f32 %v5767_v47, %v5241_v55 }
 0xf1a   : > { %v3483_v37 = vadd.f32 %v5789_v43, %v3297_v18  ;;  %v5691_v18 = vld [vmem:[%s8190_s15] ss:$0 sm:$0xff] }
 0xf2f   : > { %v5806_v12 = vpop.f32.mrf.mxu1  ;;  %v5828_v7 = vpop.f32.mrf.mxu0 }
 0xf31   : > { %v5807_v6 = vpop.f32.mrf.mxu1  ;;  %v5829_v13 = vpop.f32.mrf.mxu0 }
 0xf32   : > { %v5808_v34 = vadd.f32 %v5807_v6, %v5806_v12  ;;  %v5830_v38 = vadd.f32 %v5829_v13, %v5828_v7 }
 0xf33   : > { %v5809_v8 = vpop.f32.mrf.mxu1  ;;  %v5831_v1 = vpop.f32.mrf.mxu0 }
 0xf34   : > { %v3668_v45 = vadd.f32 %v5808_v34, %v3482_v16  ;;  %v5690_v34 = vld [vmem:[%s8189_s14] ss:$0 sm:$0xff] }
 0xf35   : > { %v5810_v5 = vpop.f32.mrf.mxu1  ;;  %v5832_v46 = vpop.f32.mrf.mxu0 }
 0xf36   : > { %v5811_v48 = vadd.f32 %v5810_v5, %v5809_v8  ;;  %v3854_v20 = vadd.f32 %v5830_v38, %v3668_v45  ;;  %v5833_v35 = vadd.f32 %v5832_v46, %v5831_v1 }
 0xf38   : > { %v3669_v52 = vadd.f32 %v5811_v48, %v3483_v37 }
 0xf3a   : > { %v3855_v24 = vadd.f32 %v5833_v35, %v3669_v52 }
 0xf4f   : > { %v5850_v44 = vpop.f32.mrf.mxu1 }
 0xf50   : > { %v5872_v27 = vpop.f32.mrf.mxu0 }
 0xf51   : > { %v5851_v58 = vpop.f32.mrf.mxu1 }
 0xf52   : > { %v5873_v30 = vpop.f32.mrf.mxu0  ;;  %v5852_v49 = vadd.f32 %v5851_v58, %v5850_v44 }
 0xf53   : > { %v5853_v29 = vpop.f32.mrf.mxu1  ;;  %v5874_v26 = vadd.f32 %v5873_v30, %v5872_v27 }
 0xf54   : > { %v5875_v39 = vpop.f32.mrf.mxu0  ;;  %v4032_v54 = vadd.f32 %v5852_v49, %v3854_v20 }
 0xf55   : > { %v5854_v23 = vpop.f32.mrf.mxu1 }
 0xf56   : > { %v5876_v31 = vpop.f32.mrf.mxu0  ;;  %v5855_v22 = vadd.f32 %v5854_v23, %v5853_v29  ;;  %v4218_v10 = vadd.f32 %v5874_v26, %v4032_v54 }
 0xf57   : > { %v5877_v57 = vadd.f32 %v5876_v31, %v5875_v39 }
 0xf58   : > { %v4033_v59 = vadd.f32 %v5855_v22, %v3855_v24 }
 0xf5a   : > { %v4219_v19 = vadd.f32 %v5877_v57, %v4033_v59 }
 0xf6f   : > { %v5894_v42 = vpop.f32.mrf.mxu1 }
 0xf70   : > { %v5916_v28 = vpop.f32.mrf.mxu0 }
 0xf71   : > { %v5895_v40 = vpop.f32.mrf.mxu1 }
 0xf72   : > { %v5917_v14 = vpop.f32.mrf.mxu0  ;;  %v5896_v9 = vadd.f32 %v5895_v40, %v5894_v42 }
 0xf73   : > { %v5897_v25 = vpop.f32.mrf.mxu1  ;;  %v5918_v3 = vadd.f32 %v5917_v14, %v5916_v28 }
 0xf74   : > { %v5919_v60 = vpop.f32.mrf.mxu0  ;;  %v4404_v61 = vadd.f32 %v5896_v9, %v4218_v10 }
 0xf75   : > { %v5898_v11 = vpop.f32.mrf.mxu1 }
 0xf76   : > { %v5899_v63 = vadd.f32 %v5898_v11, %v5897_v25  ;;  %v5920_v21 = vpop.f32.mrf.mxu0  ;;  %v4590_v36 = vadd.f32 %v5918_v3, %v4404_v61 }
 0xf77   : > { %v5921_v51 = vadd.f32 %v5920_v21, %v5919_v60 }
 0xf78   : > { %v4405_v2 = vadd.f32 %v5899_v63, %v4219_v19 }
 0xf7a   : > { %v4591_v4 = vadd.f32 %v5921_v51, %v4405_v2 }
 0xf8f   : > { %v5938_v0 = vpop.f32.mrf.mxu1 }
 0xf91   : > { %v5939_v32 = vpop.f32.mrf.mxu1 }
 0xf92   : > { %v5940_v41 = vadd.f32 %v5939_v32, %v5938_v0 }
 0xf93   : > { %v5941_v50 = vpop.f32.mrf.mxu1 }
 0xf94   : > { %v4768_v56 = vadd.f32 %v5940_v41, %v4590_v36 }
 0xf95   : > { %v5942_v12 = vpop.f32.mrf.mxu1 }
 0xf96   : > { %v5943_v6 = vadd.f32 %v5942_v12, %v5941_v50  ;;  %v4770_v7 = vadd.f32 %v4768_v56, %v6891_v15 }
 0xf98   : > { %v4769_v8 = vadd.f32 %v5943_v6, %v4591_v4  ;;  %4772 = vadd.xlane.f32.xlu1 %v4770_v7 }
 0xf9a   : > { %v4771_v13 = vadd.f32 %v4769_v8, %v6894_v17 }
 0xf9c   : > { %4774 = vadd.xlane.f32.xlu1 %v4771_v13 }
0x1021   : > { %v4773_v5 = vpop.xlane.xlu1 %4772 }
0x1022   : > { %v4776_v1 = vmul.f32 0.0078125, %v4773_v5 }
0x1024   : > { %v4778_v44 = vsub.f32 %v4770_v7, %v4776_v1 }
0x1025   : > { %v4775_v46 = vpop.xlane.xlu1 %4774 }
0x1026   : > { %v4777_v58 = vmul.f32 0.0078125, %v4775_v46  ;;  %v4780_v27 = vmul.f32 %v4778_v44, %v4778_v44 }
0x1028   : > { %v4779_v62 = vsub.f32 %v4771_v13, %v4777_v58  ;;  %4782 = vadd.xlane.f32.xlu0 %v4780_v27 }
0x102a   : > { %v4781_v55 = vmul.f32 %v4779_v62, %v4779_v62 }
0x102c   : > { %4784 = vadd.xlane.f32.xlu1 %v4781_v55 }
0x10b1   : > { %v4783_v29 = vpop.xlane.xlu0 %4782 }
0x10b2   : > { %v4786_v30 = vmul.f32 0.0078125, %v4783_v29 }
0x10b4   : > { %v4788_v53 = vadd.f32 1e-05, %v4786_v30 }
0x10b5   : > { %v4785_v15 = vpop.xlane.xlu1 %4784 }
0x10b6   : > { %6499 = vrsqrt.f32 %v4788_v53  ;;  %v4787_v47 = vmul.f32 0.0078125, %v4785_v15 }
0x10b8   : > { %v4789_v23 = vadd.f32 1e-05, %v4787_v47 }
0x10ba   : > { %6501 = vrsqrt.f32 %v4789_v23 }
0x10c3   : > { %v6500_v17 = vpop.eup %6499 }
0x10c4   : > { %v4792_v33 = vmul.f32 %v6500_v17, %v4778_v44 }
0x10c6   : > { %v4801_v42 = vmul.f32 %v5690_v34, %v4792_v33 }
0x10c7   : > { %v6502_v39 = vpop.eup %6501 }
0x10c8   : > { %v4793_v16 = vmul.f32 %v6502_v39, %v4779_v62  ;;  %v4810_v45 = vadd.f32 %v5691_v18, %v4801_v42 }
0x10ca   : > { %v4802_v43 = vmul.f32 %v5690_v34, %v4793_v16 }
0x10cc   : > { %v4811_v48 = vadd.f32 %v5691_v18, %v4802_v43 }
0x10ce   : > { %v5707_v31 = vpack.c.bf16 %v4811_v48, %v4810_v45 }
0x10d0   : > { %5708 = vst [vmem:[%s535_s24] sm:$0xff] %v5707_v31  }
0x10d1 PF: > { %s26_s21 = sadd.s32 1, %s6509_s21  }
0x10d2   : > { %p23_p4 = scmp.ge.s32.totalorder %s26_s21, 4  }
0x10d4   :  { %25 = sbr.rel (!%p23_p4) target bundleno = 2 (0x2), region = 133 }

</bundles_post_ra>
